<compile_context>
chip_gen: v7x
topology: tpu7x:2x2x1
jax: 0.10.0
libtpu: 0.0.40
codegen_flags: <defaults>
</compile_context>

<pallas_src>
import functools
import math

import jax
import jax.numpy as jnp
from jax.experimental import pallas as pl
from jax.experimental.pallas import tpu as pltpu


# ----------------------------------------------------------------------------
# small helpers
# ----------------------------------------------------------------------------

def _cdiv(a, b):
    return -(-a // b)


def _round_up(a, b):
    return _cdiv(a, b) * b


_TM_CAP = None
_VMEM_LIMIT = None


def _budgets():
    """TPU-generation-adaptive row-tile cap and VMEM limit (conservative fallback)."""
    global _TM_CAP, _VMEM_LIMIT
    if _TM_CAP is None:
        vmem_cap = 64 * 1024 * 1024  # conservative (v7x per-TC VMEM)
        try:
            fn = getattr(pltpu, "get_tpu_info", None)
            if fn is not None:
                info = fn()
                for name in ("vmem_capacity_bytes", "vmem_size_bytes", "vmem_bytes"):
                    v = getattr(info, name, None)
                    if v:
                        vmem_cap = int(v)
                        break
        except Exception:
            pass
        if vmem_cap >= 100 * 1024 * 1024:        # v5e / v6e (128 MiB VMEM)
            _TM_CAP, _VMEM_LIMIT = 1024, 96 * 1024 * 1024
        else:                                    # v7x (64 MiB VMEM)
            _TM_CAP, _VMEM_LIMIT = 512, 48 * 1024 * 1024
    return _TM_CAP, _VMEM_LIMIT


def _choose_tm(M, K):
    """Row tile for the matmul kernel: big (amortize per-step overhead), multiple
    of 8, split into an even number of >=2 grid steps when there is enough work
    so both v7x TensorCores stay busy."""
    tm_cap, _ = _budgets()
    cap = tm_cap if K <= 1280 else max(256, tm_cap // 2)
    m8 = _round_up(max(M, 1), 8)
    if m8 <= cap:
        if M >= 256:
            return max(8, _round_up(_cdiv(M, 2), 8))
        return max(8, m8)
    steps = _cdiv(m8, cap)
    if steps % 2:
        steps += 1
    return max(8, _round_up(_cdiv(M, steps), 8))


def _choose_th(h, w, n):
    """Output-row tile for the 3x3 stride-1 conv kernel.  TH divides H; the
    per-tap matmul has M = TH*(W+2) rows.  Force >=2 grid steps when possible."""
    cap = min(h, 32, max(8, 4096 // (w + 2)))
    best = 1
    for cand in range(1, cap + 1):
        if h % cand == 0:
            best = cand
    if n * (h // best) < 2 and h % 2 == 0:
        best = max(1, h // 2)
    return best


# ----------------------------------------------------------------------------
# ConvParams: arrays are pytree children, (k, stride, pad) are static aux data
# ----------------------------------------------------------------------------

@jax.tree_util.register_pytree_node_class
class ConvParams:
    def __init__(self, w, bias, k, s, p):
        self.w = w          # (k*k*Cin, Cout) bf16, BN scale folded in
        self.bias = bias    # (Cout,) f32 folded BN bias (+ conv bias)
        self.k = k
        self.s = s
        self.p = p

    def tree_flatten(self):
        return (self.w, self.bias), (self.k, self.s, self.p)

    @classmethod
    def tree_unflatten(cls, aux, children):
        return cls(children[0], children[1], *aux)


# ----------------------------------------------------------------------------
# Pallas kernel 1: fused matmul + bias + (residual) + ReLU   (1x1 and s2 convs)
# ----------------------------------------------------------------------------

def _mm_bias_act_kernel(x_ref, w_ref, b_ref, o_ref, *, relu):
    acc = jnp.dot(x_ref[...], w_ref[...], preferred_element_type=jnp.float32)
    out = acc + b_ref[...]
    if relu:
        out = jnp.maximum(out, 0.0)
    o_ref[...] = out.astype(o_ref.dtype)


def _mm_bias_res_act_kernel(x_ref, w_ref, b_ref, r_ref, o_ref, *, relu):
    acc = jnp.dot(x_ref[...], w_ref[...], preferred_element_type=jnp.float32)
    out = acc + b_ref[...] + r_ref[...].astype(jnp.float32)
    if relu:
        out = jnp.maximum(out, 0.0)
    o_ref[...] = out.astype(o_ref.dtype)


def fused_matmul_bias_act(x, w, bias, residual, *, relu, out_dtype):
    """out = maybe_relu(x @ w + bias (+ residual)); x:(M,K), w:(K,N), bias:(N,)."""
    M, K = x.shape
    _, N = w.shape
    TM = _choose_tm(M, K)
    grid = (_cdiv(M, TM),)
    _, vmem_limit = _budgets()

    x = x.astype(jnp.bfloat16)
    w = w.astype(jnp.bfloat16)
    bias2d = bias.reshape(1, N).astype(jnp.float32)

    in_specs = [
        pl.BlockSpec((TM, K), lambda i: (i, 0)),
        pl.BlockSpec((K, N), lambda i: (0, 0)),
        pl.BlockSpec((1, N), lambda i: (0, 0)),
    ]
    args = [x, w, bias2d]
    if residual is None:
        kernel = functools.partial(_mm_bias_act_kernel, relu=relu)
    else:
        kernel = functools.partial(_mm_bias_res_act_kernel, relu=relu)
        in_specs.append(pl.BlockSpec((TM, N), lambda i: (i, 0)))
        args.append(residual.astype(jnp.bfloat16))

    return pl.pallas_call(
        kernel,
        out_shape=jax.ShapeDtypeStruct((M, N), out_dtype),
        grid=grid,
        in_specs=in_specs,
        out_specs=pl.BlockSpec((TM, N), lambda i: (i, 0)),
        compiler_params=pltpu.CompilerParams(
            dimension_semantics=("parallel",),
            vmem_limit_bytes=vmem_limit,
        ),
    )(*args)


# ----------------------------------------------------------------------------
# Pallas kernel 2: 3x3 stride-1 conv, in-kernel 9-tap accumulation (no im2col)
# ----------------------------------------------------------------------------

def _conv3x3_compute(x_ref, w_ref, b_ref, r_ref, o_ref, relu, wp, m):
    # x_ref: ((TH+3)*(W+2), Cin) bf16 halo tile, flattened (row-major over H,W).
    # w_ref: (9, Cin, Cout) bf16, tap-major.  b_ref: (1, Cout) f32.
    # o_ref / r_ref: (TH*(W+2), Cout); the 2 pad columns per row are junk and
    # get sliced away in XLA after the call.
    # Widen the tile to f32 once so the nine sublane-offset tap slices are plain
    # 32-bit shifts; each slice is cast back to bf16 right before the MXU.
    xall = x_ref[...].astype(jnp.float32)
    acc = None
    for di in range(3):
        for dj in range(3):
            off = di * wp + dj
            lhs = xall[off:off + m, :].astype(jnp.bfloat16)
            part = jnp.dot(lhs, w_ref[di * 3 + dj],
                           preferred_element_type=jnp.float32)
            acc = part if acc is None else acc + part
    out = acc + b_ref[...]
    if r_ref is not None:
        out = out + r_ref[...].astype(jnp.float32)
    if relu:
        out = jnp.maximum(out, 0.0)
    o_ref[...] = out.astype(o_ref.dtype)


def _conv3x3_kernel(x_ref, w_ref, b_ref, o_ref, *, relu, wp, m):
    _conv3x3_compute(x_ref, w_ref, b_ref, None, o_ref, relu, wp, m)


def _conv3x3_res_kernel(x_ref, w_ref, b_ref, r_ref, o_ref, *, relu, wp, m):
    _conv3x3_compute(x_ref, w_ref, b_ref, r_ref, o_ref, relu, wp, m)


def _conv3x3_s1(x, cp, relu, residual, out_dtype):
    """3x3, stride 1, pad 1 conv + folded BN (+ residual) (+ ReLU) via Pallas."""
    n, h, wid, cin = x.shape
    cout = cp.w.shape[1]
    x = x.astype(jnp.bfloat16)
    # pad: 1 top / 2 bottom / 1 left / 1 right (the extra bottom row only feeds
    # the discarded junk columns of the last tile).
    xp = jnp.pad(x, ((0, 0), (1, 2), (1, 1), (0, 0)))

    th = _choose_th(h, wid, n)
    t = h // th
    wp = wid + 2
    rows_in = (th + 3) * wp
    m = th * wp

    if t == 1:
        xt = xp
    else:
        xt = jnp.stack([xp[:, k * th:k * th + th + 3] for k in range(t)], axis=1)
        xt = xt.reshape(n * t, th + 3, wp, cin)
    x2 = xt.reshape(n * t, rows_in, cin)

    w3 = cp.w.reshape(9, cin, cout)                       # bf16
    b2 = cp.bias.reshape(1, cout).astype(jnp.float32)
    _, vmem_limit = _budgets()

    in_specs = [
        pl.BlockSpec((None, rows_in, cin), lambda i: (i, 0, 0)),
        pl.BlockSpec((9, cin, cout), lambda i: (0, 0, 0)),
        pl.BlockSpec((1, cout), lambda i: (0, 0)),
    ]
    args = [x2, w3, b2]
    if residual is None:
        kernel = functools.partial(_conv3x3_kernel, relu=relu, wp=wp, m=m)
    else:
        kernel = functools.partial(_conv3x3_res_kernel, relu=relu, wp=wp, m=m)
        resp = jnp.pad(residual.astype(jnp.bfloat16), ((0, 0), (0, 0), (0, 2), (0, 0)))
        resp = resp.reshape(n * t, m, cout)
        in_specs.append(pl.BlockSpec((None, m, cout), lambda i: (i, 0, 0)))
        args.append(resp)

    out = pl.pallas_call(
        kernel,
        out_shape=jax.ShapeDtypeStruct((n * t, m, cout), out_dtype),
        grid=(n * t,),
        in_specs=in_specs,
        out_specs=pl.BlockSpec((None, m, cout), lambda i: (i, 0, 0)),
        compiler_params=pltpu.CompilerParams(
            dimension_semantics=("parallel",),
            vmem_limit_bytes=vmem_limit,
        ),
    )(*args)

    # strip the two junk columns per output row and restore NHWC
    out = out.reshape(n, t, th, wp, cout)[:, :, :, :wid, :].reshape(n, h, wid, cout)
    return out


# ----------------------------------------------------------------------------
# im2col path (1x1 convs, stride-2 3x3 convs, stem)
# ----------------------------------------------------------------------------

def _im2col(x, k, stride, pad):
    n, h, w, c = x.shape
    if k == 1 and stride == 1 and pad == 0:
        return x.reshape(n * h * w, c), (n, h, w)
    if pad > 0:
        x = jnp.pad(x, ((0, 0), (pad, pad), (pad, pad), (0, 0)))
    ho = (h + 2 * pad - k) // stride + 1
    wo = (w + 2 * pad - k) // stride + 1
    cols = []
    for di in range(k):
        for dj in range(k):
            cols.append(x[:, di:di + stride * (ho - 1) + 1:stride,
                          dj:dj + stride * (wo - 1) + 1:stride, :])
    patches = jnp.concatenate(cols, axis=-1) if len(cols) > 1 else cols[0]
    return patches.reshape(n * ho * wo, k * k * c), (n, ho, wo)


def _conv_im2col(x, cp, relu, residual, out_dtype):
    patches, (n, ho, wo) = _im2col(x.astype(jnp.bfloat16), cp.k, cp.s, cp.p)
    res2d = None if residual is None else residual.reshape(n * ho * wo, -1)
    out = fused_matmul_bias_act(patches, cp.w, cp.bias, res2d,
                                relu=relu, out_dtype=out_dtype)
    return out.reshape(n, ho, wo, cp.w.shape[1])


def apply_convbn(x, cp, relu, residual=None, out_dtype=jnp.bfloat16):
    if cp.k == 3 and cp.s == 1 and cp.p == 1:
        return _conv3x3_s1(x, cp, relu, residual, out_dtype)
    return _conv_im2col(x, cp, relu, residual, out_dtype)


# ----------------------------------------------------------------------------
# Bilinear resize (F.interpolate, align_corners=False), NHWC — XLA gather/lerp
# ----------------------------------------------------------------------------

def bilinear_resize(x, out_h, out_w):
    if (x.shape[1], x.shape[2]) == (out_h, out_w):
        return x
    n, h, w, c = x.shape
    xf = x.astype(jnp.float32)

    def idx(out_size, in_size):
        scale = in_size / out_size
        src = (jnp.arange(out_size, dtype=jnp.float32) + 0.5) * scale - 0.5
        src = jnp.maximum(src, 0.0)
        i0 = jnp.minimum(jnp.floor(src).astype(jnp.int32), in_size - 1)
        i1 = jnp.minimum(i0 + 1, in_size - 1)
        frac = src - i0.astype(jnp.float32)
        return i0, i1, frac

    y0, y1, fy = idx(out_h, h)
    x0, x1, fx = idx(out_w, w)
    top = xf[:, y0, :, :]
    bot = xf[:, y1, :, :]
    fy = fy[None, :, None, None]
    rows = top * (1.0 - fy) + bot * fy
    left = rows[:, :, x0, :]
    right = rows[:, :, x1, :]
    fx = fx[None, None, :, None]
    out = left * (1.0 - fx) + right * fx
    return out.astype(x.dtype)


# ----------------------------------------------------------------------------
# Deterministic synthetic parameters (eval-mode BN folded into weights/bias)
# ----------------------------------------------------------------------------

class PGen:
    def __init__(self, seed):
        self.key = jax.random.PRNGKey(seed)
        self.i = 0

    def next(self):
        self.i += 1
        return jax.random.fold_in(self.key, self.i)


def convbn(g, cin, cout, k, s, p, conv_bias=False, bn=True):
    fan_in = k * k * cin
    w = jax.random.normal(g.next(), (fan_in, cout), jnp.float32) * math.sqrt(2.0 / fan_in)
    eps = 1e-5
    if bn:
        gamma = jnp.ones((cout,), jnp.float32)
        beta = jnp.zeros((cout,), jnp.float32)
        mean = jnp.zeros((cout,), jnp.float32)
        var = jnp.ones((cout,), jnp.float32)
        scale = gamma / jnp.sqrt(var + eps)
        bias = beta - mean * scale
    else:
        scale = jnp.ones((cout,), jnp.float32)
        bias = jnp.zeros((cout,), jnp.float32)
    if conv_bias:
        b = jax.random.normal(g.next(), (cout,), jnp.float32) * 0.01
        bias = bias + b * scale
    w_folded = (w * scale[None, :]).astype(jnp.bfloat16)
    return ConvParams(w_folded, bias, k, s, p)


def _pad_conv_1x1(cp, k_pad, n_pad):
    """Zero-pad a 1x1 conv's K/N dims to lane-friendly sizes (outputs sliced later)."""
    kk, nn = cp.w.shape
    w = jnp.zeros((k_pad, n_pad), cp.w.dtype).at[:kk, :nn].set(cp.w)
    b = jnp.zeros((n_pad,), cp.bias.dtype).at[:nn].set(cp.bias)
    return ConvParams(w, b, cp.k, cp.s, cp.p)


def make_bottleneck(g, cin, planes, downsample):
    return {
        "c1": convbn(g, cin, planes, 1, 1, 0),
        "c2": convbn(g, planes, planes, 3, 1, 1),
        "c3": convbn(g, planes, planes * 4, 1, 1, 0),
        "down": convbn(g, cin, planes * 4, 1, 1, 0) if downsample else None,
    }


def make_basic(g, cin, cout):
    return {
        "c1": convbn(g, cin, cout, 3, 1, 1),
        "c2": convbn(g, cout, cout, 3, 1, 1),
        "down": None,
    }


def make_hr_module(g, channels):
    nb = len(channels)
    branches = [[make_basic(g, c, c) for _ in range(4)] for c in channels]
    fuse = []
    for i in range(nb):
        row = []
        for j in range(nb):
            if j > i:
                row.append(convbn(g, channels[j], channels[i], 1, 1, 0))   # up: 1x1
            elif j == i:
                row.append(None)
            else:
                convs = []
                for k in range(i - j):
                    cout = channels[i] if k == i - j - 1 else channels[j]
                    convs.append(convbn(g, channels[j], cout, 3, 2, 1))    # down: 3x3 s2
                row.append(convs)
        fuse.append(row)
    return {"branches": branches, "fuse": fuse}


def build_params(seed=0, num_classes=19):
    g = PGen(seed)
    front = {
        "stem1": convbn(g, 3, 64, 3, 2, 1),
        "stem2": convbn(g, 64, 64, 3, 2, 1),
    }
    layer1 = [make_bottleneck(g, 64, 64, downsample=True)]
    for _ in range(3):
        layer1.append(make_bottleneck(g, 256, 64, downsample=False))
    front["layer1"] = layer1
    front["trans1"] = [
        [convbn(g, 256, 48, 3, 1, 1)],
        [convbn(g, 256, 96, 3, 2, 1)],
    ]

    P = {"front": front}
    P["stage2"] = [make_hr_module(g, [48, 96])]
    P["trans2"] = [convbn(g, 96, 192, 3, 2, 1)]
    P["stage3"] = [make_hr_module(g, [48, 96, 192]) for _ in range(4)]
    P["trans3"] = [convbn(g, 192, 384, 3, 2, 1)]
    P["stage4"] = [make_hr_module(g, [48, 96, 192, 384]) for _ in range(3)]

    last_c = 48 + 96 + 192 + 384  # 720
    last1 = convbn(g, last_c, last_c, 1, 1, 0, conv_bias=True, bn=True)
    last2 = convbn(g, last_c, num_classes, 1, 1, 0, conv_bias=True, bn=False)
    # lane-dense head: pad 720 -> 768 and 19 -> 128 (zero rows/cols, sliced later)
    P["last1"] = _pad_conv_1x1(last1, _round_up(last_c, 128), _round_up(last_c, 128))
    P["last2"] = _pad_conv_1x1(last2, _round_up(last_c, 128), _round_up(num_classes, 128))
    return P


# ----------------------------------------------------------------------------
# Forward pass (mirrors HighResolutionNet.forward)
# ----------------------------------------------------------------------------

def apply_basic(x, blk):
    out = apply_convbn(x, blk["c1"], relu=True)
    res = x if blk["down"] is None else apply_convbn(x, blk["down"], relu=False)
    return apply_convbn(out, blk["c2"], relu=True, residual=res)   # fused add+ReLU


def apply_bottleneck(x, blk):
    res = x if blk["down"] is None else apply_convbn(x, blk["down"], relu=False)
    out = apply_convbn(x, blk["c1"], relu=True)
    out = apply_convbn(out, blk["c2"], relu=True)
    return apply_convbn(out, blk["c3"], relu=True, residual=res)   # fused add+ReLU


def apply_fuse(x, entry, target_hw):
    if isinstance(entry, list):                       # downsample chain (3x3 s2)
        y = x
        nconv = len(entry)
        for idx, c in enumerate(entry):
            y = apply_convbn(y, c, relu=(idx != nconv - 1))
        return y
    y = apply_convbn(x, entry, relu=False)            # upsample: 1x1 + bilinear
    return bilinear_resize(y, target_hw[0], target_hw[1])


def apply_hr_module(xs, mod):
    nb = len(xs)
    xs = list(xs)
    for i in range(nb):
        for blk in mod["branches"][i]:
            xs[i] = apply_basic(xs[i], blk)
    outs = []
    for i in range(nb):
        fl = mod["fuse"][i]
        target = (xs[i].shape[1], xs[i].shape[2])
        y = (xs[0] if fl[0] is None else apply_fuse(xs[0], fl[0], target)).astype(jnp.float32)
        for j in range(1, nb):
            if j == i:
                y = y + xs[j].astype(jnp.float32)
            else:
                y = y + apply_fuse(xs[j], fl[j], target).astype(jnp.float32)
        outs.append(jnp.maximum(y, 0.0).astype(jnp.bfloat16))
    return outs


@jax.jit
def _front(Pf, x_nchw):
    x = jnp.transpose(x_nchw, (0, 2, 3, 1)).astype(jnp.bfloat16)   # -> NHWC bf16
    x = apply_convbn(x, Pf["stem1"], relu=True)
    x = apply_convbn(x, Pf["stem2"], relu=True)
    for blk in Pf["layer1"]:
        x = apply_bottleneck(x, blk)
    outs = []
    for chain in Pf["trans1"]:
        y = x
        for c in chain:
            y = apply_convbn(y, c, relu=True)
        outs.append(y)
    return tuple(outs)


@jax.jit
def _conv_chain_relu(convs, x):
    for c in convs:
        x = apply_convbn(x, c, relu=True)
    return x


_module_jit = jax.jit(apply_hr_module)


@functools.partial(jax.jit, static_argnames=("num_classes",))
def _head(last1, last2, ys, num_classes):
    x0 = ys[0]
    h0, w0 = x0.shape[1], x0.shape[2]
    ups = [x0] + [bilinear_resize(ys[i], h0, w0) for i in range(1, 4)]
    xc = jnp.concatenate(ups, axis=-1)                         # (N, h0, w0, 720) bf16
    cpad = last1.w.shape[0] - xc.shape[-1]
    if cpad > 0:                                               # 720 -> 768 (lane dense)
        xc = jnp.pad(xc, ((0, 0), (0, 0), (0, 0), (0, cpad)))
    xh = apply_convbn(xc, last1, relu=True)
    out = apply_convbn(xh, last2, relu=False, out_dtype=jnp.float32)
    out = out[..., :num_classes]                               # drop padded classes
    out = bilinear_resize(out, h0 * 4, w0 * 4)
    return jnp.transpose(out, (0, 3, 1, 2))                    # NCHW f32


def hrnet_forward(P, x_nchw, num_classes=19):
    y = list(_front(P["front"], x_nchw))
    for mod in P["stage2"]:
        y = list(_module_jit(y, mod))
    y.append(_conv_chain_relu(P["trans2"], y[-1]))
    for mod in P["stage3"]:
        y = list(_module_jit(y, mod))
    y.append(_conv_chain_relu(P["trans3"], y[-1]))
    for mod in P["stage4"]:
        y = list(_module_jit(y, mod))
    return _head(P["last1"], P["last2"], tuple(y), num_classes=num_classes)


# ----------------------------------------------------------------------------
# Main
# ----------------------------------------------------------------------------

if __name__ == "__main__":
    num_classes = 19
    params = build_params(seed=0, num_classes=num_classes)

    # Small input consistent with the module: H, W divisible by 32
    # (two stride-2 stem convs + 3 further downsampling branches).
    key = jax.random.PRNGKey(0)
    x = jax.random.normal(key, (1, 3, 64, 64), jnp.float32)   # NCHW like PyTorch

    out = hrnet_forward(params, x, num_classes=num_classes)
    out = jax.block_until_ready(out)

    expected = (1, num_classes, 64, 64)
    assert out.shape == expected, f"got {out.shape}, expected {expected}"
    assert bool(jnp.all(jnp.isfinite(out))), "non-finite output"
    print("KERNEL_OK")
</pallas_src>

<mosaic_0001>
module attributes {stable_mosaic.version = 11 : i64} {
  func.func @_mm_bias_act_kernel(%arg0: i32, %arg1: memref<512x27xbf16, #tpu.memory_space<vmem>>, %arg2: memref<27x64xbf16, #tpu.memory_space<vmem>>, %arg3: memref<1x64xf32, #tpu.memory_space<vmem>>, %arg4: memref<512x64xbf16, #tpu.memory_space<vmem>>) attributes {dimension_semantics = [#tpu.dimension_semantics<parallel>], iteration_bounds = array<i64: 2>, scalar_prefetch = 0 : i64, scratch_operands = 0 : i64, tpu.core_type = #tpu.core_type<tc>, window_params = [{transform_indices = @transform_0, window_bounds = array<i64: 512, 27>}, {pipeline_mode = #tpu.pipeline_mode<synchronous>, transform_indices = @transform_1, window_bounds = array<i64: 27, 64>}, {pipeline_mode = #tpu.pipeline_mode<synchronous>, transform_indices = @transform_2, window_bounds = array<i64: 1, 64>}, {transform_indices = @transform_3, window_bounds = array<i64: 512, 64>}]} {
    %c0 = arith.constant 0 : index
    %c0_0 = arith.constant 0 : index
    %0 = vector.load %arg1[%c0, %c0_0] : memref<512x27xbf16, #tpu.memory_space<vmem>>, vector<512x27xbf16>
    %c0_1 = arith.constant 0 : index
    %c0_2 = arith.constant 0 : index
    %1 = vector.load %arg2[%c0_1, %c0_2] : memref<27x64xbf16, #tpu.memory_space<vmem>>, vector<27x64xbf16>
    %cst = arith.constant dense<0.000000e+00> : vector<512x64xf32>
    %2 = tpu.matmul %0, %1, %cst {dimension_numbers = #tpu.dot_dimension_numbers<[1], [0], [0], [1], [0, 0, 1, 1], [], []>} : vector<512x27xbf16>, vector<27x64xbf16>, vector<512x64xf32> -> vector<512x64xf32>
    %c0_3 = arith.constant 0 : index
    %c0_4 = arith.constant 0 : index
    %3 = vector.load %arg3[%c0_3, %c0_4] : memref<1x64xf32, #tpu.memory_space<vmem>>, vector<1x64xf32>
    %4 = vector.broadcast %3 : vector<1x64xf32> to vector<512x64xf32>
    %5 = arith.addf %2, %4 : vector<512x64xf32>
    %cst_5 = arith.constant 0.000000e+00 : f32
    %6 = vector.broadcast %cst_5 : f32 to vector<512x64xf32>
    %7 = arith.maximumf %5, %6 : vector<512x64xf32>
    %8 = arith.truncf %7 : vector<512x64xf32> to vector<512x64xbf16>
    %c0_6 = arith.constant 0 : index
    %c0_7 = arith.constant 0 : index
    %9 = vector.load %arg4[%c0_6, %c0_7] : memref<512x64xbf16, #tpu.memory_space<vmem>>, vector<512x64xbf16>
    tpu.vector_store %arg4[%c0_6, %c0_7], %8 {strides = array<i32>} : memref<512x64xbf16, #tpu.memory_space<vmem>>, vector<512x64xbf16>,
    return
  }
  func.func @transform_0(%arg0: i32) -> (i32, i32) {
    %c0_i32 = arith.constant 0 : i32
    %c0_i32_0 = arith.constant 0 : i32
    return %arg0, %c0_i32 : i32, i32
  }
  func.func @transform_1(%arg0: i32) -> (i32, i32) {
    %c0_i32 = arith.constant 0 : i32
    %c0_i32_0 = arith.constant 0 : i32
    %c0_i32_1 = arith.constant 0 : i32
    return %c0_i32, %c0_i32_0 : i32, i32
  }
  func.func @transform_2(%arg0: i32) -> (i32, i32) {
    %c0_i32 = arith.constant 0 : i32
    %c0_i32_0 = arith.constant 0 : i32
    %c0_i32_1 = arith.constant 0 : i32
    return %c0_i32, %c0_i32_0 : i32, i32
  }
  func.func @transform_3(%arg0: i32) -> (i32, i32) {
    %c0_i32 = arith.constant 0 : i32
    %c0_i32_0 = arith.constant 0 : i32
    return %arg0, %c0_i32 : i32, i32
  }
}

module attributes {stable_mosaic.version = 11 : i64} {
  func.func @_mm_bias_act_kernel(%arg0: i32, %arg1: memref<128x576xbf16, #tpu.memory_space<vmem>>, %arg2: memref<576x64xbf16, #tpu.memory_space<vmem>>, %arg3: memref<1x64xf32, #tpu.memory_space<vmem>>, %arg4: memref<128x64xbf16, #tpu.memory_space<vmem>>) attributes {dimension_semantics = [#tpu.dimension_semantics<parallel>], iteration_bounds = array<i64: 2>, scalar_prefetch = 0 : i64, scratch_operands = 0 : i64, tpu.core_type = #tpu.core_type<tc>, window_params = [{transform_indices = @transform_0, window_bounds = array<i64: 128, 576>}, {pipeline_mode = #tpu.pipeline_mode<synchronous>, transform_indices = @transform_1, window_bounds = array<i64: 576, 64>}, {pipeline_mode = #tpu.pipeline_mode<synchronous>, transform_indices = @transform_2, window_bounds = array<i64: 1, 64>}, {transform_indices = @transform_3, window_bounds = array<i64: 128, 64>}]} {
    %c0 = arith.constant 0 : index
    %c0_0 = arith.constant 0 : index
    %0 = vector.load %arg1[%c0, %c0_0] : memref<128x576xbf16, #tpu.memory_space<vmem>>, vector<128x576xbf16>
    %c0_1 = arith.constant 0 : index
    %c0_2 = arith.constant 0 : index
    %1 = vector.load %arg2[%c0_1, %c0_2] : memref<576x64xbf16, #tpu.memory_space<vmem>>, vector<576x64xbf16>
    %cst = arith.constant dense<0.000000e+00> : vector<128x64xf32>
    %2 = tpu.matmul %0, %1, %cst {dimension_numbers = #tpu.dot_dimension_numbers<[1], [0], [0], [1], [0, 0, 1, 1], [], []>} : vector<128x576xbf16>, vector<576x64xbf16>, vector<128x64xf32> -> vector<128x64xf32>
    %c0_3 = arith.constant 0 : index
    %c0_4 = arith.constant 0 : index
    %3 = vector.load %arg3[%c0_3, %c0_4] : memref<1x64xf32, #tpu.memory_space<vmem>>, vector<1x64xf32>
    %4 = vector.broadcast %3 : vector<1x64xf32> to vector<128x64xf32>
    %5 = arith.addf %2, %4 : vector<128x64xf32>
    %cst_5 = arith.constant 0.000000e+00 : f32
    %6 = vector.broadcast %cst_5 : f32 to vector<128x64xf32>
    %7 = arith.maximumf %5, %6 : vector<128x64xf32>
    %8 = arith.truncf %7 : vector<128x64xf32> to vector<128x64xbf16>
    %c0_6 = arith.constant 0 : index
    %c0_7 = arith.constant 0 : index
    %9 = vector.load %arg4[%c0_6, %c0_7] : memref<128x64xbf16, #tpu.memory_space<vmem>>, vector<128x64xbf16>
    tpu.vector_store %arg4[%c0_6, %c0_7], %8 {strides = array<i32>} : memref<128x64xbf16, #tpu.memory_space<vmem>>, vector<128x64xbf16>,
    return
  }
  func.func @transform_0(%arg0: i32) -> (i32, i32) {
    %c0_i32 = arith.constant 0 : i32
    %c0_i32_0 = arith.constant 0 : i32
    return %arg0, %c0_i32 : i32, i32
  }
  func.func @transform_1(%arg0: i32) -> (i32, i32) {
    %c0_i32 = arith.constant 0 : i32
    %c0_i32_0 = arith.constant 0 : i32
    %c0_i32_1 = arith.constant 0 : i32
    return %c0_i32, %c0_i32_0 : i32, i32
  }
  func.func @transform_2(%arg0: i32) -> (i32, i32) {
    %c0_i32 = arith.constant 0 : i32
    %c0_i32_0 = arith.constant 0 : i32
    %c0_i32_1 = arith.constant 0 : i32
    return %c0_i32, %c0_i32_0 : i32, i32
  }
  func.func @transform_3(%arg0: i32) -> (i32, i32) {
    %c0_i32 = arith.constant 0 : i32
    %c0_i32_0 = arith.constant 0 : i32
    return %arg0, %c0_i32 : i32, i32
  }
}

module attributes {stable_mosaic.version = 11 : i64} {
  func.func @_mm_bias_act_kernel(%arg0: i32, %arg1: memref<128x64xbf16, #tpu.memory_space<vmem>>, %arg2: memref<64x64xbf16, #tpu.memory_space<vmem>>, %arg3: memref<1x64xf32, #tpu.memory_space<vmem>>, %arg4: memref<128x64xbf16, #tpu.memory_space<vmem>>) attributes {dimension_semantics = [#tpu.dimension_semantics<parallel>], iteration_bounds = array<i64: 2>, scalar_prefetch = 0 : i64, scratch_operands = 0 : i64, tpu.core_type = #tpu.core_type<tc>, window_params = [{transform_indices = @transform_0, window_bounds = array<i64: 128, 64>}, {pipeline_mode = #tpu.pipeline_mode<synchronous>, transform_indices = @transform_1, window_bounds = array<i64: 64, 64>}, {pipeline_mode = #tpu.pipeline_mode<synchronous>, transform_indices = @transform_2, window_bounds = array<i64: 1, 64>}, {transform_indices = @transform_3, window_bounds = array<i64: 128, 64>}]} {
    %c0 = arith.constant 0 : index
    %c0_0 = arith.constant 0 : index
    %0 = vector.load %arg1[%c0, %c0_0] : memref<128x64xbf16, #tpu.memory_space<vmem>>, vector<128x64xbf16>
    %c0_1 = arith.constant 0 : index
    %c0_2 = arith.constant 0 : index
    %1 = vector.load %arg2[%c0_1, %c0_2] : memref<64x64xbf16, #tpu.memory_space<vmem>>, vector<64x64xbf16>
    %cst = arith.constant dense<0.000000e+00> : vector<128x64xf32>
    %2 = tpu.matmul %0, %1, %cst {dimension_numbers = #tpu.dot_dimension_numbers<[1], [0], [0], [1], [0, 0, 1, 1], [], []>} : vector<128x64xbf16>, vector<64x64xbf16>, vector<128x64xf32> -> vector<128x64xf32>
    %c0_3 = arith.constant 0 : index
    %c0_4 = arith.constant 0 : index
    %3 = vector.load %arg3[%c0_3, %c0_4] : memref<1x64xf32, #tpu.memory_space<vmem>>, vector<1x64xf32>
    %4 = vector.broadcast %3 : vector<1x64xf32> to vector<128x64xf32>
    %5 = arith.addf %2, %4 : vector<128x64xf32>
    %cst_5 = arith.constant 0.000000e+00 : f32
    %6 = vector.broadcast %cst_5 : f32 to vector<128x64xf32>
    %7 = arith.maximumf %5, %6 : vector<128x64xf32>
    %8 = arith.truncf %7 : vector<128x64xf32> to vector<128x64xbf16>
    %c0_6 = arith.constant 0 : index
    %c0_7 = arith.constant 0 : index
    %9 = vector.load %arg4[%c0_6, %c0_7] : memref<128x64xbf16, #tpu.memory_space<vmem>>, vector<128x64xbf16>
    tpu.vector_store %arg4[%c0_6, %c0_7], %8 {strides = array<i32>} : memref<128x64xbf16, #tpu.memory_space<vmem>>, vector<128x64xbf16>,
    return
  }
  func.func @transform_0(%arg0: i32) -> (i32, i32) {
    %c0_i32 = arith.constant 0 : i32
    %c0_i32_0 = arith.constant 0 : i32
    return %arg0, %c0_i32 : i32, i32
  }
  func.func @transform_1(%arg0: i32) -> (i32, i32) {
    %c0_i32 = arith.constant 0 : i32
    %c0_i32_0 = arith.constant 0 : i32
    %c0_i32_1 = arith.constant 0 : i32
    return %c0_i32, %c0_i32_0 : i32, i32
  }
  func.func @transform_2(%arg0: i32) -> (i32, i32) {
    %c0_i32 = arith.constant 0 : i32
    %c0_i32_0 = arith.constant 0 : i32
    %c0_i32_1 = arith.constant 0 : i32
    return %c0_i32, %c0_i32_0 : i32, i32
  }
  func.func @transform_3(%arg0: i32) -> (i32, i32) {
    %c0_i32 = arith.constant 0 : i32
    %c0_i32_0 = arith.constant 0 : i32
    return %arg0, %c0_i32 : i32, i32
  }
}

module attributes {stable_mosaic.version = 11 : i64} {
  func.func @_conv3x3_kernel(%arg0: i32, %arg1: memref<1x198x64xbf16, #tpu.memory_space<vmem>>, %arg2: memref<9x64x64xbf16, #tpu.memory_space<vmem>>, %arg3: memref<1x64xf32, #tpu.memory_space<vmem>>, %arg4: memref<1x144x64xbf16, #tpu.memory_space<vmem>>) attributes {dimension_semantics = [#tpu.dimension_semantics<parallel>], iteration_bounds = array<i64: 2>, scalar_prefetch = 0 : i64, scratch_operands = 0 : i64, tpu.core_type = #tpu.core_type<tc>, window_params = [{transform_indices = @transform_0, window_bounds = array<i64: 1, 198, 64>}, {pipeline_mode = #tpu.pipeline_mode<synchronous>, transform_indices = @transform_1, window_bounds = array<i64: 9, 64, 64>}, {pipeline_mode = #tpu.pipeline_mode<synchronous>, transform_indices = @transform_2, window_bounds = array<i64: 1, 64>}, {transform_indices = @transform_3, window_bounds = array<i64: 1, 144, 64>}]} {
    %c0 = arith.constant 0 : index
    %c0_0 = arith.constant 0 : index
    %c0_1 = arith.constant 0 : index
    %0 = vector.load %arg1[%c0, %c0_0, %c0_1] : memref<1x198x64xbf16, #tpu.memory_space<vmem>>, vector<1x198x64xbf16>
    %1 = vector.shape_cast %0 : vector<1x198x64xbf16> to vector<198x64xbf16>
    %2 = arith.extf %1 : vector<198x64xbf16> to vector<198x64xf32>
    %3 = vector.extract_strided_slice %2 {offsets = [0, 0], sizes = [144, 64], strides = [1, 1]} : vector<198x64xf32> to vector<144x64xf32>
    %4 = arith.truncf %3 : vector<144x64xf32> to vector<144x64xbf16>
    %c0_2 = arith.constant 0 : index
    %c0_3 = arith.constant 0 : index
    %c0_4 = arith.constant 0 : index
    %5 = vector.load %arg2[%c0_2, %c0_3, %c0_4] : memref<9x64x64xbf16, #tpu.memory_space<vmem>>, vector<1x64x64xbf16>
    %6 = vector.shape_cast %5 : vector<1x64x64xbf16> to vector<64x64xbf16>
    %cst = arith.constant dense<0.000000e+00> : vector<144x64xf32>
    %7 = tpu.matmul %4, %6, %cst {dimension_numbers = #tpu.dot_dimension_numbers<[1], [0], [0], [1], [0, 0, 1, 1], [], []>} : vector<144x64xbf16>, vector<64x64xbf16>, vector<144x64xf32> -> vector<144x64xf32>
    %8 = vector.extract_strided_slice %2 {offsets = [1, 0], sizes = [144, 64], strides = [1, 1]} : vector<198x64xf32> to vector<144x64xf32>
    %9 = arith.truncf %8 : vector<144x64xf32> to vector<144x64xbf16>
    %c1 = arith.constant 1 : index
    %c0_5 = arith.constant 0 : index
    %c0_6 = arith.constant 0 : index
    %10 = vector.load %arg2[%c1, %c0_5, %c0_6] : memref<9x64x64xbf16, #tpu.memory_space<vmem>>, vector<1x64x64xbf16>
    %11 = vector.shape_cast %10 : vector<1x64x64xbf16> to vector<64x64xbf16>
    %cst_7 = arith.constant dense<0.000000e+00> : vector<144x64xf32>
    %12 = tpu.matmul %9, %11, %cst_7 {dimension_numbers = #tpu.dot_dimension_numbers<[1], [0], [0], [1], [0, 0, 1, 1], [], []>} : vector<144x64xbf16>, vector<64x64xbf16>, vector<144x64xf32> -> vector<144x64xf32>
    %13 = arith.addf %7, %12 : vector<144x64xf32>
    %14 = vector.extract_strided_slice %2 {offsets = [2, 0], sizes = [144, 64], strides = [1, 1]} : vector<198x64xf32> to vector<144x64xf32>
    %15 = arith.truncf %14 : vector<144x64xf32> to vector<144x64xbf16>
    %c2 = arith.constant 2 : index
    %c0_8 = arith.constant 0 : index
    %c0_9 = arith.constant 0 : index
    %16 = vector.load %arg2[%c2, %c0_8, %c0_9] : memref<9x64x64xbf16, #tpu.memory_space<vmem>>, vector<1x64x64xbf16>
    %17 = vector.shape_cast %16 : vector<1x64x64xbf16> to vector<64x64xbf16>
    %cst_10 = arith.constant dense<0.000000e+00> : vector<144x64xf32>
    %18 = tpu.matmul %15, %17, %cst_10 {dimension_numbers = #tpu.dot_dimension_numbers<[1], [0], [0], [1], [0, 0, 1, 1], [], []>} : vector<144x64xbf16>, vector<64x64xbf16>, vector<144x64xf32> -> vector<144x64xf32>
    %19 = arith.addf %13, %18 : vector<144x64xf32>
    %20 = vector.extract_strided_slice %2 {offsets = [18, 0], sizes = [144, 64], strides = [1, 1]} : vector<198x64xf32> to vector<144x64xf32>
    %21 = arith.truncf %20 : vector<144x64xf32> to vector<144x64xbf16>
    %c3 = arith.constant 3 : index
    %c0_11 = arith.constant 0 : index
    %c0_12 = arith.constant 0 : index
    %22 = vector.load %arg2[%c3, %c0_11, %c0_12] : memref<9x64x64xbf16, #tpu.memory_space<vmem>>, vector<1x64x64xbf16>
    %23 = vector.shape_cast %22 : vector<1x64x64xbf16> to vector<64x64xbf16>
    %cst_13 = arith.constant dense<0.000000e+00> : vector<144x64xf32>
    %24 = tpu.matmul %21, %23, %cst_13 {dimension_numbers = #tpu.dot_dimension_numbers<[1], [0], [0], [1], [0, 0, 1, 1], [], []>} : vector<144x64xbf16>, vector<64x64xbf16>, vector<144x64xf32> -> vector<144x64xf32>
    %25 = arith.addf %19, %24 : vector<144x64xf32>
    %26 = vector.extract_strided_slice %2 {offsets = [19, 0], sizes = [144, 64], strides = [1, 1]} : vector<198x64xf32> to vector<144x64xf32>
    %27 = arith.truncf %26 : vector<144x64xf32> to vector<144x64xbf16>
    %c4 = arith.constant 4 : index
    %c0_14 = arith.constant 0 : index
    %c0_15 = arith.constant 0 : index
    %28 = vector.load %arg2[%c4, %c0_14, %c0_15] : memref<9x64x64xbf16, #tpu.memory_space<vmem>>, vector<1x64x64xbf16>
    %29 = vector.shape_cast %28 : vector<1x64x64xbf16> to vector<64x64xbf16>
    %cst_16 = arith.constant dense<0.000000e+00> : vector<144x64xf32>
    %30 = tpu.matmul %27, %29, %cst_16 {dimension_numbers = #tpu.dot_dimension_numbers<[1], [0], [0], [1], [0, 0, 1, 1], [], []>} : vector<144x64xbf16>, vector<64x64xbf16>, vector<144x64xf32> -> vector<144x64xf32>
    %31 = arith.addf %25, %30 : vector<144x64xf32>
    %32 = vector.extract_strided_slice %2 {offsets = [20, 0], sizes = [144, 64], strides = [1, 1]} : vector<198x64xf32> to vector<144x64xf32>
    %33 = arith.truncf %32 : vector<144x64xf32> to vector<144x64xbf16>
    %c5 = arith.constant 5 : index
    %c0_17 = arith.constant 0 : index
    %c0_18 = arith.constant 0 : index
    %34 = vector.load %arg2[%c5, %c0_17, %c0_18] : memref<9x64x64xbf16, #tpu.memory_space<vmem>>, vector<1x64x64xbf16>
    %35 = vector.shape_cast %34 : vector<1x64x64xbf16> to vector<64x64xbf16>
    %cst_19 = arith.constant dense<0.000000e+00> : vector<144x64xf32>
    %36 = tpu.matmul %33, %35, %cst_19 {dimension_numbers = #tpu.dot_dimension_numbers<[1], [0], [0], [1], [0, 0, 1, 1], [], []>} : vector<144x64xbf16>, vector<64x64xbf16>, vector<144x64xf32> -> vector<144x64xf32>
    %37 = arith.addf %31, %36 : vector<144x64xf32>
    %38 = vector.extract_strided_slice %2 {offsets = [36, 0], sizes = [144, 64], strides = [1, 1]} : vector<198x64xf32> to vector<144x64xf32>
    %39 = arith.truncf %38 : vector<144x64xf32> to vector<144x64xbf16>
    %c6 = arith.constant 6 : index
    %c0_20 = arith.constant 0 : index
    %c0_21 = arith.constant 0 : index
    %40 = vector.load %arg2[%c6, %c0_20, %c0_21] : memref<9x64x64xbf16, #tpu.memory_space<vmem>>, vector<1x64x64xbf16>
    %41 = vector.shape_cast %40 : vector<1x64x64xbf16> to vector<64x64xbf16>
    %cst_22 = arith.constant dense<0.000000e+00> : vector<144x64xf32>
    %42 = tpu.matmul %39, %41, %cst_22 {dimension_numbers = #tpu.dot_dimension_numbers<[1], [0], [0], [1], [0, 0, 1, 1], [], []>} : vector<144x64xbf16>, vector<64x64xbf16>, vector<144x64xf32> -> vector<144x64xf32>
    %43 = arith.addf %37, %42 : vector<144x64xf32>
    %44 = vector.extract_strided_slice %2 {offsets = [37, 0], sizes = [144, 64], strides = [1, 1]} : vector<198x64xf32> to vector<144x64xf32>
    %45 = arith.truncf %44 : vector<144x64xf32> to vector<144x64xbf16>
    %c7 = arith.constant 7 : index
    %c0_23 = arith.constant 0 : index
    %c0_24 = arith.constant 0 : index
    %46 = vector.load %arg2[%c7, %c0_23, %c0_24] : memref<9x64x64xbf16, #tpu.memory_space<vmem>>, vector<1x64x64xbf16>
    %47 = vector.shape_cast %46 : vector<1x64x64xbf16> to vector<64x64xbf16>
    %cst_25 = arith.constant dense<0.000000e+00> : vector<144x64xf32>
    %48 = tpu.matmul %45, %47, %cst_25 {dimension_numbers = #tpu.dot_dimension_numbers<[1], [0], [0], [1], [0, 0, 1, 1], [], []>} : vector<144x64xbf16>, vector<64x64xbf16>, vector<144x64xf32> -> vector<144x64xf32>
    %49 = arith.addf %43, %48 : vector<144x64xf32>
    %50 = vector.extract_strided_slice %2 {offsets = [38, 0], sizes = [144, 64], strides = [1, 1]} : vector<198x64xf32> to vector<144x64xf32>
    %51 = arith.truncf %50 : vector<144x64xf32> to vector<144x64xbf16>
    %c8 = arith.constant 8 : index
    %c0_26 = arith.constant 0 : index
    %c0_27 = arith.constant 0 : index
    %52 = vector.load %arg2[%c8, %c0_26, %c0_27] : memref<9x64x64xbf16, #tpu.memory_space<vmem>>, vector<1x64x64xbf16>
    %53 = vector.shape_cast %52 : vector<1x64x64xbf16> to vector<64x64xbf16>
    %cst_28 = arith.constant dense<0.000000e+00> : vector<144x64xf32>
    %54 = tpu.matmul %51, %53, %cst_28 {dimension_numbers = #tpu.dot_dimension_numbers<[1], [0], [0], [1], [0, 0, 1, 1], [], []>} : vector<144x64xbf16>, vector<64x64xbf16>, vector<144x64xf32> -> vector<144x64xf32>
    %55 = arith.addf %49, %54 : vector<144x64xf32>
    %c0_29 = arith.constant 0 : index
    %c0_30 = arith.constant 0 : index
    %56 = vector.load %arg3[%c0_29, %c0_30] : memref<1x64xf32, #tpu.memory_space<vmem>>, vector<1x64xf32>
    %57 = vector.broadcast %56 : vector<1x64xf32> to vector<144x64xf32>
    %58 = arith.addf %55, %57 : vector<144x64xf32>
    %cst_31 = arith.constant 0.000000e+00 : f32
    %59 = vector.broadcast %cst_31 : f32 to vector<144x64xf32>
    %60 = arith.maximumf %58, %59 : vector<144x64xf32>
    %61 = arith.truncf %60 : vector<144x64xf32> to vector<144x64xbf16>
    %c0_32 = arith.constant 0 : index
    %c0_33 = arith.constant 0 : index
    %c0_34 = arith.constant 0 : index
    %62 = vector.load %arg4[%c0_32, %c0_33, %c0_34] : memref<1x144x64xbf16, #tpu.memory_space<vmem>>, vector<1x144x64xbf16>
    %63 = vector.shape_cast %62 : vector<1x144x64xbf16> to vector<144x64xbf16>
    %64 = vector.shape_cast %61 : vector<144x64xbf16> to vector<1x144x64xbf16>
    tpu.vector_store %arg4[%c0_32, %c0_33, %c0_34], %64 {strides = array<i32>} : memref<1x144x64xbf16, #tpu.memory_space<vmem>>, vector<1x144x64xbf16>,
    return
  }
  func.func @transform_0(%arg0: i32) -> (i32, i32, i32) {
    %c0_i32 = arith.constant 0 : i32
    %c0_i32_0 = arith.constant 0 : i32
    %c0_i32_1 = arith.constant 0 : i32
    return %arg0, %c0_i32, %c0_i32_0 : i32, i32, i32
  }
  func.func @transform_1(%arg0: i32) -> (i32, i32, i32) {
    %c0_i32 = arith.constant 0 : i32
    %c0_i32_0 = arith.constant 0 : i32
    %c0_i32_1 = arith.constant 0 : i32
    %c0_i32_2 = arith.constant 0 : i32
    return %c0_i32, %c0_i32_0, %c0_i32_1 : i32, i32, i32
  }
  func.func @transform_2(%arg0: i32) -> (i32, i32) {
    %c0_i32 = arith.constant 0 : i32
    %c0_i32_0 = arith.constant 0 : i32
    %c0_i32_1 = arith.constant 0 : i32
    return %c0_i32, %c0_i32_0 : i32, i32
  }
  func.func @transform_3(%arg0: i32) -> (i32, i32, i32) {
    %c0_i32 = arith.constant 0 : i32
    %c0_i32_0 = arith.constant 0 : i32
    %c0_i32_1 = arith.constant 0 : i32
    return %arg0, %c0_i32, %c0_i32_0 : i32, i32, i32
  }
}

module attributes {stable_mosaic.version = 11 : i64} {
  func.func @_mm_bias_act_kernel(%arg0: i32, %arg1: memref<128x64xbf16, #tpu.memory_space<vmem>>, %arg2: memref<64x256xbf16, #tpu.memory_space<vmem>>, %arg3: memref<1x256xf32, #tpu.memory_space<vmem>>, %arg4: memref<128x256xbf16, #tpu.memory_space<vmem>>) attributes {dimension_semantics = [#tpu.dimension_semantics<parallel>], iteration_bounds = array<i64: 2>, scalar_prefetch = 0 : i64, scratch_operands = 0 : i64, tpu.core_type = #tpu.core_type<tc>, window_params = [{transform_indices = @transform_0, window_bounds = array<i64: 128, 64>}, {pipeline_mode = #tpu.pipeline_mode<synchronous>, transform_indices = @transform_1, window_bounds = array<i64: 64, 256>}, {pipeline_mode = #tpu.pipeline_mode<synchronous>, transform_indices = @transform_2, window_bounds = array<i64: 1, 256>}, {transform_indices = @transform_3, window_bounds = array<i64: 128, 256>}]} {
    %c0 = arith.constant 0 : index
    %c0_0 = arith.constant 0 : index
    %0 = vector.load %arg1[%c0, %c0_0] : memref<128x64xbf16, #tpu.memory_space<vmem>>, vector<128x64xbf16>
    %c0_1 = arith.constant 0 : index
    %c0_2 = arith.constant 0 : index
    %1 = vector.load %arg2[%c0_1, %c0_2] : memref<64x256xbf16, #tpu.memory_space<vmem>>, vector<64x256xbf16>
    %cst = arith.constant dense<0.000000e+00> : vector<128x256xf32>
    %2 = tpu.matmul %0, %1, %cst {dimension_numbers = #tpu.dot_dimension_numbers<[1], [0], [0], [1], [0, 0, 1, 1], [], []>} : vector<128x64xbf16>, vector<64x256xbf16>, vector<128x256xf32> -> vector<128x256xf32>
    %c0_3 = arith.constant 0 : index
    %c0_4 = arith.constant 0 : index
    %3 = vector.load %arg3[%c0_3, %c0_4] : memref<1x256xf32, #tpu.memory_space<vmem>>, vector<1x256xf32>
    %4 = vector.broadcast %3 : vector<1x256xf32> to vector<128x256xf32>
    %5 = arith.addf %2, %4 : vector<128x256xf32>
    %6 = arith.truncf %5 : vector<128x256xf32> to vector<128x256xbf16>
    %c0_5 = arith.constant 0 : index
    %c0_6 = arith.constant 0 : index
    %7 = vector.load %arg4[%c0_5, %c0_6] : memref<128x256xbf16, #tpu.memory_space<vmem>>, vector<128x256xbf16>
    tpu.vector_store %arg4[%c0_5, %c0_6], %6 {strides = array<i32>} : memref<128x256xbf16, #tpu.memory_space<vmem>>, vector<128x256xbf16>,
    return
  }
  func.func @transform_0(%arg0: i32) -> (i32, i32) {
    %c0_i32 = arith.constant 0 : i32
    %c0_i32_0 = arith.constant 0 : i32
    return %arg0, %c0_i32 : i32, i32
  }
  func.func @transform_1(%arg0: i32) -> (i32, i32) {
    %c0_i32 = arith.constant 0 : i32
    %c0_i32_0 = arith.constant 0 : i32
    %c0_i32_1 = arith.constant 0 : i32
    return %c0_i32, %c0_i32_0 : i32, i32
  }
  func.func @transform_2(%arg0: i32) -> (i32, i32) {
    %c0_i32 = arith.constant 0 : i32
    %c0_i32_0 = arith.constant 0 : i32
    %c0_i32_1 = arith.constant 0 : i32
    return %c0_i32, %c0_i32_0 : i32, i32
  }
  func.func @transform_3(%arg0: i32) -> (i32, i32) {
    %c0_i32 = arith.constant 0 : i32
    %c0_i32_0 = arith.constant 0 : i32
    return %arg0, %c0_i32 : i32, i32
  }
}

module attributes {stable_mosaic.version = 11 : i64} {
  func.func @_mm_bias_res_act_kernel(%arg0: i32, %arg1: memref<128x64xbf16, #tpu.memory_space<vmem>>, %arg2: memref<64x256xbf16, #tpu.memory_space<vmem>>, %arg3: memref<1x256xf32, #tpu.memory_space<vmem>>, %arg4: memref<128x256xbf16, #tpu.memory_space<vmem>>, %arg5: memref<128x256xbf16, #tpu.memory_space<vmem>>) attributes {dimension_semantics = [#tpu.dimension_semantics<parallel>], iteration_bounds = array<i64: 2>, scalar_prefetch = 0 : i64, scratch_operands = 0 : i64, tpu.core_type = #tpu.core_type<tc>, window_params = [{transform_indices = @transform_0, window_bounds = array<i64: 128, 64>}, {pipeline_mode = #tpu.pipeline_mode<synchronous>, transform_indices = @transform_1, window_bounds = array<i64: 64, 256>}, {pipeline_mode = #tpu.pipeline_mode<synchronous>, transform_indices = @transform_2, window_bounds = array<i64: 1, 256>}, {transform_indices = @transform_3, window_bounds = array<i64: 128, 256>}, {transform_indices = @transform_4, window_bounds = array<i64: 128, 256>}]} {
    %c0 = arith.constant 0 : index
    %c0_0 = arith.constant 0 : index
    %0 = vector.load %arg1[%c0, %c0_0] : memref<128x64xbf16, #tpu.memory_space<vmem>>, vector<128x64xbf16>
    %c0_1 = arith.constant 0 : index
    %c0_2 = arith.constant 0 : index
    %1 = vector.load %arg2[%c0_1, %c0_2] : memref<64x256xbf16, #tpu.memory_space<vmem>>, vector<64x256xbf16>
    %cst = arith.constant dense<0.000000e+00> : vector<128x256xf32>
    %2 = tpu.matmul %0, %1, %cst {dimension_numbers = #tpu.dot_dimension_numbers<[1], [0], [0], [1], [0, 0, 1, 1], [], []>} : vector<128x64xbf16>, vector<64x256xbf16>, vector<128x256xf32> -> vector<128x256xf32>
    %c0_3 = arith.constant 0 : index
    %c0_4 = arith.constant 0 : index
    %3 = vector.load %arg3[%c0_3, %c0_4] : memref<1x256xf32, #tpu.memory_space<vmem>>, vector<1x256xf32>
    %4 = vector.broadcast %3 : vector<1x256xf32> to vector<128x256xf32>
    %5 = arith.addf %2, %4 : vector<128x256xf32>
    %c0_5 = arith.constant 0 : index
    %c0_6 = arith.constant 0 : index
    %6 = vector.load %arg4[%c0_5, %c0_6] : memref<128x256xbf16, #tpu.memory_space<vmem>>, vector<128x256xbf16>
    %7 = arith.extf %6 : vector<128x256xbf16> to vector<128x256xf32>
    %8 = arith.addf %5, %7 : vector<128x256xf32>
    %cst_7 = arith.constant 0.000000e+00 : f32
    %9 = vector.broadcast %cst_7 : f32 to vector<128x256xf32>
    %10 = arith.maximumf %8, %9 : vector<128x256xf32>
    %11 = arith.truncf %10 : vector<128x256xf32> to vector<128x256xbf16>
    %c0_8 = arith.constant 0 : index
    %c0_9 = arith.constant 0 : index
    %12 = vector.load %arg5[%c0_8, %c0_9] : memref<128x256xbf16, #tpu.memory_space<vmem>>, vector<128x256xbf16>
    tpu.vector_store %arg5[%c0_8, %c0_9], %11 {strides = array<i32>} : memref<128x256xbf16, #tpu.memory_space<vmem>>, vector<128x256xbf16>,
    return
  }
  func.func @transform_0(%arg0: i32) -> (i32, i32) {
    %c0_i32 = arith.constant 0 : i32
    %c0_i32_0 = arith.constant 0 : i32
    return %arg0, %c0_i32 : i32, i32
  }
  func.func @transform_1(%arg0: i32) -> (i32, i32) {
    %c0_i32 = arith.constant 0 : i32
    %c0_i32_0 = arith.constant 0 : i32
    %c0_i32_1 = arith.constant 0 : i32
    return %c0_i32, %c0_i32_0 : i32, i32
  }
  func.func @transform_2(%arg0: i32) -> (i32, i32) {
    %c0_i32 = arith.constant 0 : i32
    %c0_i32_0 = arith.constant 0 : i32
    %c0_i32_1 = arith.constant 0 : i32
    return %c0_i32, %c0_i32_0 : i32, i32
  }
  func.func @transform_3(%arg0: i32) -> (i32, i32) {
    %c0_i32 = arith.constant 0 : i32
    %c0_i32_0 = arith.constant 0 : i32
    return %arg0, %c0_i32 : i32, i32
  }
  func.func @transform_4(%arg0: i32) -> (i32, i32) {
    %c0_i32 = arith.constant 0 : i32
    %c0_i32_0 = arith.constant 0 : i32
    return %arg0, %c0_i32 : i32, i32
  }
}

module attributes {stable_mosaic.version = 11 : i64} {
  func.func @_mm_bias_act_kernel(%arg0: i32, %arg1: memref<128x256xbf16, #tpu.memory_space<vmem>>, %arg2: memref<256x64xbf16, #tpu.memory_space<vmem>>, %arg3: memref<1x64xf32, #tpu.memory_space<vmem>>, %arg4: memref<128x64xbf16, #tpu.memory_space<vmem>>) attributes {dimension_semantics = [#tpu.dimension_semantics<parallel>], iteration_bounds = array<i64: 2>, scalar_prefetch = 0 : i64, scratch_operands = 0 : i64, tpu.core_type = #tpu.core_type<tc>, window_params = [{transform_indices = @transform_0, window_bounds = array<i64: 128, 256>}, {pipeline_mode = #tpu.pipeline_mode<synchronous>, transform_indices = @transform_1, window_bounds = array<i64: 256, 64>}, {pipeline_mode = #tpu.pipeline_mode<synchronous>, transform_indices = @transform_2, window_bounds = array<i64: 1, 64>}, {transform_indices = @transform_3, window_bounds = array<i64: 128, 64>}]} {
    %c0 = arith.constant 0 : index
    %c0_0 = arith.constant 0 : index
    %0 = vector.load %arg1[%c0, %c0_0] : memref<128x256xbf16, #tpu.memory_space<vmem>>, vector<128x256xbf16>
    %c0_1 = arith.constant 0 : index
    %c0_2 = arith.constant 0 : index
    %1 = vector.load %arg2[%c0_1, %c0_2] : memref<256x64xbf16, #tpu.memory_space<vmem>>, vector<256x64xbf16>
    %cst = arith.constant dense<0.000000e+00> : vector<128x64xf32>
    %2 = tpu.matmul %0, %1, %cst {dimension_numbers = #tpu.dot_dimension_numbers<[1], [0], [0], [1], [0, 0, 1, 1], [], []>} : vector<128x256xbf16>, vector<256x64xbf16>, vector<128x64xf32> -> vector<128x64xf32>
    %c0_3 = arith.constant 0 : index
    %c0_4 = arith.constant 0 : index
    %3 = vector.load %arg3[%c0_3, %c0_4] : memref<1x64xf32, #tpu.memory_space<vmem>>, vector<1x64xf32>
    %4 = vector.broadcast %3 : vector<1x64xf32> to vector<128x64xf32>
    %5 = arith.addf %2, %4 : vector<128x64xf32>
    %cst_5 = arith.constant 0.000000e+00 : f32
    %6 = vector.broadcast %cst_5 : f32 to vector<128x64xf32>
    %7 = arith.maximumf %5, %6 : vector<128x64xf32>
    %8 = arith.truncf %7 : vector<128x64xf32> to vector<128x64xbf16>
    %c0_6 = arith.constant 0 : index
    %c0_7 = arith.constant 0 : index
    %9 = vector.load %arg4[%c0_6, %c0_7] : memref<128x64xbf16, #tpu.memory_space<vmem>>, vector<128x64xbf16>
    tpu.vector_store %arg4[%c0_6, %c0_7], %8 {strides = array<i32>} : memref<128x64xbf16, #tpu.memory_space<vmem>>, vector<128x64xbf16>,
    return
  }
  func.func @transform_0(%arg0: i32) -> (i32, i32) {
    %c0_i32 = arith.constant 0 : i32
    %c0_i32_0 = arith.constant 0 : i32
    return %arg0, %c0_i32 : i32, i32
  }
  func.func @transform_1(%arg0: i32) -> (i32, i32) {
    %c0_i32 = arith.constant 0 : i32
    %c0_i32_0 = arith.constant 0 : i32
    %c0_i32_1 = arith.constant 0 : i32
    return %c0_i32, %c0_i32_0 : i32, i32
  }
  func.func @transform_2(%arg0: i32) -> (i32, i32) {
    %c0_i32 = arith.constant 0 : i32
    %c0_i32_0 = arith.constant 0 : i32
    %c0_i32_1 = arith.constant 0 : i32
    return %c0_i32, %c0_i32_0 : i32, i32
  }
  func.func @transform_3(%arg0: i32) -> (i32, i32) {
    %c0_i32 = arith.constant 0 : i32
    %c0_i32_0 = arith.constant 0 : i32
    return %arg0, %c0_i32 : i32, i32
  }
}

module attributes {stable_mosaic.version = 11 : i64} {
  func.func @_conv3x3_kernel(%arg0: i32, %arg1: memref<1x198x256xbf16, #tpu.memory_space<vmem>>, %arg2: memref<9x256x48xbf16, #tpu.memory_space<vmem>>, %arg3: memref<1x48xf32, #tpu.memory_space<vmem>>, %arg4: memref<1x144x48xbf16, #tpu.memory_space<vmem>>) attributes {dimension_semantics = [#tpu.dimension_semantics<parallel>], iteration_bounds = array<i64: 2>, scalar_prefetch = 0 : i64, scratch_operands = 0 : i64, tpu.core_type = #tpu.core_type<tc>, window_params = [{transform_indices = @transform_0, window_bounds = array<i64: 1, 198, 256>}, {pipeline_mode = #tpu.pipeline_mode<synchronous>, transform_indices = @transform_1, window_bounds = array<i64: 9, 256, 48>}, {pipeline_mode = #tpu.pipeline_mode<synchronous>, transform_indices = @transform_2, window_bounds = array<i64: 1, 48>}, {transform_indices = @transform_3, window_bounds = array<i64: 1, 144, 48>}]} {
    %c0 = arith.constant 0 : index
    %c0_0 = arith.constant 0 : index
    %c0_1 = arith.constant 0 : index
    %0 = vector.load %arg1[%c0, %c0_0, %c0_1] : memref<1x198x256xbf16, #tpu.memory_space<vmem>>, vector<1x198x256xbf16>
    %1 = vector.shape_cast %0 : vector<1x198x256xbf16> to vector<198x256xbf16>
    %2 = arith.extf %1 : vector<198x256xbf16> to vector<198x256xf32>
    %3 = vector.extract_strided_slice %2 {offsets = [0, 0], sizes = [144, 256], strides = [1, 1]} : vector<198x256xf32> to vector<144x256xf32>
    %4 = arith.truncf %3 : vector<144x256xf32> to vector<144x256xbf16>
    %c0_2 = arith.constant 0 : index
    %c0_3 = arith.constant 0 : index
    %c0_4 = arith.constant 0 : index
    %5 = vector.load %arg2[%c0_2, %c0_3, %c0_4] : memref<9x256x48xbf16, #tpu.memory_space<vmem>>, vector<1x256x48xbf16>
    %6 = vector.shape_cast %5 : vector<1x256x48xbf16> to vector<256x48xbf16>
    %cst = arith.constant dense<0.000000e+00> : vector<144x48xf32>
    %7 = tpu.matmul %4, %6, %cst {dimension_numbers = #tpu.dot_dimension_numbers<[1], [0], [0], [1], [0, 0, 1, 1], [], []>} : vector<144x256xbf16>, vector<256x48xbf16>, vector<144x48xf32> -> vector<144x48xf32>
    %8 = vector.extract_strided_slice %2 {offsets = [1, 0], sizes = [144, 256], strides = [1, 1]} : vector<198x256xf32> to vector<144x256xf32>
    %9 = arith.truncf %8 : vector<144x256xf32> to vector<144x256xbf16>
    %c1 = arith.constant 1 : index
    %c0_5 = arith.constant 0 : index
    %c0_6 = arith.constant 0 : index
    %10 = vector.load %arg2[%c1, %c0_5, %c0_6] : memref<9x256x48xbf16, #tpu.memory_space<vmem>>, vector<1x256x48xbf16>
    %11 = vector.shape_cast %10 : vector<1x256x48xbf16> to vector<256x48xbf16>
    %cst_7 = arith.constant dense<0.000000e+00> : vector<144x48xf32>
    %12 = tpu.matmul %9, %11, %cst_7 {dimension_numbers = #tpu.dot_dimension_numbers<[1], [0], [0], [1], [0, 0, 1, 1], [], []>} : vector<144x256xbf16>, vector<256x48xbf16>, vector<144x48xf32> -> vector<144x48xf32>
    %13 = arith.addf %7, %12 : vector<144x48xf32>
    %14 = vector.extract_strided_slice %2 {offsets = [2, 0], sizes = [144, 256], strides = [1, 1]} : vector<198x256xf32> to vector<144x256xf32>
    %15 = arith.truncf %14 : vector<144x256xf32> to vector<144x256xbf16>
    %c2 = arith.constant 2 : index
    %c0_8 = arith.constant 0 : index
    %c0_9 = arith.constant 0 : index
    %16 = vector.load %arg2[%c2, %c0_8, %c0_9] : memref<9x256x48xbf16, #tpu.memory_space<vmem>>, vector<1x256x48xbf16>
    %17 = vector.shape_cast %16 : vector<1x256x48xbf16> to vector<256x48xbf16>
    %cst_10 = arith.constant dense<0.000000e+00> : vector<144x48xf32>
    %18 = tpu.matmul %15, %17, %cst_10 {dimension_numbers = #tpu.dot_dimension_numbers<[1], [0], [0], [1], [0, 0, 1, 1], [], []>} : vector<144x256xbf16>, vector<256x48xbf16>, vector<144x48xf32> -> vector<144x48xf32>
    %19 = arith.addf %13, %18 : vector<144x48xf32>
    %20 = vector.extract_strided_slice %2 {offsets = [18, 0], sizes = [144, 256], strides = [1, 1]} : vector<198x256xf32> to vector<144x256xf32>
    %21 = arith.truncf %20 : vector<144x256xf32> to vector<144x256xbf16>
    %c3 = arith.constant 3 : index
    %c0_11 = arith.constant 0 : index
    %c0_12 = arith.constant 0 : index
    %22 = vector.load %arg2[%c3, %c0_11, %c0_12] : memref<9x256x48xbf16, #tpu.memory_space<vmem>>, vector<1x256x48xbf16>
    %23 = vector.shape_cast %22 : vector<1x256x48xbf16> to vector<256x48xbf16>
    %cst_13 = arith.constant dense<0.000000e+00> : vector<144x48xf32>
    %24 = tpu.matmul %21, %23, %cst_13 {dimension_numbers = #tpu.dot_dimension_numbers<[1], [0], [0], [1], [0, 0, 1, 1], [], []>} : vector<144x256xbf16>, vector<256x48xbf16>, vector<144x48xf32> -> vector<144x48xf32>
    %25 = arith.addf %19, %24 : vector<144x48xf32>
    %26 = vector.extract_strided_slice %2 {offsets = [19, 0], sizes = [144, 256], strides = [1, 1]} : vector<198x256xf32> to vector<144x256xf32>
    %27 = arith.truncf %26 : vector<144x256xf32> to vector<144x256xbf16>
    %c4 = arith.constant 4 : index
    %c0_14 = arith.constant 0 : index
    %c0_15 = arith.constant 0 : index
    %28 = vector.load %arg2[%c4, %c0_14, %c0_15] : memref<9x256x48xbf16, #tpu.memory_space<vmem>>, vector<1x256x48xbf16>
    %29 = vector.shape_cast %28 : vector<1x256x48xbf16> to vector<256x48xbf16>
    %cst_16 = arith.constant dense<0.000000e+00> : vector<144x48xf32>
    %30 = tpu.matmul %27, %29, %cst_16 {dimension_numbers = #tpu.dot_dimension_numbers<[1], [0], [0], [1], [0, 0, 1, 1], [], []>} : vector<144x256xbf16>, vector<256x48xbf16>, vector<144x48xf32> -> vector<144x48xf32>
    %31 = arith.addf %25, %30 : vector<144x48xf32>
    %32 = vector.extract_strided_slice %2 {offsets = [20, 0], sizes = [144, 256], strides = [1, 1]} : vector<198x256xf32> to vector<144x256xf32>
    %33 = arith.truncf %32 : vector<144x256xf32> to vector<144x256xbf16>
    %c5 = arith.constant 5 : index
    %c0_17 = arith.constant 0 : index
    %c0_18 = arith.constant 0 : index
    %34 = vector.load %arg2[%c5, %c0_17, %c0_18] : memref<9x256x48xbf16, #tpu.memory_space<vmem>>, vector<1x256x48xbf16>
    %35 = vector.shape_cast %34 : vector<1x256x48xbf16> to vector<256x48xbf16>
    %cst_19 = arith.constant dense<0.000000e+00> : vector<144x48xf32>
    %36 = tpu.matmul %33, %35, %cst_19 {dimension_numbers = #tpu.dot_dimension_numbers<[1], [0], [0], [1], [0, 0, 1, 1], [], []>} : vector<144x256xbf16>, vector<256x48xbf16>, vector<144x48xf32> -> vector<144x48xf32>
    %37 = arith.addf %31, %36 : vector<144x48xf32>
    %38 = vector.extract_strided_slice %2 {offsets = [36, 0], sizes = [144, 256], strides = [1, 1]} : vector<198x256xf32> to vector<144x256xf32>
    %39 = arith.truncf %38 : vector<144x256xf32> to vector<144x256xbf16>
    %c6 = arith.constant 6 : index
    %c0_20 = arith.constant 0 : index
    %c0_21 = arith.constant 0 : index
    %40 = vector.load %arg2[%c6, %c0_20, %c0_21] : memref<9x256x48xbf16, #tpu.memory_space<vmem>>, vector<1x256x48xbf16>
    %41 = vector.shape_cast %40 : vector<1x256x48xbf16> to vector<256x48xbf16>
    %cst_22 = arith.constant dense<0.000000e+00> : vector<144x48xf32>
    %42 = tpu.matmul %39, %41, %cst_22 {dimension_numbers = #tpu.dot_dimension_numbers<[1], [0], [0], [1], [0, 0, 1, 1], [], []>} : vector<144x256xbf16>, vector<256x48xbf16>, vector<144x48xf32> -> vector<144x48xf32>
    %43 = arith.addf %37, %42 : vector<144x48xf32>
    %44 = vector.extract_strided_slice %2 {offsets = [37, 0], sizes = [144, 256], strides = [1, 1]} : vector<198x256xf32> to vector<144x256xf32>
    %45 = arith.truncf %44 : vector<144x256xf32> to vector<144x256xbf16>
    %c7 = arith.constant 7 : index
    %c0_23 = arith.constant 0 : index
    %c0_24 = arith.constant 0 : index
    %46 = vector.load %arg2[%c7, %c0_23, %c0_24] : memref<9x256x48xbf16, #tpu.memory_space<vmem>>, vector<1x256x48xbf16>
    %47 = vector.shape_cast %46 : vector<1x256x48xbf16> to vector<256x48xbf16>
    %cst_25 = arith.constant dense<0.000000e+00> : vector<144x48xf32>
    %48 = tpu.matmul %45, %47, %cst_25 {dimension_numbers = #tpu.dot_dimension_numbers<[1], [0], [0], [1], [0, 0, 1, 1], [], []>} : vector<144x256xbf16>, vector<256x48xbf16>, vector<144x48xf32> -> vector<144x48xf32>
    %49 = arith.addf %43, %48 : vector<144x48xf32>
    %50 = vector.extract_strided_slice %2 {offsets = [38, 0], sizes = [144, 256], strides = [1, 1]} : vector<198x256xf32> to vector<144x256xf32>
    %51 = arith.truncf %50 : vector<144x256xf32> to vector<144x256xbf16>
    %c8 = arith.constant 8 : index
    %c0_26 = arith.constant 0 : index
    %c0_27 = arith.constant 0 : index
    %52 = vector.load %arg2[%c8, %c0_26, %c0_27] : memref<9x256x48xbf16, #tpu.memory_space<vmem>>, vector<1x256x48xbf16>
    %53 = vector.shape_cast %52 : vector<1x256x48xbf16> to vector<256x48xbf16>
    %cst_28 = arith.constant dense<0.000000e+00> : vector<144x48xf32>
    %54 = tpu.matmul %51, %53, %cst_28 {dimension_numbers = #tpu.dot_dimension_numbers<[1], [0], [0], [1], [0, 0, 1, 1], [], []>} : vector<144x256xbf16>, vector<256x48xbf16>, vector<144x48xf32> -> vector<144x48xf32>
    %55 = arith.addf %49, %54 : vector<144x48xf32>
    %c0_29 = arith.constant 0 : index
    %c0_30 = arith.constant 0 : index
    %56 = vector.load %arg3[%c0_29, %c0_30] : memref<1x48xf32, #tpu.memory_space<vmem>>, vector<1x48xf32>
    %57 = vector.broadcast %56 : vector<1x48xf32> to vector<144x48xf32>
    %58 = arith.addf %55, %57 : vector<144x48xf32>
    %cst_31 = arith.constant 0.000000e+00 : f32
    %59 = vector.broadcast %cst_31 : f32 to vector<144x48xf32>
    %60 = arith.maximumf %58, %59 : vector<144x48xf32>
    %61 = arith.truncf %60 : vector<144x48xf32> to vector<144x48xbf16>
    %c0_32 = arith.constant 0 : index
    %c0_33 = arith.constant 0 : index
    %c0_34 = arith.constant 0 : index
    %62 = vector.load %arg4[%c0_32, %c0_33, %c0_34] : memref<1x144x48xbf16, #tpu.memory_space<vmem>>, vector<1x144x48xbf16>
    %63 = vector.shape_cast %62 : vector<1x144x48xbf16> to vector<144x48xbf16>
    %64 = vector.shape_cast %61 : vector<144x48xbf16> to vector<1x144x48xbf16>
    tpu.vector_store %arg4[%c0_32, %c0_33, %c0_34], %64 {strides = array<i32>} : memref<1x144x48xbf16, #tpu.memory_space<vmem>>, vector<1x144x48xbf16>,
    return
  }
  func.func @transform_0(%arg0: i32) -> (i32, i32, i32) {
    %c0_i32 = arith.constant 0 : i32
    %c0_i32_0 = arith.constant 0 : i32
    %c0_i32_1 = arith.constant 0 : i32
    return %arg0, %c0_i32, %c0_i32_0 : i32, i32, i32
  }
  func.func @transform_1(%arg0: i32) -> (i32, i32, i32) {
    %c0_i32 = arith.constant 0 : i32
    %c0_i32_0 = arith.constant 0 : i32
    %c0_i32_1 = arith.constant 0 : i32
    %c0_i32_2 = arith.constant 0 : i32
    return %c0_i32, %c0_i32_0, %c0_i32_1 : i32, i32, i32
  }
  func.func @transform_2(%arg0: i32) -> (i32, i32) {
    %c0_i32 = arith.constant 0 : i32
    %c0_i32_0 = arith.constant 0 : i32
    %c0_i32_1 = arith.constant 0 : i32
    return %c0_i32, %c0_i32_0 : i32, i32
  }
  func.func @transform_3(%arg0: i32) -> (i32, i32, i32) {
    %c0_i32 = arith.constant 0 : i32
    %c0_i32_0 = arith.constant 0 : i32
    %c0_i32_1 = arith.constant 0 : i32
    return %arg0, %c0_i32, %c0_i32_0 : i32, i32, i32
  }
}

module attributes {stable_mosaic.version = 11 : i64} {
  func.func @_mm_bias_act_kernel(%arg0: i32, %arg1: memref<64x2304xbf16, #tpu.memory_space<vmem>>, %arg2: memref<2304x96xbf16, #tpu.memory_space<vmem>>, %arg3: memref<1x96xf32, #tpu.memory_space<vmem>>, %arg4: memref<64x96xbf16, #tpu.memory_space<vmem>>) attributes {dimension_semantics = [#tpu.dimension_semantics<parallel>], iteration_bounds = array<i64: 1>, scalar_prefetch = 0 : i64, scratch_operands = 0 : i64, tpu.core_type = #tpu.core_type<tc>, window_params = [{transform_indices = @transform_0, window_bounds = array<i64: 64, 2304>}, {pipeline_mode = #tpu.pipeline_mode<synchronous>, transform_indices = @transform_1, window_bounds = array<i64: 2304, 96>}, {pipeline_mode = #tpu.pipeline_mode<synchronous>, transform_indices = @transform_2, window_bounds = array<i64: 1, 96>}, {transform_indices = @transform_3, window_bounds = array<i64: 64, 96>}]} {
    %c0 = arith.constant 0 : index
    %c0_0 = arith.constant 0 : index
    %0 = vector.load %arg1[%c0, %c0_0] : memref<64x2304xbf16, #tpu.memory_space<vmem>>, vector<64x2304xbf16>
    %c0_1 = arith.constant 0 : index
    %c0_2 = arith.constant 0 : index
    %1 = vector.load %arg2[%c0_1, %c0_2] : memref<2304x96xbf16, #tpu.memory_space<vmem>>, vector<2304x96xbf16>
    %cst = arith.constant dense<0.000000e+00> : vector<64x96xf32>
    %2 = tpu.matmul %0, %1, %cst {dimension_numbers = #tpu.dot_dimension_numbers<[1], [0], [0], [1], [0, 0, 1, 1], [], []>} : vector<64x2304xbf16>, vector<2304x96xbf16>, vector<64x96xf32> -> vector<64x96xf32>
    %c0_3 = arith.constant 0 : index
    %c0_4 = arith.constant 0 : index
    %3 = vector.load %arg3[%c0_3, %c0_4] : memref<1x96xf32, #tpu.memory_space<vmem>>, vector<1x96xf32>
    %4 = vector.broadcast %3 : vector<1x96xf32> to vector<64x96xf32>
    %5 = arith.addf %2, %4 : vector<64x96xf32>
    %cst_5 = arith.constant 0.000000e+00 : f32
    %6 = vector.broadcast %cst_5 : f32 to vector<64x96xf32>
    %7 = arith.maximumf %5, %6 : vector<64x96xf32>
    %8 = arith.truncf %7 : vector<64x96xf32> to vector<64x96xbf16>
    %c0_6 = arith.constant 0 : index
    %c0_7 = arith.constant 0 : index
    %9 = vector.load %arg4[%c0_6, %c0_7] : memref<64x96xbf16, #tpu.memory_space<vmem>>, vector<64x96xbf16>
    tpu.vector_store %arg4[%c0_6, %c0_7], %8 {strides = array<i32>} : memref<64x96xbf16, #tpu.memory_space<vmem>>, vector<64x96xbf16>,
    return
  }
  func.func @transform_0(%arg0: i32) -> (i32, i32) {
    %c0_i32 = arith.constant 0 : i32
    %c0_i32_0 = arith.constant 0 : i32
    return %arg0, %c0_i32 : i32, i32
  }
  func.func @transform_1(%arg0: i32) -> (i32, i32) {
    %c0_i32 = arith.constant 0 : i32
    %c0_i32_0 = arith.constant 0 : i32
    %c0_i32_1 = arith.constant 0 : i32
    return %c0_i32, %c0_i32_0 : i32, i32
  }
  func.func @transform_2(%arg0: i32) -> (i32, i32) {
    %c0_i32 = arith.constant 0 : i32
    %c0_i32_0 = arith.constant 0 : i32
    %c0_i32_1 = arith.constant 0 : i32
    return %c0_i32, %c0_i32_0 : i32, i32
  }
  func.func @transform_3(%arg0: i32) -> (i32, i32) {
    %c0_i32 = arith.constant 0 : i32
    %c0_i32_0 = arith.constant 0 : i32
    return %arg0, %c0_i32 : i32, i32
  }
}

</mosaic_0001>

<bundles_post_ra>
// kernel: _front.17
= control target key start
LH: loop header
LB: loop body
LE: loop exit
PB: predicated region body
PF: predicated region fallthrough
CT: control target
= control target key end

     0   :  { %s1639_s12 = smov 0   ;;  %s1934_s0 = inlined_call_operand.vmem [shape: bf16[1024,27], index: 0, kind: input, shape index: {}]   ;;  %s1935_s1 = inlined_call_operand.vmem [shape: bf16[27,64], index: 1, kind: input, shape index: {}]   ;;  %s1936_s2 = inlined_call_operand.vmem [shape: f32[1,64], index: 2, kind: input, shape index: {}]   ;;  %s1937_s3 = inlined_call_operand.vmem [shape: bf16[1024,64], index: 3, kind: output, shape index: {}]  }
   0x1 LB: > { %s1255_s13 = sadd.s32 4294967295, %s1616_s12   ;;  %p1259_p0 = scmp.ge.s32.totalorder %s1616_s12, 1  ;;  %s1616_s12 = sphi %s1639_s12, %s13_s12  }
   0x2   : > { %p138_p1 = scmp.lt.s32.totalorder %s1616_s12, 3 }
   0x4   : > { %p139_p2 = pnand %p1259_p0, %p138_p1 }
   0x5   : > { %v1576_v0 = vld [vmem:[%s1935_s1] sm:$0xff] (!%p139_p2)   ;;  %vm518_vm0 = vcmask (!%p139_p2), 1044480   ;;  %v1577_v1 = vld [vmem:[%s1935_s1 + $0x8] sm:$0x3f] (!%p139_p2)   ;;  %vm519_vm1 = vcmask (!%p139_p2), 1045504   ;;  %s1260_s18 = sshll.u32 (!%p139_p2), %s1255_s13, 6 }
   0x6   : > { %142 = sbr.rel (%p139_p2) target bundleno = 297 (0x129), region = 32  ;;  %1495 = vmatprep.subr.bf16.mxu0 (!%p139_p2), %v1576_v0  ;;  %1563 = vmatprep.subr.bf16.mxu1 (!%p139_p2), %v1576_v0  ;;  %v1618_v2 = vmov (!%p139_p2), 65535   ;;  %p163_p3 = scmp.lt.s32.totalorder (!%p139_p2), %s1260_s18, 127  ;;  %vm421_vm2 = vcmask (!%p139_p2), 220160   ;;  %v1730_v38 = vld [vmem:[%s1936_s2] ss:$0 sm:$0xff] (!%p139_p2) }
   0x7   : > { %1496 = vmatpush3.bf16.msra.mxu0 (!%p139_p2), %v1576_v0  ;;  %1565 = vmatpush3.bf16.msra.mxu1 (!%p139_p2), %v1576_v0  ;;  %v520_v3 = vsel (!%p139_p2), %vm518_vm0, 4294967295, %v1618_v2  ;;  %vm1134_vm3 = vcmask (!%p139_p2), 519168  }
   0x8   : > { %v521_v4 = vsel (!%p139_p2), %vm519_vm1, %v520_v3, 0 }
   0x9   : > { %v523_v5 = vand.u32 (!%p139_p2), %v1577_v1, %v521_v4 }
   0xb   : > { %1497 = vmatprep.subr.bf16.mxu0 (!%p139_p2), %v523_v5  ;;  %1564 = vmatprep.subr.bf16.mxu1 (!%p139_p2), %v523_v5 }
   0xc   : > { %1498 = vmatpush3.bf16.msra.mxu0 (!%p139_p2), %v523_v5  ;;  %1566 = vmatpush3.bf16.msra.mxu1 (!%p139_p2), %v523_v5 }
   0xd   : > { %s1939_s18 = smov (!%p163_p3, %s1260_s18), 127 }
   0xe   : > { %s1261_s19 = sshll.u32 %s1939_s18, 2 }
   0xf   : > { %s1661_s22 = scalar_lea.vmem %s1934_s0, %s1261_s19  ;;  %s1742_s27 = scalar_lea.vmem %s1937_s3, %s1261_s19 }
  0x10   : > { %v1578_v6 = vld [vmem:[%s1661_s22] sm:$0xff]   ;;  %v1580_v8 = vld [vmem:[%s1661_s22 + $0x8] sm:$0xff]   ;;  %v1582_v10 = vld [vmem:[%s1661_s22 + $0x10] sm:$0xff]  }
  0x11   : > { %v1579_v7 = vld [vmem:[%s1661_s22 + $0x80] sm:$0xff]   ;;  %1499 = vmatprep.mubr.msk.bf16.mxu0 %vm421_vm2, %v1578_v6  ;;  %v1581_v9 = vld [vmem:[%s1661_s22 + $0x88] sm:$0xff]   ;;  %v1583_v11 = vld [vmem:[%s1661_s22 + $0x90] sm:$0xff]  }
  0x12   : > { %1531 = vmatprep.mubr.msk.bf16.mxu1 %vm421_vm2, %v1579_v7  ;;  %1500 = vmatmul.mubr.msk.bf16.vlgmr.msra.gmra.mrb[0].mxu0 %vm421_vm2, %v1580_v8  ;;  %v1584_v12 = vld [vmem:[%s1661_s22 + $0x18] sm:$0xff]   ;;  %v1586_v14 = vld [vmem:[%s1661_s22 + $0x20] sm:$0xff]   ;;  %v1588_v16 = vld [vmem:[%s1661_s22 + $0x28] sm:$0xff]  }
  0x13   : > { %1532 = vmatmul.mubr.msk.bf16.vlgmr.msra.gmra.mrb[0].mxu1 %vm421_vm2, %v1581_v9  ;;  %1503 = vmatprep.mubr.msk.bf16.mxu0 %vm421_vm2, %v1582_v10  ;;  %v1585_v13 = vld [vmem:[%s1661_s22 + $0x98] sm:$0xff]   ;;  %v1587_v15 = vld [vmem:[%s1661_s22 + $0xa0] sm:$0xff]   ;;  %v1589_v17 = vld [vmem:[%s1661_s22 + $0xa8] sm:$0xff]  }
  0x14   : > { %1535 = vmatprep.mubr.msk.bf16.mxu1 %vm421_vm2, %v1583_v11  ;;  %v1590_v18 = vld [vmem:[%s1661_s22 + $0x30] sm:$0xff]   ;;  %v1592_v20 = vld [vmem:[%s1661_s22 + $0x38] sm:$0xff]   ;;  %v1594_v22 = vld [vmem:[%s1661_s22 + $0x40] sm:$0xff]  }
  0x15   : > { %v1591_v19 = vld [vmem:[%s1661_s22 + $0xb0] sm:$0xff]   ;;  %v1593_v21 = vld [vmem:[%s1661_s22 + $0xb8] sm:$0xff]   ;;  %v1595_v23 = vld [vmem:[%s1661_s22 + $0xc0] sm:$0xff]  }
  0x16   : > { %v1596_v24 = vld [vmem:[%s1661_s22 + $0x48] sm:$0xff]   ;;  %v1598_v26 = vld [vmem:[%s1661_s22 + $0x50] sm:$0xff]   ;;  %v1600_v28 = vld [vmem:[%s1661_s22 + $0x58] sm:$0xff]  }
  0x17   : > { %v1597_v25 = vld [vmem:[%s1661_s22 + $0xc8] sm:$0xff]   ;;  %v1599_v27 = vld [vmem:[%s1661_s22 + $0xd0] sm:$0xff]   ;;  %v1601_v29 = vld [vmem:[%s1661_s22 + $0xd8] sm:$0xff]  }
  0x18   : > { %v1602_v30 = vld [vmem:[%s1661_s22 + $0x60] sm:$0xff]   ;;  %v1604_v32 = vld [vmem:[%s1661_s22 + $0x68] sm:$0xff]   ;;  %v1606_v34 = vld [vmem:[%s1661_s22 + $0x70] sm:$0xff]  }
  0x19   : > { %v1603_v31 = vld [vmem:[%s1661_s22 + $0xe0] sm:$0xff]   ;;  %v1605_v33 = vld [vmem:[%s1661_s22 + $0xe8] sm:$0xff]   ;;  %v1607_v35 = vld [vmem:[%s1661_s22 + $0xf0] sm:$0xff]  }
  0x1a   : > { %1504 = vmatmul.mubr.msk.bf16.gmra.mrb[4].mxu0 %vm421_vm2, %v1584_v12  ;;  %v1608_v36 = vld [vmem:[%s1661_s22 + $0x78] sm:$0xff]  }
  0x1b   : > { %1536 = vmatmul.mubr.msk.bf16.gmra.mrb[4].mxu1 %vm421_vm2, %v1585_v13  ;;  %1507 = vmatprep.mubr.msk.bf16.mxu0 %vm421_vm2, %v1586_v14  ;;  %v1609_v37 = vld [vmem:[%s1661_s22 + $0xf8] sm:$0xff]  }
  0x1c   : > { %1539 = vmatprep.mubr.msk.bf16.mxu1 %vm421_vm2, %v1587_v15 }
  0x22   : > { %1508 = vmatmul.mubr.msk.bf16.gmra.mrb[8].mxu0 %vm421_vm2, %v1588_v16 }
  0x23   : > { %1540 = vmatmul.mubr.msk.bf16.gmra.mrb[8].mxu1 %vm421_vm2, %v1589_v17  ;;  %1511 = vmatprep.mubr.msk.bf16.mxu0 %vm421_vm2, %v1590_v18 }
  0x24   : > { %1543 = vmatprep.mubr.msk.bf16.mxu1 %vm421_vm2, %v1591_v19 }
  0x2a   : > { %1512 = vmatmul.mubr.msk.bf16.gmra.mrb[12].mxu0 %vm421_vm2, %v1592_v20 }
  0x2b   : > { %1544 = vmatmul.mubr.msk.bf16.gmra.mrb[12].mxu1 %vm421_vm2, %v1593_v21  ;;  %1515 = vmatprep.mubr.msk.bf16.mxu0 %vm421_vm2, %v1594_v22 }
  0x2c   : > { %1547 = vmatprep.mubr.msk.bf16.mxu1 %vm421_vm2, %v1595_v23 }
  0x32   : > { %1516 = vmatmul.mubr.msk.bf16.gmra.mrb[16].mxu0 %vm421_vm2, %v1596_v24 }
  0x33   : > { %1548 = vmatmul.mubr.msk.bf16.gmra.mrb[16].mxu1 %vm421_vm2, %v1597_v25  ;;  %1519 = vmatprep.mubr.msk.bf16.mxu0 %vm421_vm2, %v1598_v26 }
  0x34   : > { %1551 = vmatprep.mubr.msk.bf16.mxu1 %vm421_vm2, %v1599_v27 }
  0x3a   : > { %1520 = vmatmul.mubr.msk.bf16.gmra.mrb[20].mxu0 %vm421_vm2, %v1600_v28 }
  0x3b   : > { %1552 = vmatmul.mubr.msk.bf16.gmra.mrb[20].mxu1 %vm421_vm2, %v1601_v29  ;;  %1523 = vmatprep.mubr.msk.bf16.mxu0 %vm421_vm2, %v1602_v30 }
  0x3c   : > { %1555 = vmatprep.mubr.msk.bf16.mxu1 %vm421_vm2, %v1603_v31 }
  0x42   : > { %1524 = vmatmul.mubr.msk.bf16.gmra.mrb[24].mxu0 %vm421_vm2, %v1604_v32 }
  0x43   : > { %1556 = vmatmul.mubr.msk.bf16.gmra.mrb[24].mxu1 %vm421_vm2, %v1605_v33  ;;  %1527 = vmatprep.mubr.msk.bf16.mxu0 %vm421_vm2, %v1606_v34 }
  0x44   : > { %1559 = vmatprep.mubr.msk.bf16.mxu1 %vm421_vm2, %v1607_v35 }
  0x4a   : > { %1528 = vmatmul.mubr.msk.bf16.gmra.mrb[28].mxu0 %vm421_vm2, %v1608_v36 }
  0x4b   : > { %1560 = vmatmul.mubr.msk.bf16.gmra.mrb[28].mxu1 %vm421_vm2, %v1609_v37 }
  0xe5   : > { %v1501_v39 = vpop.f32.mrb[0].mxu0 }
  0xe6   : > { %v568_v40 = vadd.f32 %v1501_v39, %v1730_v38  ;;  %v1533_v41 = vpop.f32.mrb[0].mxu1  ;;  %v559_v42 = vpop.f32.mrb[1].mxu0 }
  0xe7   : > { %v696_v43 = vadd.f32 %v1533_v41, %v1730_v38  ;;  %v560_v44 = vadd.f32 %v1730_v38, %v559_v42  ;;  %v687_v45 = vpop.f32.mrb[1].mxu1  ;;  %v1502_v46 = vpop.f32.mrb[2].mxu0 }
  0xe8   : > { %v816_v47 = vmax.f32 %v568_v40, 0.0  ;;  %v688_v48 = vadd.f32 %v1730_v38, %v687_v45  ;;  %v571_v49 = vadd.f32 %v1502_v46, %v1730_v38  ;;  %v1534_v50 = vpop.f32.mrb[2].mxu1  ;;  %v562_v51 = vpop.f32.mrb[3].mxu0 }
  0xe9   : > { %v848_v52 = vmax.f32 %v696_v43, 0.0  ;;  %v814_v53 = vmax.f32 %v560_v44, 0.0  ;;  %v699_v54 = vadd.f32 %v1534_v50, %v1730_v38  ;;  %v563_v55 = vadd.f32 %v1730_v38, %v562_v51  ;;  %v690_v56 = vpop.f32.mrb[3].mxu1 }
  0xea   : > { %v1399_v57 = vpack.c.bf16 %v816_v47, %v816_v47  ;;  %v846_v58 = vmax.f32 %v688_v48, 0.0  ;;  %v817_v59 = vmax.f32 %v571_v49, 0.0  ;;  %v691_v60 = vadd.f32 %v1730_v38, %v690_v56 }
  0xeb   : > { %v1431_v61 = vpack.c.bf16 %v848_v52, %v848_v52  ;;  %v1397_v62 = vpack.c.bf16 %v814_v53, %v814_v53  ;;  %v849_v63 = vmax.f32 %v699_v54, 0.0  ;;  %v815_v0 = vmax.f32 %v563_v55, 0.0 }
  0xec   : > { %1137 = vst.msk [vmem:[%s1742_s27 + $0x8] sm:$0xf] %vm1134_vm3, %v1399_v57  ;;  %v1429_v1 = vpack.c.bf16 %v846_v58, %v846_v58  ;;  %v1400_v2 = vpack.c.bf16 %v817_v59, %v817_v59  ;;  %v847_v3 = vmax.f32 %v691_v60, 0.0 }
  0xed   : > { %1169 = vst.msk [vmem:[%s1742_s27 + $0x88] sm:$0xf] %vm1134_vm3, %v1431_v61  ;;  %1135 = vst.msk [vmem:[%s1742_s27] sm:$0xf] %vm1134_vm3, %v1397_v62  ;;  %v1432_v4 = vpack.c.bf16 %v849_v63, %v849_v63  ;;  %v1398_v5 = vpack.c.bf16 %v815_v0, %v815_v0  ;;  %v1505_v6 = vpop.f32.mrb[4].mxu0 }
  0xee   : > { %1167 = vst.msk [vmem:[%s1742_s27 + $0x80] sm:$0xf] %vm1134_vm3, %v1429_v1  ;;  %1138 = vst.msk [vmem:[%s1742_s27 + $0xc] sm:$0xf] %vm1134_vm3, %v1400_v2  ;;  %v1430_v7 = vpack.c.bf16 %v847_v3, %v847_v3  ;;  %v584_v8 = vadd.f32 %v1505_v6, %v1730_v38  ;;  %v1537_v9 = vpop.f32.mrb[4].mxu1  ;;  %v575_v10 = vpop.f32.mrb[5].mxu0 }
  0xef   : > { %1170 = vst.msk [vmem:[%s1742_s27 + $0x8c] sm:$0xf] %vm1134_vm3, %v1432_v4  ;;  %1136 = vst.msk [vmem:[%s1742_s27 + $0x4] sm:$0xf] %vm1134_vm3, %v1398_v5  ;;  %v712_v11 = vadd.f32 %v1537_v9, %v1730_v38  ;;  %v576_v12 = vadd.f32 %v1730_v38, %v575_v10  ;;  %v703_v13 = vpop.f32.mrb[5].mxu1  ;;  %v1506_v14 = vpop.f32.mrb[6].mxu0 }
  0xf0   : > { %1168 = vst.msk [vmem:[%s1742_s27 + $0x84] sm:$0xf] %vm1134_vm3, %v1430_v7  ;;  %v820_v15 = vmax.f32 %v584_v8, 0.0  ;;  %v704_v16 = vadd.f32 %v1730_v38, %v703_v13  ;;  %v587_v17 = vadd.f32 %v1506_v14, %v1730_v38  ;;  %v1538_v18 = vpop.f32.mrb[6].mxu1  ;;  %v578_v19 = vpop.f32.mrb[7].mxu0 }
  0xf1   : > { %v852_v20 = vmax.f32 %v712_v11, 0.0  ;;  %v818_v21 = vmax.f32 %v576_v12, 0.0  ;;  %v715_v22 = vadd.f32 %v1538_v18, %v1730_v38  ;;  %v579_v23 = vadd.f32 %v1730_v38, %v578_v19  ;;  %v706_v24 = vpop.f32.mrb[7].mxu1 }
  0xf2   : > { %v1403_v25 = vpack.c.bf16 %v820_v15, %v820_v15  ;;  %v850_v26 = vmax.f32 %v704_v16, 0.0  ;;  %v821_v27 = vmax.f32 %v587_v17, 0.0  ;;  %v707_v28 = vadd.f32 %v1730_v38, %v706_v24 }
  0xf3   : > { %v1435_v29 = vpack.c.bf16 %v852_v20, %v852_v20  ;;  %v1401_v30 = vpack.c.bf16 %v818_v21, %v818_v21  ;;  %v853_v31 = vmax.f32 %v715_v22, 0.0  ;;  %v819_v32 = vmax.f32 %v579_v23, 0.0 }
  0xf4   : > { %1141 = vst.msk [vmem:[%s1742_s27 + $0x18] sm:$0xf] %vm1134_vm3, %v1403_v25  ;;  %v1433_v33 = vpack.c.bf16 %v850_v26, %v850_v26  ;;  %v1404_v34 = vpack.c.bf16 %v821_v27, %v821_v27  ;;  %v851_v35 = vmax.f32 %v707_v28, 0.0 }
  0xf5   : > { %1173 = vst.msk [vmem:[%s1742_s27 + $0x98] sm:$0xf] %vm1134_vm3, %v1435_v29  ;;  %1139 = vst.msk [vmem:[%s1742_s27 + $0x10] sm:$0xf] %vm1134_vm3, %v1401_v30  ;;  %v1436_v36 = vpack.c.bf16 %v853_v31, %v853_v31  ;;  %v1402_v37 = vpack.c.bf16 %v819_v32, %v819_v32  ;;  %v1509_v39 = vpop.f32.mrb[8].mxu0 }
  0xf6   : > { %1171 = vst.msk [vmem:[%s1742_s27 + $0x90] sm:$0xf] %vm1134_vm3, %v1433_v33  ;;  %1142 = vst.msk [vmem:[%s1742_s27 + $0x1c] sm:$0xf] %vm1134_vm3, %v1404_v34  ;;  %v1434_v40 = vpack.c.bf16 %v851_v35, %v851_v35  ;;  %v600_v41 = vadd.f32 %v1509_v39, %v1730_v38  ;;  %v1541_v42 = vpop.f32.mrb[8].mxu1  ;;  %v591_v43 = vpop.f32.mrb[9].mxu0 }
  0xf7   : > { %1174 = vst.msk [vmem:[%s1742_s27 + $0x9c] sm:$0xf] %vm1134_vm3, %v1436_v36  ;;  %1140 = vst.msk [vmem:[%s1742_s27 + $0x14] sm:$0xf] %vm1134_vm3, %v1402_v37  ;;  %v728_v44 = vadd.f32 %v1541_v42, %v1730_v38  ;;  %v592_v45 = vadd.f32 %v1730_v38, %v591_v43  ;;  %v719_v46 = vpop.f32.mrb[9].mxu1  ;;  %v1510_v47 = vpop.f32.mrb[10].mxu0 }
  0xf8   : > { %1172 = vst.msk [vmem:[%s1742_s27 + $0x94] sm:$0xf] %vm1134_vm3, %v1434_v40  ;;  %v824_v48 = vmax.f32 %v600_v41, 0.0  ;;  %v720_v49 = vadd.f32 %v1730_v38, %v719_v46  ;;  %v603_v50 = vadd.f32 %v1510_v47, %v1730_v38  ;;  %v1542_v51 = vpop.f32.mrb[10].mxu1  ;;  %v594_v52 = vpop.f32.mrb[11].mxu0 }
  0xf9   : > { %v856_v53 = vmax.f32 %v728_v44, 0.0  ;;  %v822_v54 = vmax.f32 %v592_v45, 0.0  ;;  %v731_v55 = vadd.f32 %v1542_v51, %v1730_v38  ;;  %v595_v56 = vadd.f32 %v1730_v38, %v594_v52  ;;  %v722_v57 = vpop.f32.mrb[11].mxu1 }
  0xfa   : > { %v1407_v58 = vpack.c.bf16 %v824_v48, %v824_v48  ;;  %v854_v59 = vmax.f32 %v720_v49, 0.0  ;;  %v825_v60 = vmax.f32 %v603_v50, 0.0  ;;  %v723_v61 = vadd.f32 %v1730_v38, %v722_v57 }
  0xfb   : > { %v1439_v62 = vpack.c.bf16 %v856_v53, %v856_v53  ;;  %v1405_v63 = vpack.c.bf16 %v822_v54, %v822_v54  ;;  %v857_v0 = vmax.f32 %v731_v55, 0.0  ;;  %v823_v1 = vmax.f32 %v595_v56, 0.0 }
  0xfc   : > { %1145 = vst.msk [vmem:[%s1742_s27 + $0x28] sm:$0xf] %vm1134_vm3, %v1407_v58  ;;  %v1437_v2 = vpack.c.bf16 %v854_v59, %v854_v59  ;;  %v1408_v3 = vpack.c.bf16 %v825_v60, %v825_v60  ;;  %v855_v4 = vmax.f32 %v723_v61, 0.0 }
  0xfd   : > { %1177 = vst.msk [vmem:[%s1742_s27 + $0xa8] sm:$0xf] %vm1134_vm3, %v1439_v62  ;;  %1143 = vst.msk [vmem:[%s1742_s27 + $0x20] sm:$0xf] %vm1134_vm3, %v1405_v63  ;;  %v1440_v5 = vpack.c.bf16 %v857_v0, %v857_v0  ;;  %v1406_v6 = vpack.c.bf16 %v823_v1, %v823_v1  ;;  %v1513_v7 = vpop.f32.mrb[12].mxu0 }
  0xfe   : > { %1175 = vst.msk [vmem:[%s1742_s27 + $0xa0] sm:$0xf] %vm1134_vm3, %v1437_v2  ;;  %1146 = vst.msk [vmem:[%s1742_s27 + $0x2c] sm:$0xf] %vm1134_vm3, %v1408_v3  ;;  %v1438_v8 = vpack.c.bf16 %v855_v4, %v855_v4  ;;  %v616_v9 = vadd.f32 %v1513_v7, %v1730_v38  ;;  %v1545_v10 = vpop.f32.mrb[12].mxu1  ;;  %v607_v11 = vpop.f32.mrb[13].mxu0 }
  0xff   : > { %1178 = vst.msk [vmem:[%s1742_s27 + $0xac] sm:$0xf] %vm1134_vm3, %v1440_v5  ;;  %1144 = vst.msk [vmem:[%s1742_s27 + $0x24] sm:$0xf] %vm1134_vm3, %v1406_v6  ;;  %v744_v12 = vadd.f32 %v1545_v10, %v1730_v38  ;;  %v608_v13 = vadd.f32 %v1730_v38, %v607_v11  ;;  %v735_v14 = vpop.f32.mrb[13].mxu1  ;;  %v1514_v15 = vpop.f32.mrb[14].mxu0 }
 0x100   : > { %1176 = vst.msk [vmem:[%s1742_s27 + $0xa4] sm:$0xf] %vm1134_vm3, %v1438_v8  ;;  %v828_v16 = vmax.f32 %v616_v9, 0.0  ;;  %v736_v17 = vadd.f32 %v1730_v38, %v735_v14  ;;  %v619_v18 = vadd.f32 %v1514_v15, %v1730_v38  ;;  %v1546_v19 = vpop.f32.mrb[14].mxu1  ;;  %v610_v20 = vpop.f32.mrb[15].mxu0 }
 0x101   : > { %v860_v21 = vmax.f32 %v744_v12, 0.0  ;;  %v826_v22 = vmax.f32 %v608_v13, 0.0  ;;  %v747_v23 = vadd.f32 %v1546_v19, %v1730_v38  ;;  %v611_v24 = vadd.f32 %v1730_v38, %v610_v20  ;;  %v738_v25 = vpop.f32.mrb[15].mxu1 }
 0x102   : > { %v1411_v26 = vpack.c.bf16 %v828_v16, %v828_v16  ;;  %v858_v27 = vmax.f32 %v736_v17, 0.0  ;;  %v829_v28 = vmax.f32 %v619_v18, 0.0  ;;  %v739_v29 = vadd.f32 %v1730_v38, %v738_v25 }
 0x103   : > { %v1443_v30 = vpack.c.bf16 %v860_v21, %v860_v21  ;;  %v1409_v31 = vpack.c.bf16 %v826_v22, %v826_v22  ;;  %v861_v32 = vmax.f32 %v747_v23, 0.0  ;;  %v827_v33 = vmax.f32 %v611_v24, 0.0 }
 0x104   : > { %1149 = vst.msk [vmem:[%s1742_s27 + $0x38] sm:$0xf] %vm1134_vm3, %v1411_v26  ;;  %v1441_v34 = vpack.c.bf16 %v858_v27, %v858_v27  ;;  %v1412_v35 = vpack.c.bf16 %v829_v28, %v829_v28  ;;  %v859_v36 = vmax.f32 %v739_v29, 0.0 }
 0x105   : > { %1181 = vst.msk [vmem:[%s1742_s27 + $0xb8] sm:$0xf] %vm1134_vm3, %v1443_v30  ;;  %1147 = vst.msk [vmem:[%s1742_s27 + $0x30] sm:$0xf] %vm1134_vm3, %v1409_v31  ;;  %v1444_v37 = vpack.c.bf16 %v861_v32, %v861_v32  ;;  %v1410_v39 = vpack.c.bf16 %v827_v33, %v827_v33  ;;  %v1517_v40 = vpop.f32.mrb[16].mxu0 }
 0x106   : > { %1179 = vst.msk [vmem:[%s1742_s27 + $0xb0] sm:$0xf] %vm1134_vm3, %v1441_v34  ;;  %1150 = vst.msk [vmem:[%s1742_s27 + $0x3c] sm:$0xf] %vm1134_vm3, %v1412_v35  ;;  %v1442_v41 = vpack.c.bf16 %v859_v36, %v859_v36  ;;  %v632_v42 = vadd.f32 %v1517_v40, %v1730_v38  ;;  %v1549_v43 = vpop.f32.mrb[16].mxu1  ;;  %v623_v44 = vpop.f32.mrb[17].mxu0 }
 0x107   : > { %1182 = vst.msk [vmem:[%s1742_s27 + $0xbc] sm:$0xf] %vm1134_vm3, %v1444_v37  ;;  %1148 = vst.msk [vmem:[%s1742_s27 + $0x34] sm:$0xf] %vm1134_vm3, %v1410_v39  ;;  %v760_v45 = vadd.f32 %v1549_v43, %v1730_v38  ;;  %v624_v46 = vadd.f32 %v1730_v38, %v623_v44  ;;  %v751_v47 = vpop.f32.mrb[17].mxu1  ;;  %v1518_v48 = vpop.f32.mrb[18].mxu0 }
 0x108   : > { %1180 = vst.msk [vmem:[%s1742_s27 + $0xb4] sm:$0xf] %vm1134_vm3, %v1442_v41  ;;  %v832_v49 = vmax.f32 %v632_v42, 0.0  ;;  %v752_v50 = vadd.f32 %v1730_v38, %v751_v47  ;;  %v635_v51 = vadd.f32 %v1518_v48, %v1730_v38  ;;  %v1550_v52 = vpop.f32.mrb[18].mxu1  ;;  %v626_v53 = vpop.f32.mrb[19].mxu0 }
 0x109   : > { %v864_v54 = vmax.f32 %v760_v45, 0.0  ;;  %v830_v55 = vmax.f32 %v624_v46, 0.0  ;;  %v763_v56 = vadd.f32 %v1550_v52, %v1730_v38  ;;  %v627_v57 = vadd.f32 %v1730_v38, %v626_v53  ;;  %v754_v58 = vpop.f32.mrb[19].mxu1 }
 0x10a   : > { %v1415_v59 = vpack.c.bf16 %v832_v49, %v832_v49  ;;  %v862_v60 = vmax.f32 %v752_v50, 0.0  ;;  %v833_v61 = vmax.f32 %v635_v51, 0.0  ;;  %v755_v62 = vadd.f32 %v1730_v38, %v754_v58 }
 0x10b   : > { %v1447_v63 = vpack.c.bf16 %v864_v54, %v864_v54  ;;  %v1413_v0 = vpack.c.bf16 %v830_v55, %v830_v55  ;;  %v865_v1 = vmax.f32 %v763_v56, 0.0  ;;  %v831_v2 = vmax.f32 %v627_v57, 0.0 }
 0x10c   : > { %1153 = vst.msk [vmem:[%s1742_s27 + $0x48] sm:$0xf] %vm1134_vm3, %v1415_v59  ;;  %v1445_v3 = vpack.c.bf16 %v862_v60, %v862_v60  ;;  %v1416_v4 = vpack.c.bf16 %v833_v61, %v833_v61  ;;  %v863_v5 = vmax.f32 %v755_v62, 0.0 }
 0x10d   : > { %1185 = vst.msk [vmem:[%s1742_s27 + $0xc8] sm:$0xf] %vm1134_vm3, %v1447_v63  ;;  %1151 = vst.msk [vmem:[%s1742_s27 + $0x40] sm:$0xf] %vm1134_vm3, %v1413_v0  ;;  %v1448_v6 = vpack.c.bf16 %v865_v1, %v865_v1  ;;  %v1414_v7 = vpack.c.bf16 %v831_v2, %v831_v2  ;;  %v1521_v8 = vpop.f32.mrb[20].mxu0 }
 0x10e   : > { %1183 = vst.msk [vmem:[%s1742_s27 + $0xc0] sm:$0xf] %vm1134_vm3, %v1445_v3  ;;  %1154 = vst.msk [vmem:[%s1742_s27 + $0x4c] sm:$0xf] %vm1134_vm3, %v1416_v4  ;;  %v1446_v9 = vpack.c.bf16 %v863_v5, %v863_v5  ;;  %v648_v10 = vadd.f32 %v1521_v8, %v1730_v38  ;;  %v1553_v11 = vpop.f32.mrb[20].mxu1  ;;  %v639_v12 = vpop.f32.mrb[21].mxu0 }
 0x10f   : > { %1186 = vst.msk [vmem:[%s1742_s27 + $0xcc] sm:$0xf] %vm1134_vm3, %v1448_v6  ;;  %1152 = vst.msk [vmem:[%s1742_s27 + $0x44] sm:$0xf] %vm1134_vm3, %v1414_v7  ;;  %v776_v13 = vadd.f32 %v1553_v11, %v1730_v38  ;;  %v640_v14 = vadd.f32 %v1730_v38, %v639_v12  ;;  %v767_v15 = vpop.f32.mrb[21].mxu1  ;;  %v1522_v16 = vpop.f32.mrb[22].mxu0 }
 0x110   : > { %1184 = vst.msk [vmem:[%s1742_s27 + $0xc4] sm:$0xf] %vm1134_vm3, %v1446_v9  ;;  %v836_v17 = vmax.f32 %v648_v10, 0.0  ;;  %v768_v18 = vadd.f32 %v1730_v38, %v767_v15  ;;  %v651_v19 = vadd.f32 %v1522_v16, %v1730_v38  ;;  %v1554_v20 = vpop.f32.mrb[22].mxu1  ;;  %v642_v21 = vpop.f32.mrb[23].mxu0 }
 0x111   : > { %v868_v22 = vmax.f32 %v776_v13, 0.0  ;;  %v834_v23 = vmax.f32 %v640_v14, 0.0  ;;  %v779_v24 = vadd.f32 %v1554_v20, %v1730_v38  ;;  %v643_v25 = vadd.f32 %v1730_v38, %v642_v21  ;;  %v770_v26 = vpop.f32.mrb[23].mxu1 }
 0x112   : > { %v1419_v27 = vpack.c.bf16 %v836_v17, %v836_v17  ;;  %v866_v28 = vmax.f32 %v768_v18, 0.0  ;;  %v837_v29 = vmax.f32 %v651_v19, 0.0  ;;  %v771_v30 = vadd.f32 %v1730_v38, %v770_v26 }
 0x113   : > { %v1451_v31 = vpack.c.bf16 %v868_v22, %v868_v22  ;;  %v1417_v32 = vpack.c.bf16 %v834_v23, %v834_v23  ;;  %v869_v33 = vmax.f32 %v779_v24, 0.0  ;;  %v835_v34 = vmax.f32 %v643_v25, 0.0 }
 0x114   : > { %1157 = vst.msk [vmem:[%s1742_s27 + $0x58] sm:$0xf] %vm1134_vm3, %v1419_v27  ;;  %v1449_v35 = vpack.c.bf16 %v866_v28, %v866_v28  ;;  %v1420_v36 = vpack.c.bf16 %v837_v29, %v837_v29  ;;  %v867_v37 = vmax.f32 %v771_v30, 0.0 }
 0x115   : > { %1189 = vst.msk [vmem:[%s1742_s27 + $0xd8] sm:$0xf] %vm1134_vm3, %v1451_v31  ;;  %1155 = vst.msk [vmem:[%s1742_s27 + $0x50] sm:$0xf] %vm1134_vm3, %v1417_v32  ;;  %v1452_v39 = vpack.c.bf16 %v869_v33, %v869_v33  ;;  %v1418_v40 = vpack.c.bf16 %v835_v34, %v835_v34  ;;  %v1525_v41 = vpop.f32.mrb[24].mxu0 }
 0x116   : > { %1187 = vst.msk [vmem:[%s1742_s27 + $0xd0] sm:$0xf] %vm1134_vm3, %v1449_v35  ;;  %1158 = vst.msk [vmem:[%s1742_s27 + $0x5c] sm:$0xf] %vm1134_vm3, %v1420_v36  ;;  %v1450_v42 = vpack.c.bf16 %v867_v37, %v867_v37  ;;  %v664_v43 = vadd.f32 %v1525_v41, %v1730_v38  ;;  %v1557_v44 = vpop.f32.mrb[24].mxu1  ;;  %v655_v45 = vpop.f32.mrb[25].mxu0 }
 0x117   : > { %1190 = vst.msk [vmem:[%s1742_s27 + $0xdc] sm:$0xf] %vm1134_vm3, %v1452_v39  ;;  %1156 = vst.msk [vmem:[%s1742_s27 + $0x54] sm:$0xf] %vm1134_vm3, %v1418_v40  ;;  %v792_v46 = vadd.f32 %v1557_v44, %v1730_v38  ;;  %v656_v47 = vadd.f32 %v1730_v38, %v655_v45  ;;  %v783_v48 = vpop.f32.mrb[25].mxu1  ;;  %v1526_v49 = vpop.f32.mrb[26].mxu0 }
 0x118   : > { %1188 = vst.msk [vmem:[%s1742_s27 + $0xd4] sm:$0xf] %vm1134_vm3, %v1450_v42  ;;  %v840_v50 = vmax.f32 %v664_v43, 0.0  ;;  %v784_v51 = vadd.f32 %v1730_v38, %v783_v48  ;;  %v667_v52 = vadd.f32 %v1526_v49, %v1730_v38  ;;  %v1558_v53 = vpop.f32.mrb[26].mxu1  ;;  %v658_v54 = vpop.f32.mrb[27].mxu0 }
 0x119   : > { %v872_v55 = vmax.f32 %v792_v46, 0.0  ;;  %v838_v56 = vmax.f32 %v656_v47, 0.0  ;;  %v795_v57 = vadd.f32 %v1558_v53, %v1730_v38  ;;  %v659_v58 = vadd.f32 %v1730_v38, %v658_v54  ;;  %v786_v59 = vpop.f32.mrb[27].mxu1 }
 0x11a   : > { %v1423_v60 = vpack.c.bf16 %v840_v50, %v840_v50  ;;  %v870_v61 = vmax.f32 %v784_v51, 0.0  ;;  %v841_v62 = vmax.f32 %v667_v52, 0.0  ;;  %v787_v63 = vadd.f32 %v1730_v38, %v786_v59 }
 0x11b   : > { %v1455_v0 = vpack.c.bf16 %v872_v55, %v872_v55  ;;  %v1421_v1 = vpack.c.bf16 %v838_v56, %v838_v56  ;;  %v873_v2 = vmax.f32 %v795_v57, 0.0  ;;  %v839_v3 = vmax.f32 %v659_v58, 0.0 }
 0x11c   : > { %1161 = vst.msk [vmem:[%s1742_s27 + $0x68] sm:$0xf] %vm1134_vm3, %v1423_v60  ;;  %v1453_v4 = vpack.c.bf16 %v870_v61, %v870_v61  ;;  %v1424_v5 = vpack.c.bf16 %v841_v62, %v841_v62  ;;  %v871_v6 = vmax.f32 %v787_v63, 0.0 }
 0x11d   : > { %1193 = vst.msk [vmem:[%s1742_s27 + $0xe8] sm:$0xf] %vm1134_vm3, %v1455_v0  ;;  %1159 = vst.msk [vmem:[%s1742_s27 + $0x60] sm:$0xf] %vm1134_vm3, %v1421_v1  ;;  %v1456_v7 = vpack.c.bf16 %v873_v2, %v873_v2  ;;  %v1422_v8 = vpack.c.bf16 %v839_v3, %v839_v3  ;;  %v1529_v9 = vpop.f32.mrb[28].mxu0 }
 0x11e   : > { %1191 = vst.msk [vmem:[%s1742_s27 + $0xe0] sm:$0xf] %vm1134_vm3, %v1453_v4  ;;  %1162 = vst.msk [vmem:[%s1742_s27 + $0x6c] sm:$0xf] %vm1134_vm3, %v1424_v5  ;;  %v1454_v10 = vpack.c.bf16 %v871_v6, %v871_v6  ;;  %v680_v11 = vadd.f32 %v1529_v9, %v1730_v38  ;;  %v1561_v12 = vpop.f32.mrb[28].mxu1  ;;  %v671_v13 = vpop.f32.mrb[29].mxu0 }
 0x11f   : > { %1194 = vst.msk [vmem:[%s1742_s27 + $0xec] sm:$0xf] %vm1134_vm3, %v1456_v7  ;;  %1160 = vst.msk [vmem:[%s1742_s27 + $0x64] sm:$0xf] %vm1134_vm3, %v1422_v8  ;;  %v808_v14 = vadd.f32 %v1561_v12, %v1730_v38  ;;  %v672_v15 = vadd.f32 %v1730_v38, %v671_v13  ;;  %v799_v16 = vpop.f32.mrb[29].mxu1  ;;  %v1530_v17 = vpop.f32.mrb[30].mxu0 }
 0x120   : > { %1192 = vst.msk [vmem:[%s1742_s27 + $0xe4] sm:$0xf] %vm1134_vm3, %v1454_v10  ;;  %v844_v18 = vmax.f32 %v680_v11, 0.0  ;;  %v800_v19 = vadd.f32 %v1730_v38, %v799_v16  ;;  %v683_v20 = vadd.f32 %v1530_v17, %v1730_v38  ;;  %v1562_v21 = vpop.f32.mrb[30].mxu1  ;;  %v674_v22 = vpop.f32.mrb[31].mxu0 }
 0x121   : > { %v876_v23 = vmax.f32 %v808_v14, 0.0  ;;  %v842_v24 = vmax.f32 %v672_v15, 0.0  ;;  %v811_v25 = vadd.f32 %v1562_v21, %v1730_v38  ;;  %v675_v26 = vadd.f32 %v1730_v38, %v674_v22  ;;  %v802_v27 = vpop.f32.mrb[31].mxu1 }
 0x122   : > { %v1427_v28 = vpack.c.bf16 %v844_v18, %v844_v18  ;;  %v874_v29 = vmax.f32 %v800_v19, 0.0  ;;  %v845_v30 = vmax.f32 %v683_v20, 0.0  ;;  %v803_v31 = vadd.f32 %v1730_v38, %v802_v27 }
 0x123   : > { %v1459_v32 = vpack.c.bf16 %v876_v23, %v876_v23  ;;  %v1425_v33 = vpack.c.bf16 %v842_v24, %v842_v24  ;;  %v877_v34 = vmax.f32 %v811_v25, 0.0  ;;  %v843_v35 = vmax.f32 %v675_v26, 0.0 }
 0x124   : > { %1165 = vst.msk [vmem:[%s1742_s27 + $0x78] sm:$0xf] %vm1134_vm3, %v1427_v28  ;;  %v1457_v36 = vpack.c.bf16 %v874_v29, %v874_v29  ;;  %v1428_v37 = vpack.c.bf16 %v845_v30, %v845_v30  ;;  %v875_v39 = vmax.f32 %v803_v31, 0.0 }
 0x125   : > { %1197 = vst.msk [vmem:[%s1742_s27 + $0xf8] sm:$0xf] %vm1134_vm3, %v1459_v32  ;;  %1163 = vst.msk [vmem:[%s1742_s27 + $0x70] sm:$0xf] %vm1134_vm3, %v1425_v33  ;;  %v1460_v40 = vpack.c.bf16 %v877_v34, %v877_v34  ;;  %v1426_v41 = vpack.c.bf16 %v843_v35, %v843_v35 }
 0x126   : > { %1195 = vst.msk [vmem:[%s1742_s27 + $0xf0] sm:$0xf] %vm1134_vm3, %v1457_v36  ;;  %1166 = vst.msk [vmem:[%s1742_s27 + $0x7c] sm:$0xf] %vm1134_vm3, %v1428_v37  ;;  %v1458_v38 = vpack.c.bf16 %v875_v39, %v875_v39 }
 0x127   : > { %1198 = vst.msk [vmem:[%s1742_s27 + $0xfc] sm:$0xf] %vm1134_vm3, %v1460_v40  ;;  %1164 = vst.msk [vmem:[%s1742_s27 + $0x74] sm:$0xf] %vm1134_vm3, %v1426_v41 }
 0x128   : > { %1196 = vst.msk [vmem:[%s1742_s27 + $0xf4] sm:$0xf] %vm1134_vm3, %v1458_v38 }
 0x129 PF: > { %s13_s12 = sadd.s32 1, %s1616_s12  }
 0x12a   : > { %p10_p4 = scmp.ge.s32.totalorder %s13_s12, 4  }
 0x12c   :  { %12 = sbr.rel (!%p10_p4) target bundleno = 1 (0x1), region = 62 }

// kernel: _front.18
= control target key start
LH: loop header
LB: loop body
LE: loop exit
PB: predicated region body
PF: predicated region fallthrough
CT: control target
= control target key end

     0   :  { %s1619_s12 = smov 0   ;;  %s1888_s0 = inlined_call_operand.vmem [shape: bf16[256,576], index: 0, kind: input, shape index: {}]   ;;  %s1889_s1 = inlined_call_operand.vmem [shape: bf16[576,64], index: 1, kind: input, shape index: {}]   ;;  %s1890_s2 = inlined_call_operand.vmem [shape: f32[1,64], index: 2, kind: input, shape index: {}]   ;;  %s1891_s3 = inlined_call_operand.vmem [shape: bf16[256,64], index: 3, kind: output, shape index: {}]  }
   0x1 LB: > { %s1190_s13 = sadd.s32 4294967295, %s1597_s12   ;;  %p1194_p0 = scmp.ge.s32.totalorder %s1597_s12, 1  ;;  %s1597_s12 = sphi %s1619_s12, %s13_s12  }
   0x2   : > { %p139_p1 = scmp.lt.s32.totalorder %s1597_s12, 3 }
   0x4   : > { %p140_p2 = pnand %p1194_p0, %p139_p1 }
   0x5   : > { %v1499_v0 = vld [vmem:[%s1889_s1 + $0x40] sm:$0xff] (!%p140_p2)   ;;  %v1503_v4 = vld [vmem:[%s1889_s1 + $0x48] sm:$0xff] (!%p140_p2)   ;;  %v1507_v8 = vld [vmem:[%s1889_s1 + $0x50] sm:$0xff] (!%p140_p2)   ;;  %s1195_s19 = sshll.u32 (!%p140_p2), %s1190_s13, 4  ;;  %vm721_vm0 = vcmask (!%p140_p2), 523264   ;;  %vm1117_vm1 = vcmask (!%p140_p2), 519168  }
   0x6   : > { %143 = sbr.rel (%p140_p2) target bundleno = 334 (0x14e), region = 32  ;;  %v1500_v1 = vld [vmem:[%s1889_s1 + $0xc0] sm:$0xff] (!%p140_p2)   ;;  %1318 = vmatprep.subr.bf16.mxu0 (!%p140_p2), %v1499_v0  ;;  %v1504_v5 = vld [vmem:[%s1889_s1 + $0xc8] sm:$0xff] (!%p140_p2)   ;;  %v1508_v9 = vld [vmem:[%s1889_s1 + $0xd0] sm:$0xff] (!%p140_p2)   ;;  %p165_p3 = scmp.lt.s32.totalorder (!%p140_p2), %s1195_s19, 31 }
   0x7   : > { %v1501_v2 = vld [vmem:[%s1889_s1] sm:$0xff] (!%p140_p2)   ;;  %1382 = vmatprep.subr.bf16.mxu1 (!%p140_p2), %v1500_v1  ;;  %v1505_v6 = vld [vmem:[%s1889_s1 + $0x8] sm:$0xff] (!%p140_p2)   ;;  %v1509_v10 = vld [vmem:[%s1889_s1 + $0x10] sm:$0xff] (!%p140_p2)  }
   0x8   : > { %v1502_v3 = vld [vmem:[%s1889_s1 + $0x80] sm:$0xff] (!%p140_p2)   ;;  %1319 = vmatpush3.bf16.msra.mxu0 (!%p140_p2), %v1501_v2  ;;  %v1506_v7 = vld [vmem:[%s1889_s1 + $0x88] sm:$0xff] (!%p140_p2)   ;;  %v1510_v11 = vld [vmem:[%s1889_s1 + $0x90] sm:$0xff] (!%p140_p2)  }
   0x9   : > { %1383 = vmatpush3.bf16.msra.mxu1 (!%p140_p2), %v1502_v3  ;;  %1320 = vmatprep.subr.bf16.mxu0 (!%p140_p2), %v1503_v4  ;;  %v1511_v12 = vld [vmem:[%s1889_s1 + $0x58] sm:$0xff] (!%p140_p2)   ;;  %v1515_v16 = vld [vmem:[%s1889_s1 + $0x60] sm:$0xff] (!%p140_p2)   ;;  %v1519_v20 = vld [vmem:[%s1889_s1 + $0x68] sm:$0xff] (!%p140_p2)  }
   0xa   : > { %1384 = vmatprep.subr.bf16.mxu1 (!%p140_p2), %v1504_v5  ;;  %v1512_v13 = vld [vmem:[%s1889_s1 + $0xd8] sm:$0xff] (!%p140_p2)   ;;  %v1516_v17 = vld [vmem:[%s1889_s1 + $0xe0] sm:$0xff] (!%p140_p2)   ;;  %v1520_v21 = vld [vmem:[%s1889_s1 + $0xe8] sm:$0xff] (!%p140_p2)  }
   0xb   : > { %v1513_v14 = vld [vmem:[%s1889_s1 + $0x18] sm:$0xff] (!%p140_p2)   ;;  %v1517_v18 = vld [vmem:[%s1889_s1 + $0x20] sm:$0xff] (!%p140_p2)   ;;  %v1521_v22 = vld [vmem:[%s1889_s1 + $0x28] sm:$0xff] (!%p140_p2)  }
   0xc   : > { %1321 = vmatpush3.bf16.msra.mxu0 (!%p140_p2), %v1505_v6  ;;  %v1514_v15 = vld [vmem:[%s1889_s1 + $0x98] sm:$0xff] (!%p140_p2)   ;;  %v1518_v19 = vld [vmem:[%s1889_s1 + $0xa0] sm:$0xff] (!%p140_p2)   ;;  %v1522_v23 = vld [vmem:[%s1889_s1 + $0xa8] sm:$0xff] (!%p140_p2)  }
   0xd   : > { %1385 = vmatpush3.bf16.msra.mxu1 %v1506_v7  ;;  %1322 = vmatprep.subr.bf16.mxu0 %v1507_v8  ;;  %s1893_s19 = smov (!%p165_p3, %s1195_s19), 31  ;;  %v1523_v24 = vld [vmem:[%s1889_s1 + $0x70] sm:$0xff]   ;;  %v1527_v28 = vld [vmem:[%s1889_s1 + $0x78] sm:$0xff]   ;;  %v1537_v36 = vld [vmem:[%s1889_s1 + $0x100] sm:$0xff]  }
   0xe   : > { %1386 = vmatprep.subr.bf16.mxu1 %v1508_v9  ;;  %v1524_v25 = vld [vmem:[%s1889_s1 + $0xf0] sm:$0xff]   ;;  %s1490_s16 = smul.u32 20, %s1893_s19  ;;  %v1528_v29 = vld [vmem:[%s1889_s1 + $0xf8] sm:$0xff]   ;;  %v1550_v42 = vld [vmem:[%s1889_s1 + $0x108] sm:$0xff]   ;;  %s1198_s17 = sshll.u32 %s1893_s19, 2 }
   0xf   : > { %v1525_v26 = vld [vmem:[%s1889_s1 + $0x30] sm:$0xff]   ;;  %v1529_v30 = vld [vmem:[%s1889_s1 + $0x38] sm:$0xff]   ;;  %s1843_s19 = scalar_lea.vmem %s1891_s3, %s1198_s17 }
  0x10   : > { %1323 = vmatpush3.bf16.msra.mxu0 %v1509_v10  ;;  %v1526_v27 = vld [vmem:[%s1889_s1 + $0xb0] sm:$0xff]   ;;  %s1725_s13 = scalar_lea.vmem %s1888_s0, %s1490_s16  ;;  %v1530_v31 = vld [vmem:[%s1889_s1 + $0xb8] sm:$0xff]  }
  0x11   : > { %1387 = vmatpush3.bf16.msra.mxu1 %v1510_v11  ;;  %1324 = vmatprep.subr.bf16.mxu0 %v1511_v12  ;;  %v1531_v32 = vld [vmem:[%s1725_s13] ss:$20 sps:$4 sm:$0xff]   ;;  %v1533_v33 = vld [vmem:[%s1725_s13 + $0x4] ss:$20 sps:$4 sm:$0xff]   ;;  %v1534_v34 = vld [vmem:[%s1725_s13 + $0x8] ss:$20 sps:$4 sm:$0xff]  }
  0x12   : > { %1388 = vmatprep.subr.bf16.mxu1 %v1512_v13  ;;  %v1536_v35 = vld [vmem:[%s1725_s13 + $0xc] ss:$20 sps:$4 sm:$0xff]   ;;  %778 = vmatprep.mubr.bf16.mxu0 %v1533_v33  ;;  %v1540_v38 = vld [vmem:[%s1725_s13 + $0x34] ss:$20 sps:$4 sm:$0xff]   ;;  %v1543_v40 = vld [vmem:[%s1725_s13 + $0x30] ss:$20 sps:$4 sm:$0xff]  }
  0x13   : > { %875 = vmatprep.mubr.bf16.mxu1 %v1536_v35  ;;  %v1538_v37 = vld [vmem:[%s1725_s13 + $0x2c] ss:$20 sps:$4 sm:$0xff]   ;;  %v1542_v39 = vld [vmem:[%s1725_s13 + $0x28] ss:$20 sps:$4 sm:$0xff]   ;;  %v1548_v44 = vld [vmem:[%s1725_s13 + $0x50] ss:$20 sps:$4 sm:$0xff]  }
  0x14   : > { %1325 = vmatpush3.bf16.msra.mxu0 %v1513_v14  ;;  %v1544_v41 = vld [vmem:[%s1725_s13 + $0x54] ss:$20 sps:$4 sm:$0xff]   ;;  %v1546_v43 = vld [vmem:[%s1725_s13 + $0x5c] ss:$20 sps:$4 sm:$0xff]   ;;  %v1549_v45 = vld [vmem:[%s1725_s13 + $0x58] ss:$20 sps:$4 sm:$0xff]  }
  0x15   : > { %1389 = vmatpush3.bf16.msra.mxu1 %v1514_v15  ;;  %1326 = vmatprep.subr.bf16.mxu0 %v1515_v16  ;;  %v1563_v46 = vld [vmem:[%s1889_s1 + $0x110] sm:$0xff]   ;;  %v1553_v48 = vld [vmem:[%s1725_s13 + $0x84] ss:$20 sps:$4 sm:$0xff]   ;;  %v1559_v53 = vld [vmem:[%s1725_s13 + $0xac] ss:$20 sps:$4 sm:$0xff]  }
  0x16   : > { %1390 = vmatprep.subr.bf16.mxu1 %v1516_v17  ;;  %v1551_v47 = vld [vmem:[%s1725_s13 + $0x7c] ss:$20 sps:$4 sm:$0xff]   ;;  %v1555_v50 = vld [vmem:[%s1725_s13 + $0x78] ss:$20 sps:$4 sm:$0xff]   ;;  %v1556_v51 = vld [vmem:[%s1725_s13 + $0x80] ss:$20 sps:$4 sm:$0xff]  }
  0x17   : > { %v1576_v49 = vld [vmem:[%s1889_s1 + $0x118] sm:$0xff]   ;;  %v1561_v54 = vld [vmem:[%s1725_s13 + $0xa0] ss:$20 sps:$4 sm:$0xff]   ;;  %v1569_v59 = vld [vmem:[%s1725_s13 + $0xd0] ss:$20 sps:$4 sm:$0xff]  }
  0x18   : > { %1327 = vmatpush3.bf16.msra.mxu0 %v1517_v18  ;;  %v1557_v52 = vld [vmem:[%s1725_s13 + $0xa4] ss:$20 sps:$4 sm:$0xff]   ;;  %v1562_v55 = vld [vmem:[%s1725_s13 + $0xa8] ss:$20 sps:$4 sm:$0xff]   ;;  %v1564_v56 = vld [vmem:[%s1725_s13 + $0xcc] ss:$20 sps:$4 sm:$0xff]  }
  0x19   : > { %1391 = vmatpush3.bf16.msra.mxu1 %v1518_v19  ;;  %1328 = vmatprep.subr.bf16.mxu0 %v1519_v20  ;;  %v1566_v57 = vld [vmem:[%s1725_s13 + $0xd4] ss:$20 sps:$4 sm:$0xff]   ;;  %v1572_v61 = vld [vmem:[%s1725_s13 + $0xfc] ss:$20 sps:$4 sm:$0xff]   ;;  %v1575_v63 = vld [vmem:[%s1725_s13 + $0xf8] ss:$20 sps:$4 sm:$0xff]  }
  0x1a   : > { %1392 = vmatprep.subr.bf16.mxu1 %v1520_v21  ;;  %v1568_v58 = vld [vmem:[%s1725_s13 + $0xc8] ss:$20 sps:$4 sm:$0xff]   ;;  %v1574_v62 = vld [vmem:[%s1725_s13 + $0xf0] ss:$20 sps:$4 sm:$0xff]   ;;  %v1581_v2 = vld [vmem:[%s1725_s13 + $0x118] ss:$20 sps:$4 sm:$0xff]  }
  0x1b   : > { %v1570_v60 = vld [vmem:[%s1725_s13 + $0xf4] ss:$20 sps:$4 sm:$0xff]   ;;  %v1577_v0 = vld [vmem:[%s1725_s13 + $0x11c] ss:$20 sps:$4 sm:$0xff]   ;;  %v1579_v1 = vld [vmem:[%s1725_s13 + $0x124] ss:$20 sps:$4 sm:$0xff]  }
  0x1c   : > { %1329 = vmatpush3.bf16.msra.mxu0 %v1521_v22  ;;  %v1582_v3 = vld [vmem:[%s1725_s13 + $0x120] ss:$20 sps:$4 sm:$0xff]   ;;  %v1583_v4 = vld [vmem:[%s1725_s13 + $0x10] ss:$20 sps:$4 sm:$0xff]   ;;  %v1585_v6 = vld [vmem:[%s1725_s13 + $0x38] ss:$20 sps:$4 sm:$0xff]  }
  0x1d   : > { %1393 = vmatpush3.bf16.msra.mxu1 %v1522_v23  ;;  %1330 = vmatprep.subr.bf16.mxu0 %v1523_v24  ;;  %v1584_v5 = vld [vmem:[%s1725_s13 + $0xb0] ss:$20 sps:$4 sm:$0xff]   ;;  %v1586_v7 = vld [vmem:[%s1725_s13 + $0xd8] ss:$20 sps:$4 sm:$0xff]   ;;  %v1587_v8 = vld [vmem:[%s1725_s13 + $0x60] ss:$20 sps:$4 sm:$0xff]  }
  0x1e   : > { %1394 = vmatprep.subr.bf16.mxu1 %v1524_v25  ;;  %v1588_v9 = vld [vmem:[%s1725_s13 + $0x100] ss:$20 sps:$4 sm:$0xff]   ;;  %v1589_v10 = vld [vmem:[%s1725_s13 + $0x88] ss:$20 sps:$4 sm:$0xff]  }
  0x1f   : > { %v1590_v11 = vld [vmem:[%s1725_s13 + $0x128] ss:$20 sps:$4 sm:$0xff]   ;;  %v1796_v14 = vld [vmem:[%s1890_s2] ss:$0 sm:$0xff] }
  0x20   : > { %1331 = vmatpush3.bf16.msra.mxu0 %v1525_v26 }
  0x21   : > { %1395 = vmatpush3.bf16.msra.mxu1 %v1526_v27  ;;  %1332 = vmatprep.subr.bf16.mxu0 %v1527_v28 }
  0x22   : > { %1396 = vmatprep.subr.bf16.mxu1 %v1528_v29 }
  0x24   : > { %1333 = vmatpush3.bf16.msra.mxu0 %v1529_v30 }
  0x25   : > { %1397 = vmatpush3.bf16.msra.mxu1 %v1530_v31  ;;  %1458 = vmatprep.subr.bf16.mxu0 %v1537_v36 }
  0x26   : > { %1482 = vmatprep.subr.bf16.mxu1 %v1537_v36 }
  0x27   : > { %779 = vmatmul.mubr.bf16.vlgmr.msra.gmra.mrb[0].mxu0 %v1531_v32 }
  0x28   : > { %876 = vmatmul.mubr.bf16.vlgmr.msra.gmra.mrb[0].mxu1 %v1534_v34  ;;  %1459 = vmatpush3.bf16.msra.mxu0 %v1537_v36 }
  0x29   : > { %1486 = vmatpush3.bf16.msra.mxu1 %v1537_v36  ;;  %786 = vmatprep.mubr.bf16.mxu0 %v1538_v37 }
  0x2a   : > { %883 = vmatprep.mubr.bf16.mxu1 %v1540_v38  ;;  %1460 = vmatprep.subr.bf16.mxu0 %v1550_v42 }
  0x2b   : > { %1483 = vmatprep.subr.bf16.mxu1 %v1550_v42 }
  0x2c   : > { %1461 = vmatpush3.bf16.msra.mxu0 %v1550_v42 }
  0x2d   : > { %1487 = vmatpush3.bf16.msra.mxu1 %v1550_v42  ;;  %1462 = vmatprep.subr.bf16.mxu0 %v1563_v46 }
  0x2e   : > { %1484 = vmatprep.subr.bf16.mxu1 %v1563_v46 }
  0x2f   : > { %787 = vmatmul.mubr.bf16.gmra.mrb[4].mxu0 %v1542_v39 }
  0x30   : > { %884 = vmatmul.mubr.bf16.gmra.mrb[4].mxu1 %v1543_v40  ;;  %794 = vmatprep.mubr.bf16.mxu0 %v1544_v41 }
  0x31   : > { %891 = vmatprep.mubr.bf16.mxu1 %v1546_v43  ;;  %1463 = vmatpush3.bf16.msra.mxu0 %v1563_v46 }
  0x32   : > { %1488 = vmatpush3.bf16.msra.mxu1 %v1563_v46  ;;  %1464 = vmatprep.subr.bf16.mxu0 %v1576_v49 }
  0x33   : > { %1485 = vmatprep.subr.bf16.mxu1 %v1576_v49 }
  0x35   : > { %1465 = vmatpush3.bf16.msra.mxu0 %v1576_v49 }
  0x36   : > { %1489 = vmatpush3.bf16.msra.mxu1 %v1576_v49 }
  0x37   : > { %795 = vmatmul.mubr.bf16.gmra.mrb[8].mxu0 %v1548_v44 }
  0x38   : > { %892 = vmatmul.mubr.bf16.gmra.mrb[8].mxu1 %v1549_v45  ;;  %802 = vmatprep.mubr.bf16.mxu0 %v1551_v47 }
  0x39   : > { %899 = vmatprep.mubr.bf16.mxu1 %v1553_v48 }
  0x3f   : > { %803 = vmatmul.mubr.bf16.gmra.mrb[12].mxu0 %v1555_v50 }
  0x40   : > { %900 = vmatmul.mubr.bf16.gmra.mrb[12].mxu1 %v1556_v51  ;;  %810 = vmatprep.mubr.bf16.mxu0 %v1557_v52 }
  0x41   : > { %907 = vmatprep.mubr.bf16.mxu1 %v1559_v53 }
  0x47   : > { %811 = vmatmul.mubr.bf16.gmra.mrb[16].mxu0 %v1561_v54 }
  0x48   : > { %908 = vmatmul.mubr.bf16.gmra.mrb[16].mxu1 %v1562_v55  ;;  %818 = vmatprep.mubr.bf16.mxu0 %v1564_v56 }
  0x49   : > { %915 = vmatprep.mubr.bf16.mxu1 %v1566_v57 }
  0x4f   : > { %819 = vmatmul.mubr.bf16.gmra.mrb[20].mxu0 %v1568_v58 }
  0x50   : > { %916 = vmatmul.mubr.bf16.gmra.mrb[20].mxu1 %v1569_v59  ;;  %826 = vmatprep.mubr.bf16.mxu0 %v1570_v60 }
  0x51   : > { %923 = vmatprep.mubr.bf16.mxu1 %v1572_v61 }
  0x57   : > { %827 = vmatmul.mubr.bf16.gmra.mrb[24].mxu0 %v1574_v62 }
  0x58   : > { %924 = vmatmul.mubr.bf16.gmra.mrb[24].mxu1 %v1575_v63  ;;  %834 = vmatprep.mubr.bf16.mxu0 %v1577_v0 }
  0x59   : > { %931 = vmatprep.mubr.bf16.mxu1 %v1579_v1 }
  0x5f   : > { %835 = vmatmul.mubr.bf16.gmra.mrb[28].mxu0 %v1581_v2 }
  0x60   : > { %932 = vmatmul.mubr.bf16.gmra.mrb[28].mxu1 %v1582_v3  ;;  %1466 = vmatprep.mubr.msk.bf16.mxu0 %vm721_vm0, %v1583_v4 }
  0x61   : > { %1474 = vmatprep.mubr.msk.bf16.mxu1 %vm721_vm0, %v1584_v5 }
  0x67   : > { %1467 = vmatmul.mubr.msk.bf16.vlgmr.msra.gmra.mrb[32].mxu0 %vm721_vm0, %v1585_v6 }
  0x68   : > { %1475 = vmatmul.mubr.msk.bf16.vlgmr.msra.gmra.mrb[32].mxu1 %vm721_vm0, %v1586_v7  ;;  %1470 = vmatprep.mubr.msk.bf16.mxu0 %vm721_vm0, %v1587_v8 }
  0x69   : > { %1478 = vmatprep.mubr.msk.bf16.mxu1 %vm721_vm0, %v1588_v9 }
  0x6f   : > { %1471 = vmatmul.mubr.msk.bf16.gmra.mrb[36].mxu0 %vm721_vm0, %v1589_v10 }
  0x70   : > { %1479 = vmatmul.mubr.msk.bf16.gmra.mrb[36].mxu1 %vm721_vm0, %v1590_v11 }
  0xfa   : > { %v1334_v12 = vpop.f32.mrb[0].mxu0 }
  0xfb   : > { %v1398_v13 = vpop.f32.mrb[0].mxu1  ;;  %v1335_v15 = vpop.f32.mrb[1].mxu0 }
  0xfc   : > { %v1336_v16 = vadd.f32 %v1335_v15, %v1334_v12  ;;  %v1399_v17 = vpop.f32.mrb[1].mxu1  ;;  %v1337_v18 = vpop.f32.mrb[2].mxu0 }
  0xfd   : > { %v1400_v19 = vadd.f32 %v1399_v17, %v1398_v13  ;;  %v1401_v20 = vpop.f32.mrb[2].mxu1  ;;  %v1338_v21 = vpop.f32.mrb[3].mxu0 }
  0xfe   : > { %v781_v22 = vadd.f32 %v1336_v16, %v1796_v14  ;;  %v1339_v23 = vadd.f32 %v1338_v21, %v1337_v18  ;;  %v1402_v24 = vpop.f32.mrb[3].mxu1 }
  0xff   : > { %v1403_v25 = vadd.f32 %v1402_v24, %v1401_v20 }
 0x100   : > { %v784_v26 = vadd.f32 %v1339_v23, %v1796_v14  ;;  %v1800_v27 = vadd.f32 %v1400_v19, %v781_v22 }
 0x102   : > { %v1340_v28 = vpop.f32.mrb[4].mxu0  ;;  %v1802_v29 = vadd.f32 %v1403_v25, %v784_v26 }
 0x103   : > { %v1404_v30 = vpop.f32.mrb[4].mxu1  ;;  %v1341_v31 = vpop.f32.mrb[5].mxu0 }
 0x104   : > { %v1342_v32 = vadd.f32 %v1341_v31, %v1340_v28  ;;  %v1405_v33 = vpop.f32.mrb[5].mxu1  ;;  %v1343_v34 = vpop.f32.mrb[6].mxu0 }
 0x105   : > { %v1406_v35 = vadd.f32 %v1405_v33, %v1404_v30  ;;  %v1407_v36 = vpop.f32.mrb[6].mxu1  ;;  %v1344_v37 = vpop.f32.mrb[7].mxu0 }
 0x106   : > { %v789_v38 = vadd.f32 %v1342_v32, %v1796_v14  ;;  %v1345_v39 = vadd.f32 %v1344_v37, %v1343_v34  ;;  %v1408_v40 = vpop.f32.mrb[7].mxu1 }
 0x107   : > { %v1409_v41 = vadd.f32 %v1408_v40, %v1407_v36 }
 0x108   : > { %v792_v42 = vadd.f32 %v1345_v39, %v1796_v14  ;;  %v1806_v43 = vadd.f32 %v1406_v35, %v789_v38 }
 0x10a   : > { %v1346_v44 = vpop.f32.mrb[8].mxu0  ;;  %v1808_v45 = vadd.f32 %v1409_v41, %v792_v42 }
 0x10b   : > { %v1410_v46 = vpop.f32.mrb[8].mxu1  ;;  %v1347_v47 = vpop.f32.mrb[9].mxu0 }
 0x10c   : > { %v1348_v48 = vadd.f32 %v1347_v47, %v1346_v44  ;;  %v1411_v49 = vpop.f32.mrb[9].mxu1  ;;  %v1349_v50 = vpop.f32.mrb[10].mxu0 }
 0x10d   : > { %v1412_v51 = vadd.f32 %v1411_v49, %v1410_v46  ;;  %v1413_v52 = vpop.f32.mrb[10].mxu1  ;;  %v1350_v53 = vpop.f32.mrb[11].mxu0 }
 0x10e   : > { %v797_v54 = vadd.f32 %v1348_v48, %v1796_v14  ;;  %v1351_v55 = vadd.f32 %v1350_v53, %v1349_v50  ;;  %v1414_v56 = vpop.f32.mrb[11].mxu1 }
 0x10f   : > { %v1415_v57 = vadd.f32 %v1414_v56, %v1413_v52 }
 0x110   : > { %v800_v58 = vadd.f32 %v1351_v55, %v1796_v14  ;;  %v1812_v59 = vadd.f32 %v1412_v51, %v797_v54 }
 0x112   : > { %v1352_v60 = vpop.f32.mrb[12].mxu0  ;;  %v1814_v61 = vadd.f32 %v1415_v57, %v800_v58 }
 0x113   : > { %v1416_v62 = vpop.f32.mrb[12].mxu1  ;;  %v1353_v63 = vpop.f32.mrb[13].mxu0 }
 0x114   : > { %v1354_v0 = vadd.f32 %v1353_v63, %v1352_v60  ;;  %v1417_v1 = vpop.f32.mrb[13].mxu1  ;;  %v1355_v2 = vpop.f32.mrb[14].mxu0 }
 0x115   : > { %v1418_v3 = vadd.f32 %v1417_v1, %v1416_v62  ;;  %v1419_v4 = vpop.f32.mrb[14].mxu1  ;;  %v1356_v5 = vpop.f32.mrb[15].mxu0 }
 0x116   : > { %v805_v6 = vadd.f32 %v1354_v0, %v1796_v14  ;;  %v1357_v7 = vadd.f32 %v1356_v5, %v1355_v2  ;;  %v1420_v8 = vpop.f32.mrb[15].mxu1 }
 0x117   : > { %v1421_v9 = vadd.f32 %v1420_v8, %v1419_v4 }
 0x118   : > { %v808_v10 = vadd.f32 %v1357_v7, %v1796_v14  ;;  %v1818_v11 = vadd.f32 %v1418_v3, %v805_v6 }
 0x11a   : > { %v1358_v12 = vpop.f32.mrb[16].mxu0  ;;  %v1820_v13 = vadd.f32 %v1421_v9, %v808_v10 }
 0x11b   : > { %v1422_v15 = vpop.f32.mrb[16].mxu1  ;;  %v1359_v16 = vpop.f32.mrb[17].mxu0 }
 0x11c   : > { %v1360_v17 = vadd.f32 %v1359_v16, %v1358_v12  ;;  %v1423_v18 = vpop.f32.mrb[17].mxu1  ;;  %v1361_v19 = vpop.f32.mrb[18].mxu0 }
 0x11d   : > { %v1424_v20 = vadd.f32 %v1423_v18, %v1422_v15  ;;  %v1425_v21 = vpop.f32.mrb[18].mxu1  ;;  %v1362_v22 = vpop.f32.mrb[19].mxu0 }
 0x11e   : > { %v813_v23 = vadd.f32 %v1360_v17, %v1796_v14  ;;  %v1363_v24 = vadd.f32 %v1362_v22, %v1361_v19  ;;  %v1426_v25 = vpop.f32.mrb[19].mxu1 }
 0x11f   : > { %v1427_v26 = vadd.f32 %v1426_v25, %v1425_v21 }
 0x120   : > { %v816_v28 = vadd.f32 %v1363_v24, %v1796_v14  ;;  %v910_v30 = vadd.f32 %v1424_v20, %v813_v23 }
 0x122   : > { %v1364_v31 = vpop.f32.mrb[20].mxu0  ;;  %v1824_v32 = vadd.f32 %v1427_v26, %v816_v28 }
 0x123   : > { %v1428_v33 = vpop.f32.mrb[20].mxu1  ;;  %v1365_v34 = vpop.f32.mrb[21].mxu0 }
 0x124   : > { %v1366_v35 = vadd.f32 %v1365_v34, %v1364_v31  ;;  %v1429_v36 = vpop.f32.mrb[21].mxu1  ;;  %v1367_v37 = vpop.f32.mrb[22].mxu0 }
 0x125   : > { %v1430_v38 = vadd.f32 %v1429_v36, %v1428_v33  ;;  %v1431_v39 = vpop.f32.mrb[22].mxu1  ;;  %v1368_v40 = vpop.f32.mrb[23].mxu0 }
 0x126   : > { %v821_v41 = vadd.f32 %v1366_v35, %v1796_v14  ;;  %v1369_v42 = vadd.f32 %v1368_v40, %v1367_v37  ;;  %v1432_v44 = vpop.f32.mrb[23].mxu1 }
 0x127   : > { %v1433_v46 = vadd.f32 %v1432_v44, %v1431_v39 }
 0x128   : > { %v824_v47 = vadd.f32 %v1369_v42, %v1796_v14  ;;  %v918_v48 = vadd.f32 %v1430_v38, %v821_v41 }
 0x12a   : > { %v1370_v49 = vpop.f32.mrb[24].mxu0  ;;  %v921_v50 = vadd.f32 %v1433_v46, %v824_v47 }
 0x12b   : > { %v1434_v51 = vpop.f32.mrb[24].mxu1  ;;  %v1371_v52 = vpop.f32.mrb[25].mxu0 }
 0x12c   : > { %v1372_v53 = vadd.f32 %v1371_v52, %v1370_v49  ;;  %v1435_v54 = vpop.f32.mrb[25].mxu1  ;;  %v1373_v55 = vpop.f32.mrb[26].mxu0 }
 0x12d   : > { %v1436_v56 = vadd.f32 %v1435_v54, %v1434_v51  ;;  %v1437_v57 = vpop.f32.mrb[26].mxu1  ;;  %v1374_v58 = vpop.f32.mrb[27].mxu0 }
 0x12e   : > { %v829_v60 = vadd.f32 %v1372_v53, %v1796_v14  ;;  %v1375_v62 = vadd.f32 %v1374_v58, %v1373_v55  ;;  %v1438_v63 = vpop.f32.mrb[27].mxu1 }
 0x12f   : > { %v1439_v0 = vadd.f32 %v1438_v63, %v1437_v57 }
 0x130   : > { %v832_v1 = vadd.f32 %v1375_v62, %v1796_v14  ;;  %v1830_v2 = vadd.f32 %v1436_v56, %v829_v60 }
 0x132   : > { %v1376_v3 = vpop.f32.mrb[28].mxu0  ;;  %v1832_v4 = vadd.f32 %v1439_v0, %v832_v1 }
 0x133   : > { %v1440_v5 = vpop.f32.mrb[28].mxu1  ;;  %v1377_v6 = vpop.f32.mrb[29].mxu0 }
 0x134   : > { %v1378_v7 = vadd.f32 %v1377_v6, %v1376_v3  ;;  %v1441_v8 = vpop.f32.mrb[29].mxu1  ;;  %v1379_v9 = vpop.f32.mrb[30].mxu0 }
 0x135   : > { %v1442_v10 = vadd.f32 %v1441_v8, %v1440_v5  ;;  %v1443_v12 = vpop.f32.mrb[30].mxu1  ;;  %v1380_v15 = vpop.f32.mrb[31].mxu0 }
 0x136   : > { %v837_v16 = vadd.f32 %v1378_v7, %v1796_v14  ;;  %v1381_v17 = vadd.f32 %v1380_v15, %v1379_v9  ;;  %v1444_v18 = vpop.f32.mrb[31].mxu1 }
 0x137   : > { %v1445_v19 = vadd.f32 %v1444_v18, %v1443_v12 }
 0x138   : > { %v840_v20 = vadd.f32 %v1381_v17, %v1796_v14  ;;  %v934_v21 = vadd.f32 %v1442_v10, %v837_v16 }
 0x13a   : > { %v1468_v22 = vpop.f32.mrb[32].mxu0  ;;  %v937_v23 = vadd.f32 %v1445_v19, %v840_v20 }
 0x13b   : > { %v983_v24 = vadd.f32 %v1468_v22, %v1806_v43  ;;  %v1476_v25 = vpop.f32.mrb[32].mxu1  ;;  %v974_v26 = vpop.f32.mrb[33].mxu0 }
 0x13c   : > { %v1015_v28 = vadd.f32 %v1476_v25, %v918_v48  ;;  %v975_v31 = vadd.f32 %v974_v26, %v1800_v27  ;;  %v1006_v33 = vpop.f32.mrb[33].mxu1  ;;  %v1469_v34 = vpop.f32.mrb[34].mxu0 }
 0x13d   : > { %v1039_v35 = vmax.f32 %v983_v24, 0.0  ;;  %v1007_v36 = vadd.f32 %v1006_v33, %v910_v30  ;;  %v986_v37 = vadd.f32 %v1469_v34, %v1808_v45  ;;  %v1477_v38 = vpop.f32.mrb[34].mxu1  ;;  %v977_v14 = vpop.f32.mrb[35].mxu0 }
 0x13e   : > { %v1047_v43 = vmax.f32 %v1015_v28, 0.0  ;;  %v1037_v39 = vmax.f32 %v975_v31, 0.0  ;;  %v1018_v40 = vadd.f32 %v1477_v38, %v921_v50  ;;  %v978_v27 = vadd.f32 %v977_v14, %v1802_v29  ;;  %v1009_v41 = vpop.f32.mrb[35].mxu1 }
 0x13f   : > { %v1304_v42 = vpack.c.bf16 %v1039_v35, %v1039_v35  ;;  %v1045_v30 = vmax.f32 %v1007_v36, 0.0  ;;  %v1040_v45 = vmax.f32 %v986_v37, 0.0  ;;  %v1010_v44 = vadd.f32 %v1009_v41, %v1824_v32 }
 0x140   : > { %v1312_v46 = vpack.c.bf16 %v1047_v43, %v1047_v43  ;;  %v1302_v47 = vpack.c.bf16 %v1037_v39, %v1037_v39  ;;  %v1048_v48 = vmax.f32 %v1018_v40, 0.0  ;;  %v1038_v49 = vmax.f32 %v978_v27, 0.0 }
 0x141   : > { %1120 = vst.msk [vmem:[%s1843_s19 + $0x8] sm:$0xf] %vm1117_vm1, %v1304_v42  ;;  %v1310_v50 = vpack.c.bf16 %v1045_v30, %v1045_v30  ;;  %v1305_v51 = vpack.c.bf16 %v1040_v45, %v1040_v45  ;;  %v1046_v52 = vmax.f32 %v1010_v44, 0.0 }
 0x142   : > { %1128 = vst.msk [vmem:[%s1843_s19 + $0x28] sm:$0xf] %vm1117_vm1, %v1312_v46  ;;  %1118 = vst.msk [vmem:[%s1843_s19] sm:$0xf] %vm1117_vm1, %v1302_v47  ;;  %v1313_v29 = vpack.c.bf16 %v1048_v48, %v1048_v48  ;;  %v1303_v53 = vpack.c.bf16 %v1038_v49, %v1038_v49  ;;  %v1472_v54 = vpop.f32.mrb[36].mxu0 }
 0x143   : > { %1126 = vst.msk [vmem:[%s1843_s19 + $0x20] sm:$0xf] %vm1117_vm1, %v1310_v50  ;;  %1121 = vst.msk [vmem:[%s1843_s19 + $0xc] sm:$0xf] %vm1117_vm1, %v1305_v51  ;;  %v1311_v32 = vpack.c.bf16 %v1046_v52, %v1046_v52  ;;  %v999_v55 = vadd.f32 %v1472_v54, %v1818_v11  ;;  %v1480_v56 = vpop.f32.mrb[36].mxu1  ;;  %v990_v57 = vpop.f32.mrb[37].mxu0 }
 0x144   : > { %1129 = vst.msk [vmem:[%s1843_s19 + $0x2c] sm:$0xf] %vm1117_vm1, %v1313_v29  ;;  %1119 = vst.msk [vmem:[%s1843_s19 + $0x4] sm:$0xf] %vm1117_vm1, %v1303_v53  ;;  %v1031_v58 = vadd.f32 %v1480_v56, %v934_v21  ;;  %v991_v60 = vadd.f32 %v990_v57, %v1812_v59  ;;  %v1022_v62 = vpop.f32.mrb[37].mxu1  ;;  %v1473_v63 = vpop.f32.mrb[38].mxu0 }
 0x145   : > { %1127 = vst.msk [vmem:[%s1843_s19 + $0x24] sm:$0xf] %vm1117_vm1, %v1311_v32  ;;  %v1043_v0 = vmax.f32 %v999_v55, 0.0  ;;  %v1023_v1 = vadd.f32 %v1022_v62, %v1830_v2  ;;  %v1002_v3 = vadd.f32 %v1473_v63, %v1820_v13  ;;  %v1481_v11 = vpop.f32.mrb[38].mxu1  ;;  %v993_v5 = vpop.f32.mrb[39].mxu0 }
 0x146   : > { %v1051_v6 = vmax.f32 %v1031_v58, 0.0  ;;  %v1041_v7 = vmax.f32 %v991_v60, 0.0  ;;  %v1034_v8 = vadd.f32 %v1481_v11, %v937_v23  ;;  %v994_v9 = vadd.f32 %v993_v5, %v1814_v61  ;;  %v1025_v59 = vpop.f32.mrb[39].mxu1 }
 0x147   : > { %v1308_v10 = vpack.c.bf16 %v1043_v0, %v1043_v0  ;;  %v1049_v12 = vmax.f32 %v1023_v1, 0.0  ;;  %v1044_v15 = vmax.f32 %v1002_v3, 0.0  ;;  %v1026_v2 = vadd.f32 %v1025_v59, %v1832_v4 }
 0x148   : > { %v1316_v13 = vpack.c.bf16 %v1051_v6, %v1051_v6  ;;  %v1306_v16 = vpack.c.bf16 %v1041_v7, %v1041_v7  ;;  %v1052_v17 = vmax.f32 %v1034_v8, 0.0  ;;  %v1042_v18 = vmax.f32 %v994_v9, 0.0 }
 0x149   : > { %1124 = vst.msk [vmem:[%s1843_s19 + $0x18] sm:$0xf] %vm1117_vm1, %v1308_v10  ;;  %v1314_v19 = vpack.c.bf16 %v1049_v12, %v1049_v12  ;;  %v1309_v20 = vpack.c.bf16 %v1044_v15, %v1044_v15  ;;  %v1050_v61 = vmax.f32 %v1026_v2, 0.0 }
 0x14a   : > { %1132 = vst.msk [vmem:[%s1843_s19 + $0x38] sm:$0xf] %vm1117_vm1, %v1316_v13  ;;  %1122 = vst.msk [vmem:[%s1843_s19 + $0x10] sm:$0xf] %vm1117_vm1, %v1306_v16  ;;  %v1317_v21 = vpack.c.bf16 %v1052_v17, %v1052_v17  ;;  %v1307_v22 = vpack.c.bf16 %v1042_v18, %v1042_v18 }
 0x14b   : > { %1130 = vst.msk [vmem:[%s1843_s19 + $0x30] sm:$0xf] %vm1117_vm1, %v1314_v19  ;;  %1125 = vst.msk [vmem:[%s1843_s19 + $0x1c] sm:$0xf] %vm1117_vm1, %v1309_v20  ;;  %v1315_v4 = vpack.c.bf16 %v1050_v61, %v1050_v61 }
 0x14c   : > { %1133 = vst.msk [vmem:[%s1843_s19 + $0x3c] sm:$0xf] %vm1117_vm1, %v1317_v21  ;;  %1123 = vst.msk [vmem:[%s1843_s19 + $0x14] sm:$0xf] %vm1117_vm1, %v1307_v22 }
 0x14d   : > { %1131 = vst.msk [vmem:[%s1843_s19 + $0x34] sm:$0xf] %vm1117_vm1, %v1315_v4 }
 0x14e PF: > { %s13_s12 = sadd.s32 1, %s1597_s12  }
 0x14f   : > { %p10_p4 = scmp.ge.s32.totalorder %s13_s12, 4  }
 0x151   :  { %12 = sbr.rel (!%p10_p4) target bundleno = 1 (0x1), region = 62 }

// kernel: _front.20
= control target key start
LH: loop header
LB: loop body
LE: loop exit
PB: predicated region body
PF: predicated region fallthrough
CT: control target
= control target key end

     0   :  { %s701_s12 = smov 0   ;;  %s782_s0 = inlined_call_operand.vmem [shape: bf16[256,64], index: 0, kind: input, shape index: {}]   ;;  %s783_s1 = inlined_call_operand.vmem [shape: bf16[64,64], index: 1, kind: input, shape index: {}]   ;;  %s784_s2 = inlined_call_operand.vmem [shape: f32[1,64], index: 2, kind: input, shape index: {}]   ;;  %s785_s3 = inlined_call_operand.vmem [shape: bf16[256,64], index: 3, kind: output, shape index: {}]  }
   0x1 LB: > { %s545_s13 = sadd.s32 4294967295, %s679_s12   ;;  %p549_p0 = scmp.ge.s32.totalorder %s679_s12, 1  ;;  %s679_s12 = sphi %s701_s12, %s13_s12  }
   0x2   : > { %p138_p1 = scmp.lt.s32.totalorder %s679_s12, 3 }
   0x4   : > { %p139_p2 = pnand %p549_p0, %p138_p1 }
   0x5   : > { %v661_v0 = vld [vmem:[%s783_s1] sm:$0xff] (!%p139_p2)   ;;  %s550_s16 = sshll.u32 (!%p139_p2), %s545_s13, 4  ;;  %v662_v1 = vld [vmem:[%s783_s1 + $0x8] sm:$0xff] (!%p139_p2)   ;;  %v663_v2 = vld [vmem:[%s783_s1 + $0x10] sm:$0xff] (!%p139_p2)   ;;  %vm270_vm0 = vcmask (!%p139_p2), 523264   ;;  %vm472_vm1 = vcmask (!%p139_p2), 519168  }
   0x6   : > { %142 = sbr.rel (%p139_p2) target bundleno = 252 (0xfc), region = 32  ;;  %p163_p3 = scmp.lt.s32.totalorder (!%p139_p2), %s550_s16, 31  ;;  %621 = vmatprep.subr.bf16.mxu0 (!%p139_p2), %v661_v0  ;;  %645 = vmatprep.subr.bf16.mxu1 (!%p139_p2), %v661_v0  ;;  %v664_v3 = vld [vmem:[%s783_s1 + $0x18] sm:$0xff] (!%p139_p2)   ;;  %v554_v12 = vld [vmem:[%s784_s2] ss:$0 sm:$0xff] (!%p139_p2) }
   0x7   : > { %622 = vmatpush3.bf16.msra.mxu0 (!%p139_p2), %v661_v0  ;;  %649 = vmatpush3.bf16.msra.mxu1 (!%p139_p2), %v661_v0 }
   0x8   : > { %623 = vmatprep.subr.bf16.mxu0 (!%p139_p2), %v662_v1  ;;  %646 = vmatprep.subr.bf16.mxu1 (!%p139_p2), %v662_v1 }
   0xb   : > { %624 = vmatpush3.bf16.msra.mxu0 (!%p139_p2), %v662_v1  ;;  %650 = vmatpush3.bf16.msra.mxu1 (!%p139_p2), %v662_v1 }
   0xc   : > { %625 = vmatprep.subr.bf16.mxu0 (!%p139_p2), %v663_v2  ;;  %647 = vmatprep.subr.bf16.mxu1 (!%p139_p2), %v663_v2 }
   0xd   : > { %s787_s16 = smov (!%p163_p3, %s550_s16), 31 }
   0xe   : > { %s551_s21 = sshll.u32 %s787_s16, 2 }
   0xf   : > { %s166_s26 = scalar_lea.vmem %s782_s0, %s551_s21  ;;  %626 = vmatpush3.bf16.msra.mxu0 %v663_v2  ;;  %651 = vmatpush3.bf16.msra.mxu1 %v663_v2  ;;  %s745_s4 = scalar_lea.vmem %s785_s3, %s551_s21 }
  0x10   : > { %v665_v4 = vld [vmem:[%s166_s26] sm:$0xff]   ;;  %627 = vmatprep.subr.bf16.mxu0 %v664_v3  ;;  %648 = vmatprep.subr.bf16.mxu1 %v664_v3  ;;  %v667_v6 = vld [vmem:[%s166_s26 + $0x8] sm:$0xff]   ;;  %v669_v8 = vld [vmem:[%s166_s26 + $0x10] sm:$0xff]  }
  0x11   : > { %v666_v5 = vld [vmem:[%s166_s26 + $0x20] sm:$0xff]   ;;  %629 = vmatprep.mubr.msk.bf16.mxu0 %vm270_vm0, %v665_v4  ;;  %v668_v7 = vld [vmem:[%s166_s26 + $0x28] sm:$0xff]   ;;  %v670_v9 = vld [vmem:[%s166_s26 + $0x30] sm:$0xff]  }
  0x12   : > { %637 = vmatprep.mubr.msk.bf16.mxu1 %vm270_vm0, %v666_v5  ;;  %v671_v10 = vld [vmem:[%s166_s26 + $0x18] sm:$0xff]  }
  0x13   : > { %628 = vmatpush3.bf16.msra.mxu0 %v664_v3  ;;  %652 = vmatpush3.bf16.msra.mxu1 %v664_v3  ;;  %v672_v11 = vld [vmem:[%s166_s26 + $0x38] sm:$0xff]  }
  0x16   : > { %630 = vmatmul.mubr.msk.bf16.vlgmr.msra.gmra.mrb[0].mxu0 %vm270_vm0, %v667_v6  ;;  %638 = vmatmul.mubr.msk.bf16.vlgmr.msra.gmra.mrb[0].mxu1 %vm270_vm0, %v668_v7 }
  0x17   : > { %633 = vmatprep.mubr.msk.bf16.mxu0 %vm270_vm0, %v669_v8  ;;  %641 = vmatprep.mubr.msk.bf16.mxu1 %vm270_vm0, %v670_v9 }
  0x1e   : > { %634 = vmatmul.mubr.msk.bf16.gmra.mrb[4].mxu0 %vm270_vm0, %v671_v10  ;;  %642 = vmatmul.mubr.msk.bf16.gmra.mrb[4].mxu1 %vm270_vm0, %v672_v11 }
  0xe9   : > { %v631_v13 = vpop.f32.mrb[0].mxu0  ;;  %v639_v14 = vpop.f32.mrb[0].mxu1 }
  0xea   : > { %v338_v15 = vadd.f32 %v631_v13, %v554_v12  ;;  %v370_v16 = vadd.f32 %v639_v14, %v554_v12  ;;  %v329_v17 = vpop.f32.mrb[1].mxu0  ;;  %v361_v18 = vpop.f32.mrb[1].mxu1 }
  0xeb   : > { %v330_v19 = vadd.f32 %v554_v12, %v329_v17  ;;  %v362_v20 = vadd.f32 %v554_v12, %v361_v18  ;;  %v632_v21 = vpop.f32.mrb[2].mxu0  ;;  %v640_v22 = vpop.f32.mrb[2].mxu1 }
  0xec   : > { %v394_v23 = vmax.f32 %v338_v15, 0.0  ;;  %v402_v24 = vmax.f32 %v370_v16, 0.0  ;;  %v341_v25 = vadd.f32 %v632_v21, %v554_v12  ;;  %v373_v26 = vadd.f32 %v640_v22, %v554_v12  ;;  %v332_v27 = vpop.f32.mrb[3].mxu0  ;;  %v364_v28 = vpop.f32.mrb[3].mxu1 }
  0xed   : > { %v392_v29 = vmax.f32 %v330_v19, 0.0  ;;  %v400_v30 = vmax.f32 %v362_v20, 0.0  ;;  %v333_v31 = vadd.f32 %v554_v12, %v332_v27  ;;  %v365_v32 = vadd.f32 %v554_v12, %v364_v28 }
  0xee   : > { %v595_v33 = vpack.c.bf16 %v394_v23, %v394_v23  ;;  %v603_v34 = vpack.c.bf16 %v402_v24, %v402_v24  ;;  %v395_v35 = vmax.f32 %v341_v25, 0.0  ;;  %v403_v36 = vmax.f32 %v373_v26, 0.0 }
  0xef   : > { %v593_v37 = vpack.c.bf16 %v392_v29, %v392_v29  ;;  %v601_v38 = vpack.c.bf16 %v400_v30, %v400_v30  ;;  %v393_v39 = vmax.f32 %v333_v31, 0.0  ;;  %v401_v40 = vmax.f32 %v365_v32, 0.0 }
  0xf0   : > { %475 = vst.msk [vmem:[%s745_s4 + $0x8] sm:$0xf] %vm472_vm1, %v595_v33  ;;  %483 = vst.msk [vmem:[%s745_s4 + $0x28] sm:$0xf] %vm472_vm1, %v603_v34  ;;  %v596_v41 = vpack.c.bf16 %v395_v35, %v395_v35  ;;  %v604_v42 = vpack.c.bf16 %v403_v36, %v403_v36 }
  0xf1   : > { %473 = vst.msk [vmem:[%s745_s4] sm:$0xf] %vm472_vm1, %v593_v37  ;;  %481 = vst.msk [vmem:[%s745_s4 + $0x20] sm:$0xf] %vm472_vm1, %v601_v38  ;;  %v594_v43 = vpack.c.bf16 %v393_v39, %v393_v39  ;;  %v602_v44 = vpack.c.bf16 %v401_v40, %v401_v40  ;;  %v635_v45 = vpop.f32.mrb[4].mxu0  ;;  %v643_v46 = vpop.f32.mrb[4].mxu1 }
  0xf2   : > { %476 = vst.msk [vmem:[%s745_s4 + $0xc] sm:$0xf] %vm472_vm1, %v596_v41  ;;  %484 = vst.msk [vmem:[%s745_s4 + $0x2c] sm:$0xf] %vm472_vm1, %v604_v42  ;;  %v354_v47 = vadd.f32 %v635_v45, %v554_v12  ;;  %v386_v48 = vadd.f32 %v643_v46, %v554_v12  ;;  %v345_v49 = vpop.f32.mrb[5].mxu0  ;;  %v377_v50 = vpop.f32.mrb[5].mxu1 }
  0xf3   : > { %474 = vst.msk [vmem:[%s745_s4 + $0x4] sm:$0xf] %vm472_vm1, %v594_v43  ;;  %482 = vst.msk [vmem:[%s745_s4 + $0x24] sm:$0xf] %vm472_vm1, %v602_v44  ;;  %v346_v51 = vadd.f32 %v554_v12, %v345_v49  ;;  %v378_v52 = vadd.f32 %v554_v12, %v377_v50  ;;  %v636_v53 = vpop.f32.mrb[6].mxu0  ;;  %v644_v54 = vpop.f32.mrb[6].mxu1 }
  0xf4   : > { %v398_v55 = vmax.f32 %v354_v47, 0.0  ;;  %v406_v56 = vmax.f32 %v386_v48, 0.0  ;;  %v357_v57 = vadd.f32 %v636_v53, %v554_v12  ;;  %v389_v58 = vadd.f32 %v644_v54, %v554_v12  ;;  %v348_v59 = vpop.f32.mrb[7].mxu0  ;;  %v380_v60 = vpop.f32.mrb[7].mxu1 }
  0xf5   : > { %v396_v61 = vmax.f32 %v346_v51, 0.0  ;;  %v404_v62 = vmax.f32 %v378_v52, 0.0  ;;  %v349_v63 = vadd.f32 %v554_v12, %v348_v59  ;;  %v381_v0 = vadd.f32 %v554_v12, %v380_v60 }
  0xf6   : > { %v599_v1 = vpack.c.bf16 %v398_v55, %v398_v55  ;;  %v607_v2 = vpack.c.bf16 %v406_v56, %v406_v56  ;;  %v399_v3 = vmax.f32 %v357_v57, 0.0  ;;  %v407_v4 = vmax.f32 %v389_v58, 0.0 }
  0xf7   : > { %v597_v5 = vpack.c.bf16 %v396_v61, %v396_v61  ;;  %v605_v6 = vpack.c.bf16 %v404_v62, %v404_v62  ;;  %v397_v7 = vmax.f32 %v349_v63, 0.0  ;;  %v405_v8 = vmax.f32 %v381_v0, 0.0 }
  0xf8   : > { %479 = vst.msk [vmem:[%s745_s4 + $0x18] sm:$0xf] %vm472_vm1, %v599_v1  ;;  %487 = vst.msk [vmem:[%s745_s4 + $0x38] sm:$0xf] %vm472_vm1, %v607_v2  ;;  %v600_v9 = vpack.c.bf16 %v399_v3, %v399_v3  ;;  %v608_v10 = vpack.c.bf16 %v407_v4, %v407_v4 }
  0xf9   : > { %477 = vst.msk [vmem:[%s745_s4 + $0x10] sm:$0xf] %vm472_vm1, %v597_v5  ;;  %485 = vst.msk [vmem:[%s745_s4 + $0x30] sm:$0xf] %vm472_vm1, %v605_v6  ;;  %v598_v11 = vpack.c.bf16 %v397_v7, %v397_v7  ;;  %v606_v12 = vpack.c.bf16 %v405_v8, %v405_v8 }
  0xfa   : > { %480 = vst.msk [vmem:[%s745_s4 + $0x1c] sm:$0xf] %vm472_vm1, %v600_v9  ;;  %488 = vst.msk [vmem:[%s745_s4 + $0x3c] sm:$0xf] %vm472_vm1, %v608_v10 }
  0xfb   : > { %478 = vst.msk [vmem:[%s745_s4 + $0x14] sm:$0xf] %vm472_vm1, %v598_v11  ;;  %486 = vst.msk [vmem:[%s745_s4 + $0x34] sm:$0xf] %vm472_vm1, %v606_v12 }
  0xfc PF: > { %s13_s12 = sadd.s32 1, %s679_s12  }
  0xfd   : > { %p10_p4 = scmp.ge.s32.totalorder %s13_s12, 4  }
  0xff   :  { %12 = sbr.rel (!%p10_p4) target bundleno = 1 (0x1), region = 62 }

// kernel: _front.19
= control target key start
LH: loop header
LB: loop body
LE: loop exit
PB: predicated region body
PF: predicated region fallthrough
CT: control target
= control target key end

     0   :  { %s736_s12 = smov 0   ;;  %s856_s0 = inlined_call_operand.vmem [shape: bf16[256,64], index: 0, kind: input, shape index: {}]   ;;  %s857_s1 = inlined_call_operand.vmem [shape: bf16[64,256], index: 1, kind: input, shape index: {}]   ;;  %s858_s2 = inlined_call_operand.vmem [shape: f32[1,256], index: 2, kind: input, shape index: {}]   ;;  %s859_s3 = inlined_call_operand.vmem [shape: bf16[256,256], index: 3, kind: output, shape index: {}]  }
   0x1 LB: > { %s601_s13 = sadd.s32 4294967295, %s713_s12   ;;  %p605_p0 = scmp.ge.s32.totalorder %s713_s12, 1  ;;  %s713_s12 = sphi %s736_s12, %s13_s12  }
   0x2   : > { %p138_p1 = scmp.lt.s32.totalorder %s713_s12, 3 }
   0x4   : > { %p139_p2 = pnand %p605_p0, %p138_p1 }
   0x5   : > { %v687_v0 = vld [vmem:[%s857_s1 + $0x4] ss:$8 sps:$4 sm:$0xff] (!%p139_p2)   ;;  %s606_s16 = sshll.u32 (!%p139_p2), %s601_s13, 4  ;;  %v689_v1 = vld [vmem:[%s857_s1] ss:$8 sps:$4 sm:$0xff] (!%p139_p2)   ;;  %v715_v2 = vmov (!%p139_p2), 0   ;;  %v203_v17 = vlaneseq (!%p139_p2) }
   0x6   : > { %142 = sbr.rel (%p139_p2) target bundleno = 267 (0x10b), region = 32  ;;  %350 = vmatprep.mubr.bf16.mxu0 (!%p139_p2), %v715_v2  ;;  %390 = vmatprep.mubr.bf16.mxu1 (!%p139_p2), %v715_v2  ;;  %p164_p3 = scmp.lt.s32.totalorder (!%p139_p2), %s606_s16, 31  ;;  %v690_v3 = vld [vmem:[%s857_s1 + $0x14] ss:$8 sps:$4 sm:$0xff] (!%p139_p2)   ;;  %v692_v4 = vld [vmem:[%s857_s1 + $0x10] ss:$8 sps:$4 sm:$0xff] (!%p139_p2)  }
   0x7   : > { %318 = vmatprep.subr.bf16.mxu0 (!%p139_p2), %v687_v0  ;;  %670 = vmatprep.subr.bf16.mxu1 (!%p139_p2), %v687_v0  ;;  %v693_v5 = vld [vmem:[%s857_s1 + $0x24] ss:$8 sps:$4 sm:$0xff] (!%p139_p2)   ;;  %v695_v6 = vld [vmem:[%s857_s1 + $0x20] ss:$8 sps:$4 sm:$0xff] (!%p139_p2)   ;;  %v696_v7 = vld [vmem:[%s857_s1 + $0x34] ss:$8 sps:$4 sm:$0xff] (!%p139_p2)  }
   0x8   : > { %319 = vmatpush1.bf16.msra.mxu0 (!%p139_p2), %v689_v1  ;;  %674 = vmatpush1.bf16.msra.mxu1 (!%p139_p2), %v689_v1  ;;  %v698_v8 = vld [vmem:[%s857_s1 + $0x30] ss:$8 sps:$4 sm:$0xff] (!%p139_p2)   ;;  %vm293_vm0 = vcmask (!%p139_p2), 523264   ;;  %v204_v18 = vshrl.u32 (!%p139_p2), %v203_v17, 7  ;;  %v201_v20 = vld [vmem:[%s858_s2] sm:$0x3] (!%p139_p2) }
   0x9   : > { %320 = vmatprep.subr.bf16.mxu0 (!%p139_p2), %v690_v3  ;;  %671 = vmatprep.subr.bf16.mxu1 (!%p139_p2), %v690_v3 }
   0xa   : > { %v205_v19 = vsub.s32 (!%p139_p2), 0, %v204_v18  ;;  %v209_v21 = vsub.s32 (!%p139_p2), 1, %v204_v18 }
   0xc   : > { %321 = vmatpush1.bf16.msra.mxu0 (!%p139_p2), %v692_v4  ;;  %675 = vmatpush1.bf16.msra.mxu1 (!%p139_p2), %v692_v4  ;;  %v795_v22 = vrot.slane (!%p139_p2), %v201_v20, %v205_v19  ;;  %v797_v23 = vrot.slane (!%p139_p2), %v201_v20, %v209_v21 }
   0xd   : > { %s861_s16 = smov (!%p164_p3, %s606_s16), 31  ;;  %322 = vmatprep.subr.bf16.mxu0 %v693_v5  ;;  %672 = vmatprep.subr.bf16.mxu1 %v693_v5 }
   0xe   : > { %s607_s25 = sshll.u32 %s861_s16, 2  ;;  %s653_s10 = sshll.u32 %s861_s16, 3 }
   0xf   : > { %s765_s28 = scalar_lea.vmem %s856_s0, %s607_s25  ;;  %s807_s14 = scalar_lea.vmem %s859_s3, %s653_s10 }
  0x10   : > { %323 = vmatpush1.bf16.msra.mxu0 %v695_v6  ;;  %676 = vmatpush1.bf16.msra.mxu1 %v695_v6  ;;  %v699_v9 = vld [vmem:[%s765_s28] sm:$0xff]   ;;  %v701_v11 = vld [vmem:[%s765_s28 + $0x8] sm:$0xff]   ;;  %v703_v13 = vld [vmem:[%s765_s28 + $0x10] sm:$0xff]  }
  0x11   : > { %324 = vmatprep.subr.bf16.mxu0 %v696_v7  ;;  %673 = vmatprep.subr.bf16.mxu1 %v696_v7  ;;  %v700_v10 = vld [vmem:[%s765_s28 + $0x20] sm:$0xff]   ;;  %v702_v12 = vld [vmem:[%s765_s28 + $0x28] sm:$0xff]   ;;  %v704_v14 = vld [vmem:[%s765_s28 + $0x30] sm:$0xff]  }
  0x12   : > { %v705_v15 = vld [vmem:[%s765_s28 + $0x18] sm:$0xff]  }
  0x13   : > { %v706_v16 = vld [vmem:[%s765_s28 + $0x38] sm:$0xff]  }
  0x14   : > { %325 = vmatpush1.bf16.msra.mxu0 %v698_v8  ;;  %677 = vmatpush1.bf16.msra.mxu1 %v698_v8 }
  0x17   : > { %627 = vmatmul.mubr.msk.bf16.vlgmr.msra.gmra.mrb[0].mxu0 %vm293_vm0, %v699_v9  ;;  %631 = vmatmul.mubr.msk.bf16.vlgmr.msra.gmra.mrb[0].mxu1 %vm293_vm0, %v700_v10 }
  0x18   : > { %360 = vmatprep.mubr.bf16.mxu0 %v715_v2  ;;  %400 = vmatprep.mubr.bf16.mxu1 %v715_v2 }
  0x1f   : > { %628 = vmatmul.mubr.msk.bf16.gmra.mrb[4].mxu0 %vm293_vm0, %v701_v11  ;;  %632 = vmatmul.mubr.msk.bf16.gmra.mrb[4].mxu1 %vm293_vm0, %v702_v12 }
  0x20   : > { %370 = vmatprep.mubr.bf16.mxu0 %v715_v2  ;;  %410 = vmatprep.mubr.bf16.mxu1 %v715_v2 }
  0x27   : > { %629 = vmatmul.mubr.msk.bf16.gmra.mrb[8].mxu0 %vm293_vm0, %v703_v13  ;;  %633 = vmatmul.mubr.msk.bf16.gmra.mrb[8].mxu1 %vm293_vm0, %v704_v14 }
  0x28   : > { %380 = vmatprep.mubr.bf16.mxu0 %v715_v2  ;;  %420 = vmatprep.mubr.bf16.mxu1 %v715_v2 }
  0x2f   : > { %630 = vmatmul.mubr.msk.bf16.gmra.mrb[12].mxu0 %vm293_vm0, %v705_v15  ;;  %634 = vmatmul.mubr.msk.bf16.gmra.mrb[12].mxu1 %vm293_vm0, %v706_v16 }
  0xea   : > { %v352_v24 = vpop.f32.mrb[0].mxu0  ;;  %v392_v25 = vpop.f32.mrb[0].mxu1 }
  0xeb   : > { %v353_v26 = vadd.f32 %v352_v24, %v795_v22  ;;  %v393_v27 = vadd.f32 %v392_v25, %v795_v22  ;;  %v354_v28 = vpop.f32.mrb[1].mxu0  ;;  %v394_v29 = vpop.f32.mrb[1].mxu1 }
  0xec   : > { %v355_v30 = vadd.f32 %v354_v28, %v797_v23  ;;  %v395_v31 = vadd.f32 %v394_v29, %v797_v23  ;;  %v356_v32 = vpop.f32.mrb[2].mxu0  ;;  %v396_v33 = vpop.f32.mrb[2].mxu1 }
  0xed   : > { %v357_v34 = vadd.f32 %v356_v32, %v795_v22  ;;  %v397_v35 = vadd.f32 %v396_v33, %v795_v22  ;;  %v358_v36 = vpop.f32.mrb[3].mxu0  ;;  %v398_v37 = vpop.f32.mrb[3].mxu1 }
  0xee   : > { %v654_v38 = vpack.c.bf16 %v355_v30, %v353_v26  ;;  %v662_v39 = vpack.c.bf16 %v395_v31, %v393_v27  ;;  %v359_v40 = vadd.f32 %v358_v36, %v797_v23  ;;  %v399_v41 = vadd.f32 %v398_v37, %v797_v23 }
  0xf0   : > { %527 = vst [vmem:[%s807_s14] sm:$0xff] %v654_v38  ;;  %535 = vst [vmem:[%s807_s14 + $0x40] sm:$0xff] %v662_v39  ;;  %v655_v42 = vpack.c.bf16 %v359_v40, %v357_v34  ;;  %v663_v43 = vpack.c.bf16 %v399_v41, %v397_v35 }
  0xf2   : > { %528 = vst [vmem:[%s807_s14 + $0x8] sm:$0xff] %v655_v42  ;;  %536 = vst [vmem:[%s807_s14 + $0x48] sm:$0xff] %v663_v43  ;;  %v362_v44 = vpop.f32.mrb[4].mxu0  ;;  %v402_v45 = vpop.f32.mrb[4].mxu1 }
  0xf3   : > { %v363_v46 = vadd.f32 %v362_v44, %v795_v22  ;;  %v403_v47 = vadd.f32 %v402_v45, %v795_v22  ;;  %v364_v48 = vpop.f32.mrb[5].mxu0  ;;  %v404_v49 = vpop.f32.mrb[5].mxu1 }
  0xf4   : > { %v365_v50 = vadd.f32 %v364_v48, %v797_v23  ;;  %v405_v51 = vadd.f32 %v404_v49, %v797_v23  ;;  %v366_v52 = vpop.f32.mrb[6].mxu0  ;;  %v406_v53 = vpop.f32.mrb[6].mxu1 }
  0xf5   : > { %v367_v54 = vadd.f32 %v366_v52, %v795_v22  ;;  %v407_v55 = vadd.f32 %v406_v53, %v795_v22  ;;  %v368_v56 = vpop.f32.mrb[7].mxu0  ;;  %v408_v57 = vpop.f32.mrb[7].mxu1 }
  0xf6   : > { %v656_v58 = vpack.c.bf16 %v365_v50, %v363_v46  ;;  %v664_v59 = vpack.c.bf16 %v405_v51, %v403_v47  ;;  %v369_v60 = vadd.f32 %v368_v56, %v797_v23  ;;  %v409_v61 = vadd.f32 %v408_v57, %v797_v23 }
  0xf8   : > { %529 = vst [vmem:[%s807_s14 + $0x10] sm:$0xff] %v656_v58  ;;  %537 = vst [vmem:[%s807_s14 + $0x50] sm:$0xff] %v664_v59  ;;  %v657_v62 = vpack.c.bf16 %v369_v60, %v367_v54  ;;  %v665_v63 = vpack.c.bf16 %v409_v61, %v407_v55 }
  0xfa   : > { %530 = vst [vmem:[%s807_s14 + $0x18] sm:$0xff] %v657_v62  ;;  %538 = vst [vmem:[%s807_s14 + $0x58] sm:$0xff] %v665_v63  ;;  %v372_v0 = vpop.f32.mrb[8].mxu0  ;;  %v412_v1 = vpop.f32.mrb[8].mxu1 }
  0xfb   : > { %v373_v2 = vadd.f32 %v372_v0, %v795_v22  ;;  %v413_v3 = vadd.f32 %v412_v1, %v795_v22  ;;  %v374_v4 = vpop.f32.mrb[9].mxu0  ;;  %v414_v5 = vpop.f32.mrb[9].mxu1 }
  0xfc   : > { %v375_v6 = vadd.f32 %v374_v4, %v797_v23  ;;  %v415_v7 = vadd.f32 %v414_v5, %v797_v23  ;;  %v376_v8 = vpop.f32.mrb[10].mxu0  ;;  %v416_v9 = vpop.f32.mrb[10].mxu1 }
  0xfd   : > { %v377_v10 = vadd.f32 %v376_v8, %v795_v22  ;;  %v417_v11 = vadd.f32 %v416_v9, %v795_v22  ;;  %v378_v12 = vpop.f32.mrb[11].mxu0  ;;  %v418_v13 = vpop.f32.mrb[11].mxu1 }
  0xfe   : > { %v658_v14 = vpack.c.bf16 %v375_v6, %v373_v2  ;;  %v666_v15 = vpack.c.bf16 %v415_v7, %v413_v3  ;;  %v379_v16 = vadd.f32 %v378_v12, %v797_v23  ;;  %v419_v17 = vadd.f32 %v418_v13, %v797_v23 }
 0x100   : > { %531 = vst [vmem:[%s807_s14 + $0x20] sm:$0xff] %v658_v14  ;;  %539 = vst [vmem:[%s807_s14 + $0x60] sm:$0xff] %v666_v15  ;;  %v659_v18 = vpack.c.bf16 %v379_v16, %v377_v10  ;;  %v667_v19 = vpack.c.bf16 %v419_v17, %v417_v11 }
 0x102   : > { %532 = vst [vmem:[%s807_s14 + $0x28] sm:$0xff] %v659_v18  ;;  %540 = vst [vmem:[%s807_s14 + $0x68] sm:$0xff] %v667_v19  ;;  %v382_v20 = vpop.f32.mrb[12].mxu0  ;;  %v422_v21 = vpop.f32.mrb[12].mxu1 }
 0x103   : > { %v383_v24 = vadd.f32 %v382_v20, %v795_v22  ;;  %v423_v25 = vadd.f32 %v422_v21, %v795_v22  ;;  %v384_v26 = vpop.f32.mrb[13].mxu0  ;;  %v424_v27 = vpop.f32.mrb[13].mxu1 }
 0x104   : > { %v385_v28 = vadd.f32 %v384_v26, %v797_v23  ;;  %v425_v29 = vadd.f32 %v424_v27, %v797_v23  ;;  %v386_v30 = vpop.f32.mrb[14].mxu0  ;;  %v426_v31 = vpop.f32.mrb[14].mxu1 }
 0x105   : > { %v387_v32 = vadd.f32 %v386_v30, %v795_v22  ;;  %v427_v33 = vadd.f32 %v426_v31, %v795_v22  ;;  %v388_v34 = vpop.f32.mrb[15].mxu0  ;;  %v428_v35 = vpop.f32.mrb[15].mxu1 }
 0x106   : > { %v660_v36 = vpack.c.bf16 %v385_v28, %v383_v24  ;;  %v668_v37 = vpack.c.bf16 %v425_v29, %v423_v25  ;;  %v389_v38 = vadd.f32 %v388_v34, %v797_v23  ;;  %v429_v39 = vadd.f32 %v428_v35, %v797_v23 }
 0x108   : > { %533 = vst [vmem:[%s807_s14 + $0x30] sm:$0xff] %v660_v36  ;;  %541 = vst [vmem:[%s807_s14 + $0x70] sm:$0xff] %v668_v37  ;;  %v661_v40 = vpack.c.bf16 %v389_v38, %v387_v32  ;;  %v669_v41 = vpack.c.bf16 %v429_v39, %v427_v33 }
 0x10a   : > { %534 = vst [vmem:[%s807_s14 + $0x38] sm:$0xff] %v661_v40  ;;  %542 = vst [vmem:[%s807_s14 + $0x78] sm:$0xff] %v669_v41 }
 0x10b PF: > { %s13_s12 = sadd.s32 1, %s713_s12  }
 0x10c   : > { %p10_p4 = scmp.ge.s32.totalorder %s13_s12, 4  }
 0x10e   :  { %12 = sbr.rel (!%p10_p4) target bundleno = 1 (0x1), region = 62 }

// kernel: _front.21
= control target key start
LH: loop header
LB: loop body
LE: loop exit
PB: predicated region body
PF: predicated region fallthrough
CT: control target
= control target key end

     0   :  { %s3098_s12 = smov 0   ;;  %s4086_s0 = inlined_call_operand.vmem [shape: bf16[2,198,64], index: 0, kind: input, shape index: {}]   ;;  %s4087_s1 = inlined_call_operand.vmem [shape: bf16[9,64,64], index: 1, kind: input, shape index: {}]   ;;  %s4088_s2 = inlined_call_operand.vmem [shape: f32[1,64], index: 2, kind: input, shape index: {}]   ;;  %s4089_s3 = inlined_call_operand.vmem [shape: bf16[2,144,64], index: 3, kind: output, shape index: {}]  }
   0x1 LB: > { %s2240_s13 = sadd.s32 4294967295, %s3074_s12   ;;  %p2244_p0 = scmp.ge.s32.totalorder %s3074_s12, 1  ;;  %s3074_s12 = sphi %s3098_s12, %s13_s12  }
   0x2   : > { %p137_p1 = scmp.lt.s32.totalorder %s3074_s12, 3 }
   0x4   : > { %p138_p2 = pnand %p2244_p0, %p137_p1 }
   0x5   : > { %v3014_v0 = vld [vmem:[%s4087_s1 + $0x20] sm:$0xff] (!%p138_p2)   ;;  %v3076_v1 = vmov (!%p138_p2), 0.0   ;;  %v3015_v2 = vld [vmem:[%s4087_s1 + $0x28] sm:$0xff] (!%p138_p2)   ;;  %p161_p3 = scmp.lt.s32.totalorder (!%p138_p2), %s2240_s13, 1  ;;  %vm3077_vm0 = vmmov (!%p138_p2), 0   ;;  %v3016_v3 = vld [vmem:[%s4087_s1 + $0x30] sm:$0xff] (!%p138_p2)  }
   0x6   : > { %141 = sbr.rel (%p138_p2) target bundleno = 568 (0x238), region = 32  ;;  %2598 = vmatprep.subr.bf16.mxu0 (!%p138_p2), %v3076_v1  ;;  %2994 = vmatprep.subr.bf16.mxu1 (!%p138_p2), %v3076_v1  ;;  %v3017_v4 = vld [vmem:[%s4087_s1 + $0x38] sm:$0xff] (!%p138_p2)   ;;  %vm346_vm1 = vcmask (!%p138_p2), 523264   ;;  %vm245_vm2 = vsmask.f32 (!%p138_p2), 7424  ;;  %v3022_v21 = vld [vmem:[%s4087_s1 + $0x40] sm:$0xff] (!%p138_p2)  }
   0x7   : > { %2599 = vmatpush3.bf16.msra.mxu0 (!%p138_p2), %v3014_v0  ;;  %2998 = vmatpush3.bf16.msra.mxu1 (!%p138_p2), %v3014_v0  ;;  %v3023_v27 = vld [vmem:[%s4087_s1] sm:$0xff] (!%p138_p2)   ;;  %v3026_v33 = vld [vmem:[%s4087_s1 + $0x48] sm:$0xff] (!%p138_p2)   ;;  %v3030_v45 = vld [vmem:[%s4087_s1 + $0x50] sm:$0xff] (!%p138_p2)   ;;  %vm645_vm3 = vcmask (!%p138_p2), 1046528   ;;  %vm1018_vm4 = vsmask.f32 (!%p138_p2), 6400 }
   0x8   : > { %2600 = vmatprep.subr.bf16.mxu0 (!%p138_p2), %v3076_v1  ;;  %2995 = vmatprep.subr.bf16.mxu1 (!%p138_p2), %v3076_v1  ;;  %v3027_v40 = vld [vmem:[%s4087_s1 + $0x8] sm:$0xff] (!%p138_p2)   ;;  %v3031_v49 = vld [vmem:[%s4087_s1 + $0x10] sm:$0xff] (!%p138_p2)   ;;  %v3036_v54 = vld [vmem:[%s4087_s1 + $0x58] sm:$0xff] (!%p138_p2)   ;;  %vm1251_vm5 = vcmask (!%p138_p2), 1045504   ;;  %vm1624_vm6 = vsmask.f32 (!%p138_p2), 5376 }
   0x9   : > { %2606 = vmatprep.mubr.msk.bf16.mxu0 (!%p138_p2), %vm3077_vm0, %v3076_v1  ;;  %2626 = vmatprep.mubr.msk.bf16.mxu1 (!%p138_p2), %vm3077_vm0, %v3076_v1  ;;  %v3035_v58 = vld [vmem:[%s4087_s1 + $0x18] sm:$0xff] (!%p138_p2)   ;;  %vm1857_vm7 = vcmask (!%p138_p2), 1044480   ;;  %vm2166_vm8 = vcmask (!%p138_p2), 519168  }
   0xb   : > { %2601 = vmatpush3.bf16.msra.mxu0 (!%p138_p2), %v3015_v2  ;;  %2999 = vmatpush3.bf16.msra.mxu1 (!%p138_p2), %v3015_v2 }
   0xc   : > { %2602 = vmatprep.subr.bf16.mxu0 (!%p138_p2), %v3076_v1  ;;  %2996 = vmatprep.subr.bf16.mxu1 (!%p138_p2), %v3076_v1 }
   0xd   : > { %s4091_s13 = smov (!%p161_p3, %s2240_s13), 1 }
   0xe   : > { %s3002_s20 = smul.u32 100, %s4091_s13 }
   0xf   : > { %2603 = vmatpush3.bf16.msra.mxu0 %v3016_v3  ;;  %3000 = vmatpush3.bf16.msra.mxu1 %v3016_v3  ;;  %s3003_s18 = smul.u32 72, %s4091_s13 }
  0x10   : > { %s3134_s25 = scalar_lea.vmem %s4086_s0, %s3002_s20  ;;  %2604 = vmatprep.subr.bf16.mxu0 %v3076_v1  ;;  %2997 = vmatprep.subr.bf16.mxu1 %v3076_v1 }
  0x11   : > { %v3137_v5 = vld [vmem:[%s3134_s25] sm:$0xff]   ;;  %v3140_v6 = vld [vmem:[%s3134_s25 + $0x8] sm:$0xff]   ;;  %v3151_v11 = vld [vmem:[%s3134_s25 + $0x30] sm:$0xff]   ;;  %s4015_s21 = scalar_lea.vmem %s4089_s3, %s3003_s18 }
  0x12   : > { %v247_v7 = vshrl.u32 %v3137_v5, 16  ;;  %v249_v8 = vshll.u32 %v3137_v5, 16  ;;  %v254_v9 = vshll.u32 %v3140_v6, 16  ;;  %v3148_v10 = vld [vmem:[%s3134_s25 + $0x28] sm:$0xff]   ;;  %v258_v12 = vshrl.u32 %v3140_v6, 16  ;;  %v3160_v17 = vld [vmem:[%s3134_s25 + $0x10] sm:$0xff]  }
  0x13   : > { %2605 = vmatpush3.bf16.msra.mxu0 %v3017_v4  ;;  %3001 = vmatpush3.bf16.msra.mxu1 %v3017_v4  ;;  %v3157_v16 = vshll.u32 %v3148_v10, 16  ;;  %v3163_v18 = vld [vmem:[%s3134_s25 + $0x38] sm:$0xff]   ;;  %v3166_v19 = vshrl.u32 %v3148_v10, 16  ;;  %v3169_v20 = vshll.u32 %v3151_v11, 16  ;;  %v3180_v25 = vshll.u32 %v3160_v17, 16  ;;  %v3219_v41 = vld [vmem:[%s3134_s25 + $0x40] sm:$0xff]  }
  0x14   : > { %v251_v13 = vrot.slane %v249_v8, 1  ;;  %v256_v14 = vrot.slane %v254_v9, 1  ;;  %v3154_v15 = vrot.slane %v254_v9, 2  ;;  %2686 = vmatprep.subr.bf16.mxu0 %v3076_v1  ;;  %2642 = vmatprep.subr.bf16.mxu1 %v3076_v1  ;;  %v3176_v22 = vrot.slane %v258_v12, 1  ;;  %v3207_v37 = vld [vmem:[%s3134_s25 + $0x18] sm:$0xff]   ;;  %v3246_v50 = vld [vmem:[%s3134_s25 + $0x20] sm:$0xff]  }
  0x15   : > { %v288_v24 = vrot.slane %v3157_v16, 1  ;;  %v296_v26 = vrot.slane %v3169_v20, 1  ;;  %v3193_v31 = vshrl.u32 %v3151_v11, 16  ;;  %v3196_v32 = vshll.u32 %v3163_v18, 16  ;;  %v190_v51 = vld [vmem:[%s3134_s25 + $0x48] sm:$0xf] }
  0x16   : > { %v252_v23 = vor.u32 %v251_v13, %v247_v7  ;;  %v1021_v28 = vor.u32 %v3154_v15, %v3176_v22  ;;  %v260_v35 = vor.u32 %v258_v12, %v256_v14  ;;  %v264_v36 = vrot.slane %v3180_v25, 1  ;;  %v191_v13 = vld [vmem:[%s3134_s25 + $0x4c] sm:$0xf] }
  0x17   : > { %v292_v30 = vor.u32 %v3166_v19, %v288_v24  ;;  %v300_v38 = vor.u32 %v3193_v31, %v296_v26  ;;  %v304_v39 = vrot.slane %v3196_v32, 1  ;;  %v3223_v42 = vshrl.u32 %v3160_v17, 16  ;;  %v3048_v22 = vld [vmem:[%s4087_s1 + $0xc8] sm:$0xff]  }
  0x18   : > { %v257_v29 = vsel %vm245_vm2, %v252_v23, %v256_v14  ;;  %v265_v43 = vsel %vm245_vm2, %v260_v35, %v264_v36  ;;  %v3227_v44 = vshll.u32 %v3207_v37, 16  ;;  %v3233_v46 = vshrl.u32 %v3163_v18, 16 }
  0x19   : > { %2607 = vmatmul.mubr.msk.bf16.vlgmr.msra.gmra.mrb[0].mxu0 %vm346_vm1, %v257_v29  ;;  %v297_v34 = vsel %vm245_vm2, %v292_v30, %v296_v26  ;;  %v305_v47 = vsel %vm245_vm2, %v300_v38, %v304_v39  ;;  %v3238_v48 = vshll.u32 %v3219_v41, 16  ;;  %v268_v52 = vor.u32 %v3223_v42, %v264_v36 }
  0x1a   : > { %2687 = vmatpush3.bf16.msra.mxu0 %v3022_v21  ;;  %2610 = vmatprep.mubr.msk.bf16.mxu0 %vm3077_vm0, %v3076_v1  ;;  %v272_v53 = vrot.slane %v3227_v44, 1  ;;  %v308_v55 = vor.u32 %v3233_v46, %v304_v39  ;;  %v2256_v57 = vcombine.low %v190_v51, %v190_v51  ;;  %v3268_v60 = vshrl.u32 %v3207_v37, 16  ;;  %v3038_v39 = vld [vmem:[%s4087_s1 + $0x80] sm:$0xff]  }
  0x1b   : > { %2627 = vmatmul.mubr.msk.bf16.vlgmr.msra.gmra.mrb[0].mxu1 %vm346_vm1, %v297_v34  ;;  %2688 = vmatprep.subr.bf16.mxu0 %v3076_v1  ;;  %v312_v56 = vrot.slane %v3238_v48, 1  ;;  %v3271_v61 = vshll.u32 %v3246_v50, 16  ;;  %v3275_v62 = vrot.slane %v3219_v41, 1  ;;  %v3279_v2 = vshrl.u32 %v3219_v41, 16  ;;  %v3037_v34 = vld [vmem:[%s4087_s1 + $0x60] sm:$0xff]  }
  0x1c   : > { %2630 = vmatprep.mubr.msk.bf16.mxu1 %vm3077_vm0, %v3076_v1  ;;  %2643 = vmatpush3.bf16.msra.mxu1 %v3023_v27  ;;  %v273_v59 = vsel %vm245_vm2, %v268_v52, %v272_v53  ;;  %v663_v63 = vrot.slane %v2256_v57, 1  ;;  %v318_v3 = vshll.u32 %v2256_v57, 16  ;;  %v276_v7 = vor.u32 %v3268_v60, %v272_v53  ;;  %v3044_v52 = vld [vmem:[%s4087_s1 + $0x98] sm:$0xff]  }
  0x1d   : > { %2644 = vmatprep.subr.bf16.mxu1 %v3076_v1  ;;  %v313_v0 = vsel %vm245_vm2, %v308_v55, %v312_v56  ;;  %v280_v8 = vrot.slane %v3271_v61, 1  ;;  %v316_v9 = vor.u32 %v3279_v2, %v312_v56  ;;  %v3298_v21 = vshrl.u32 %v3246_v50, 16 }
  0x1e   : > { %2689 = vmatpush3.bf16.msra.mxu0 %v3026_v33  ;;  %v3285_v4 = vsel %vm645_vm3, %v3275_v62, %v663_v63  ;;  %v320_v12 = vrot.slane %v318_v3, 1  ;;  %v3301_v26 = vcombine.low %v190_v51, %v191_v13  ;;  %v646_v35 = vrot.slane %v3137_v5, 1  ;;  %v3046_v13 = vld [vmem:[%s4087_s1 + $0xc0] sm:$0xff]  }
  0x1f   : > { %2690 = vmatprep.subr.bf16.mxu0 %v3076_v1  ;;  %v281_v14 = vsel %vm245_vm2, %v276_v7, %v280_v8  ;;  %v284_v27 = vor.u32 %v3298_v21, %v280_v8  ;;  %v647_v36 = vrot.slane %v3140_v6, 1  ;;  %v651_v51 = vrot.slane %v3207_v37, 1 }
  0x20   : > { %2645 = vmatpush3.bf16.msra.mxu1 %v3027_v40  ;;  %v321_v23 = vsel %vm245_vm2, %v316_v9, %v320_v12  ;;  %v852_v29 = vrot.slane %v3301_v26, 1  ;;  %v649_v40 = vrot.slane %v3160_v17, 1  ;;  %v655_v56 = vrot.slane %v3148_v10, 1  ;;  %v3047_v12 = vld [vmem:[%s4087_s1 + $0xa8] sm:$0xff]  }
  0x21   : > { %2611 = vmatmul.mubr.msk.bf16.gmra.mrb[4].mxu0 %vm346_vm1, %v265_v43  ;;  %2646 = vmatprep.subr.bf16.mxu1 %v3076_v1  ;;  %v289_v30 = vsel %vm245_vm2, %v284_v27, %v288_v24  ;;  %v3039_v24 = vld [vmem:[%s4087_s1 + $0x68] sm:$0xff]   ;;  %v648_v38 = vsel %vm645_vm3, %v646_v35, %v647_v36  ;;  %v659_v63 = vrot.slane %v3163_v18, 1  ;;  %v1022_v7 = vrot.slane %v3223_v42, 1  ;;  %v3049_v27 = vld [vmem:[%s4087_s1 + $0xb0] sm:$0xff]  }
  0x22   : > { %2614 = vmatprep.mubr.msk.bf16.mxu0 %vm3077_vm0, %v3076_v1  ;;  %2691 = vmatpush3.bf16.msra.mxu0 %v3030_v45  ;;  %v3318_v33 = vsel %vm645_vm3, %v3275_v62, %v852_v29  ;;  %v3040_v43 = vld [vmem:[%s4087_s1 + $0x88] sm:$0xff]   ;;  %v3043_v45 = vld [vmem:[%s4087_s1 + $0x78] sm:$0xff]   ;;  %v652_v53 = vsel %vm645_vm3, %v649_v40, %v651_v51  ;;  %v1023_v8 = vrot.slane %v3180_v25, 2  ;;  %v1031_v35 = vrot.slane %v3271_v61, 2 }
  0x23   : > { %2631 = vmatmul.mubr.msk.bf16.gmra.mrb[4].mxu1 %vm346_vm1, %v305_v47  ;;  %2692 = vmatprep.subr.bf16.mxu0 %v3076_v1  ;;  %v650_v47 = vsel %vm645_vm3, %v647_v36, %v649_v40  ;;  %v3437_v3 = vsel %vm645_vm3, %v659_v63, %v3275_v62  ;;  %v3045_v62 = vld [vmem:[%s4087_s1 + $0xa0] sm:$0xff]   ;;  %v3050_v36 = vld [vmem:[%s4087_s1 + $0xd0] sm:$0xff]   ;;  %v1035_v40 = vrot.slane %v3157_v16, 2 }
  0x24   : > { %2634 = vmatprep.mubr.msk.bf16.mxu1 %vm3077_vm0, %v3076_v1  ;;  %2647 = vmatpush3.bf16.msra.mxu1 %v3031_v49  ;;  %v3042_v49 = vld [vmem:[%s4087_s1 + $0x90] sm:$0xff]   ;;  %v1024_v9 = vor.u32 %v1023_v8, %v1022_v7  ;;  %v1054_v7 = vshll.u32 %v3301_v26, 16 }
  0x25   : > { %2648 = vmatprep.subr.bf16.mxu1 %v3076_v1 }
  0x26   : > { %2693 = vmatpush3.bf16.msra.mxu0 %v3036_v54  ;;  %v653_v54 = vrot.slane %v3246_v50, 1 }
  0x27   : > { %2774 = vmatprep.subr.bf16.mxu0 %v3076_v1 }
  0x28   : > { %2649 = vmatpush3.bf16.msra.mxu1 %v3035_v58  ;;  %v3389_v55 = vsel %vm645_vm3, %v651_v51, %v653_v54  ;;  %v3401_v57 = vsel %vm645_vm3, %v653_v54, %v655_v56  ;;  %v657_v58 = vrot.slane %v3151_v11, 1  ;;  %v1043_v54 = vrot.slane %v3196_v32, 2 }
  0x29   : > { %2615 = vmatmul.mubr.msk.bf16.gmra.mrb[8].mxu0 %vm346_vm1, %v273_v59  ;;  %2730 = vmatprep.subr.bf16.mxu1 %v3076_v1 }
  0x2a   : > { %2618 = vmatprep.mubr.msk.bf16.mxu0 %vm3077_vm0, %v3076_v1  ;;  %v3413_v59 = vsel %vm645_vm3, %v655_v56, %v657_v58 }
  0x2b   : > { %2635 = vmatmul.mubr.msk.bf16.gmra.mrb[8].mxu1 %vm346_vm1, %v313_v0  ;;  %v3425_v0 = vsel %vm645_vm3, %v657_v58, %v659_v63  ;;  %v1047_v58 = vrot.slane %v3238_v48, 2  ;;  %v1051_v63 = vshrl.u32 %v3301_v26, 16 }
  0x2c   : > { %2638 = vmatprep.mubr.msk.bf16.mxu1 %vm3077_vm0, %v3076_v1 }
  0x31   : > { %2619 = vmatmul.mubr.msk.bf16.gmra.mrb[12].mxu0 %vm346_vm1, %v281_v14  ;;  %v1026_v14 = vrot.slane %v3268_v60, 1 }
  0x32   : > { %2622 = vmatprep.mubr.msk.bf16.mxu0 %vm3077_vm0, %v3076_v1 }
  0x33   : > { %2639 = vmatmul.mubr.msk.bf16.gmra.mrb[12].mxu1 %vm346_vm1, %v321_v23  ;;  %v1027_v23 = vrot.slane %v3227_v44, 2 }
  0x34   : > { %2650 = vmatprep.mubr.msk.bf16.mxu1 %vm3077_vm0, %v3076_v1 }
  0x35   : > { %v1028_v15 = vor.u32 %v1027_v23, %v1026_v14 }
  0x39   : > { %2623 = vmatmul.mubr.msk.bf16.gmra.mrb[16].mxu0 %vm346_vm1, %v289_v30  ;;  %v1029_v30 = vsel %vm1018_vm4, %v1024_v9, %v1028_v15 }
  0x3a   : > { %2694 = vmatprep.mubr.msk.bf16.mxu0 %vm3077_vm0, %v3076_v1 }
  0x3b   : > { %2651 = vmatmul.mubr.msk.bf16.vlgmr.msra.gmra.mrb[16].mxu1 %vm346_vm1, %v3137_v5  ;;  %v3041_v5 = vld [vmem:[%s4087_s1 + $0x70] sm:$0xff]  }
  0x3c   : > { %2654 = vmatprep.mubr.msk.bf16.mxu1 %vm3077_vm0, %v3076_v1  ;;  %2731 = vmatpush3.bf16.msra.mxu1 %v3037_v34  ;;  %v1030_v34 = vrot.slane %v3298_v21, 1 }
  0x3d   : > { %2732 = vmatprep.subr.bf16.mxu1 %v3076_v1 }
  0x40   : > { %2733 = vmatpush3.bf16.msra.mxu1 %v3039_v24  ;;  %v1032_v24 = vor.u32 %v1031_v35, %v1030_v34  ;;  %v3054_v35 = vld [vmem:[%s4087_s1 + $0xe0] sm:$0xff]  }
  0x41   : > { %2695 = vmatmul.mubr.msk.bf16.vlgmr.msra.gmra.mrb[20].mxu0 %vm346_vm1, %v648_v38  ;;  %2734 = vmatprep.subr.bf16.mxu1 %v3076_v1  ;;  %v3052_v38 = vld [vmem:[%s4087_s1 + $0xd8] sm:$0xff]  }
  0x42   : > { %2775 = vmatpush3.bf16.msra.mxu0 %v3038_v39  ;;  %2698 = vmatprep.mubr.msk.bf16.mxu0 %vm3077_vm0, %v3076_v1  ;;  %v1033_v39 = vsel %vm1018_vm4, %v1028_v15, %v1032_v24 }
  0x43   : > { %2655 = vmatmul.mubr.msk.bf16.gmra.mrb[20].mxu1 %vm346_vm1, %v3140_v6  ;;  %2776 = vmatprep.subr.bf16.mxu0 %v3076_v1 }
  0x44   : > { %2658 = vmatprep.mubr.msk.bf16.mxu1 %vm3077_vm0, %v3076_v1  ;;  %2735 = vmatpush3.bf16.msra.mxu1 %v3041_v5  ;;  %v1034_v5 = vrot.slane %v3166_v19, 1 }
  0x45   : > { %2736 = vmatprep.subr.bf16.mxu1 %v3076_v1 }
  0x46   : > { %2777 = vmatpush3.bf16.msra.mxu0 %v3040_v43  ;;  %v1036_v43 = vor.u32 %v1035_v40, %v1034_v5  ;;  %v1257_v5 = vrot.slane %v3246_v50, 2  ;;  %v3057_v40 = vld [vmem:[%s4087_s1 + $0x108] sm:$0xff]  }
  0x47   : > { %2778 = vmatprep.subr.bf16.mxu0 %v3076_v1 }
  0x48   : > { %2737 = vmatpush3.bf16.msra.mxu1 %v3043_v45  ;;  %v1037_v45 = vsel %vm1018_vm4, %v1032_v24, %v1036_v43 }
  0x49   : > { %2699 = vmatmul.mubr.msk.bf16.gmra.mrb[24].mxu0 %vm346_vm1, %v650_v47  ;;  %2818 = vmatprep.subr.bf16.mxu1 %v3076_v1 }
  0x4a   : > { %2702 = vmatprep.mubr.msk.bf16.mxu0 %vm3077_vm0, %v3076_v1  ;;  %2779 = vmatpush3.bf16.msra.mxu0 %v3042_v49  ;;  %v1039_v49 = vrot.slane %v3169_v20, 2 }
  0x4b   : > { %2659 = vmatmul.mubr.msk.bf16.gmra.mrb[24].mxu1 %vm346_vm1, %v3160_v17  ;;  %2780 = vmatprep.subr.bf16.mxu0 %v3076_v1 }
  0x4c   : > { %2662 = vmatprep.mubr.msk.bf16.mxu1 %vm3077_vm0, %v3076_v1 }
  0x4e   : > { %2781 = vmatpush3.bf16.msra.mxu0 %v3044_v52 }
  0x4f   : > { %2862 = vmatprep.subr.bf16.mxu0 %v3076_v1 }
  0x51   : > { %2703 = vmatmul.mubr.msk.bf16.gmra.mrb[28].mxu0 %vm346_vm1, %v652_v53 }
  0x52   : > { %2706 = vmatprep.mubr.msk.bf16.mxu0 %vm3077_vm0, %v3076_v1 }
  0x53   : > { %2663 = vmatmul.mubr.msk.bf16.gmra.mrb[28].mxu1 %vm346_vm1, %v3207_v37 }
  0x54   : > { %2666 = vmatprep.mubr.msk.bf16.mxu1 %vm3077_vm0, %v3076_v1 }
  0x59   : > { %2707 = vmatmul.mubr.msk.bf16.gmra.mrb[32].mxu0 %vm346_vm1, %v3389_v55 }
  0x5a   : > { %2710 = vmatprep.mubr.msk.bf16.mxu0 %vm3077_vm0, %v3076_v1 }
  0x5b   : > { %2667 = vmatmul.mubr.msk.bf16.gmra.mrb[32].mxu1 %vm346_vm1, %v3246_v50 }
  0x5c   : > { %2670 = vmatprep.mubr.msk.bf16.mxu1 %vm3077_vm0, %v3076_v1 }
  0x61   : > { %2711 = vmatmul.mubr.msk.bf16.gmra.mrb[36].mxu0 %vm346_vm1, %v3401_v57 }
  0x62   : > { %2714 = vmatprep.mubr.msk.bf16.mxu0 %vm3077_vm0, %v3076_v1 }
  0x63   : > { %2671 = vmatmul.mubr.msk.bf16.gmra.mrb[36].mxu1 %vm346_vm1, %v3148_v10 }
  0x64   : > { %2674 = vmatprep.mubr.msk.bf16.mxu1 %vm3077_vm0, %v3076_v1 }
  0x69   : > { %2715 = vmatmul.mubr.msk.bf16.gmra.mrb[40].mxu0 %vm346_vm1, %v3413_v59 }
  0x6a   : > { %2718 = vmatprep.mubr.msk.bf16.mxu0 %vm3077_vm0, %v3076_v1 }
  0x6b   : > { %2675 = vmatmul.mubr.msk.bf16.gmra.mrb[40].mxu1 %vm346_vm1, %v3151_v11 }
  0x6c   : > { %2678 = vmatprep.mubr.msk.bf16.mxu1 %vm3077_vm0, %v3076_v1 }
  0x71   : > { %2719 = vmatmul.mubr.msk.bf16.gmra.mrb[44].mxu0 %vm346_vm1, %v3425_v0 }
  0x72   : > { %2722 = vmatprep.mubr.msk.bf16.mxu0 %vm3077_vm0, %v3076_v1 }
  0x73   : > { %2679 = vmatmul.mubr.msk.bf16.gmra.mrb[44].mxu1 %vm346_vm1, %v3163_v18 }
  0x74   : > { %2682 = vmatprep.mubr.msk.bf16.mxu1 %vm3077_vm0, %v3076_v1 }
  0x79   : > { %2723 = vmatmul.mubr.msk.bf16.gmra.mrb[48].mxu0 %vm346_vm1, %v3437_v3 }
  0x7a   : > { %2726 = vmatprep.mubr.msk.bf16.mxu0 %vm3077_vm0, %v3076_v1 }
  0x7b   : > { %2683 = vmatmul.mubr.msk.bf16.gmra.mrb[48].mxu1 %vm346_vm1, %v3219_v41 }
  0x7c   : > { %2738 = vmatprep.mubr.msk.bf16.mxu1 %vm3077_vm0, %v3076_v1 }
  0x81   : > { %2727 = vmatmul.mubr.msk.bf16.gmra.mrb[52].mxu0 %vm346_vm1, %v3285_v4  ;;  %v1025_v4 = vsel %vm1018_vm4, %v1021_v28, %v1024_v9  ;;  %v3051_v28 = vld [vmem:[%s4087_s1 + $0xb8] sm:$0xff]   ;;  %v1056_v9 = vrot.slane %v1054_v7, 2 }
  0x82   : > { %2782 = vmatprep.mubr.msk.bf16.mxu0 %vm3077_vm0, %v3076_v1 }
  0x83   : > { %2739 = vmatmul.mubr.msk.bf16.vlgmr.msra.gmra.mrb[52].mxu1 %vm346_vm1, %v650_v47  ;;  %v1038_v47 = vrot.slane %v3193_v31, 1 }
  0x84   : > { %2742 = vmatprep.mubr.msk.bf16.mxu1 %vm3077_vm0, %v3076_v1  ;;  %2819 = vmatpush3.bf16.msra.mxu1 %v3045_v62  ;;  %v1053_v62 = vrot.slane %v1051_v63, 1 }
  0x85   : > { %2820 = vmatprep.subr.bf16.mxu1 %v3076_v1  ;;  %v1040_v51 = vor.u32 %v1039_v49, %v1038_v47  ;;  %v3059_v47 = vld [vmem:[%s4087_s1 + $0x110] sm:$0xff]   ;;  %v1259_v49 = vrot.slane %v3148_v10, 2  ;;  %v1261_v10 = vrot.slane %v3151_v11, 2 }
  0x87   : > { %v1041_v52 = vsel %vm1018_vm4, %v1036_v43, %v1040_v51  ;;  %v3060_v43 = vld [vmem:[%s4087_s1 + $0xf8] sm:$0xff]  }
  0x88   : > { %2821 = vmatpush3.bf16.msra.mxu1 %v3047_v12 }
  0x89   : > { %2783 = vmatmul.mubr.msk.bf16.vlgmr.msra.gmra.mrb[56].mxu0 %vm346_vm1, %v1025_v4  ;;  %2822 = vmatprep.subr.bf16.mxu1 %v3076_v1 }
  0x8a   : > { %2863 = vmatpush3.bf16.msra.mxu0 %v3046_v13  ;;  %2786 = vmatprep.mubr.msk.bf16.mxu0 %vm3077_vm0, %v3076_v1 }
  0x8b   : > { %2743 = vmatmul.mubr.msk.bf16.gmra.mrb[56].mxu1 %vm346_vm1, %v652_v53  ;;  %2864 = vmatprep.subr.bf16.mxu0 %v3076_v1  ;;  %v1042_v53 = vrot.slane %v3233_v46, 1 }
  0x8c   : > { %2746 = vmatprep.mubr.msk.bf16.mxu1 %vm3077_vm0, %v3076_v1  ;;  %2823 = vmatpush3.bf16.msra.mxu1 %v3049_v27 }
  0x8d   : > { %2824 = vmatprep.subr.bf16.mxu1 %v3076_v1 }
  0x8e   : > { %2865 = vmatpush3.bf16.msra.mxu0 %v3048_v22 }
  0x8f   : > { %2866 = vmatprep.subr.bf16.mxu0 %v3076_v1 }
  0x90   : > { %2825 = vmatpush3.bf16.msra.mxu1 %v3051_v28 }
  0x91   : > { %2787 = vmatmul.mubr.msk.bf16.gmra.mrb[60].mxu0 %vm346_vm1, %v1029_v30  ;;  %2906 = vmatprep.subr.bf16.mxu1 %v3076_v1  ;;  %v1253_v30 = vrot.slane %v3160_v17, 2 }
  0x92   : > { %2790 = vmatprep.mubr.msk.bf16.mxu0 %vm3077_vm0, %v3076_v1  ;;  %2867 = vmatpush3.bf16.msra.mxu0 %v3050_v36  ;;  %v1255_v36 = vrot.slane %v3207_v37, 2 }
  0x93   : > { %2747 = vmatmul.mubr.msk.bf16.gmra.mrb[60].mxu1 %vm346_vm1, %v3389_v55  ;;  %2868 = vmatprep.subr.bf16.mxu0 %v3076_v1  ;;  %v1044_v55 = vor.u32 %v1043_v54, %v1042_v53  ;;  %v1262_v53 = vsel %vm1251_vm5, %v1259_v49, %v1261_v10  ;;  %v1263_v54 = vrot.slane %v3163_v18, 2 }
  0x94   : > { %2750 = vmatprep.mubr.msk.bf16.mxu1 %vm3077_vm0, %v3076_v1  ;;  %v1256_v24 = vsel %vm1251_vm5, %v1253_v30, %v1255_v36 }
  0x95   : > { %v1045_v56 = vsel %vm1018_vm4, %v1040_v51, %v1044_v55  ;;  %v3061_v51 = vld [vmem:[%s4087_s1 + $0x118] sm:$0xff]  }
  0x96   : > { %2869 = vmatpush3.bf16.msra.mxu0 %v3052_v38  ;;  %v3055_v38 = vld [vmem:[%s4087_s1 + $0x100] sm:$0xff]  }
  0x97   : > { %2950 = vmatprep.subr.bf16.mxu0 %v3076_v1 }
  0x99   : > { %2791 = vmatmul.mubr.msk.bf16.gmra.mrb[64].mxu0 %vm346_vm1, %v1033_v39  ;;  %v3058_v39 = vld [vmem:[%s4087_s1 + $0xf0] sm:$0xff]  }
  0x9a   : > { %2794 = vmatprep.mubr.msk.bf16.mxu0 %vm3077_vm0, %v3076_v1 }
  0x9b   : > { %2751 = vmatmul.mubr.msk.bf16.gmra.mrb[64].mxu1 %vm346_vm1, %v3401_v57  ;;  %v1046_v57 = vrot.slane %v3279_v2, 1 }
  0x9c   : > { %2754 = vmatprep.mubr.msk.bf16.mxu1 %vm3077_vm0, %v3076_v1 }
  0xa1   : > { %2795 = vmatmul.mubr.msk.bf16.gmra.mrb[68].mxu0 %vm346_vm1, %v1037_v45  ;;  %v1258_v45 = vsel %vm1251_vm5, %v1255_v36, %v1257_v5 }
  0xa2   : > { %2798 = vmatprep.mubr.msk.bf16.mxu0 %vm3077_vm0, %v3076_v1 }
  0xa3   : > { %2755 = vmatmul.mubr.msk.bf16.gmra.mrb[68].mxu1 %vm346_vm1, %v3413_v59  ;;  %v1048_v59 = vor.u32 %v1047_v58, %v1046_v57  ;;  %v1264_v58 = vsel %vm1251_vm5, %v1261_v10, %v1263_v54 }
  0xa4   : > { %2758 = vmatprep.mubr.msk.bf16.mxu1 %vm3077_vm0, %v3076_v1 }
  0xa5   : > { %v1049_v8 = vsel %vm1018_vm4, %v1044_v55, %v1048_v59 }
  0xa9   : > { %2799 = vmatmul.mubr.msk.bf16.gmra.mrb[72].mxu0 %vm346_vm1, %v1041_v52  ;;  %v1260_v52 = vsel %vm1251_vm5, %v1257_v5, %v1259_v49 }
  0xaa   : > { %2802 = vmatprep.mubr.msk.bf16.mxu0 %vm3077_vm0, %v3076_v1 }
  0xab   : > { %2759 = vmatmul.mubr.msk.bf16.gmra.mrb[72].mxu1 %vm346_vm1, %v3425_v0  ;;  %v3553_v0 = vld [vmem:[%s3134_s25 + $0x50] sm:$0xf] }
  0xac   : > { %2762 = vmatprep.mubr.msk.bf16.mxu1 %vm3077_vm0, %v3076_v1  ;;  %v3562_v12 = vcombine.low %v3553_v0, %v3553_v0 }
  0xae   : > { %v1060_v4 = vshrl.u32 %v3562_v12, 16  ;;  %v1063_v13 = vshll.u32 %v3562_v12, 16  ;;  %v854_v14 = vrot.slane %v3562_v12, 1 }
  0xb0   : > { %v1062_v27 = vrot.slane %v1060_v4, 1  ;;  %v1065_v15 = vrot.slane %v1063_v13, 2  ;;  %v855_v22 = vsel %vm645_vm3, %v852_v29, %v854_v14 }
  0xb1   : > { %2803 = vmatmul.mubr.msk.bf16.gmra.mrb[76].mxu0 %vm346_vm1, %v1045_v56 }
  0xb2   : > { %2806 = vmatprep.mubr.msk.bf16.mxu0 %vm3077_vm0, %v3076_v1  ;;  %v1066_v28 = vor.u32 %v1065_v15, %v1062_v27 }
  0xb3   : > { %2763 = vmatmul.mubr.msk.bf16.gmra.mrb[76].mxu1 %vm346_vm1, %v3437_v3  ;;  %v1057_v3 = vor.u32 %v1056_v9, %v1053_v62  ;;  %v1265_v9 = vrot.slane %v3219_v41, 2 }
  0xb4   : > { %2766 = vmatprep.mubr.msk.bf16.mxu1 %vm3077_vm0, %v3076_v1 }
  0xb5   : > { %v1058_v23 = vsel %vm1018_vm4, %v1048_v59, %v1057_v3  ;;  %v1067_v34 = vsel %vm1018_vm4, %v1057_v3, %v1066_v28  ;;  %v1267_v28 = vrot.slane %v3301_v26, 2 }
  0xb7   : > { %v1268_v36 = vsel %vm1251_vm5, %v1265_v9, %v1267_v28 }
  0xb9   : > { %2807 = vmatmul.mubr.msk.bf16.gmra.mrb[80].mxu0 %vm346_vm1, %v1049_v8 }
  0xba   : > { %2810 = vmatprep.mubr.msk.bf16.mxu0 %vm3077_vm0, %v3076_v1 }
  0xbb   : > { %2767 = vmatmul.mubr.msk.bf16.gmra.mrb[80].mxu1 %vm346_vm1, %v3318_v33  ;;  %v1252_v33 = vrot.slane %v3140_v6, 2  ;;  %v3056_v6 = vld [vmem:[%s4087_s1 + $0xe8] sm:$0xff]  }
  0xbc   : > { %2770 = vmatprep.mubr.msk.bf16.mxu1 %vm3077_vm0, %v3076_v1 }
  0xbd   : > { %v1254_v29 = vsel %vm1251_vm5, %v1252_v33, %v1253_v30  ;;  %v193_v33 = vld [vmem:[%s3134_s25 + $0x54] sm:$0xf] }
  0xc1   : > { %2811 = vmatmul.mubr.msk.bf16.gmra.mrb[84].mxu0 %vm346_vm1, %v1058_v23  ;;  %v1266_v23 = vsel %vm1251_vm5, %v1263_v54, %v1265_v9 }
  0xc2   : > { %2814 = vmatprep.mubr.msk.bf16.mxu0 %vm3077_vm0, %v3076_v1 }
  0xc3   : > { %2771 = vmatmul.mubr.msk.bf16.gmra.mrb[84].mxu1 %vm346_vm1, %v855_v22 }
  0xc4   : > { %2826 = vmatprep.mubr.msk.bf16.mxu1 %vm3077_vm0, %v3076_v1 }
  0xc9   : > { %2815 = vmatmul.mubr.msk.bf16.gmra.mrb[88].mxu0 %vm346_vm1, %v1067_v34 }
  0xca   : > { %2870 = vmatprep.mubr.msk.bf16.mxu0 %vm3077_vm0, %v3076_v1 }
  0xcb   : > { %2827 = vmatmul.mubr.msk.bf16.vlgmr.msra.gmra.mrb[88].mxu1 %vm346_vm1, %v1254_v29 }
  0xcc   : > { %2830 = vmatprep.mubr.msk.bf16.mxu1 %vm3077_vm0, %v3076_v1  ;;  %2907 = vmatpush3.bf16.msra.mxu1 %v3054_v35 }
  0xcd   : > { %2908 = vmatprep.subr.bf16.mxu1 %v3076_v1 }
  0xd0   : > { %2909 = vmatpush3.bf16.msra.mxu1 %v3056_v6  ;;  %v3698_v6 = vcombine.low %v3553_v0, %v193_v33 }
  0xd1   : > { %2871 = vmatmul.mubr.msk.bf16.vlgmr.msra.gmra.mrb[92].mxu0 %vm346_vm1, %v1256_v24  ;;  %2910 = vmatprep.subr.bf16.mxu1 %v3076_v1 }
  0xd2   : > { %2951 = vmatpush3.bf16.msra.mxu0 %v3055_v38  ;;  %2874 = vmatprep.mubr.msk.bf16.mxu0 %vm3077_vm0, %v3076_v1 }
  0xd3   : > { %2831 = vmatmul.mubr.msk.bf16.gmra.mrb[92].mxu1 %vm346_vm1, %v1256_v24  ;;  %2952 = vmatprep.subr.bf16.mxu0 %v3076_v1 }
  0xd4   : > { %2834 = vmatprep.mubr.msk.bf16.mxu1 %vm3077_vm0, %v3076_v1  ;;  %2911 = vmatpush3.bf16.msra.mxu1 %v3058_v39 }
  0xd5   : > { %2912 = vmatprep.subr.bf16.mxu1 %v3076_v1 }
  0xd6   : > { %2953 = vmatpush3.bf16.msra.mxu0 %v3057_v40  ;;  %v1458_v40 = vrot.slane %v3698_v6, 2 }
  0xd7   : > { %2954 = vmatprep.subr.bf16.mxu0 %v3076_v1 }
  0xd8   : > { %2913 = vmatpush3.bf16.msra.mxu1 %v3060_v43  ;;  %v1269_v43 = vrot.slane %v3562_v12, 2  ;;  %v1625_v12 = vrot.slane %v3223_v42, 2 }
  0xd9   : > { %2875 = vmatmul.mubr.msk.bf16.gmra.mrb[96].mxu0 %vm346_vm1, %v1258_v45 }
  0xda   : > { %2878 = vmatprep.mubr.msk.bf16.mxu0 %vm3077_vm0, %v3076_v1  ;;  %2955 = vmatpush3.bf16.msra.mxu0 %v3059_v47  ;;  %v1270_v54 = vsel %vm1251_vm5, %v1267_v28, %v1269_v43 }
  0xdb   : > { %2835 = vmatmul.mubr.msk.bf16.gmra.mrb[96].mxu1 %vm346_vm1, %v1258_v45  ;;  %2956 = vmatprep.subr.bf16.mxu0 %v3076_v1 }
  0xdc   : > { %2838 = vmatprep.mubr.msk.bf16.mxu1 %vm3077_vm0, %v3076_v1 }
  0xde   : > { %2957 = vmatpush3.bf16.msra.mxu0 %v3061_v51  ;;  %v1459_v51 = vsel %vm1251_vm5, %v1267_v28, %v1458_v40 }
  0xe1   : > { %2879 = vmatmul.mubr.msk.bf16.gmra.mrb[100].mxu0 %vm346_vm1, %v1260_v52 }
  0xe2   : > { %2882 = vmatprep.mubr.msk.bf16.mxu0 %vm3077_vm0, %v3076_v1 }
  0xe3   : > { %2839 = vmatmul.mubr.msk.bf16.gmra.mrb[100].mxu1 %vm346_vm1, %v1260_v52  ;;  %v3718_v52 = vld [vmem:[%s3134_s25 + $0x58] ss:$0 sps:$4 sm:$0xff]  }
  0xe4   : > { %2842 = vmatprep.mubr.msk.bf16.mxu1 %vm3077_vm0, %v3076_v1  ;;  %v1460_v9 = vrot.slane %v3718_v52, 2 }
  0xe9   : > { %2883 = vmatmul.mubr.msk.bf16.gmra.mrb[104].mxu0 %vm346_vm1, %v1262_v53 }
  0xea   : > { %2886 = vmatprep.mubr.msk.bf16.mxu0 %vm3077_vm0, %v3076_v1 }
  0xeb   : > { %2843 = vmatmul.mubr.msk.bf16.gmra.mrb[104].mxu1 %vm346_vm1, %v1262_v53 }
  0xec   : > { %v3655_v55 = vpop.f32.mrb[0].mxu0  ;;  %2846 = vmatprep.mubr.msk.bf16.mxu1 %vm3077_vm0, %v3076_v1 }
  0xed   : > { %v2608_v11 = vpop.f32.mrb[1].mxu0 }
  0xee   : > { %v3659_v56 = vpop.f32.mrb[2].mxu0  ;;  %v3661_v57 = vpop.f32.mrb[0].mxu1 }
  0xef   : > { %v2609_v59 = vpop.f32.mrb[3].mxu0  ;;  %v2628_v8 = vpop.f32.mrb[1].mxu1 }
  0xf0   : > { %v3664_v62 = vpop.f32.mrb[2].mxu1  ;;  %v1628_v59 = vrot.slane %v3268_v60, 2  ;;  %v1629_v8 = vrot.slane %v3227_v44, 3 }
  0xf1   : > { %2887 = vmatmul.mubr.msk.bf16.gmra.mrb[108].mxu0 %vm346_vm1, %v1264_v58  ;;  %v2629_v18 = vpop.f32.mrb[3].mxu1 }
  0xf2   : > { %2890 = vmatprep.mubr.msk.bf16.mxu0 %vm3077_vm0, %v3076_v1  ;;  %v1630_v42 = vor.u32 %v1629_v8, %v1628_v59  ;;  %v1636_v59 = vrot.slane %v3166_v19, 2  ;;  %v1637_v8 = vrot.slane %v3157_v16, 3 }
  0xf3   : > { %2847 = vmatmul.mubr.msk.bf16.gmra.mrb[108].mxu1 %vm346_vm1, %v1264_v58  ;;  %v1626_v58 = vrot.slane %v3180_v25, 3 }
  0xf4   : > { %v3671_v3 = vpop.f32.mrb[4].mxu0  ;;  %2850 = vmatprep.mubr.msk.bf16.mxu1 %vm3077_vm0, %v3076_v1 }
  0xf5   : > { %v2612_v4 = vpop.f32.mrb[5].mxu0  ;;  %v1627_v25 = vor.u32 %v1626_v58, %v1625_v12 }
  0xf6   : > { %v3675_v13 = vpop.f32.mrb[6].mxu0  ;;  %v3677_v14 = vpop.f32.mrb[4].mxu1 }
  0xf7   : > { %v2613_v27 = vpop.f32.mrb[7].mxu0  ;;  %v2632_v15 = vpop.f32.mrb[5].mxu1 }
  0xf8   : > { %v3680_v22 = vpop.f32.mrb[6].mxu1  ;;  %v1461_v27 = vsel %vm1251_vm5, %v1458_v40, %v1460_v9  ;;  %v1858_v40 = vrot.slane %v3160_v17, 3 }
  0xf9   : > { %2891 = vmatmul.mubr.msk.bf16.gmra.mrb[112].mxu0 %vm346_vm1, %v1266_v23  ;;  %v2633_v41 = vpop.f32.mrb[7].mxu1 }
  0xfa   : > { %2894 = vmatprep.mubr.msk.bf16.mxu0 %vm3077_vm0, %v3076_v1 }
  0xfb   : > { %2851 = vmatmul.mubr.msk.bf16.gmra.mrb[112].mxu1 %vm346_vm1, %v1266_v23 }
  0xfc   : > { %v3688_v30 = vpop.f32.mrb[8].mxu0  ;;  %2854 = vmatprep.mubr.msk.bf16.mxu1 %vm3077_vm0, %v3076_v1 }
  0xfd   : > { %v2616_v34 = vpop.f32.mrb[9].mxu0 }
  0xfe   : > { %v3692_v29 = vpop.f32.mrb[10].mxu0  ;;  %v3694_v35 = vpop.f32.mrb[8].mxu1  ;;  %v1631_v34 = vsel %vm1624_vm6, %v1627_v25, %v1630_v42 }
  0xff   : > { %v2617_v24 = vpop.f32.mrb[11].mxu0  ;;  %v2636_v38 = vpop.f32.mrb[9].mxu1 }
 0x100   : > { %v3700_v39 = vpop.f32.mrb[10].mxu1  ;;  %v1633_v24 = vrot.slane %v3271_v61, 3 }
 0x101   : > { %2895 = vmatmul.mubr.msk.bf16.gmra.mrb[116].mxu0 %vm346_vm1, %v1268_v36  ;;  %v2637_v5 = vpop.f32.mrb[11].mxu1 }
 0x102   : > { %2898 = vmatprep.mubr.msk.bf16.mxu0 %vm3077_vm0, %v3076_v1 }
 0x103   : > { %2855 = vmatmul.mubr.msk.bf16.gmra.mrb[116].mxu1 %vm346_vm1, %v1268_v36  ;;  %v1632_v36 = vrot.slane %v3298_v21, 2 }
 0x104   : > { %v3708_v45 = vpop.f32.mrb[12].mxu0  ;;  %2858 = vmatprep.mubr.msk.bf16.mxu1 %vm3077_vm0, %v3076_v1 }
 0x105   : > { %v2620_v0 = vpop.f32.mrb[13].mxu0  ;;  %v1634_v61 = vor.u32 %v1633_v24, %v1632_v36  ;;  %v1641_v36 = vrot.slane %v3169_v20, 3 }
 0x106   : > { %v3712_v47 = vpop.f32.mrb[14].mxu0  ;;  %v3714_v49 = vpop.f32.mrb[12].mxu1 }
 0x107   : > { %v2621_v10 = vpop.f32.mrb[15].mxu0  ;;  %v2640_v53 = vpop.f32.mrb[13].mxu1  ;;  %v1635_v58 = vsel %vm1624_vm6, %v1630_v42, %v1634_v61  ;;  %v1638_v42 = vor.u32 %v1637_v8, %v1636_v59 }
 0x108   : > { %v3721_v11 = vpop.f32.mrb[14].mxu1 }
 0x109   : > { %2899 = vmatmul.mubr.msk.bf16.gmra.mrb[120].mxu0 %vm346_vm1, %v1459_v51  ;;  %v2641_v18 = vpop.f32.mrb[15].mxu1 }
 0x10a   : > { %2902 = vmatprep.mubr.msk.bf16.mxu0 %vm3077_vm0, %v3076_v1 }
 0x10b   : > { %2859 = vmatmul.mubr.msk.bf16.gmra.mrb[120].mxu1 %vm346_vm1, %v1270_v54 }
 0x10c   : > { %v3732_v4 = vpop.f32.mrb[16].mxu0  ;;  %2914 = vmatprep.mubr.msk.bf16.mxu1 %vm3077_vm0, %v3076_v1 }
 0x10d   : > { %v2624_v60 = vpop.f32.mrb[17].mxu0 }
 0x10e   : > { %v555_v44 = vpop.f32.mrb[16].mxu1  ;;  %v3736_v23 = vpop.f32.mrb[18].mxu0 }
 0x10f   : > { %v556_v15 = vadd.f32 %v555_v44, %v3655_v55  ;;  %v2652_v41 = vpop.f32.mrb[17].mxu1  ;;  %v2625_v28 = vpop.f32.mrb[19].mxu0  ;;  %v1859_v55 = vrot.slane %v3207_v37, 3 }
 0x110   : > { %v558_v33 = vpop.f32.mrb[18].mxu1 }
 0x111   : > { %v559_v38 = vadd.f32 %v558_v33, %v3659_v56  ;;  %2903 = vmatmul.mubr.msk.bf16.gmra.mrb[124].mxu0 %vm346_vm1, %v1461_v27  ;;  %v2653_v5 = vpop.f32.mrb[19].mxu1  ;;  %v1860_v10 = vsel %vm1857_vm7, %v1858_v40, %v1859_v55  ;;  %v1639_v33 = vsel %vm1624_vm6, %v1634_v61, %v1638_v42 }
 0x112   : > { %2958 = vmatprep.mubr.msk.bf16.mxu0 %vm3077_vm0, %v3076_v1 }
 0x113   : > { %2915 = vmatmul.mubr.msk.bf16.vlgmr.msra.gmra.mrb[124].mxu1 %vm346_vm1, %v1631_v34  ;;  %v1640_v34 = vrot.slane %v3193_v31, 2 }
 0x114   : > { %v750_v43 = vpop.f32.mrb[20].mxu0  ;;  %2918 = vmatprep.mubr.msk.bf16.mxu1 %vm3077_vm0, %v3076_v1 }
 0x115   : > { %v3752_v21 = vadd.f32 %v750_v43, %v556_v15  ;;  %v2696_v56 = vpop.f32.mrb[21].mxu0 }
 0x116   : > { %v563_v0 = vpop.f32.mrb[20].mxu1  ;;  %v753_v51 = vpop.f32.mrb[22].mxu0 }
 0x117   : > { %v564_v53 = vadd.f32 %v563_v0, %v3671_v3  ;;  %v2656_v17 = vpop.f32.mrb[21].mxu1  ;;  %v3756_v54 = vadd.f32 %v753_v51, %v559_v38  ;;  %v2697_v37 = vpop.f32.mrb[23].mxu0  ;;  %v1861_v3 = vrot.slane %v3246_v50, 3 }
 0x118   : > { %v566_v12 = vpop.f32.mrb[22].mxu1  ;;  %v1644_v37 = vrot.slane %v3233_v46, 2 }
 0x119   : > { %v567_v18 = vadd.f32 %v566_v12, %v3675_v13  ;;  %2959 = vmatmul.mubr.msk.bf16.vlgmr.msra.gmra.mrb[128].mxu0 %vm346_vm1, %v1860_v10  ;;  %v2657_v9 = vpop.f32.mrb[23].mxu1  ;;  %v1862_v44 = vsel %vm1857_vm7, %v1859_v55, %v1861_v3  ;;  %v1642_v55 = vor.u32 %v1641_v36, %v1640_v34  ;;  %v1645_v12 = vrot.slane %v3196_v32, 3 }
 0x11a   : > { %2962 = vmatprep.mubr.msk.bf16.mxu0 %vm3077_vm0, %v3076_v1 }
 0x11b   : > { %2919 = vmatmul.mubr.msk.bf16.gmra.mrb[128].mxu1 %vm346_vm1, %v1635_v58  ;;  %v1643_v17 = vsel %vm1624_vm6, %v1638_v42, %v1642_v55  ;;  %v1646_v9 = vor.u32 %v1645_v12, %v1644_v37  ;;  %v1657_v37 = vshrl.u32 %v3698_v6, 16 }
 0x11c   : > { %v758_v25 = vpop.f32.mrb[24].mxu0  ;;  %2922 = vmatprep.mubr.msk.bf16.mxu1 %vm3077_vm0, %v3076_v1 }
 0x11d   : > { %v3769_v19 = vadd.f32 %v758_v25, %v564_v53  ;;  %v2700_v16 = vpop.f32.mrb[25].mxu0 }
 0x11e   : > { %v571_v13 = vpop.f32.mrb[24].mxu1  ;;  %v761_v60 = vpop.f32.mrb[26].mxu0 }
 0x11f   : > { %v572_v27 = vadd.f32 %v571_v13, %v3688_v30  ;;  %v2660_v15 = vpop.f32.mrb[25].mxu1  ;;  %v3773_v41 = vadd.f32 %v761_v60, %v567_v18  ;;  %v2701_v50 = vpop.f32.mrb[27].mxu0  ;;  %v3064_v30 = vld [vmem:[%s3134_s25 + $0x28] sm:$0xff]  }
 0x120   : > { %v574_v28 = vpop.f32.mrb[26].mxu1  ;;  %v1863_v5 = vrot.slane %v3064_v30, 3  ;;  %v1648_v15 = vrot.slane %v3279_v2, 2  ;;  %v1649_v50 = vrot.slane %v3238_v48, 3 }
 0x121   : > { %v575_v24 = vadd.f32 %v574_v28, %v3692_v29  ;;  %2963 = vmatmul.mubr.msk.bf16.gmra.mrb[132].mxu0 %vm346_vm1, %v1862_v44  ;;  %v2661_v38 = vpop.f32.mrb[27].mxu1 }
 0x122   : > { %2966 = vmatprep.mubr.msk.bf16.mxu0 %vm3077_vm0, %v3076_v1  ;;  %v1864_v61 = vsel %vm1857_vm7, %v1861_v3, %v1863_v5 }
 0x123   : > { %2923 = vmatmul.mubr.msk.bf16.gmra.mrb[132].mxu1 %vm346_vm1, %v1639_v33 }
 0x124   : > { %v766_v40 = vpop.f32.mrb[28].mxu0  ;;  %2926 = vmatprep.mubr.msk.bf16.mxu1 %vm3077_vm0, %v3076_v1 }
 0x125   : > { %v3786_v31 = vadd.f32 %v766_v40, %v572_v27  ;;  %v2704_v20 = vpop.f32.mrb[29].mxu0  ;;  %v1647_v27 = vsel %vm1624_vm6, %v1642_v55, %v1646_v9 }
 0x126   : > { %v579_v29 = vpop.f32.mrb[28].mxu1  ;;  %v769_v43 = vpop.f32.mrb[30].mxu0 }
 0x127   : > { %v580_v56 = vadd.f32 %v579_v29, %v3708_v45  ;;  %v2664_v0 = vpop.f32.mrb[29].mxu1  ;;  %v3790_v51 = vadd.f32 %v769_v43, %v575_v24  ;;  %v2705_v10 = vpop.f32.mrb[31].mxu0  ;;  %v3065_v45 = vld [vmem:[%s3134_s25 + $0x30] sm:$0xff]   ;;  %v1650_v24 = vor.u32 %v1649_v50, %v1648_v15  ;;  %v1666_v15 = vshrl.u32 %v3718_v52, 16 }
 0x128   : > { %v582_v53 = vpop.f32.mrb[30].mxu1  ;;  %v1865_v8 = vrot.slane %v3065_v45, 3  ;;  %v1669_v50 = vshll.u32 %v3718_v52, 16 }
 0x129   : > { %v583_v58 = vadd.f32 %v582_v53, %v3712_v47  ;;  %2967 = vmatmul.mubr.msk.bf16.gmra.mrb[136].mxu0 %vm346_vm1, %v1864_v61  ;;  %v2665_v59 = vpop.f32.mrb[31].mxu1  ;;  %v1651_v43 = vsel %vm1624_vm6, %v1646_v9, %v1650_v24  ;;  %v1652_v61 = vrot.slane %v1051_v63, 2 }
 0x12a   : > { %2970 = vmatprep.mubr.msk.bf16.mxu0 %vm3077_vm0, %v3076_v1  ;;  %v1866_v25 = vsel %vm1857_vm7, %v1863_v5, %v1865_v8 }
 0x12b   : > { %2927 = vmatmul.mubr.msk.bf16.gmra.mrb[136].mxu1 %vm346_vm1, %v1643_v17 }
 0x12c   : > { %v774_v18 = vpop.f32.mrb[32].mxu0  ;;  %2930 = vmatprep.mubr.msk.bf16.mxu1 %vm3077_vm0, %v3076_v1 }
 0x12d   : > { %v3803_v46 = vadd.f32 %v774_v18, %v580_v56  ;;  %v2708_v32 = vpop.f32.mrb[33].mxu0  ;;  %v1653_v56 = vrot.slane %v1054_v7, 3  ;;  %v1660_v7 = vshll.u32 %v3698_v6, 16 }
 0x12e   : > { %v587_v47 = vpop.f32.mrb[32].mxu1  ;;  %v777_v3 = vpop.f32.mrb[34].mxu0 }
 0x12f   : > { %v588_v42 = vadd.f32 %v587_v47, %v3732_v4  ;;  %v2668_v16 = vpop.f32.mrb[33].mxu1  ;;  %v3807_v13 = vadd.f32 %v777_v3, %v583_v58  ;;  %v2709_v60 = vpop.f32.mrb[35].mxu0  ;;  %v3066_v4 = vld [vmem:[%s3134_s25 + $0x38] sm:$0xff]   ;;  %v1654_v63 = vor.u32 %v1653_v56, %v1652_v61 }
 0x130   : > { %v590_v44 = vpop.f32.mrb[34].mxu1  ;;  %v1867_v34 = vrot.slane %v3066_v4, 3 }
 0x131   : > { %v591_v28 = vadd.f32 %v590_v44, %v3736_v23  ;;  %2971 = vmatmul.mubr.msk.bf16.gmra.mrb[140].mxu0 %vm346_vm1, %v1866_v25  ;;  %v2669_v33 = vpop.f32.mrb[35].mxu1  ;;  %v1655_v3 = vsel %vm1624_vm6, %v1650_v24, %v1654_v63  ;;  %v1659_v25 = vrot.slane %v1657_v37, 2  ;;  %v1871_v44 = vrot.slane %v3301_v26, 3 }
 0x132   : > { %2974 = vmatprep.mubr.msk.bf16.mxu0 %vm3077_vm0, %v3076_v1  ;;  %v1868_v30 = vsel %vm1857_vm7, %v1865_v8, %v1867_v34 }
 0x133   : > { %2931 = vmatmul.mubr.msk.bf16.gmra.mrb[140].mxu1 %vm346_vm1, %v1647_v27 }
 0x134   : > { %v782_v36 = vpop.f32.mrb[36].mxu0  ;;  %2934 = vmatprep.mubr.msk.bf16.mxu1 %vm3077_vm0, %v3076_v1 }
 0x135   : > { %v3820_v2 = vadd.f32 %v782_v36, %v588_v42  ;;  %v2712_v48 = vpop.f32.mrb[37].mxu0  ;;  %v1662_v42 = vrot.slane %v1660_v7, 3 }
 0x136   : > { %v595_v23 = vpop.f32.mrb[36].mxu1  ;;  %v785_v38 = vpop.f32.mrb[38].mxu0 }
 0x137   : > { %v596_v5 = vadd.f32 %v595_v23, %v3661_v57  ;;  %v2672_v40 = vpop.f32.mrb[37].mxu1  ;;  %v3824_v55 = vadd.f32 %v785_v38, %v591_v28  ;;  %v2713_v20 = vpop.f32.mrb[39].mxu0  ;;  %v3067_v57 = vld [vmem:[%s3134_s25 + $0x40] sm:$0xff]   ;;  %v1663_v27 = vor.u32 %v1662_v42, %v1659_v25 }
 0x138   : > { %v598_v29 = vpop.f32.mrb[38].mxu1  ;;  %v1869_v53 = vrot.slane %v3067_v57, 3 }
 0x139   : > { %v599_v0 = vadd.f32 %v598_v29, %v3664_v62  ;;  %2975 = vmatmul.mubr.msk.bf16.gmra.mrb[144].mxu0 %vm346_vm1, %v1868_v30  ;;  %v2673_v10 = vpop.f32.mrb[39].mxu1  ;;  %v1664_v38 = vsel %vm1624_vm6, %v1654_v63, %v1663_v27  ;;  %v1668_v30 = vrot.slane %v1666_v15, 2  ;;  %v1873_v29 = vrot.slane %v3698_v6, 3 }
 0x13a   : > { %2978 = vmatprep.mubr.msk.bf16.mxu0 %vm3077_vm0, %v3076_v1  ;;  %v1870_v45 = vsel %vm1857_vm7, %v1867_v34, %v1869_v53  ;;  %v1872_v34 = vsel %vm1857_vm7, %v1869_v53, %v1871_v44 }
 0x13b   : > { %2935 = vmatmul.mubr.msk.bf16.gmra.mrb[144].mxu1 %vm346_vm1, %v1651_v43  ;;  %v1874_v10 = vsel %vm1857_vm7, %v1871_v44, %v1873_v29 }
 0x13c   : > { %v790_v17 = vpop.f32.mrb[40].mxu0  ;;  %2938 = vmatprep.mubr.msk.bf16.mxu1 %vm3077_vm0, %v3076_v1 }
 0x13d   : > { %v3841_v62 = vadd.f32 %v790_v17, %v596_v5  ;;  %v2716_v12 = vpop.f32.mrb[41].mxu0  ;;  %v1671_v5 = vrot.slane %v1669_v50, 3 }
 0x13e   : > { %v603_v58 = vpop.f32.mrb[40].mxu1  ;;  %v793_v59 = vpop.f32.mrb[42].mxu0 }
 0x13f   : > { %v604_v8 = vadd.f32 %v603_v58, %v3677_v14  ;;  %v2676_v18 = vpop.f32.mrb[41].mxu1  ;;  %v3845_v9 = vadd.f32 %v793_v59, %v599_v0  ;;  %v2717_v32 = vpop.f32.mrb[43].mxu0  ;;  %v1672_v43 = vor.u32 %v1671_v5, %v1668_v30  ;;  %v1875_v58 = vrot.slane %v3718_v52, 3 }
 0x140   : > { %v606_v47 = vpop.f32.mrb[42].mxu1 }
 0x141   : > { %v607_v16 = vadd.f32 %v606_v47, %v3680_v22  ;;  %2979 = vmatmul.mubr.msk.bf16.gmra.mrb[148].mxu0 %vm346_vm1, %v1870_v45  ;;  %v2677_v60 = vpop.f32.mrb[43].mxu1  ;;  %v1673_v37 = vsel %vm1624_vm6, %v1663_v27, %v1672_v43  ;;  %v1876_v32 = vsel %vm1857_vm7, %v1873_v29, %v1875_v58 }
 0x142   : > { %2982 = vmatprep.mubr.msk.bf16.mxu0 %vm3077_vm0, %v3076_v1 }
 0x143   : > { %2939 = vmatmul.mubr.msk.bf16.gmra.mrb[148].mxu1 %vm346_vm1, %v1655_v3 }
 0x144   : > { %v798_v14 = vpop.f32.mrb[44].mxu0  ;;  %2942 = vmatprep.mubr.msk.bf16.mxu1 %vm3077_vm0, %v3076_v1 }
 0x145   : > { %v3858_v22 = vadd.f32 %v798_v14, %v604_v8  ;;  %v2720_v28 = vpop.f32.mrb[45].mxu0 }
 0x146   : > { %v611_v33 = vpop.f32.mrb[44].mxu1  ;;  %v801_v4 = vpop.f32.mrb[46].mxu0 }
 0x147   : > { %v612_v26 = vadd.f32 %v611_v33, %v3694_v35  ;;  %v2680_v36 = vpop.f32.mrb[45].mxu1  ;;  %v3862_v24 = vadd.f32 %v801_v4, %v607_v16  ;;  %v2721_v48 = vpop.f32.mrb[47].mxu0 }
 0x148   : > { %v614_v23 = vpop.f32.mrb[46].mxu1 }
 0x149   : > { %v615_v40 = vadd.f32 %v614_v23, %v3700_v39  ;;  %2983 = vmatmul.mubr.msk.bf16.gmra.mrb[152].mxu0 %vm346_vm1, %v1872_v34  ;;  %v2681_v20 = vpop.f32.mrb[47].mxu1 }
 0x14a   : > { %2986 = vmatprep.mubr.msk.bf16.mxu0 %vm3077_vm0, %v3076_v1 }
 0x14b   : > { %2943 = vmatmul.mubr.msk.bf16.gmra.mrb[152].mxu1 %vm346_vm1, %v1664_v38 }
 0x14c   : > { %v806_v35 = vpop.f32.mrb[48].mxu0  ;;  %2946 = vmatprep.mubr.msk.bf16.mxu1 %vm3077_vm0, %v3076_v1 }
 0x14d   : > { %v3873_v61 = vadd.f32 %v806_v35, %v612_v26  ;;  %v2724_v56 = vpop.f32.mrb[49].mxu0 }
 0x14e   : > { %v619_v0 = vpop.f32.mrb[48].mxu1  ;;  %v809_v39 = vpop.f32.mrb[50].mxu0 }
 0x14f   : > { %v620_v57 = vadd.f32 %v619_v0, %v3714_v49  ;;  %v2684_v53 = vpop.f32.mrb[49].mxu1  ;;  %v3877_v17 = vadd.f32 %v809_v39, %v615_v40  ;;  %v2725_v6 = vpop.f32.mrb[51].mxu0 }
 0x150   : > { %v622_v63 = vpop.f32.mrb[50].mxu1 }
 0x151   : > { %v623_v7 = vadd.f32 %v622_v63, %v3721_v11  ;;  %2987 = vmatmul.mubr.msk.bf16.gmra.mrb[156].mxu0 %vm346_vm1, %v1874_v10  ;;  %v2685_v12 = vpop.f32.mrb[51].mxu1 }
 0x152   : > { %2990 = vmatprep.mubr.msk.bf16.mxu0 %vm3077_vm0, %v3076_v1 }
 0x153   : > { %2947 = vmatmul.mubr.msk.bf16.gmra.mrb[156].mxu1 %vm346_vm1, %v1673_v37 }
 0x154   : > { %v814_v49 = vpop.f32.mrb[52].mxu0 }
 0x155   : > { %v3886_v59 = vadd.f32 %v814_v49, %v620_v57  ;;  %v2728_v45 = vpop.f32.mrb[53].mxu0 }
 0x156   : > { %v920_v8 = vpop.f32.mrb[52].mxu1  ;;  %v817_v18 = vpop.f32.mrb[54].mxu0 }
 0x157   : > { %v991_v11 = vadd.f32 %v920_v8, %v3752_v21  ;;  %v2740_v47 = vpop.f32.mrb[53].mxu1  ;;  %v3890_v3 = vadd.f32 %v817_v18, %v623_v7  ;;  %v2729_v25 = vpop.f32.mrb[55].mxu0 }
 0x158   : > { %v923_v42 = vpop.f32.mrb[54].mxu1 }
 0x159   : > { %v992_v1 = vadd.f32 %v923_v42, %v3756_v54  ;;  %2991 = vmatmul.mubr.msk.bf16.gmra.mrb[160].mxu0 %vm346_vm1, %v1876_v32  ;;  %v2741_v52 = vpop.f32.mrb[55].mxu1 }
 0x15c   : > { %v1153_v16 = vpop.f32.mrb[56].mxu0 }
 0x15d   : > { %v3894_v60 = vadd.f32 %v1153_v16, %v991_v11  ;;  %v2784_v44 = vpop.f32.mrb[57].mxu0 }
 0x15e   : > { %v928_v14 = vpop.f32.mrb[56].mxu1  ;;  %v1156_v27 = vpop.f32.mrb[58].mxu0 }
 0x15f   : > { %v993_v15 = vadd.f32 %v928_v14, %v3769_v19  ;;  %v2744_v50 = vpop.f32.mrb[57].mxu1  ;;  %v3897_v21 = vadd.f32 %v1156_v27, %v992_v1  ;;  %v2785_v28 = vpop.f32.mrb[59].mxu0 }
 0x160   : > { %v931_v33 = vpop.f32.mrb[58].mxu1 }
 0x161   : > { %v994_v4 = vadd.f32 %v931_v33, %v3773_v41  ;;  %v2745_v34 = vpop.f32.mrb[59].mxu1 }
 0x164   : > { %v1161_v54 = vpop.f32.mrb[60].mxu0 }
 0x165   : > { %v3900_v26 = vadd.f32 %v1161_v54, %v993_v15  ;;  %v2788_v36 = vpop.f32.mrb[61].mxu0 }
 0x166   : > { %v936_v48 = vpop.f32.mrb[60].mxu1  ;;  %v1164_v23 = vpop.f32.mrb[62].mxu0 }
 0x167   : > { %v995_v38 = vadd.f32 %v936_v48, %v3786_v31  ;;  %v2748_v30 = vpop.f32.mrb[61].mxu1  ;;  %v3903_v5 = vadd.f32 %v1164_v23, %v994_v4  ;;  %v2789_v19 = vpop.f32.mrb[63].mxu0 }
 0x168   : > { %v939_v40 = vpop.f32.mrb[62].mxu1 }
 0x169   : > { %v996_v20 = vadd.f32 %v939_v40, %v3790_v51  ;;  %v2749_v29 = vpop.f32.mrb[63].mxu1 }
 0x16c   : > { %v1169_v35 = vpop.f32.mrb[64].mxu0 }
 0x16d   : > { %v3906_v43 = vadd.f32 %v1169_v35, %v995_v38  ;;  %v2792_v41 = vpop.f32.mrb[65].mxu0 }
 0x16e   : > { %v944_v56 = vpop.f32.mrb[64].mxu1  ;;  %v1172_v0 = vpop.f32.mrb[66].mxu0 }
 0x16f   : > { %v997_v39 = vadd.f32 %v944_v56, %v3803_v46  ;;  %v2752_v10 = vpop.f32.mrb[65].mxu1  ;;  %v3909_v57 = vadd.f32 %v1172_v0, %v996_v20  ;;  %v2793_v31 = vpop.f32.mrb[67].mxu0 }
 0x170   : > { %v947_v53 = vpop.f32.mrb[66].mxu1 }
 0x171   : > { %v998_v6 = vadd.f32 %v947_v53, %v3807_v13  ;;  %v2753_v63 = vpop.f32.mrb[67].mxu1 }
 0x174   : > { %v1177_v37 = vpop.f32.mrb[68].mxu0 }
 0x175   : > { %v3912_v7 = vadd.f32 %v1177_v37, %v997_v39  ;;  %v2796_v51 = vpop.f32.mrb[69].mxu0 }
 0x176   : > { %v952_v12 = vpop.f32.mrb[68].mxu1  ;;  %v1180_v58 = vpop.f32.mrb[70].mxu0 }
 0x177   : > { %v999_v49 = vadd.f32 %v952_v12, %v3820_v2  ;;  %v2756_v45 = vpop.f32.mrb[69].mxu1  ;;  %v3915_v8 = vadd.f32 %v1180_v58, %v998_v6  ;;  %v2797_v46 = vpop.f32.mrb[71].mxu0 }
 0x178   : > { %v955_v18 = vpop.f32.mrb[70].mxu1 }
 0x179   : > { %v1000_v32 = vadd.f32 %v955_v18, %v3824_v55  ;;  %v2757_v11 = vpop.f32.mrb[71].mxu1 }
 0x17c   : > { %v1185_v47 = vpop.f32.mrb[72].mxu0 }
 0x17d   : > { %v3918_v25 = vadd.f32 %v1185_v47, %v999_v49  ;;  %v2800_v13 = vpop.f32.mrb[73].mxu0 }
 0x17e   : > { %v960_v42 = vpop.f32.mrb[72].mxu1  ;;  %v1188_v1 = vpop.f32.mrb[74].mxu0 }
 0x17f   : > { %v1001_v52 = vadd.f32 %v960_v42, %v3841_v62  ;;  %v2760_v16 = vpop.f32.mrb[73].mxu1  ;;  %v3921_v44 = vadd.f32 %v1188_v1, %v1000_v32  ;;  %v2801_v2 = vpop.f32.mrb[75].mxu0 }
 0x180   : > { %v963_v14 = vpop.f32.mrb[74].mxu1 }
 0x181   : > { %v1002_v27 = vadd.f32 %v963_v14, %v3845_v9  ;;  %v2761_v15 = vpop.f32.mrb[75].mxu1 }
 0x184   : > { %v1193_v50 = vpop.f32.mrb[76].mxu0 }
 0x185   : > { %v3924_v28 = vadd.f32 %v1193_v50, %v1001_v52  ;;  %v2804_v55 = vpop.f32.mrb[77].mxu0 }
 0x186   : > { %v968_v33 = vpop.f32.mrb[76].mxu1  ;;  %v1196_v4 = vpop.f32.mrb[78].mxu0 }
 0x187   : > { %v1003_v34 = vadd.f32 %v968_v33, %v3858_v22  ;;  %v2764_v54 = vpop.f32.mrb[77].mxu1  ;;  %v3927_v36 = vadd.f32 %v1196_v4, %v1002_v27  ;;  %v2805_v62 = vpop.f32.mrb[79].mxu0 }
 0x188   : > { %v971_v48 = vpop.f32.mrb[78].mxu1 }
 0x189   : > { %v1004_v23 = vadd.f32 %v971_v48, %v3862_v24  ;;  %v2765_v38 = vpop.f32.mrb[79].mxu1 }
 0x18c   : > { %v1201_v30 = vpop.f32.mrb[80].mxu0 }
 0x18d   : > { %v3930_v19 = vadd.f32 %v1201_v30, %v1003_v34  ;;  %v2808_v9 = vpop.f32.mrb[81].mxu0 }
 0x18e   : > { %v976_v40 = vpop.f32.mrb[80].mxu1  ;;  %v1204_v20 = vpop.f32.mrb[82].mxu0 }
 0x18f   : > { %v1005_v29 = vadd.f32 %v976_v40, %v3873_v61  ;;  %v2768_v35 = vpop.f32.mrb[81].mxu1  ;;  %v3933_v41 = vadd.f32 %v1204_v20, %v1004_v23  ;;  %v2809_v22 = vpop.f32.mrb[83].mxu0 }
 0x190   : > { %v979_v56 = vpop.f32.mrb[82].mxu1 }
 0x191   : > { %v1006_v0 = vadd.f32 %v979_v56, %v3877_v17  ;;  %v2769_v39 = vpop.f32.mrb[83].mxu1 }
 0x194   : > { %v1209_v10 = vpop.f32.mrb[84].mxu0 }
 0x195   : > { %v3936_v31 = vadd.f32 %v1209_v10, %v1005_v29  ;;  %v2812_v24 = vpop.f32.mrb[85].mxu0 }
 0x196   : > { %v984_v53 = vpop.f32.mrb[84].mxu1  ;;  %v1212_v6 = vpop.f32.mrb[86].mxu0 }
 0x197   : > { %v1007_v63 = vadd.f32 %v984_v53, %v3886_v59  ;;  %v2772_v37 = vpop.f32.mrb[85].mxu1  ;;  %v3939_v51 = vadd.f32 %v1212_v6, %v1006_v0  ;;  %v2813_v61 = vpop.f32.mrb[87].mxu0 }
 0x198   : > { %v987_v12 = vpop.f32.mrb[86].mxu1 }
 0x199   : > { %v1008_v58 = vadd.f32 %v987_v12, %v3890_v3  ;;  %v2773_v49 = vpop.f32.mrb[87].mxu1 }
 0x19c   : > { %v1217_v45 = vpop.f32.mrb[88].mxu0 }
 0x19d   : > { %v3942_v46 = vadd.f32 %v1217_v45, %v1007_v63  ;;  %v2816_v17 = vpop.f32.mrb[89].mxu0 }
 0x19e   : > { %v1356_v18 = vpop.f32.mrb[88].mxu1  ;;  %v1220_v32 = vpop.f32.mrb[90].mxu0 }
 0x19f   : > { %v1427_v11 = vadd.f32 %v1356_v18, %v3894_v60  ;;  %v2828_v47 = vpop.f32.mrb[89].mxu1  ;;  %v3945_v13 = vadd.f32 %v1220_v32, %v1008_v58  ;;  %v2817_v59 = vpop.f32.mrb[91].mxu0 }
 0x1a0   : > { %v1359_v42 = vpop.f32.mrb[90].mxu1 }
 0x1a1   : > { %v1428_v1 = vadd.f32 %v1359_v42, %v3897_v21  ;;  %v2829_v52 = vpop.f32.mrb[91].mxu1 }
 0x1a4   : > { %v1526_v16 = vpop.f32.mrb[92].mxu0 }
 0x1a5   : > { %v3948_v2 = vadd.f32 %v1526_v16, %v1427_v11  ;;  %v2872_v3 = vpop.f32.mrb[93].mxu0 }
 0x1a6   : > { %v1364_v14 = vpop.f32.mrb[92].mxu1  ;;  %v1529_v27 = vpop.f32.mrb[94].mxu0 }
 0x1a7   : > { %v1429_v15 = vadd.f32 %v1364_v14, %v3900_v26  ;;  %v2832_v50 = vpop.f32.mrb[93].mxu1  ;;  %v3951_v55 = vadd.f32 %v1529_v27, %v1428_v1  ;;  %v2873_v60 = vpop.f32.mrb[95].mxu0 }
 0x1a8   : > { %v1367_v33 = vpop.f32.mrb[94].mxu1 }
 0x1a9   : > { %v1430_v4 = vadd.f32 %v1367_v33, %v3903_v5  ;;  %v2833_v34 = vpop.f32.mrb[95].mxu1 }
 0x1ac   : > { %v1534_v54 = vpop.f32.mrb[96].mxu0 }
 0x1ad   : > { %v3954_v62 = vadd.f32 %v1534_v54, %v1429_v15  ;;  %v2876_v21 = vpop.f32.mrb[97].mxu0 }
 0x1ae   : > { %v1372_v48 = vpop.f32.mrb[96].mxu1  ;;  %v1537_v23 = vpop.f32.mrb[98].mxu0 }
 0x1af   : > { %v1431_v38 = vadd.f32 %v1372_v48, %v3906_v43  ;;  %v2836_v30 = vpop.f32.mrb[97].mxu1  ;;  %v3957_v9 = vadd.f32 %v1537_v23, %v1430_v4  ;;  %v2877_v26 = vpop.f32.mrb[99].mxu0 }
 0x1b0   : > { %v1375_v40 = vpop.f32.mrb[98].mxu1 }
 0x1b1   : > { %v1432_v20 = vadd.f32 %v1375_v40, %v3909_v57  ;;  %v2837_v29 = vpop.f32.mrb[99].mxu1 }
 0x1b4   : > { %v1542_v35 = vpop.f32.mrb[100].mxu0 }
 0x1b5   : > { %v3960_v22 = vadd.f32 %v1542_v35, %v1431_v38  ;;  %v2880_v5 = vpop.f32.mrb[101].mxu0 }
 0x1b6   : > { %v1380_v56 = vpop.f32.mrb[100].mxu1  ;;  %v1545_v0 = vpop.f32.mrb[102].mxu0 }
 0x1b7   : > { %v1433_v39 = vadd.f32 %v1380_v56, %v3912_v7  ;;  %v2840_v10 = vpop.f32.mrb[101].mxu1  ;;  %v3963_v24 = vadd.f32 %v1545_v0, %v1432_v20  ;;  %v2881_v43 = vpop.f32.mrb[103].mxu0 }
 0x1b8   : > { %v1383_v53 = vpop.f32.mrb[102].mxu1 }
 0x1b9   : > { %v1434_v6 = vadd.f32 %v1383_v53, %v3915_v8  ;;  %v2841_v63 = vpop.f32.mrb[103].mxu1 }
 0x1bc   : > { %v1550_v37 = vpop.f32.mrb[104].mxu0 }
 0x1bd   : > { %v3966_v61 = vadd.f32 %v1550_v37, %v1433_v39  ;;  %v2884_v57 = vpop.f32.mrb[105].mxu0 }
 0x1be   : > { %v1388_v12 = vpop.f32.mrb[104].mxu1  ;;  %v1553_v58 = vpop.f32.mrb[106].mxu0 }
 0x1bf   : > { %v1435_v49 = vadd.f32 %v1388_v12, %v3918_v25  ;;  %v2844_v45 = vpop.f32.mrb[105].mxu1  ;;  %v3969_v17 = vadd.f32 %v1553_v58, %v1434_v6  ;;  %v2885_v7 = vpop.f32.mrb[107].mxu0 }
 0x1c0   : > { %v1391_v18 = vpop.f32.mrb[106].mxu1 }
 0x1c1   : > { %v1436_v32 = vadd.f32 %v1391_v18, %v3921_v44  ;;  %v2845_v11 = vpop.f32.mrb[107].mxu1 }
 0x1c4   : > { %v1558_v47 = vpop.f32.mrb[108].mxu0 }
 0x1c5   : > { %v3972_v59 = vadd.f32 %v1558_v47, %v1435_v49  ;;  %v2888_v8 = vpop.f32.mrb[109].mxu0 }
 0x1c6   : > { %v1396_v42 = vpop.f32.mrb[108].mxu1  ;;  %v1561_v1 = vpop.f32.mrb[110].mxu0 }
 0x1c7   : > { %v1437_v52 = vadd.f32 %v1396_v42, %v3924_v28  ;;  %v2848_v16 = vpop.f32.mrb[109].mxu1  ;;  %v3975_v3 = vadd.f32 %v1561_v1, %v1436_v32  ;;  %v2889_v25 = vpop.f32.mrb[111].mxu0 }
 0x1c8   : > { %v1399_v14 = vpop.f32.mrb[110].mxu1 }
 0x1c9   : > { %v1438_v27 = vadd.f32 %v1399_v14, %v3927_v36  ;;  %v2849_v15 = vpop.f32.mrb[111].mxu1 }
 0x1cc   : > { %v1566_v50 = vpop.f32.mrb[112].mxu0 }
 0x1cd   : > { %v3978_v60 = vadd.f32 %v1566_v50, %v1437_v52  ;;  %v2892_v44 = vpop.f32.mrb[113].mxu0 }
 0x1ce   : > { %v1404_v33 = vpop.f32.mrb[112].mxu1  ;;  %v1569_v4 = vpop.f32.mrb[114].mxu0 }
 0x1cf   : > { %v1439_v34 = vadd.f32 %v1404_v33, %v3930_v19  ;;  %v2852_v54 = vpop.f32.mrb[113].mxu1  ;;  %v3981_v21 = vadd.f32 %v1569_v4, %v1438_v27  ;;  %v2893_v28 = vpop.f32.mrb[115].mxu0 }
 0x1d0   : > { %v1407_v48 = vpop.f32.mrb[114].mxu1 }
 0x1d1   : > { %v1440_v23 = vadd.f32 %v1407_v48, %v3933_v41  ;;  %v2853_v38 = vpop.f32.mrb[115].mxu1 }
 0x1d4   : > { %v1574_v30 = vpop.f32.mrb[116].mxu0 }
 0x1d5   : > { %v3984_v26 = vadd.f32 %v1574_v30, %v1439_v34  ;;  %v2896_v36 = vpop.f32.mrb[117].mxu0 }
 0x1d6   : > { %v1412_v40 = vpop.f32.mrb[116].mxu1  ;;  %v1577_v20 = vpop.f32.mrb[118].mxu0 }
 0x1d7   : > { %v1441_v29 = vadd.f32 %v1412_v40, %v3936_v31  ;;  %v2856_v35 = vpop.f32.mrb[117].mxu1  ;;  %v3987_v5 = vadd.f32 %v1577_v20, %v1440_v23  ;;  %v2897_v19 = vpop.f32.mrb[119].mxu0 }
 0x1d8   : > { %v1415_v56 = vpop.f32.mrb[118].mxu1 }
 0x1d9   : > { %v1442_v0 = vadd.f32 %v1415_v56, %v3939_v51  ;;  %v2857_v39 = vpop.f32.mrb[119].mxu1 }
 0x1dc   : > { %v1582_v10 = vpop.f32.mrb[120].mxu0 }
 0x1dd   : > { %v3990_v43 = vadd.f32 %v1582_v10, %v1441_v29  ;;  %v2900_v41 = vpop.f32.mrb[121].mxu0 }
 0x1de   : > { %v1420_v53 = vpop.f32.mrb[120].mxu1  ;;  %v1585_v6 = vpop.f32.mrb[122].mxu0 }
 0x1df   : > { %v1443_v63 = vadd.f32 %v1420_v53, %v3942_v46  ;;  %v2860_v37 = vpop.f32.mrb[121].mxu1  ;;  %v3993_v57 = vadd.f32 %v1585_v6, %v1442_v0  ;;  %v2901_v31 = vpop.f32.mrb[123].mxu0 }
 0x1e0   : > { %v1423_v12 = vpop.f32.mrb[122].mxu1 }
 0x1e1   : > { %v1444_v58 = vadd.f32 %v1423_v12, %v3945_v13  ;;  %v2861_v49 = vpop.f32.mrb[123].mxu1  ;;  %v4005_v13 = vld [vmem:[%s4088_s2] ss:$0 sm:$0xff] }
 0x1e4   : > { %v1590_v45 = vpop.f32.mrb[124].mxu0 }
 0x1e5   : > { %v3996_v7 = vadd.f32 %v1590_v45, %v1443_v63  ;;  %v2904_v51 = vpop.f32.mrb[125].mxu0 }
 0x1e6   : > { %v1759_v18 = vpop.f32.mrb[124].mxu1  ;;  %v1593_v32 = vpop.f32.mrb[126].mxu0 }
 0x1e7   : > { %v1830_v11 = vadd.f32 %v1759_v18, %v3948_v2  ;;  %v2916_v47 = vpop.f32.mrb[125].mxu1  ;;  %v3999_v8 = vadd.f32 %v1593_v32, %v1444_v58  ;;  %v2905_v46 = vpop.f32.mrb[127].mxu0 }
 0x1e8   : > { %v1762_v42 = vpop.f32.mrb[126].mxu1 }
 0x1e9   : > { %v1831_v1 = vadd.f32 %v1762_v42, %v3951_v55  ;;  %v2917_v52 = vpop.f32.mrb[127].mxu1 }
 0x1ec   : > { %v1962_v16 = vpop.f32.mrb[128].mxu0 }
 0x1ed   : > { %v2033_v25 = vadd.f32 %v1962_v16, %v1830_v11  ;;  %v2960_v14 = vpop.f32.mrb[129].mxu0 }
 0x1ee   : > { %v1767_v27 = vpop.f32.mrb[128].mxu1  ;;  %v1965_v15 = vpop.f32.mrb[130].mxu0 }
 0x1ef   : > { %v1832_v2 = vadd.f32 %v1767_v27, %v3954_v62  ;;  %v2058_v50 = vadd.f32 %v4005_v13, %v2033_v25  ;;  %v2920_v44 = vpop.f32.mrb[129].mxu1  ;;  %v2034_v33 = vadd.f32 %v1965_v15, %v1831_v1  ;;  %v2961_v4 = vpop.f32.mrb[131].mxu0 }
 0x1f0   : > { %v1770_v55 = vpop.f32.mrb[130].mxu1 }
 0x1f1   : > { %v2076_v34 = vmax.f32 %v2058_v50, 0.0  ;;  %v1833_v54 = vadd.f32 %v1770_v55, %v3957_v9  ;;  %v2059_v28 = vadd.f32 %v4005_v13, %v2034_v33  ;;  %v2921_v48 = vpop.f32.mrb[131].mxu1 }
 0x1f3   : > { %v2463_v62 = vpack.c.bf16 %v2076_v34, %v2076_v34  ;;  %v2077_v23 = vmax.f32 %v2059_v28, 0.0 }
 0x1f4   : > { %v1970_v38 = vpop.f32.mrb[132].mxu0 }
 0x1f5   : > { %2167 = vst.msk [vmem:[%s4015_s21] sm:$0xf] %vm2166_vm8, %v2463_v62  ;;  %v2464_v30 = vpack.c.bf16 %v2077_v23, %v2077_v23  ;;  %v2035_v36 = vadd.f32 %v1970_v38, %v1832_v2  ;;  %v2964_v40 = vpop.f32.mrb[133].mxu0 }
 0x1f6   : > { %v1775_v9 = vpop.f32.mrb[132].mxu1  ;;  %v1973_v20 = vpop.f32.mrb[134].mxu0 }
 0x1f7   : > { %2168 = vst.msk [vmem:[%s4015_s21 + $0x4] sm:$0xf] %vm2166_vm8, %v2464_v30  ;;  %v1834_v29 = vadd.f32 %v1775_v9, %v3960_v22  ;;  %v2060_v35 = vadd.f32 %v4005_v13, %v2035_v36  ;;  %v2924_v19 = vpop.f32.mrb[133].mxu1  ;;  %v2036_v56 = vadd.f32 %v1973_v20, %v1833_v54  ;;  %v2965_v0 = vpop.f32.mrb[135].mxu0 }
 0x1f8   : > { %v1778_v39 = vpop.f32.mrb[134].mxu1 }
 0x1f9   : > { %v2078_v10 = vmax.f32 %v2060_v35, 0.0  ;;  %v1835_v41 = vadd.f32 %v1778_v39, %v3963_v24  ;;  %v2061_v53 = vadd.f32 %v4005_v13, %v2036_v56  ;;  %v2925_v6 = vpop.f32.mrb[135].mxu1 }
 0x1fb   : > { %v2465_v63 = vpack.c.bf16 %v2078_v10, %v2078_v10  ;;  %v2079_v37 = vmax.f32 %v2061_v53, 0.0 }
 0x1fc   : > { %v1978_v31 = vpop.f32.mrb[136].mxu0 }
 0x1fd   : > { %2169 = vst.msk [vmem:[%s4015_s21 + $0x8] sm:$0xf] %vm2166_vm8, %v2465_v63  ;;  %v2466_v12 = vpack.c.bf16 %v2079_v37, %v2079_v37  ;;  %v2037_v22 = vadd.f32 %v1978_v31, %v1834_v29  ;;  %v2968_v58 = vpop.f32.mrb[137].mxu0 }
 0x1fe   : > { %v1783_v49 = vpop.f32.mrb[136].mxu1  ;;  %v1981_v45 = vpop.f32.mrb[138].mxu0 }
 0x1ff   : > { %2170 = vst.msk [vmem:[%s4015_s21 + $0xc] sm:$0xf] %vm2166_vm8, %v2466_v12  ;;  %v1836_v51 = vadd.f32 %v1783_v49, %v3966_v61  ;;  %v2062_v24 = vadd.f32 %v4005_v13, %v2037_v22  ;;  %v2928_v18 = vpop.f32.mrb[137].mxu1  ;;  %v2038_v32 = vadd.f32 %v1981_v45, %v1835_v41  ;;  %v2969_v11 = vpop.f32.mrb[139].mxu0 }
 0x200   : > { %v1786_v47 = vpop.f32.mrb[138].mxu1 }
 0x201   : > { %v2080_v46 = vmax.f32 %v2062_v24, 0.0  ;;  %v1837_v42 = vadd.f32 %v1786_v47, %v3969_v17  ;;  %v2063_v1 = vadd.f32 %v4005_v13, %v2038_v32  ;;  %v2929_v52 = vpop.f32.mrb[139].mxu1 }
 0x203   : > { %v2467_v16 = vpack.c.bf16 %v2080_v46, %v2080_v46  ;;  %v2081_v25 = vmax.f32 %v2063_v1, 0.0 }
 0x204   : > { %v1986_v14 = vpop.f32.mrb[140].mxu0 }
 0x205   : > { %2171 = vst.msk [vmem:[%s4015_s21 + $0x10] sm:$0xf] %vm2166_vm8, %v2467_v16  ;;  %v2468_v27 = vpack.c.bf16 %v2081_v25, %v2081_v25  ;;  %v2039_v61 = vadd.f32 %v1986_v14, %v1836_v51  ;;  %v2972_v15 = vpop.f32.mrb[141].mxu0 }
 0x206   : > { %v1791_v2 = vpop.f32.mrb[140].mxu1  ;;  %v1989_v50 = vpop.f32.mrb[142].mxu0 }
 0x207   : > { %2172 = vst.msk [vmem:[%s4015_s21 + $0x14] sm:$0xf] %vm2166_vm8, %v2468_v27  ;;  %v1838_v44 = vadd.f32 %v1791_v2, %v3972_v59  ;;  %v2064_v17 = vadd.f32 %v4005_v13, %v2039_v61  ;;  %v2932_v33 = vpop.f32.mrb[141].mxu1  ;;  %v2040_v4 = vadd.f32 %v1989_v50, %v1837_v42  ;;  %v2973_v55 = vpop.f32.mrb[143].mxu0 }
 0x208   : > { %v1794_v34 = vpop.f32.mrb[142].mxu1 }
 0x209   : > { %v2082_v54 = vmax.f32 %v2064_v17, 0.0  ;;  %v1839_v28 = vadd.f32 %v1794_v34, %v3975_v3  ;;  %v2065_v48 = vadd.f32 %v4005_v13, %v2040_v4  ;;  %v2933_v62 = vpop.f32.mrb[143].mxu1 }
 0x20b   : > { %v2469_v23 = vpack.c.bf16 %v2082_v54, %v2082_v54  ;;  %v2083_v38 = vmax.f32 %v2065_v48, 0.0 }
 0x20c   : > { %v1994_v30 = vpop.f32.mrb[144].mxu0 }
 0x20d   : > { %2173 = vst.msk [vmem:[%s4015_s21 + $0x18] sm:$0xf] %vm2166_vm8, %v2469_v23  ;;  %v2470_v36 = vpack.c.bf16 %v2083_v38, %v2083_v38  ;;  %v2041_v59 = vadd.f32 %v1994_v30, %v1838_v44  ;;  %v2976_v40 = vpop.f32.mrb[145].mxu0 }
 0x20e   : > { %v1799_v9 = vpop.f32.mrb[144].mxu1  ;;  %v1997_v20 = vpop.f32.mrb[146].mxu0 }
 0x20f   : > { %2174 = vst.msk [vmem:[%s4015_s21 + $0x1c] sm:$0xf] %vm2166_vm8, %v2470_v36  ;;  %v1840_v29 = vadd.f32 %v1799_v9, %v3978_v60  ;;  %v2066_v3 = vadd.f32 %v4005_v13, %v2041_v59  ;;  %v2936_v35 = vpop.f32.mrb[145].mxu1  ;;  %v2042_v19 = vadd.f32 %v1997_v20, %v1839_v28  ;;  %v2977_v56 = vpop.f32.mrb[147].mxu0 }
 0x210   : > { %v1802_v0 = vpop.f32.mrb[146].mxu1 }
 0x211   : > { %v2084_v39 = vmax.f32 %v2066_v3, 0.0  ;;  %v1841_v10 = vadd.f32 %v1802_v0, %v3981_v21  ;;  %v2067_v41 = vadd.f32 %v4005_v13, %v2042_v19  ;;  %v2937_v53 = vpop.f32.mrb[147].mxu1 }
 0x213   : > { %v2471_v6 = vpack.c.bf16 %v2084_v39, %v2084_v39  ;;  %v2085_v63 = vmax.f32 %v2067_v41, 0.0 }
 0x214   : > { %v2002_v37 = vpop.f32.mrb[148].mxu0 }
 0x215   : > { %2175 = vst.msk [vmem:[%s4015_s21 + $0x20] sm:$0xf] %vm2166_vm8, %v2471_v6  ;;  %v2472_v31 = vpack.c.bf16 %v2085_v63, %v2085_v63  ;;  %v2043_v60 = vadd.f32 %v2002_v37, %v1840_v29  ;;  %v2980_v12 = vpop.f32.mrb[149].mxu0 }
 0x216   : > { %v1807_v22 = vpop.f32.mrb[148].mxu1  ;;  %v2005_v58 = vpop.f32.mrb[150].mxu0 }
 0x217   : > { %2176 = vst.msk [vmem:[%s4015_s21 + $0x24] sm:$0xf] %vm2166_vm8, %v2472_v31  ;;  %v1842_v49 = vadd.f32 %v1807_v22, %v3984_v26  ;;  %v2068_v21 = vadd.f32 %v4005_v13, %v2043_v60  ;;  %v2940_v45 = vpop.f32.mrb[149].mxu1  ;;  %v2044_v51 = vadd.f32 %v2005_v58, %v1841_v10  ;;  %v2981_v24 = vpop.f32.mrb[151].mxu0 }
 0x218   : > { %v1810_v18 = vpop.f32.mrb[150].mxu1 }
 0x219   : > { %v2086_v32 = vmax.f32 %v2068_v21, 0.0  ;;  %v1843_v11 = vadd.f32 %v1810_v18, %v3987_v5  ;;  %v2069_v47 = vadd.f32 %v4005_v13, %v2044_v51  ;;  %v2941_v46 = vpop.f32.mrb[151].mxu1 }
 0x21b   : > { %v2473_v42 = vpack.c.bf16 %v2086_v32, %v2086_v32  ;;  %v2087_v1 = vmax.f32 %v2069_v47, 0.0 }
 0x21c   : > { %v2010_v52 = vpop.f32.mrb[152].mxu0 }
 0x21d   : > { %2177 = vst.msk [vmem:[%s4015_s21 + $0x28] sm:$0xf] %vm2166_vm8, %v2473_v42  ;;  %v2474_v16 = vpack.c.bf16 %v2087_v1, %v2087_v1  ;;  %v2045_v26 = vadd.f32 %v2010_v52, %v1842_v49  ;;  %v2984_v25 = vpop.f32.mrb[153].mxu0 }
 0x21e   : > { %v1815_v14 = vpop.f32.mrb[152].mxu1  ;;  %v2013_v27 = vpop.f32.mrb[154].mxu0 }
 0x21f   : > { %2178 = vst.msk [vmem:[%s4015_s21 + $0x2c] sm:$0xf] %vm2166_vm8, %v2474_v16  ;;  %v1844_v61 = vadd.f32 %v1815_v14, %v3990_v43  ;;  %v2070_v5 = vadd.f32 %v4005_v13, %v2045_v26  ;;  %v2944_v15 = vpop.f32.mrb[153].mxu1  ;;  %v2046_v2 = vadd.f32 %v2013_v27, %v1843_v11  ;;  %v2985_v50 = vpop.f32.mrb[155].mxu0 }
 0x220   : > { %v1818_v44 = vpop.f32.mrb[154].mxu1 }
 0x221   : > { %v2088_v17 = vmax.f32 %v2070_v5, 0.0  ;;  %v1845_v33 = vadd.f32 %v1818_v44, %v3993_v57  ;;  %v2071_v4 = vadd.f32 %v4005_v13, %v2046_v2  ;;  %v2945_v55 = vpop.f32.mrb[155].mxu1 }
 0x223   : > { %v2475_v34 = vpack.c.bf16 %v2088_v17, %v2088_v17  ;;  %v2089_v54 = vmax.f32 %v2071_v4, 0.0 }
 0x224   : > { %v2018_v28 = vpop.f32.mrb[156].mxu0 }
 0x225   : > { %2179 = vst.msk [vmem:[%s4015_s21 + $0x30] sm:$0xf] %vm2166_vm8, %v2475_v34  ;;  %v2476_v48 = vpack.c.bf16 %v2089_v54, %v2089_v54  ;;  %v2047_v43 = vadd.f32 %v2018_v28, %v1844_v61  ;;  %v2988_v62 = vpop.f32.mrb[157].mxu0 }
 0x226   : > { %v1823_v23 = vpop.f32.mrb[156].mxu1  ;;  %v2021_v38 = vpop.f32.mrb[158].mxu0 }
 0x227   : > { %2180 = vst.msk [vmem:[%s4015_s21 + $0x34] sm:$0xf] %vm2166_vm8, %v2476_v48  ;;  %v1846_v30 = vadd.f32 %v1823_v23, %v3996_v7  ;;  %v2072_v57 = vadd.f32 %v4005_v13, %v2047_v43  ;;  %v2948_v36 = vpop.f32.mrb[157].mxu1  ;;  %v2048_v59 = vadd.f32 %v2021_v38, %v1845_v33  ;;  %v2989_v40 = vpop.f32.mrb[159].mxu0 }
 0x228   : > { %v1826_v9 = vpop.f32.mrb[158].mxu1 }
 0x229   : > { %v2090_v20 = vmax.f32 %v2072_v57, 0.0  ;;  %v1847_v29 = vadd.f32 %v1826_v9, %v3999_v8  ;;  %v2073_v3 = vadd.f32 %v4005_v13, %v2048_v59  ;;  %v2949_v35 = vpop.f32.mrb[159].mxu1 }
 0x22b   : > { %v2477_v19 = vpack.c.bf16 %v2090_v20, %v2090_v20  ;;  %v2091_v56 = vmax.f32 %v2073_v3, 0.0 }
 0x22c   : > { %v2026_v0 = vpop.f32.mrb[160].mxu0 }
 0x22d   : > { %2181 = vst.msk [vmem:[%s4015_s21 + $0x38] sm:$0xf] %vm2166_vm8, %v2477_v19  ;;  %v2478_v7 = vpack.c.bf16 %v2091_v56, %v2091_v56  ;;  %v2049_v39 = vadd.f32 %v2026_v0, %v1846_v30  ;;  %v2992_v10 = vpop.f32.mrb[161].mxu0 }
 0x22e   : > { %v2029_v41 = vpop.f32.mrb[162].mxu0 }
 0x22f   : > { %2182 = vst.msk [vmem:[%s4015_s21 + $0x3c] sm:$0xf] %vm2166_vm8, %v2478_v7  ;;  %v2074_v53 = vadd.f32 %v4005_v13, %v2049_v39  ;;  %v2050_v6 = vadd.f32 %v2029_v41, %v1847_v29  ;;  %v2993_v8 = vpop.f32.mrb[163].mxu0 }
 0x231   : > { %v2092_v63 = vmax.f32 %v2074_v53, 0.0  ;;  %v2075_v37 = vadd.f32 %v4005_v13, %v2050_v6 }
 0x233   : > { %v2479_v31 = vpack.c.bf16 %v2092_v63, %v2092_v63  ;;  %v2093_v60 = vmax.f32 %v2075_v37, 0.0 }
 0x235   : > { %2183 = vst.msk [vmem:[%s4015_s21 + $0x40] sm:$0xf] %vm2166_vm8, %v2479_v31  ;;  %v2480_v12 = vpack.c.bf16 %v2093_v60, %v2093_v60 }
 0x237   : > { %2184 = vst.msk [vmem:[%s4015_s21 + $0x44] sm:$0xf] %vm2166_vm8, %v2480_v12 }
 0x238 PF: > { %s13_s12 = sadd.s32 1, %s3074_s12  }
 0x239   : > { %p10_p4 = scmp.ge.s32.totalorder %s13_s12, 4  }
 0x23b   :  { %12 = sbr.rel (!%p10_p4) target bundleno = 1 (0x1), region = 70 }

// kernel: _front.22
= control target key start
LH: loop header
LB: loop body
LE: loop exit
PB: predicated region body
PF: predicated region fallthrough
CT: control target
= control target key end

     0   :  { %s921_s15 = smov 0   ;;  %s1146_s0 = inlined_call_operand.vmem [shape: bf16[256,64], index: 0, kind: input, shape index: {}]   ;;  %s1147_s1 = inlined_call_operand.vmem [shape: bf16[64,256], index: 1, kind: input, shape index: {}]   ;;  %s1148_s2 = inlined_call_operand.vmem [shape: f32[1,256], index: 2, kind: input, shape index: {}]   ;;  %s1149_s3 = inlined_call_operand.vmem [shape: bf16[256,256], index: 3, kind: input, shape index: {}]   ;;  %s1150_s4 = inlined_call_operand.vmem [shape: bf16[256,256], index: 4, kind: output, shape index: {}]  }
   0x1 LB: > { %s777_s16 = sadd.s32 4294967295, %s893_s15   ;;  %p781_p0 = scmp.ge.s32.totalorder %s893_s15, 1  ;;  %s893_s15 = sphi %s921_s15, %s14_s15  }
   0x2   : > { %p175_p1 = scmp.lt.s32.totalorder %s893_s15, 3 }
   0x4   : > { %p176_p2 = pnand %p781_p0, %p175_p1 }
   0x5   : > { %v867_v0 = vld [vmem:[%s1147_s1 + $0x4] ss:$8 sps:$4 sm:$0xff] (!%p176_p2)   ;;  %s782_s19 = sshll.u32 (!%p176_p2), %s777_s16, 4  ;;  %v869_v1 = vld [vmem:[%s1147_s1] ss:$8 sps:$4 sm:$0xff] (!%p176_p2)   ;;  %v895_v2 = vmov (!%p176_p2), 0   ;;  %v255_v17 = vlaneseq (!%p176_p2) }
   0x6   : > { %179 = sbr.rel (%p176_p2) target bundleno = 272 (0x110), region = 36  ;;  %402 = vmatprep.mubr.bf16.mxu0 (!%p176_p2), %v895_v2  ;;  %442 = vmatprep.mubr.bf16.mxu1 (!%p176_p2), %v895_v2  ;;  %p209_p3 = scmp.lt.s32.totalorder (!%p176_p2), %s782_s19, 31  ;;  %v870_v3 = vld [vmem:[%s1147_s1 + $0x14] ss:$8 sps:$4 sm:$0xff] (!%p176_p2)   ;;  %v872_v4 = vld [vmem:[%s1147_s1 + $0x10] ss:$8 sps:$4 sm:$0xff] (!%p176_p2)  }
   0x7   : > { %370 = vmatprep.subr.bf16.mxu0 (!%p176_p2), %v867_v0  ;;  %850 = vmatprep.subr.bf16.mxu1 (!%p176_p2), %v867_v0  ;;  %v873_v5 = vld [vmem:[%s1147_s1 + $0x24] ss:$8 sps:$4 sm:$0xff] (!%p176_p2)   ;;  %v875_v6 = vld [vmem:[%s1147_s1 + $0x20] ss:$8 sps:$4 sm:$0xff] (!%p176_p2)   ;;  %v876_v7 = vld [vmem:[%s1147_s1 + $0x34] ss:$8 sps:$4 sm:$0xff] (!%p176_p2)  }
   0x8   : > { %371 = vmatpush1.bf16.msra.mxu0 (!%p176_p2), %v869_v1  ;;  %854 = vmatpush1.bf16.msra.mxu1 (!%p176_p2), %v869_v1  ;;  %v878_v8 = vld [vmem:[%s1147_s1 + $0x30] ss:$8 sps:$4 sm:$0xff] (!%p176_p2)   ;;  %vm345_vm0 = vcmask (!%p176_p2), 523264   ;;  %v256_v18 = vshrl.u32 (!%p176_p2), %v255_v17, 7  ;;  %v253_v21 = vld [vmem:[%s1148_s2] sm:$0x3] (!%p176_p2) }
   0x9   : > { %372 = vmatprep.subr.bf16.mxu0 (!%p176_p2), %v870_v3  ;;  %851 = vmatprep.subr.bf16.mxu1 (!%p176_p2), %v870_v3 }
   0xa   : > { %v257_v19 = vsub.s32 (!%p176_p2), 0, %v256_v18  ;;  %v261_v20 = vsub.s32 (!%p176_p2), 1, %v256_v18 }
   0xc   : > { %373 = vmatpush1.bf16.msra.mxu0 (!%p176_p2), %v872_v4  ;;  %855 = vmatpush1.bf16.msra.mxu1 (!%p176_p2), %v872_v4  ;;  %v992_v26 = vrot.slane (!%p176_p2), %v253_v21, %v257_v19  ;;  %v994_v27 = vrot.slane (!%p176_p2), %v253_v21, %v261_v20 }
   0xd   : > { %s1152_s19 = smov (!%p209_p3, %s782_s19), 31  ;;  %374 = vmatprep.subr.bf16.mxu0 %v873_v5  ;;  %852 = vmatprep.subr.bf16.mxu1 %v873_v5 }
   0xe   : > { %s783_s28 = sshll.u32 %s1152_s19, 2  ;;  %s832_s12 = sshll.u32 %s1152_s19, 3 }
   0xf   : > { %s950_s5 = scalar_lea.vmem %s1146_s0, %s783_s28  ;;  %s983_s16 = scalar_lea.vmem %s1149_s3, %s832_s12 }
  0x10   : > { %375 = vmatpush1.bf16.msra.mxu0 %v875_v6  ;;  %856 = vmatpush1.bf16.msra.mxu1 %v875_v6  ;;  %v879_v9 = vld [vmem:[%s950_s5] sm:$0xff]   ;;  %v881_v11 = vld [vmem:[%s950_s5 + $0x8] sm:$0xff]   ;;  %v883_v13 = vld [vmem:[%s950_s5 + $0x10] sm:$0xff]   ;;  %s1045_s22 = scalar_lea.vmem %s1150_s4, %s832_s12 }
  0x11   : > { %376 = vmatprep.subr.bf16.mxu0 %v876_v7  ;;  %853 = vmatprep.subr.bf16.mxu1 %v876_v7  ;;  %v880_v10 = vld [vmem:[%s950_s5 + $0x20] sm:$0xff]   ;;  %v882_v12 = vld [vmem:[%s950_s5 + $0x28] sm:$0xff]   ;;  %v884_v14 = vld [vmem:[%s950_s5 + $0x30] sm:$0xff]  }
  0x12   : > { %v885_v15 = vld [vmem:[%s950_s5 + $0x18] sm:$0xff]   ;;  %v483_v22 = vld [vmem:[%s983_s16] sm:$0xff]  ;;  %v484_v24 = vld [vmem:[%s983_s16 + $0x8] sm:$0xff] }
  0x13   : > { %v886_v16 = vld [vmem:[%s950_s5 + $0x38] sm:$0xff]   ;;  %v491_v23 = vld [vmem:[%s983_s16 + $0x40] sm:$0xff]  ;;  %v492_v25 = vld [vmem:[%s983_s16 + $0x48] sm:$0xff]  ;;  %v499_v30 = vunpack.c.l.bf16 %v483_v22  ;;  %v500_v32 = vunpack.c.h.bf16 %v483_v22  ;;  %v501_v36 = vunpack.c.l.bf16 %v484_v24  ;;  %v502_v38 = vunpack.c.h.bf16 %v484_v24 }
  0x14   : > { %377 = vmatpush1.bf16.msra.mxu0 %v878_v8  ;;  %857 = vmatpush1.bf16.msra.mxu1 %v878_v8  ;;  %v997_v28 = vld [vmem:[%s983_s16 + $0x10] sm:$0xff]  ;;  %v515_v31 = vunpack.c.l.bf16 %v491_v23  ;;  %v516_v33 = vunpack.c.h.bf16 %v491_v23  ;;  %v1003_v34 = vld [vmem:[%s983_s16 + $0x18] sm:$0xff]  ;;  %v517_v37 = vunpack.c.l.bf16 %v492_v25  ;;  %v518_v39 = vunpack.c.h.bf16 %v492_v25  ;;  %v1009_v40 = vld [vmem:[%s983_s16 + $0x20] sm:$0xff] }
  0x15   : > { %v1000_v29 = vld [vmem:[%s983_s16 + $0x50] sm:$0xff]  ;;  %v1006_v35 = vld [vmem:[%s983_s16 + $0x58] sm:$0xff]  ;;  %v1012_v41 = vld [vmem:[%s983_s16 + $0x60] sm:$0xff]  ;;  %v503_v42 = vunpack.c.l.bf16 %v997_v28  ;;  %v504_v44 = vunpack.c.h.bf16 %v997_v28  ;;  %v505_v48 = vunpack.c.l.bf16 %v1003_v34  ;;  %v506_v50 = vunpack.c.h.bf16 %v1003_v34 }
  0x16   : > { %v519_v43 = vunpack.c.l.bf16 %v1000_v29  ;;  %v520_v45 = vunpack.c.h.bf16 %v1000_v29  ;;  %v521_v49 = vunpack.c.l.bf16 %v1006_v35  ;;  %v522_v51 = vunpack.c.h.bf16 %v1006_v35 }
  0x17   : > { %806 = vmatmul.mubr.msk.bf16.vlgmr.msra.gmra.mrb[0].mxu0 %vm345_vm0, %v879_v9  ;;  %810 = vmatmul.mubr.msk.bf16.vlgmr.msra.gmra.mrb[0].mxu1 %vm345_vm0, %v880_v10  ;;  %v507_v56 = vunpack.c.l.bf16 %v1009_v40  ;;  %v523_v57 = vunpack.c.l.bf16 %v1012_v41  ;;  %v508_v62 = vunpack.c.h.bf16 %v1009_v40  ;;  %v524_v63 = vunpack.c.h.bf16 %v1012_v41  ;;  %v1035_v10 = vld [vmem:[%s983_s16 + $0x28] sm:$0xff] }
  0x18   : > { %412 = vmatprep.mubr.bf16.mxu0 %v895_v2  ;;  %452 = vmatprep.mubr.bf16.mxu1 %v895_v2  ;;  %v509_v22 = vunpack.c.l.bf16 %v1035_v10 }
  0x1f   : > { %807 = vmatmul.mubr.msk.bf16.gmra.mrb[4].mxu0 %vm345_vm0, %v881_v11  ;;  %811 = vmatmul.mubr.msk.bf16.gmra.mrb[4].mxu1 %vm345_vm0, %v882_v12  ;;  %v1038_v11 = vld [vmem:[%s983_s16 + $0x68] sm:$0xff] }
  0x20   : > { %422 = vmatprep.mubr.bf16.mxu0 %v895_v2  ;;  %462 = vmatprep.mubr.bf16.mxu1 %v895_v2  ;;  %v525_v23 = vunpack.c.l.bf16 %v1038_v11 }
  0x27   : > { %808 = vmatmul.mubr.msk.bf16.gmra.mrb[8].mxu0 %vm345_vm0, %v883_v13  ;;  %812 = vmatmul.mubr.msk.bf16.gmra.mrb[8].mxu1 %vm345_vm0, %v884_v14 }
  0x28   : > { %432 = vmatprep.mubr.bf16.mxu0 %v895_v2  ;;  %472 = vmatprep.mubr.bf16.mxu1 %v895_v2 }
  0x2f   : > { %809 = vmatmul.mubr.msk.bf16.gmra.mrb[12].mxu0 %vm345_vm0, %v885_v15  ;;  %813 = vmatmul.mubr.msk.bf16.gmra.mrb[12].mxu1 %vm345_vm0, %v886_v16 }
  0xea   : > { %v404_v46 = vpop.f32.mrb[0].mxu0  ;;  %v444_v47 = vpop.f32.mrb[0].mxu1 }
  0xeb   : > { %v405_v52 = vadd.f32 %v404_v46, %v992_v26  ;;  %v445_v53 = vadd.f32 %v444_v47, %v992_v26  ;;  %v406_v54 = vpop.f32.mrb[1].mxu0  ;;  %v446_v55 = vpop.f32.mrb[1].mxu1  ;;  %v510_v46 = vunpack.c.h.bf16 %v1035_v10  ;;  %v526_v47 = vunpack.c.h.bf16 %v1038_v11 }
  0xec   : > { %v407_v58 = vadd.f32 %v406_v54, %v994_v27  ;;  %v447_v59 = vadd.f32 %v446_v55, %v994_v27  ;;  %v408_v60 = vpop.f32.mrb[2].mxu0  ;;  %v448_v61 = vpop.f32.mrb[2].mxu1 }
  0xed   : > { %v531_v0 = vadd.f32 %v499_v30, %v405_v52  ;;  %v547_v1 = vadd.f32 %v515_v31, %v445_v53  ;;  %v409_v2 = vadd.f32 %v408_v60, %v992_v26  ;;  %v449_v3 = vadd.f32 %v448_v61, %v992_v26  ;;  %v410_v4 = vpop.f32.mrb[3].mxu0  ;;  %v450_v5 = vpop.f32.mrb[3].mxu1 }
  0xee   : > { %v532_v6 = vadd.f32 %v500_v32, %v407_v58  ;;  %v548_v7 = vadd.f32 %v516_v33, %v447_v59  ;;  %v411_v8 = vadd.f32 %v410_v4, %v994_v27  ;;  %v451_v9 = vadd.f32 %v450_v5, %v994_v27 }
  0xef   : > { %v563_v12 = vmax.f32 %v531_v0, 0.0  ;;  %v579_v13 = vmax.f32 %v547_v1, 0.0  ;;  %v533_v14 = vadd.f32 %v501_v36, %v409_v2  ;;  %v549_v15 = vadd.f32 %v517_v37, %v449_v3 }
  0xf0   : > { %v564_v16 = vmax.f32 %v532_v6, 0.0  ;;  %v580_v17 = vmax.f32 %v548_v7, 0.0  ;;  %v534_v18 = vadd.f32 %v502_v38, %v411_v8  ;;  %v550_v19 = vadd.f32 %v518_v39, %v451_v9  ;;  %v1072_v7 = vld [vmem:[%s983_s16 + $0x30] sm:$0xff] }
  0xf1   : > { %v565_v20 = vmax.f32 %v533_v14, 0.0  ;;  %v581_v21 = vmax.f32 %v549_v15, 0.0 }
  0xf2   : > { %v834_v24 = vpack.c.bf16 %v564_v16, %v563_v12  ;;  %v842_v25 = vpack.c.bf16 %v580_v17, %v579_v13  ;;  %v566_v30 = vmax.f32 %v534_v18, 0.0  ;;  %v582_v31 = vmax.f32 %v550_v19, 0.0  ;;  %v414_v32 = vpop.f32.mrb[4].mxu0  ;;  %v454_v33 = vpop.f32.mrb[4].mxu1 }
  0xf3   : > { %v415_v36 = vadd.f32 %v414_v32, %v992_v26  ;;  %v455_v37 = vadd.f32 %v454_v33, %v992_v26  ;;  %v416_v38 = vpop.f32.mrb[5].mxu0  ;;  %v456_v39 = vpop.f32.mrb[5].mxu1  ;;  %v511_v16 = vunpack.c.l.bf16 %v1072_v7 }
  0xf4   : > { %691 = vst [vmem:[%s1045_s22] sm:$0xff] %v834_v24  ;;  %699 = vst [vmem:[%s1045_s22 + $0x40] sm:$0xff] %v842_v25  ;;  %v835_v52 = vpack.c.bf16 %v566_v30, %v565_v20  ;;  %v843_v53 = vpack.c.bf16 %v582_v31, %v581_v21  ;;  %v417_v54 = vadd.f32 %v416_v38, %v994_v27  ;;  %v418_v58 = vpop.f32.mrb[6].mxu0  ;;  %v458_v59 = vpop.f32.mrb[6].mxu1  ;;  %v512_v24 = vunpack.c.h.bf16 %v1072_v7 }
  0xf5   : > { %v457_v55 = vadd.f32 %v456_v39, %v994_v27  ;;  %v535_v60 = vadd.f32 %v503_v42, %v415_v36  ;;  %v551_v61 = vadd.f32 %v519_v43, %v455_v37  ;;  %v419_v0 = vadd.f32 %v418_v58, %v992_v26  ;;  %v420_v2 = vpop.f32.mrb[7].mxu0  ;;  %v460_v3 = vpop.f32.mrb[7].mxu1  ;;  %v1075_v43 = vld [vmem:[%s983_s16 + $0x70] sm:$0xff] }
  0xf6   : > { %v459_v1 = vadd.f32 %v458_v59, %v992_v26  ;;  %692 = vst [vmem:[%s1045_s22 + $0x8] sm:$0xff] %v835_v52  ;;  %700 = vst [vmem:[%s1045_s22 + $0x48] sm:$0xff] %v843_v53  ;;  %v536_v4 = vadd.f32 %v504_v44, %v417_v54  ;;  %v421_v6 = vadd.f32 %v420_v2, %v994_v27  ;;  %v527_v17 = vunpack.c.l.bf16 %v1075_v43 }
  0xf7   : > { %v552_v5 = vadd.f32 %v520_v45, %v457_v55  ;;  %v461_v42 = vadd.f32 %v460_v3, %v994_v27  ;;  %v567_v8 = vmax.f32 %v535_v60, 0.0  ;;  %v583_v9 = vmax.f32 %v551_v61, 0.0  ;;  %v490_v61 = vld [vmem:[%s983_s16 + $0x38] sm:$0xff] }
  0xf8   : > { %v537_v12 = vadd.f32 %v505_v48, %v419_v0  ;;  %v553_v28 = vadd.f32 %v521_v49, %v459_v1  ;;  %v568_v44 = vmax.f32 %v536_v4, 0.0  ;;  %v538_v29 = vadd.f32 %v506_v50, %v421_v6 }
  0xf9   : > { %v584_v13 = vmax.f32 %v552_v5, 0.0  ;;  %v554_v45 = vadd.f32 %v522_v51, %v461_v42  ;;  %v528_v25 = vunpack.c.h.bf16 %v1075_v43  ;;  %v513_v6 = vunpack.c.l.bf16 %v490_v61 }
  0xfa   : > { %v569_v14 = vmax.f32 %v537_v12, 0.0  ;;  %v585_v15 = vmax.f32 %v553_v28, 0.0  ;;  %v836_v48 = vpack.c.bf16 %v568_v44, %v567_v8  ;;  %v570_v19 = vmax.f32 %v538_v29, 0.0  ;;  %v424_v20 = vpop.f32.mrb[8].mxu0  ;;  %v464_v21 = vpop.f32.mrb[8].mxu1 }
  0xfb   : > { %v844_v18 = vpack.c.bf16 %v584_v13, %v583_v9  ;;  %v586_v49 = vmax.f32 %v554_v45, 0.0  ;;  %v425_v34 = vadd.f32 %v424_v20, %v992_v26  ;;  %v465_v50 = vadd.f32 %v464_v21, %v992_v26  ;;  %v426_v35 = vpop.f32.mrb[9].mxu0  ;;  %v466_v51 = vpop.f32.mrb[9].mxu1 }
  0xfc   : > { %693 = vst [vmem:[%s1045_s22 + $0x10] sm:$0xff] %v836_v48  ;;  %v837_v30 = vpack.c.bf16 %v570_v19, %v569_v14  ;;  %v427_v32 = vadd.f32 %v426_v35, %v994_v27  ;;  %v467_v33 = vadd.f32 %v466_v51, %v994_v27  ;;  %v428_v36 = vpop.f32.mrb[10].mxu0  ;;  %v468_v37 = vpop.f32.mrb[10].mxu1  ;;  %v514_v11 = vunpack.c.h.bf16 %v490_v61 }
  0xfd   : > { %701 = vst [vmem:[%s1045_s22 + $0x50] sm:$0xff] %v844_v18  ;;  %v845_v31 = vpack.c.bf16 %v586_v49, %v585_v15  ;;  %v539_v38 = vadd.f32 %v507_v56, %v425_v34  ;;  %v555_v39 = vadd.f32 %v523_v57, %v465_v50  ;;  %v429_v52 = vadd.f32 %v428_v36, %v992_v26  ;;  %v430_v54 = vpop.f32.mrb[11].mxu0  ;;  %v470_v55 = vpop.f32.mrb[11].mxu1  ;;  %v498_v57 = vld [vmem:[%s983_s16 + $0x78] sm:$0xff] }
  0xfe   : > { %v469_v53 = vadd.f32 %v468_v37, %v992_v26  ;;  %694 = vst [vmem:[%s1045_s22 + $0x18] sm:$0xff] %v837_v30  ;;  %v540_v58 = vadd.f32 %v508_v62, %v427_v32  ;;  %v556_v59 = vadd.f32 %v524_v63, %v467_v33  ;;  %v431_v60 = vadd.f32 %v430_v54, %v994_v27 }
  0xff   : > { %702 = vst [vmem:[%s1045_s22 + $0x58] sm:$0xff] %v845_v31  ;;  %v471_v56 = vadd.f32 %v470_v55, %v994_v27  ;;  %v571_v0 = vmax.f32 %v539_v38, 0.0  ;;  %v587_v1 = vmax.f32 %v555_v39, 0.0  ;;  %v541_v2 = vadd.f32 %v509_v22, %v429_v52 }
 0x100   : > { %v557_v3 = vadd.f32 %v525_v23, %v469_v53  ;;  %v572_v4 = vmax.f32 %v540_v58, 0.0  ;;  %v588_v40 = vmax.f32 %v556_v59, 0.0  ;;  %v542_v41 = vadd.f32 %v510_v46, %v431_v60 }
 0x101   : > { %v558_v62 = vadd.f32 %v526_v47, %v471_v56  ;;  %v573_v63 = vmax.f32 %v541_v2, 0.0  ;;  %v529_v42 = vunpack.c.l.bf16 %v498_v57  ;;  %v530_v47 = vunpack.c.h.bf16 %v498_v57 }
 0x102   : > { %v589_v5 = vmax.f32 %v557_v3, 0.0  ;;  %v838_v8 = vpack.c.bf16 %v572_v4, %v571_v0  ;;  %v846_v9 = vpack.c.bf16 %v588_v40, %v587_v1  ;;  %v574_v22 = vmax.f32 %v542_v41, 0.0  ;;  %v434_v28 = vpop.f32.mrb[12].mxu0  ;;  %v474_v23 = vpop.f32.mrb[12].mxu1 }
 0x103   : > { %v590_v12 = vmax.f32 %v558_v62, 0.0  ;;  %v435_v44 = vadd.f32 %v434_v28, %v992_v26  ;;  %v475_v10 = vadd.f32 %v474_v23, %v992_v26  ;;  %v436_v46 = vpop.f32.mrb[13].mxu0  ;;  %v476_v13 = vpop.f32.mrb[13].mxu1 }
 0x104   : > { %695 = vst [vmem:[%s1045_s22 + $0x20] sm:$0xff] %v838_v8  ;;  %703 = vst [vmem:[%s1045_s22 + $0x60] sm:$0xff] %v846_v9  ;;  %v839_v29 = vpack.c.bf16 %v574_v22, %v573_v63  ;;  %v437_v14 = vadd.f32 %v436_v46, %v994_v27  ;;  %v477_v15 = vadd.f32 %v476_v13, %v994_v27  ;;  %v438_v48 = vpop.f32.mrb[14].mxu0  ;;  %v478_v18 = vpop.f32.mrb[14].mxu1 }
 0x105   : > { %v847_v45 = vpack.c.bf16 %v590_v12, %v589_v5  ;;  %v543_v19 = vadd.f32 %v511_v16, %v435_v44  ;;  %v559_v49 = vadd.f32 %v527_v17, %v475_v10  ;;  %v439_v20 = vadd.f32 %v438_v48, %v992_v26  ;;  %v440_v34 = vpop.f32.mrb[15].mxu0  ;;  %v480_v50 = vpop.f32.mrb[15].mxu1 }
 0x106   : > { %v479_v21 = vadd.f32 %v478_v18, %v992_v26  ;;  %696 = vst [vmem:[%s1045_s22 + $0x28] sm:$0xff] %v839_v29  ;;  %v544_v35 = vadd.f32 %v512_v24, %v437_v14  ;;  %v560_v51 = vadd.f32 %v528_v25, %v477_v15  ;;  %v441_v30 = vadd.f32 %v440_v34, %v994_v27 }
 0x107   : > { %704 = vst [vmem:[%s1045_s22 + $0x68] sm:$0xff] %v847_v45  ;;  %v481_v16 = vadd.f32 %v480_v50, %v994_v27  ;;  %v575_v17 = vmax.f32 %v543_v19, 0.0  ;;  %v591_v31 = vmax.f32 %v559_v49, 0.0  ;;  %v545_v32 = vadd.f32 %v513_v6, %v439_v20 }
 0x108   : > { %v561_v26 = vadd.f32 %v529_v42, %v479_v21  ;;  %v576_v33 = vmax.f32 %v544_v35, 0.0  ;;  %v592_v36 = vmax.f32 %v560_v51, 0.0  ;;  %v546_v37 = vadd.f32 %v514_v11, %v441_v30 }
 0x109   : > { %v562_v7 = vadd.f32 %v530_v47, %v481_v16  ;;  %v577_v24 = vmax.f32 %v545_v32, 0.0 }
 0x10a   : > { %v593_v38 = vmax.f32 %v561_v26, 0.0  ;;  %v840_v43 = vpack.c.bf16 %v576_v33, %v575_v17  ;;  %v848_v25 = vpack.c.bf16 %v592_v36, %v591_v31  ;;  %v578_v39 = vmax.f32 %v546_v37, 0.0 }
 0x10b   : > { %v594_v52 = vmax.f32 %v562_v7, 0.0 }
 0x10c   : > { %697 = vst [vmem:[%s1045_s22 + $0x30] sm:$0xff] %v840_v43  ;;  %705 = vst [vmem:[%s1045_s22 + $0x70] sm:$0xff] %v848_v25  ;;  %v841_v27 = vpack.c.bf16 %v578_v39, %v577_v24 }
 0x10d   : > { %v849_v53 = vpack.c.bf16 %v594_v52, %v593_v38 }
 0x10e   : > { %698 = vst [vmem:[%s1045_s22 + $0x38] sm:$0xff] %v841_v27 }
 0x10f   : > { %706 = vst [vmem:[%s1045_s22 + $0x78] sm:$0xff] %v849_v53 }
 0x110 PF: > { %s14_s15 = sadd.s32 1, %s893_s15  }
 0x111   : > { %p11_p4 = scmp.ge.s32.totalorder %s14_s15, 4  }
 0x113   :  { %13 = sbr.rel (!%p11_p4) target bundleno = 1 (0x1), region = 69 }

// kernel: _front.23
= control target key start
LH: loop header
LB: loop body
LE: loop exit
PB: predicated region body
PF: predicated region fallthrough
CT: control target
= control target key end

     0   :  { %s893_s12 = smov 0   ;;  %s1035_s0 = inlined_call_operand.vmem [shape: bf16[256,256], index: 0, kind: input, shape index: {}]   ;;  %s1036_s1 = inlined_call_operand.vmem [shape: bf16[256,64], index: 1, kind: input, shape index: {}]   ;;  %s1037_s2 = inlined_call_operand.vmem [shape: f32[1,64], index: 2, kind: input, shape index: {}]   ;;  %s1038_s3 = inlined_call_operand.vmem [shape: bf16[256,64], index: 3, kind: output, shape index: {}]  }
   0x1 LB: > { %s659_s13 = sadd.s32 4294967295, %s871_s12   ;;  %p663_p0 = scmp.ge.s32.totalorder %s871_s12, 1  ;;  %s871_s12 = sphi %s893_s12, %s13_s12  }
   0x2   : > { %p139_p1 = scmp.lt.s32.totalorder %s871_s12, 3 }
   0x4   : > { %p140_p2 = pnand %p663_p0, %p139_p1 }
   0x5   : > { %v825_v0 = vld [vmem:[%s1036_s1 + $0x40] sm:$0xff] (!%p140_p2)   ;;  %s664_s16 = sshll.u32 (!%p140_p2), %s659_s13, 4  ;;  %v827_v2 = vld [vmem:[%s1036_s1 + $0x48] sm:$0xff] (!%p140_p2)   ;;  %v829_v4 = vld [vmem:[%s1036_s1 + $0x50] sm:$0xff] (!%p140_p2)   ;;  %vm586_vm0 = vcmask (!%p140_p2), 519168  }
   0x6   : > { %143 = sbr.rel (%p140_p2) target bundleno = 286 (0x11e), region = 32  ;;  %v826_v1 = vld [vmem:[%s1036_s1] sm:$0xff] (!%p140_p2)   ;;  %737 = vmatprep.subr.bf16.mxu0 (!%p140_p2), %v825_v0  ;;  %801 = vmatprep.subr.bf16.mxu1 (!%p140_p2), %v825_v0  ;;  %v828_v3 = vld [vmem:[%s1036_s1 + $0x8] sm:$0xff] (!%p140_p2)   ;;  %p165_p3 = scmp.lt.s32.totalorder (!%p140_p2), %s664_s16, 31  ;;  %v830_v5 = vld [vmem:[%s1036_s1 + $0x10] sm:$0xff] (!%p140_p2)  }
   0x7   : > { %738 = vmatpush3.bf16.msra.mxu0 (!%p140_p2), %v826_v1  ;;  %809 = vmatpush3.bf16.msra.mxu1 (!%p140_p2), %v826_v1  ;;  %v831_v6 = vld [vmem:[%s1036_s1 + $0x58] sm:$0xff] (!%p140_p2)   ;;  %v833_v8 = vld [vmem:[%s1036_s1 + $0x60] sm:$0xff] (!%p140_p2)   ;;  %v835_v10 = vld [vmem:[%s1036_s1 + $0x68] sm:$0xff] (!%p140_p2)  }
   0x8   : > { %739 = vmatprep.subr.bf16.mxu0 (!%p140_p2), %v827_v2  ;;  %802 = vmatprep.subr.bf16.mxu1 (!%p140_p2), %v827_v2  ;;  %v832_v7 = vld [vmem:[%s1036_s1 + $0x18] sm:$0xff] (!%p140_p2)   ;;  %v834_v9 = vld [vmem:[%s1036_s1 + $0x20] sm:$0xff] (!%p140_p2)   ;;  %v836_v13 = vld [vmem:[%s1036_s1 + $0x28] sm:$0xff] (!%p140_p2)  }
   0x9   : > { %v837_v14 = vld [vmem:[%s1036_s1 + $0x70] sm:$0xff] (!%p140_p2)   ;;  %v839_v16 = vld [vmem:[%s1036_s1 + $0x78] sm:$0xff] (!%p140_p2)   ;;  %v976_v34 = vld [vmem:[%s1037_s2] ss:$0 sm:$0xff] (!%p140_p2) }
   0xa   : > { %v838_v15 = vld [vmem:[%s1036_s1 + $0x30] sm:$0xff] (!%p140_p2)   ;;  %v840_v17 = vld [vmem:[%s1036_s1 + $0x38] sm:$0xff] (!%p140_p2)  }
   0xb   : > { %740 = vmatpush3.bf16.msra.mxu0 (!%p140_p2), %v828_v3  ;;  %810 = vmatpush3.bf16.msra.mxu1 (!%p140_p2), %v828_v3 }
   0xc   : > { %741 = vmatprep.subr.bf16.mxu0 (!%p140_p2), %v829_v4  ;;  %803 = vmatprep.subr.bf16.mxu1 (!%p140_p2), %v829_v4 }
   0xd   : > { %s1040_s16 = smov (!%p165_p3, %s664_s16), 31 }
   0xe   : > { %s720_s4 = sshll.u32 %s1040_s16, 3  ;;  %s668_s28 = sshll.u32 %s1040_s16, 2 }
   0xf   : > { %742 = vmatpush3.bf16.msra.mxu0 %v830_v5  ;;  %811 = vmatpush3.bf16.msra.mxu1 %v830_v5  ;;  %s934_s9 = scalar_lea.vmem %s1035_s0, %s720_s4  ;;  %s986_s4 = scalar_lea.vmem %s1038_s3, %s668_s28 }
  0x10   : > { %743 = vmatprep.subr.bf16.mxu0 %v831_v6  ;;  %804 = vmatprep.subr.bf16.mxu1 %v831_v6  ;;  %v843_v11 = vld [vmem:[%s934_s9 + $0x4] ss:$8 sps:$4 sm:$0xff]   ;;  %v841_v18 = vld [vmem:[%s934_s9] ss:$8 sps:$4 sm:$0xff]   ;;  %v847_v20 = vld [vmem:[%s934_s9 + $0x14] ss:$8 sps:$4 sm:$0xff]  }
  0x11   : > { %v846_v12 = vld [vmem:[%s934_s9 + $0x44] ss:$8 sps:$4 sm:$0xff]   ;;  %441 = vmatprep.mubr.bf16.mxu0 %v843_v11  ;;  %v844_v19 = vld [vmem:[%s934_s9 + $0x40] ss:$8 sps:$4 sm:$0xff]   ;;  %v849_v21 = vld [vmem:[%s934_s9 + $0x54] ss:$8 sps:$4 sm:$0xff]  }
  0x12   : > { %473 = vmatprep.mubr.bf16.mxu1 %v846_v12  ;;  %v851_v22 = vld [vmem:[%s934_s9 + $0x10] ss:$8 sps:$4 sm:$0xff]   ;;  %v853_v24 = vld [vmem:[%s934_s9 + $0x24] ss:$8 sps:$4 sm:$0xff]   ;;  %v857_v26 = vld [vmem:[%s934_s9 + $0x20] ss:$8 sps:$4 sm:$0xff]  }
  0x13   : > { %744 = vmatpush3.bf16.msra.mxu0 %v832_v7  ;;  %812 = vmatpush3.bf16.msra.mxu1 %v832_v7  ;;  %v852_v23 = vld [vmem:[%s934_s9 + $0x50] ss:$8 sps:$4 sm:$0xff]   ;;  %v855_v25 = vld [vmem:[%s934_s9 + $0x64] ss:$8 sps:$4 sm:$0xff]   ;;  %v858_v27 = vld [vmem:[%s934_s9 + $0x60] ss:$8 sps:$4 sm:$0xff]  }
  0x14   : > { %745 = vmatprep.subr.bf16.mxu0 %v833_v8  ;;  %805 = vmatprep.subr.bf16.mxu1 %v833_v8  ;;  %v859_v28 = vld [vmem:[%s934_s9 + $0x34] ss:$8 sps:$4 sm:$0xff]   ;;  %v863_v30 = vld [vmem:[%s934_s9 + $0x30] ss:$8 sps:$4 sm:$0xff]  }
  0x15   : > { %v861_v29 = vld [vmem:[%s934_s9 + $0x74] ss:$8 sps:$4 sm:$0xff]   ;;  %v864_v31 = vld [vmem:[%s934_s9 + $0x70] ss:$8 sps:$4 sm:$0xff]  }
  0x17   : > { %746 = vmatpush3.bf16.msra.mxu0 %v834_v9  ;;  %813 = vmatpush3.bf16.msra.mxu1 %v834_v9 }
  0x18   : > { %747 = vmatprep.subr.bf16.mxu0 %v835_v10  ;;  %806 = vmatprep.subr.bf16.mxu1 %v835_v10 }
  0x1b   : > { %748 = vmatpush3.bf16.msra.mxu0 %v836_v13  ;;  %814 = vmatpush3.bf16.msra.mxu1 %v836_v13 }
  0x1c   : > { %749 = vmatprep.subr.bf16.mxu0 %v837_v14  ;;  %807 = vmatprep.subr.bf16.mxu1 %v837_v14 }
  0x1f   : > { %750 = vmatpush3.bf16.msra.mxu0 %v838_v15  ;;  %815 = vmatpush3.bf16.msra.mxu1 %v838_v15 }
  0x20   : > { %751 = vmatprep.subr.bf16.mxu0 %v839_v16  ;;  %808 = vmatprep.subr.bf16.mxu1 %v839_v16 }
  0x23   : > { %752 = vmatpush3.bf16.msra.mxu0 %v840_v17  ;;  %816 = vmatpush3.bf16.msra.mxu1 %v840_v17 }
  0x26   : > { %442 = vmatmul.mubr.bf16.vlgmr.msra.gmra.mrb[0].mxu0 %v841_v18  ;;  %474 = vmatmul.mubr.bf16.vlgmr.msra.gmra.mrb[0].mxu1 %v844_v19 }
  0x27   : > { %449 = vmatprep.mubr.bf16.mxu0 %v847_v20  ;;  %481 = vmatprep.mubr.bf16.mxu1 %v849_v21 }
  0x2e   : > { %450 = vmatmul.mubr.bf16.gmra.mrb[4].mxu0 %v851_v22  ;;  %482 = vmatmul.mubr.bf16.gmra.mrb[4].mxu1 %v852_v23 }
  0x2f   : > { %457 = vmatprep.mubr.bf16.mxu0 %v853_v24  ;;  %489 = vmatprep.mubr.bf16.mxu1 %v855_v25 }
  0x36   : > { %458 = vmatmul.mubr.bf16.gmra.mrb[8].mxu0 %v857_v26  ;;  %490 = vmatmul.mubr.bf16.gmra.mrb[8].mxu1 %v858_v27 }
  0x37   : > { %465 = vmatprep.mubr.bf16.mxu0 %v859_v28  ;;  %497 = vmatprep.mubr.bf16.mxu1 %v861_v29 }
  0x3e   : > { %466 = vmatmul.mubr.bf16.gmra.mrb[12].mxu0 %v863_v30  ;;  %498 = vmatmul.mubr.bf16.gmra.mrb[12].mxu1 %v864_v31 }
  0xf9   : > { %v753_v32 = vpop.f32.mrb[0].mxu0  ;;  %v777_v33 = vpop.f32.mrb[0].mxu1 }
  0xfa   : > { %v754_v35 = vpop.f32.mrb[1].mxu0  ;;  %v778_v36 = vpop.f32.mrb[1].mxu1 }
  0xfb   : > { %v755_v37 = vadd.f32 %v754_v35, %v753_v32  ;;  %v779_v38 = vadd.f32 %v778_v36, %v777_v33  ;;  %v756_v39 = vpop.f32.mrb[2].mxu0  ;;  %v780_v40 = vpop.f32.mrb[2].mxu1 }
  0xfc   : > { %v757_v41 = vpop.f32.mrb[3].mxu0  ;;  %v781_v42 = vpop.f32.mrb[3].mxu1 }
  0xfd   : > { %v444_v43 = vadd.f32 %v755_v37, %v976_v34  ;;  %v476_v44 = vadd.f32 %v779_v38, %v976_v34  ;;  %v758_v45 = vadd.f32 %v757_v41, %v756_v39  ;;  %v782_v46 = vadd.f32 %v781_v42, %v780_v40 }
  0xff   : > { %v506_v47 = vmax.f32 %v444_v43, 0.0  ;;  %v514_v48 = vmax.f32 %v476_v44, 0.0  ;;  %v447_v49 = vadd.f32 %v758_v45, %v976_v34  ;;  %v479_v50 = vadd.f32 %v782_v46, %v976_v34 }
 0x101   : > { %v721_v51 = vpack.c.bf16 %v506_v47, %v506_v47  ;;  %v729_v52 = vpack.c.bf16 %v514_v48, %v514_v48  ;;  %v507_v53 = vmax.f32 %v447_v49, 0.0  ;;  %v515_v54 = vmax.f32 %v479_v50, 0.0  ;;  %v759_v55 = vpop.f32.mrb[4].mxu0  ;;  %v783_v56 = vpop.f32.mrb[4].mxu1 }
 0x102   : > { %v760_v57 = vpop.f32.mrb[5].mxu0  ;;  %v784_v58 = vpop.f32.mrb[5].mxu1 }
 0x103   : > { %587 = vst.msk [vmem:[%s986_s4] sm:$0xf] %vm586_vm0, %v721_v51  ;;  %595 = vst.msk [vmem:[%s986_s4 + $0x20] sm:$0xf] %vm586_vm0, %v729_v52  ;;  %v722_v59 = vpack.c.bf16 %v507_v53, %v507_v53  ;;  %v730_v60 = vpack.c.bf16 %v515_v54, %v515_v54  ;;  %v761_v61 = vadd.f32 %v760_v57, %v759_v55  ;;  %v762_v63 = vpop.f32.mrb[6].mxu0  ;;  %v786_v0 = vpop.f32.mrb[6].mxu1 }
 0x104   : > { %v785_v62 = vadd.f32 %v784_v58, %v783_v56  ;;  %v763_v1 = vpop.f32.mrb[7].mxu0  ;;  %v787_v2 = vpop.f32.mrb[7].mxu1 }
 0x105   : > { %588 = vst.msk [vmem:[%s986_s4 + $0x4] sm:$0xf] %vm586_vm0, %v722_v59  ;;  %596 = vst.msk [vmem:[%s986_s4 + $0x24] sm:$0xf] %vm586_vm0, %v730_v60  ;;  %v452_v3 = vadd.f32 %v761_v61, %v976_v34  ;;  %v764_v5 = vadd.f32 %v763_v1, %v762_v63  ;;  %v788_v6 = vadd.f32 %v787_v2, %v786_v0 }
 0x106   : > { %v484_v4 = vadd.f32 %v785_v62, %v976_v34 }
 0x107   : > { %v508_v7 = vmax.f32 %v452_v3, 0.0  ;;  %v455_v9 = vadd.f32 %v764_v5, %v976_v34  ;;  %v487_v10 = vadd.f32 %v788_v6, %v976_v34 }
 0x108   : > { %v516_v8 = vmax.f32 %v484_v4, 0.0 }
 0x109   : > { %v723_v11 = vpack.c.bf16 %v508_v7, %v508_v7  ;;  %v509_v13 = vmax.f32 %v455_v9, 0.0  ;;  %v517_v14 = vmax.f32 %v487_v10, 0.0  ;;  %v765_v15 = vpop.f32.mrb[8].mxu0  ;;  %v789_v16 = vpop.f32.mrb[8].mxu1 }
 0x10a   : > { %v731_v12 = vpack.c.bf16 %v516_v8, %v516_v8  ;;  %v766_v17 = vpop.f32.mrb[9].mxu0  ;;  %v790_v18 = vpop.f32.mrb[9].mxu1 }
 0x10b   : > { %589 = vst.msk [vmem:[%s986_s4 + $0x8] sm:$0xf] %vm586_vm0, %v723_v11  ;;  %v724_v19 = vpack.c.bf16 %v509_v13, %v509_v13  ;;  %v732_v20 = vpack.c.bf16 %v517_v14, %v517_v14  ;;  %v767_v21 = vadd.f32 %v766_v17, %v765_v15  ;;  %v791_v22 = vadd.f32 %v790_v18, %v789_v16  ;;  %v768_v23 = vpop.f32.mrb[10].mxu0  ;;  %v792_v24 = vpop.f32.mrb[10].mxu1 }
 0x10c   : > { %597 = vst.msk [vmem:[%s986_s4 + $0x28] sm:$0xf] %vm586_vm0, %v731_v12  ;;  %v769_v25 = vpop.f32.mrb[11].mxu0  ;;  %v793_v26 = vpop.f32.mrb[11].mxu1 }
 0x10d   : > { %590 = vst.msk [vmem:[%s986_s4 + $0xc] sm:$0xf] %vm586_vm0, %v724_v19  ;;  %598 = vst.msk [vmem:[%s986_s4 + $0x2c] sm:$0xf] %vm586_vm0, %v732_v20  ;;  %v460_v27 = vadd.f32 %v767_v21, %v976_v34  ;;  %v492_v28 = vadd.f32 %v791_v22, %v976_v34  ;;  %v770_v29 = vadd.f32 %v769_v25, %v768_v23 }
 0x10e   : > { %v794_v30 = vadd.f32 %v793_v26, %v792_v24 }
 0x10f   : > { %v510_v31 = vmax.f32 %v460_v27, 0.0  ;;  %v518_v32 = vmax.f32 %v492_v28, 0.0  ;;  %v463_v33 = vadd.f32 %v770_v29, %v976_v34 }
 0x110   : > { %v495_v35 = vadd.f32 %v794_v30, %v976_v34 }
 0x111   : > { %v725_v36 = vpack.c.bf16 %v510_v31, %v510_v31  ;;  %v733_v37 = vpack.c.bf16 %v518_v32, %v518_v32  ;;  %v511_v38 = vmax.f32 %v463_v33, 0.0  ;;  %v771_v40 = vpop.f32.mrb[12].mxu0  ;;  %v795_v41 = vpop.f32.mrb[12].mxu1 }
 0x112   : > { %v519_v39 = vmax.f32 %v495_v35, 0.0  ;;  %v772_v42 = vpop.f32.mrb[13].mxu0  ;;  %v796_v43 = vpop.f32.mrb[13].mxu1 }
 0x113   : > { %591 = vst.msk [vmem:[%s986_s4 + $0x10] sm:$0xf] %vm586_vm0, %v725_v36  ;;  %599 = vst.msk [vmem:[%s986_s4 + $0x30] sm:$0xf] %vm586_vm0, %v733_v37  ;;  %v726_v44 = vpack.c.bf16 %v511_v38, %v511_v38  ;;  %v773_v46 = vadd.f32 %v772_v42, %v771_v40  ;;  %v797_v47 = vadd.f32 %v796_v43, %v795_v41  ;;  %v774_v48 = vpop.f32.mrb[14].mxu0  ;;  %v798_v49 = vpop.f32.mrb[14].mxu1 }
 0x114   : > { %v734_v45 = vpack.c.bf16 %v519_v39, %v519_v39  ;;  %v775_v50 = vpop.f32.mrb[15].mxu0  ;;  %v799_v51 = vpop.f32.mrb[15].mxu1 }
 0x115   : > { %592 = vst.msk [vmem:[%s986_s4 + $0x14] sm:$0xf] %vm586_vm0, %v726_v44  ;;  %v468_v52 = vadd.f32 %v773_v46, %v976_v34  ;;  %v500_v53 = vadd.f32 %v797_v47, %v976_v34  ;;  %v776_v54 = vadd.f32 %v775_v50, %v774_v48  ;;  %v800_v55 = vadd.f32 %v799_v51, %v798_v49 }
 0x116   : > { %600 = vst.msk [vmem:[%s986_s4 + $0x34] sm:$0xf] %vm586_vm0, %v734_v45 }
 0x117   : > { %v512_v56 = vmax.f32 %v468_v52, 0.0  ;;  %v520_v57 = vmax.f32 %v500_v53, 0.0  ;;  %v471_v58 = vadd.f32 %v776_v54, %v976_v34  ;;  %v503_v59 = vadd.f32 %v800_v55, %v976_v34 }
 0x119   : > { %v727_v60 = vpack.c.bf16 %v512_v56, %v512_v56  ;;  %v735_v61 = vpack.c.bf16 %v520_v57, %v520_v57  ;;  %v513_v62 = vmax.f32 %v471_v58, 0.0  ;;  %v521_v63 = vmax.f32 %v503_v59, 0.0 }
 0x11b   : > { %593 = vst.msk [vmem:[%s986_s4 + $0x18] sm:$0xf] %vm586_vm0, %v727_v60  ;;  %601 = vst.msk [vmem:[%s986_s4 + $0x38] sm:$0xf] %vm586_vm0, %v735_v61  ;;  %v728_v0 = vpack.c.bf16 %v513_v62, %v513_v62  ;;  %v736_v1 = vpack.c.bf16 %v521_v63, %v521_v63 }
 0x11d   : > { %594 = vst.msk [vmem:[%s986_s4 + $0x1c] sm:$0xf] %vm586_vm0, %v728_v0  ;;  %602 = vst.msk [vmem:[%s986_s4 + $0x3c] sm:$0xf] %vm586_vm0, %v736_v1 }
 0x11e PF: > { %s13_s12 = sadd.s32 1, %s871_s12  }
 0x11f   : > { %p10_p4 = scmp.ge.s32.totalorder %s13_s12, 4  }
 0x121   :  { %12 = sbr.rel (!%p10_p4) target bundleno = 1 (0x1), region = 62 }

// kernel: _front.32
= control target key start
LH: loop header
LB: loop body
LE: loop exit
PB: predicated region body
PF: predicated region fallthrough
CT: control target
= control target key end

     0   :  { %s4673_s12 = smov 0   ;;  %s6120_s0 = inlined_call_operand.vmem [shape: bf16[2,198,256], index: 0, kind: input, shape index: {}]   ;;  %s6121_s1 = inlined_call_operand.vmem [shape: bf16[9,256,48], index: 1, kind: input, shape index: {}]   ;;  %s6122_s2 = inlined_call_operand.vmem [shape: f32[1,48], index: 2, kind: input, shape index: {}]   ;;  %s6123_s3 = inlined_call_operand.vmem [shape: bf16[2,144,48], index: 3, kind: output, shape index: {}]  }
   0x1 LB: > { %s3317_s13 = sadd.s32 4294967295, %s4651_s12   ;;  %p3321_p0 = scmp.ge.s32.totalorder %s4651_s12, 1  ;;  %s4651_s12 = sphi %s4673_s12, %s13_s12  }
   0x2   : > { %p137_p1 = scmp.lt.s32.totalorder %s4651_s12, 3 }
   0x4   : > { %p138_p2 = pnand %p3321_p0, %p137_p1 }
   0x6   : > { %141 = sbr.rel (%p138_p2) target bundleno = 594 (0x252), region = 32 }
   0xd   : > { %v4447_v0 = vld [vmem:[%s6121_s1 + $0xc0] sm:$0xff]   ;;  %v4449_v2 = vld [vmem:[%s6121_s1 + $0xc8] sm:$0xff]   ;;  %p161_p3 = scmp.lt.s32.totalorder %s3317_s13, 1  ;;  %v4451_v4 = vld [vmem:[%s6121_s1 + $0xd0] sm:$0xff]   ;;  %vm326_vm0 = vsmask.f32 7424 }
   0xe   : > { %v4448_v1 = vld [vmem:[%s6121_s1 + $0x80] sm:$0xff]   ;;  %4421 = vmatprep.subr.bf16.mxu1 %v4447_v0  ;;  %3791 = vmatprep.subr.bf16.mxu0 %v4447_v0  ;;  %v4450_v3 = vld [vmem:[%s6121_s1 + $0x88] sm:$0xff]   ;;  %v4452_v5 = vld [vmem:[%s6121_s1 + $0x90] sm:$0xff]   ;;  %vm952_vm1 = vcmask 1046528   ;;  %vm1533_vm2 = vsmask.f32 6400 }
   0xf   : > { %4429 = vmatpush3.bf16.msra.mxu1 %v4448_v1  ;;  %3792 = vmatpush3.bf16.msra.mxu0 %v4448_v1  ;;  %s6214_s13 = smov (!%p161_p3, %s3317_s13), 1  ;;  %v4453_v6 = vld [vmem:[%s6121_s1 + $0xd8] sm:$0xff]   ;;  %v4455_v8 = vld [vmem:[%s6121_s1 + $0xe0] sm:$0xff]   ;;  %v4457_v10 = vld [vmem:[%s6121_s1 + $0xe8] sm:$0xff]   ;;  %vm1902_vm3 = vcmask 1045504   ;;  %vm2852_vm4 = vcmask 1044480  }
  0x10   : > { %4422 = vmatprep.subr.bf16.mxu1 %v4449_v2  ;;  %3793 = vmatprep.subr.bf16.mxu0 %v4449_v2  ;;  %s4437_s28 = smul.u32 200, %s6214_s13  ;;  %v4454_v7 = vld [vmem:[%s6121_s1 + $0x98] sm:$0xff]   ;;  %v4456_v9 = vld [vmem:[%s6121_s1 + $0xa0] sm:$0xff]   ;;  %v4458_v15 = vld [vmem:[%s6121_s1 + $0xa8] sm:$0xff]   ;;  %vm2483_vm5 = vsmask.f32 5376 }
  0x11   : > { %v4459_v19 = vld [vmem:[%s6121_s1 + $0xf0] sm:$0xff]   ;;  %v4461_v24 = vld [vmem:[%s6121_s1 + $0xf8] sm:$0xff]   ;;  %v4469_v38 = vld [vmem:[%s6121_s1 + $0x40] sm:$0xff]   ;;  %s4438_s18 = smul.u32 72, %s6214_s13  ;;  %vm3243_vm6 = vcmask 388096  }
  0x12   : > { %s4717_s10 = scalar_lea.vmem %s6120_s0, %s4437_s28  ;;  %v4460_v21 = vld [vmem:[%s6121_s1 + $0xb0] sm:$0xff]   ;;  %v4462_v30 = vld [vmem:[%s6121_s1 + $0xb8] sm:$0xff]   ;;  %v4482_v48 = vld [vmem:[%s6121_s1 + $0x140] sm:$0xff]  }
  0x13   : > { %4430 = vmatpush3.bf16.msra.mxu1 %v4450_v3  ;;  %3794 = vmatpush3.bf16.msra.mxu0 %v4450_v3  ;;  %v4723_v11 = vld [vmem:[%s4717_s10 + $0x44] ss:$8 sps:$4 sm:$0xff]   ;;  %v4726_v12 = vld [vmem:[%s4717_s10 + $0x54] ss:$8 sps:$4 sm:$0xff]   ;;  %v4729_v13 = vld [vmem:[%s4717_s10 + $0x40] ss:$8 sps:$4 sm:$0xff]   ;;  %s6047_s21 = scalar_lea.vmem %s6123_s3, %s4438_s18 }
  0x14   : > { %4423 = vmatprep.subr.bf16.mxu1 %v4451_v4  ;;  %3795 = vmatprep.subr.bf16.mxu0 %v4451_v4  ;;  %v4732_v14 = vld [vmem:[%s4717_s10 + $0x50] ss:$8 sps:$4 sm:$0xff]   ;;  %v4738_v16 = vshll.u32 %v4723_v11, 16  ;;  %v4741_v17 = vshrl.u32 %v4723_v11, 16  ;;  %v4744_v18 = vshll.u32 %v4726_v12, 16  ;;  %v4750_v20 = vshll.u32 %v4729_v13, 16 }
  0x15   : > { %v4761_v25 = vshrl.u32 %v4729_v13, 16  ;;  %v4764_v26 = vshll.u32 %v4732_v14, 16  ;;  %v4771_v29 = vshrl.u32 %v4726_v12, 16  ;;  %v4778_v32 = vld [vmem:[%s4717_s10 + $0x4] ss:$8 sps:$4 sm:$0xff]   ;;  %v4825_v56 = vshrl.u32 %v4732_v14, 16 }
  0x16   : > { %v397_v22 = vrot.slane %v4738_v16, 1  ;;  %v413_v23 = vrot.slane %v4744_v18, 1  ;;  %v6126_v28 = vrot.slane %v4750_v20, 1  ;;  %v4781_v33 = vld [vmem:[%s4717_s10 + $0x14] ss:$8 sps:$4 sm:$0xff]   ;;  %v340_v39 = vshrl.u32 %v4778_v32, 16 }
  0x17   : > { %4431 = vmatpush3.bf16.msra.mxu1 %v4452_v5  ;;  %3796 = vmatpush3.bf16.msra.mxu0 %v4452_v5  ;;  %6157 = vst [vmem:[#allocation2_spill] sm:$0xff] %v4764_v26  ;;  %v405_v34 = vrot.slane %v4764_v26, 1  ;;  %v4785_v35 = vld [vmem:[%s4717_s10 + $0x64] ss:$8 sps:$4 sm:$0xff]   ;;  %v4788_v36 = vld [vmem:[%s4717_s10] ss:$8 sps:$4 sm:$0xff]  }
  0x18   : > { %4424 = vmatprep.subr.bf16.mxu1 %v4453_v6  ;;  %3797 = vmatprep.subr.bf16.mxu0 %v4453_v6  ;;  %v409_v27 = vor.u32 %v4741_v17, %v397_v22  ;;  %v401_v37 = vor.u32 %v4761_v25, %v6126_v28  ;;  %v342_v40 = vshll.u32 %v4778_v32, 16  ;;  %v6124_v41 = vshll.u32 %v4781_v33, 16  ;;  %v4800_v42 = vld [vmem:[%s4717_s10 + $0x10] ss:$8 sps:$4 sm:$0xff]   ;;  %v4809_v47 = vld [vmem:[%s4717_s10 + $0x60] ss:$8 sps:$4 sm:$0xff]  }
  0x19   : > { %v425_v43 = vor.u32 %v4771_v29, %v413_v23  ;;  %v4804_v44 = vshll.u32 %v4785_v35, 16  ;;  %v328_v45 = vshrl.u32 %v4788_v36, 16  ;;  %v330_v46 = vshll.u32 %v4788_v36, 16  ;;  %v4470_v49 = vld [vmem:[%s6121_s1] sm:$0xff]   ;;  %v4471_v53 = vld [vmem:[%s6121_s1 + $0x48] sm:$0xff]   ;;  %v4484_v4 = vld [vmem:[%s6121_s1 + $0x50] sm:$0xff]  }
  0x1a   : > { %v414_v31 = vsel %vm326_vm0, %v409_v27, %v413_v23  ;;  %v344_v50 = vrot.slane %v342_v40, 1  ;;  %v349_v51 = vrot.slane %v6124_v41, 1  ;;  %v335_v52 = vshll.u32 %v4800_v42, 16  ;;  %v4483_v61 = vld [vmem:[%s6121_s1 + $0x100] sm:$0xff]   ;;  %v4486_v0 = vld [vmem:[%s6121_s1 + $0x148] sm:$0xff]  }
  0x1b   : > { %4432 = vmatpush3.bf16.msra.mxu1 %v4454_v7  ;;  %3798 = vmatpush3.bf16.msra.mxu0 %v4454_v7  ;;  %6158 = vst [vmem:[#allocation3_spill] sm:$0xff] %v4804_v44  ;;  %v429_v54 = vrot.slane %v4804_v44, 1  ;;  %v332_v55 = vrot.slane %v330_v46, 1  ;;  %v406_v57 = vsel %vm326_vm0, %v401_v37, %v405_v34  ;;  %v4829_v60 = vshll.u32 %v4809_v47, 16  ;;  %v4472_v1 = vld [vmem:[%s6121_s1 + $0x8] sm:$0xff]  }
  0x1c   : > { %4425 = vmatprep.subr.bf16.mxu1 %v4455_v8  ;;  %3799 = vmatprep.subr.bf16.mxu0 %v4455_v8  ;;  %v345_v58 = vor.u32 %v344_v50, %v340_v39  ;;  %v337_v59 = vrot.slane %v335_v52, 1  ;;  %v417_v5 = vor.u32 %v4825_v56, %v405_v34  ;;  %v4487_v7 = vld [vmem:[%s6121_s1 + $0x108] sm:$0xff]   ;;  %v6125_v8 = vshrl.u32 %v4781_v33, 16  ;;  %v4865_v23 = vld [vmem:[%s4717_s10 + $0x74] ss:$8 sps:$4 sm:$0xff]  }
  0x1d   : > { %657 = vmatprep.mubr.bf16.mxu1 %v414_v31  ;;  %v430_v62 = vsel %vm326_vm0, %v425_v43, %v429_v54  ;;  %v333_v63 = vor.u32 %v332_v55, %v328_v45  ;;  %v421_v6 = vrot.slane %v4829_v60, 1  ;;  %v4876_v31 = vld [vmem:[%s4717_s10 + $0x20] ss:$8 sps:$4 sm:$0xff]   ;;  %v4881_v37 = vshrl.u32 %v4809_v47, 16  ;;  %v4889_v43 = vld [vmem:[%s4717_s10 + $0x70] ss:$8 sps:$4 sm:$0xff]  }
  0x1e   : > { %v350_v2 = vsel %vm326_vm0, %v345_v58, %v349_v51  ;;  %v4886_v40 = vshll.u32 %v4865_v23, 16  ;;  %v4496_v45 = vld [vmem:[%s6121_s1 + $0x150] sm:$0xff]   ;;  %v956_v50 = vrot.slane %v4778_v32, 1  ;;  %v957_v41 = vrot.slane %v4781_v33, 1 }
  0x1f   : > { %4433 = vmatpush3.bf16.msra.mxu1 %v4456_v9  ;;  %3800 = vmatpush3.bf16.msra.mxu0 %v4456_v9  ;;  %v338_v3 = vsel %vm326_vm0, %v333_v63, %v337_v59  ;;  %v4853_v9 = vshrl.u32 %v4785_v35, 16 }
  0x20   : > { %4426 = vmatprep.subr.bf16.mxu1 %v4457_v10  ;;  %3801 = vmatprep.subr.bf16.mxu0 %v4457_v10  ;;  %v4855_v10 = vrot.slane %v335_v52, 2  ;;  %v4902_v52 = vshll.u32 %v4889_v43, 16 }
  0x21   : > { %625 = vmatprep.mubr.bf16.mxu0 %v350_v2  ;;  %6159 = vst [vmem:[#allocation4_spill] sm:$0xff] %v4853_v9  ;;  %v441_v39 = vor.u32 %v4853_v9, %v429_v54 }
  0x22   : > { %6160 = vst [vmem:[#allocation5_spill] sm:$0xff] %v4902_v52 }
  0x23   : > { %4434 = vmatpush3.bf16.msra.mxu1 %v4458_v15  ;;  %3802 = vmatpush3.bf16.msra.mxu0 %v4458_v15  ;;  %v4858_v15 = vld [vmem:[%s4717_s10 + $0x24] ss:$8 sps:$4 sm:$0xff]  }
  0x24   : > { %4427 = vmatprep.subr.bf16.mxu1 %v4459_v19  ;;  %3803 = vmatprep.subr.bf16.mxu0 %v4459_v19  ;;  %v351_v19 = vshrl.u32 %v4800_v42, 16  ;;  %v4870_v27 = vshll.u32 %v4858_v15, 16  ;;  %v4926_v2 = vshrl.u32 %v4858_v15, 16 }
  0x26   : > { %v4878_v34 = vrot.slane %v351_v19, 1  ;;  %v365_v46 = vrot.slane %v4870_v27, 1 }
  0x27   : > { %4435 = vmatpush3.bf16.msra.mxu1 %v4460_v21  ;;  %3804 = vmatpush3.bf16.msra.mxu0 %v4460_v21  ;;  %v4485_v21 = vld [vmem:[%s6121_s1 + $0x10] sm:$0xff]  }
  0x28   : > { %4428 = vmatprep.subr.bf16.mxu1 %v4461_v24  ;;  %3805 = vmatprep.subr.bf16.mxu0 %v4461_v24  ;;  %v361_v24 = vor.u32 %v6125_v8, %v349_v51  ;;  %v445_v51 = vrot.slane %v4886_v40, 1 }
  0x2a   : > { %v366_v54 = vsel %vm326_vm0, %v361_v24, %v365_v46  ;;  %v446_v58 = vsel %vm326_vm0, %v441_v39, %v445_v51  ;;  %v4948_v24 = vld [vmem:[%s4717_s10 + $0x30] ss:$8 sps:$4 sm:$0xff]   ;;  %v4955_v39 = vld [vmem:[%s4717_s10 + $0x80] ss:$8 sps:$4 sm:$0xff]  }
  0x2b   : > { %4436 = vmatpush3.bf16.msra.mxu1 %v4462_v30  ;;  %3806 = vmatpush3.bf16.msra.mxu0 %v4462_v30  ;;  %v4492_v30 = vld [vmem:[%s6121_s1 + $0x58] sm:$0xff]  }
  0x2c   : > { %3861 = vmatprep.subr.bf16.mxu1 %v4469_v38  ;;  %3931 = vmatprep.subr.bf16.mxu0 %v4482_v48  ;;  %v422_v38 = vsel %vm326_vm0, %v417_v5, %v421_v6  ;;  %v353_v48 = vor.u32 %v351_v19, %v337_v59  ;;  %v433_v59 = vor.u32 %v4881_v37, %v421_v6  ;;  %v4935_v5 = vshrl.u32 %v4876_v31, 16 }
  0x2d   : > { %v4942_v19 = vshrl.u32 %v4889_v43, 16 }
  0x2e   : > { %658 = vmatmul.mubr.bf16.vlgmr.msra.gmra.mrb[0].mxu1 %v406_v57  ;;  %626 = vmatmul.mubr.bf16.vlgmr.msra.gmra.mrb[0].mxu0 %v338_v3  ;;  %v4497_v57 = vld [vmem:[%s6121_s1 + $0x110] sm:$0xff]   ;;  %v4501_v3 = vld [vmem:[%s6121_s1 + $0x118] sm:$0xff]  }
  0x2f   : > { %3862 = vmatpush3.bf16.msra.mxu1 %v4470_v49  ;;  %665 = vmatprep.mubr.bf16.mxu1 %v430_v62  ;;  %v4896_v49 = vshll.u32 %v4876_v31, 16  ;;  %v4498_v62 = vld [vmem:[%s6121_s1 + $0x60] sm:$0xff]   ;;  %6161 = vst [vmem:[#allocation6_spill] sm:$0xff] %v4942_v19 }
  0x30   : > { %3863 = vmatprep.subr.bf16.mxu1 %v4471_v53  ;;  %3932 = vmatpush3.bf16.msra.mxu0 %v4483_v61  ;;  %v4495_v53 = vld [vmem:[%s6121_s1 + $0x18] sm:$0xff]   ;;  %v437_v61 = vrot.slane %v4902_v52, 1 }
  0x31   : > { %3933 = vmatprep.subr.bf16.mxu0 %v4486_v0  ;;  %v357_v55 = vrot.slane %v4896_v49, 1  ;;  %633 = vmatprep.mubr.bf16.mxu0 %v366_v54  ;;  %v4499_v0 = vld [vmem:[%s6121_s1 + $0x158] sm:$0xff]  }
  0x32   : > { %v438_v6 = vsel %vm326_vm0, %v433_v59, %v437_v61  ;;  %v4971_v59 = vshll.u32 %v4955_v39, 16  ;;  %v4523_v52 = vld [vmem:[%s6121_s1 + $0x38] sm:$0xff]  }
  0x33   : > { %3864 = vmatpush3.bf16.msra.mxu1 %v4472_v1  ;;  %v358_v63 = vsel %vm326_vm0, %v353_v48, %v357_v55  ;;  %v4500_v1 = vld [vmem:[%s6121_s1 + $0x20] sm:$0xff]   ;;  %v369_v54 = vor.u32 %v4935_v5, %v357_v55 }
  0x34   : > { %3865 = vmatprep.subr.bf16.mxu1 %v4484_v4  ;;  %3934 = vmatpush3.bf16.msra.mxu0 %v4487_v7  ;;  %v4932_v4 = vshrl.u32 %v4865_v23, 16  ;;  %v4939_v7 = vld [vmem:[%s4717_s10 + $0x34] ss:$8 sps:$4 sm:$0xff]   ;;  %6163 = vst [vmem:[#allocation8_spill] sm:$0xff] %v4971_v59  ;;  %v4510_v55 = vld [vmem:[%s6121_s1 + $0x120] sm:$0xff]  }
  0x35   : > { %3935 = vmatprep.subr.bf16.mxu0 %v4496_v45  ;;  %v4508_v45 = vld [vmem:[%s6121_s1 + $0x160] sm:$0xff]  }
  0x36   : > { %666 = vmatmul.mubr.bf16.gmra.mrb[4].mxu1 %v422_v38  ;;  %634 = vmatmul.mubr.bf16.gmra.mrb[4].mxu0 %v358_v63  ;;  %v4952_v38 = vshll.u32 %v4939_v7, 16  ;;  %v457_v48 = vor.u32 %v4932_v4, %v445_v51  ;;  %v4509_v51 = vld [vmem:[%s6121_s1 + $0x68] sm:$0xff]  }
  0x37   : > { %3866 = vmatpush3.bf16.msra.mxu1 %v4485_v21  ;;  %673 = vmatprep.mubr.bf16.mxu1 %v446_v58  ;;  %v4945_v21 = vld [vmem:[%s4717_s10 + $0x84] ss:$8 sps:$4 sm:$0xff]   ;;  %v449_v58 = vor.u32 %v4942_v19, %v437_v61  ;;  %v453_v61 = vrot.slane %v4971_v59, 1 }
  0x38   : > { %3867 = vmatprep.subr.bf16.mxu1 %v4492_v30  ;;  %3936 = vmatpush3.bf16.msra.mxu0 %v4497_v57  ;;  %v377_v30 = vor.u32 %v4926_v2, %v365_v46  ;;  %v4966_v46 = vshll.u32 %v4948_v24, 16  ;;  %v381_v57 = vrot.slane %v4952_v38, 1 }
  0x39   : > { %3937 = vmatprep.subr.bf16.mxu0 %v4499_v0 }
  0x3a   : > { %v373_v63 = vrot.slane %v4966_v46, 1  ;;  %v382_v0 = vsel %vm326_vm0, %v377_v30, %v381_v57  ;;  %v4992_v30 = vshrl.u32 %v4939_v7, 16 }
  0x3b   : > { %3868 = vmatpush3.bf16.msra.mxu1 %v4495_v53  ;;  %v4962_v53 = vshll.u32 %v4945_v21, 16  ;;  %641 = vmatprep.mubr.bf16.mxu0 %v382_v0  ;;  %v4513_v0 = vld [vmem:[%s6121_s1 + $0x128] sm:$0xff]  }
  0x3c   : > { %3869 = vmatprep.subr.bf16.mxu1 %v4498_v62  ;;  %3938 = vmatpush3.bf16.msra.mxu0 %v4501_v3 }
  0x3d   : > { %6162 = vst [vmem:[#allocation7_spill] sm:$0xff] %v4962_v53  ;;  %3939 = vmatprep.subr.bf16.mxu0 %v4508_v45  ;;  %v461_v62 = vrot.slane %v4962_v53, 1  ;;  %v4512_v45 = vld [vmem:[%s6121_s1 + $0x168] sm:$0xff]  }
  0x3e   : > { %674 = vmatmul.mubr.bf16.gmra.mrb[8].mxu1 %v438_v6  ;;  %v374_v6 = vsel %vm326_vm0, %v369_v54, %v373_v63  ;;  %v4514_v54 = vld [vmem:[%s6121_s1 + $0x70] sm:$0xff]  }
  0x3f   : > { %3870 = vmatpush3.bf16.msra.mxu1 %v4500_v1  ;;  %v4511_v1 = vld [vmem:[%s6121_s1 + $0x28] sm:$0xff]   ;;  %v462_v3 = vsel %vm326_vm0, %v457_v48, %v461_v62  ;;  %642 = vmatmul.mubr.bf16.gmra.mrb[8].mxu0 %v374_v6  ;;  %v4999_v48 = vshrl.u32 %v4945_v21, 16  ;;  %v5009_v6 = vld [vmem:[%s4717_s10 + $0x90] sm:$0xff] }
  0x40   : > { %3871 = vmatprep.subr.bf16.mxu1 %v4509_v51  ;;  %3940 = vmatpush3.bf16.msra.mxu0 %v4510_v55  ;;  %v454_v51 = vsel %vm326_vm0, %v449_v58, %v453_v61  ;;  %v393_v55 = vor.u32 %v4992_v30, %v381_v57  ;;  %v5012_v58 = vshrl.u32 %v4955_v39, 16  ;;  %v5021_v57 = vcombine.high %v5009_v6, %v5009_v6 }
  0x41   : > { %681 = vmatprep.mubr.bf16.mxu1 %v462_v3  ;;  %6164 = vst [vmem:[#allocation9_spill] sm:$0xff] %v4999_v48  ;;  %3941 = vmatprep.subr.bf16.mxu0 %v4512_v45  ;;  %v5006_v3 = vshrl.u32 %v4948_v24, 16  ;;  %v4518_v45 = vld [vmem:[%s6121_s1 + $0x30] sm:$0xff]  }
  0x42   : > { %6165 = vst [vmem:[#allocation10_spill] sm:$0xff] %v5012_v58  ;;  %v475_v28 = vshll.u32 %v5021_v57, 16  ;;  %v465_v59 = vor.u32 %v5012_v58, %v453_v61 }
  0x43   : > { %3872 = vmatpush3.bf16.msra.mxu1 %v4511_v1  ;;  %v398_v1 = vsel %vm326_vm0, %v393_v55, %v397_v22  ;;  %v385_v8 = vor.u32 %v5006_v3, %v373_v63  ;;  %v4520_v22 = vld [vmem:[%s6121_s1 + $0x170] sm:$0xff]   ;;  %v473_v55 = vor.u32 %v4999_v48, %v461_v62  ;;  %v6166_v63 = vrot.slane %v4750_v20, 1  ;;  %v4522_v62 = vld [vmem:[%s6121_s1 + $0x78] sm:$0xff]  }
  0x44   : > { %3942 = vmatpush3.bf16.msra.mxu0 %v4513_v0  ;;  %3873 = vmatprep.subr.bf16.mxu1 %v4514_v54  ;;  %v953_v0 = vrot.slane %v4788_v36, 1  ;;  %v4521_v54 = vld [vmem:[%s6121_s1 + $0x130] sm:$0xff]   ;;  %v958_v48 = vsel %vm952_vm1, %v956_v50, %v957_v41  ;;  %v4525_v50 = vld [vmem:[%s6121_s1 + $0x138] sm:$0xff]  }
  0x45   : > { %649 = vmatprep.mubr.bf16.mxu0 %v398_v1  ;;  %v390_v1 = vsel %vm326_vm0, %v385_v8, %v6166_v63  ;;  %3943 = vmatprep.subr.bf16.mxu0 %v4520_v22  ;;  %v4524_v8 = vld [vmem:[%s6121_s1 + $0x178] sm:$0xff]   ;;  %v959_v63 = vrot.slane %v4876_v31, 1 }
  0x46   : > { %682 = vmatmul.mubr.bf16.gmra.mrb[12].mxu1 %v454_v51  ;;  %v5029_v51 = vcombine.low %v5009_v6, %v5009_v6 }
  0x47   : > { %3874 = vmatpush3.bf16.msra.mxu1 %v4518_v45  ;;  %v477_v45 = vrot.slane %v475_v28, 1  ;;  %650 = vmatmul.mubr.bf16.gmra.mrb[12].mxu0 %v390_v1  ;;  %v954_v28 = vrot.slane %v4800_v42, 1  ;;  %v4533_v1 = vld [vmem:[%s6121_s1 + $0x208] sm:$0xff]  }
  0x48   : > { %v467_v53 = vshll.u32 %v5029_v51, 16  ;;  %3944 = vmatpush3.bf16.msra.mxu0 %v4521_v54  ;;  %3875 = vmatprep.subr.bf16.mxu1 %v4522_v62  ;;  %v961_v54 = vrot.slane %v4858_v15, 1  ;;  %v6167_v62 = vshrl.u32 %v4781_v33, 16 }
  0x49   : > { %v478_v61 = vsel %vm326_vm0, %v473_v55, %v477_v45  ;;  %1137 = vmatprep.mubr.bf16.mxu0 %v958_v48  ;;  %3945 = vmatprep.subr.bf16.mxu0 %v4524_v8  ;;  %v955_v48 = vsel %vm952_vm1, %v953_v0, %v954_v28  ;;  %v4532_v0 = vld [vmem:[%s6121_s1 + $0x248] sm:$0xff]  }
  0x4a   : > { %v469_v19 = vrot.slane %v467_v53, 1  ;;  %689 = vmatprep.mubr.bf16.mxu1 %v478_v61  ;;  %v4526_v53 = vld [vmem:[%s6121_s1 + $0x1c0] sm:$0xff]   ;;  %v5077_v55 = vsel %vm952_vm1, %v957_v41, %v961_v54  ;;  %v965_v41 = vrot.slane %v4939_v7, 1  ;;  %v5093_v45 = vrot.slane %v6167_v62, 1  ;;  %v4531_v8 = vld [vmem:[%s6121_s1 + $0x188] sm:$0xff]  }
  0x4b   : > { %3876 = vmatpush3.bf16.msra.mxu1 %v4523_v52  ;;  %v4528_v52 = vld [vmem:[%s6121_s1 + $0x240] sm:$0xff]   ;;  %v6168_v61 = vshll.u32 %v4781_v33, 16 }
  0x4c   : > { %v470_v22 = vsel %vm326_vm0, %v465_v59, %v469_v19  ;;  %3946 = vmatpush3.bf16.msra.mxu0 %v4525_v50  ;;  %4001 = vmatprep.subr.bf16.mxu1 %v4526_v53  ;;  %v4529_v19 = vld [vmem:[%s6121_s1 + $0x200] sm:$0xff]   ;;  %v5108_v53 = vsel %vm952_vm1, %v954_v28, %v959_v63  ;;  %v4535_v28 = vld [vmem:[%s6121_s1 + $0x190] sm:$0xff]  }
  0x4d   : > { %v4527_v59 = vld [vmem:[%s6121_s1 + $0x180] sm:$0xff]   ;;  %4071 = vmatprep.subr.bf16.mxu0 %v4528_v52  ;;  %v5101_v50 = vrot.slane %v6168_v61, 2 }
  0x4e   : > { %690 = vmatmul.mubr.bf16.gmra.mrb[16].mxu1 %v470_v22  ;;  %v4536_v22 = vld [vmem:[%s6121_s1 + $0x250] sm:$0xff]   ;;  %v4544_v62 = vld [vmem:[%s6121_s1 + $0x260] sm:$0xff]  }
  0x4f   : > { %826 = vmatprep.mubr.bf16.mxu1 %v4778_v32  ;;  %v4530_v32 = vld [vmem:[%s6121_s1 + $0x1c8] sm:$0xff]   ;;  %1138 = vmatmul.mubr.bf16.vlgmr.msra.gmra.mrb[16].mxu0 %v955_v48  ;;  %v1543_v52 = vor.u32 %v5101_v50, %v5093_v45  ;;  %v5116_v48 = vsel %vm952_vm1, %v961_v54, %v965_v41  ;;  %v963_v54 = vrot.slane %v4948_v24, 1  ;;  %v6169_v45 = vor.u32 %v4855_v10, %v4878_v34 }
  0x50   : > { %4072 = vmatpush3.bf16.msra.mxu0 %v4529_v19  ;;  %1145 = vmatprep.mubr.bf16.mxu0 %v5077_v55  ;;  %v4540_v19 = vld [vmem:[%s6121_s1 + $0x258] sm:$0xff]   ;;  %v1561_v10 = vrot.slane %v4738_v16, 2  ;;  %v4562_v34 = vld [vmem:[%s6121_s1 + $0x2c8] sm:$0xff]  }
  0x51   : > { %4073 = vmatprep.subr.bf16.mxu0 %v4532_v0  ;;  %v4541_v0 = vld [vmem:[%s6121_s1 + $0x218] sm:$0xff]  }
  0x54   : > { %4074 = vmatpush3.bf16.msra.mxu0 %v4533_v1  ;;  %v4539_v1 = vld [vmem:[%s6121_s1 + $0x198] sm:$0xff]  }
  0x55   : > { %4075 = vmatprep.subr.bf16.mxu0 %v4536_v22  ;;  %v4543_v22 = vld [vmem:[%s6121_s1 + $0x1a0] sm:$0xff]  }
  0x56   : > { %827 = vmatmul.mubr.bf16.vlgmr.msra.gmra.mrb[20].mxu1 %v4788_v36  ;;  %v4534_v36 = vld [vmem:[%s6121_s1 + $0x1d0] sm:$0xff]  }
  0x57   : > { %4002 = vmatpush3.bf16.msra.mxu1 %v4527_v59  ;;  %834 = vmatprep.mubr.bf16.mxu1 %v4781_v33  ;;  %v4537_v33 = vld [vmem:[%s6121_s1 + $0x210] sm:$0xff]   ;;  %v4538_v59 = vld [vmem:[%s6121_s1 + $0x1d8] sm:$0xff]  }
  0x58   : > { %4003 = vmatprep.subr.bf16.mxu1 %v4530_v32  ;;  %1146 = vmatmul.mubr.bf16.gmra.mrb[20].mxu0 %v5108_v53  ;;  %v969_v32 = vrot.slane %v4723_v11, 1 }
  0x59   : > { %1153 = vmatprep.mubr.bf16.mxu0 %v5116_v48  ;;  %4076 = vmatpush3.bf16.msra.mxu0 %v4537_v33  ;;  %v973_v33 = vrot.slane %v4726_v12, 1 }
  0x5a   : > { %4077 = vmatprep.subr.bf16.mxu0 %v4540_v19  ;;  %v5152_v61 = vsel %vm952_vm1, %v965_v41, %v969_v32  ;;  %v967_v41 = vrot.slane %v4729_v13, 1  ;;  %v4547_v19 = vld [vmem:[%s6121_s1 + $0x1a8] sm:$0xff]  }
  0x5b   : > { %4004 = vmatpush3.bf16.msra.mxu1 %v4531_v8  ;;  %v5146_v8 = vsel %vm952_vm1, %v959_v63, %v963_v54  ;;  %v4548_v63 = vld [vmem:[%s6121_s1 + $0x268] sm:$0xff]  }
  0x5c   : > { %4005 = vmatprep.subr.bf16.mxu1 %v4534_v36  ;;  %v4546_v36 = vld [vmem:[%s6121_s1 + $0x1e8] sm:$0xff]  }
  0x5d   : > { %4078 = vmatpush3.bf16.msra.mxu0 %v4541_v0  ;;  %v5182_v0 = vsel %vm952_vm1, %v963_v54, %v967_v41  ;;  %v4556_v54 = vld [vmem:[%s6121_s1 + $0x278] sm:$0xff]  }
  0x5e   : > { %835 = vmatmul.mubr.bf16.gmra.mrb[24].mxu1 %v4800_v42  ;;  %v4542_v42 = vld [vmem:[%s6121_s1 + $0x1e0] sm:$0xff]   ;;  %4079 = vmatprep.subr.bf16.mxu0 %v4544_v62  ;;  %v4551_v62 = vld [vmem:[%s6121_s1 + $0x1b0] sm:$0xff]  }
  0x5f   : > { %842 = vmatprep.mubr.bf16.mxu1 %v4858_v15  ;;  %4006 = vmatpush3.bf16.msra.mxu1 %v4535_v28  ;;  %v4545_v15 = vld [vmem:[%s6121_s1 + $0x220] sm:$0xff]   ;;  %v4549_v28 = vld [vmem:[%s6121_s1 + $0x228] sm:$0xff]  }
  0x60   : > { %4007 = vmatprep.subr.bf16.mxu1 %v4538_v59  ;;  %1154 = vmatmul.mubr.bf16.gmra.mrb[24].mxu0 %v5146_v8  ;;  %v4552_v59 = vld [vmem:[%s6121_s1 + $0x270] sm:$0xff]  }
  0x61   : > { %1161 = vmatprep.mubr.bf16.mxu0 %v5152_v61  ;;  %4080 = vmatpush3.bf16.msra.mxu0 %v4545_v15  ;;  %v4554_v15 = vld [vmem:[%s6121_s1 + $0x1f8] sm:$0xff]  }
  0x62   : > { %4081 = vmatprep.subr.bf16.mxu0 %v4548_v63  ;;  %v4555_v63 = vld [vmem:[%s6121_s1 + $0x1b8] sm:$0xff]  }
  0x63   : > { %4008 = vmatpush3.bf16.msra.mxu1 %v4539_v1  ;;  %v5188_v1 = vsel %vm952_vm1, %v969_v32, %v973_v33  ;;  %v971_v32 = vrot.slane %v4732_v14, 1  ;;  %v4560_v14 = vld [vmem:[%s6121_s1 + $0x340] sm:$0xff]  }
  0x64   : > { %4009 = vmatprep.subr.bf16.mxu1 %v4542_v42  ;;  %v977_v42 = vrot.slane %v4785_v35, 1 }
  0x65   : > { %4082 = vmatpush3.bf16.msra.mxu0 %v4549_v28 }
  0x66   : > { %843 = vmatmul.mubr.bf16.gmra.mrb[28].mxu1 %v4876_v31  ;;  %v4550_v31 = vld [vmem:[%s6121_s1 + $0x1f0] sm:$0xff]   ;;  %4083 = vmatprep.subr.bf16.mxu0 %v4552_v59  ;;  %v5224_v28 = vsel %vm952_vm1, %v973_v33, %v977_v42  ;;  %v979_v59 = vrot.slane %v4889_v43, 1 }
  0x67   : > { %850 = vmatprep.mubr.bf16.mxu1 %v4939_v7  ;;  %4010 = vmatpush3.bf16.msra.mxu1 %v4543_v22  ;;  %v4553_v7 = vld [vmem:[%s6121_s1 + $0x230] sm:$0xff]   ;;  %v4557_v22 = vld [vmem:[%s6121_s1 + $0x238] sm:$0xff]  }
  0x68   : > { %4011 = vmatprep.subr.bf16.mxu1 %v4546_v36  ;;  %1162 = vmatmul.mubr.bf16.gmra.mrb[28].mxu0 %v5182_v0  ;;  %v5218_v36 = vsel %vm952_vm1, %v967_v41, %v971_v32  ;;  %v981_v41 = vrot.slane %v4865_v23, 1 }
  0x69   : > { %1169 = vmatprep.mubr.bf16.mxu0 %v5188_v1  ;;  %4084 = vmatpush3.bf16.msra.mxu0 %v4553_v7  ;;  %v5245_v7 = vld [vmem:[%s4717_s10 + $0x50] ss:$8 sps:$4 sm:$0xff]  }
  0x6a   : > { %4085 = vmatprep.subr.bf16.mxu0 %v4556_v54  ;;  %v989_v54 = vrot.slane %v5021_v57, 1  ;;  %v987_v57 = vrot.slane %v5029_v51, 1  ;;  %v1552_v51 = vrot.slane %v4992_v30, 1 }
  0x6b   : > { %4012 = vmatpush3.bf16.msra.mxu1 %v4547_v19  ;;  %v5236_v19 = vsel %vm952_vm1, %v977_v42, %v981_v41  ;;  %v1544_v42 = vrot.slane %v4926_v2, 1 }
  0x6c   : > { %4013 = vmatprep.subr.bf16.mxu1 %v4550_v31  ;;  %v5242_v31 = vrot.slane %v4945_v21, 1 }
  0x6d   : > { %4086 = vmatpush3.bf16.msra.mxu0 %v4557_v22 }
  0x6e   : > { %851 = vmatmul.mubr.bf16.gmra.mrb[32].mxu1 %v4948_v24  ;;  %v4558_v24 = vld [vmem:[%s6121_s1 + $0x2c0] sm:$0xff]   ;;  %4211 = vmatprep.subr.bf16.mxu0 %v4560_v14 }
  0x6f   : > { %858 = vmatprep.mubr.bf16.mxu1 %v4723_v11  ;;  %4014 = vmatpush3.bf16.msra.mxu1 %v4551_v62  ;;  %v975_v11 = vrot.slane %v4809_v47, 1  ;;  %v5259_v62 = vrot.slane %v4955_v39, 1 }
  0x70   : > { %4015 = vmatprep.subr.bf16.mxu1 %v4554_v15  ;;  %1170 = vmatmul.mubr.bf16.gmra.mrb[32].mxu0 %v5218_v36  ;;  %v1545_v15 = vrot.slane %v4870_v27, 2 }
  0x71   : > { %1177 = vmatprep.mubr.bf16.mxu0 %v5224_v28  ;;  %v5233_v33 = vsel %vm952_vm1, %v971_v32, %v975_v11  ;;  %v990_v32 = vsel %vm952_vm1, %v5242_v31, %v989_v54  ;;  %v4564_v54 = vld [vmem:[%s6121_s1 + $0x348] sm:$0xff]  }
  0x72   : > { %v1546_v22 = vor.u32 %v1545_v15, %v1544_v42  ;;  %v4565_v42 = vld [vmem:[%s6121_s1 + $0x308] sm:$0xff]  }
  0x73   : > { %4016 = vmatpush3.bf16.msra.mxu1 %v4555_v63  ;;  %v1538_v63 = vrot.slane %v4896_v49, 2 }
  0x74   : > { %4141 = vmatprep.subr.bf16.mxu1 %v4558_v24  ;;  %v1547_v14 = vsel %vm1533_vm2, %v1543_v52, %v1546_v22  ;;  %v1553_v24 = vrot.slane %v4952_v38, 2  ;;  %v4561_v52 = vld [vmem:[%s6121_s1 + $0x300] sm:$0xff]  }
  0x76   : > { %859 = vmatmul.mubr.bf16.gmra.mrb[36].mxu1 %v4729_v13  ;;  %v5254_v13 = vsel %vm952_vm1, %v981_v41, %v5242_v31  ;;  %v1549_v41 = vrot.slane %v4966_v46, 2 }
  0x77   : > { %866 = vmatprep.mubr.bf16.mxu1 %v4726_v12  ;;  %v5250_v12 = vsel %vm952_vm1, %v975_v11, %v979_v59  ;;  %v1548_v11 = vrot.slane %v5006_v3, 1 }
  0x78   : > { %1178 = vmatmul.mubr.bf16.gmra.mrb[36].mxu0 %v5233_v33 }
  0x79   : > { %1185 = vmatprep.mubr.bf16.mxu0 %v5236_v19  ;;  %v1550_v15 = vor.u32 %v1549_v41, %v1548_v11  ;;  %v4569_v41 = vld [vmem:[%s6121_s1 + $0x310] sm:$0xff]  }
  0x7e   : > { %867 = vmatmul.mubr.bf16.gmra.mrb[40].mxu1 %v5245_v7 }
  0x7f   : > { %874 = vmatprep.mubr.bf16.mxu1 %v4785_v35  ;;  %v5266_v35 = vsel %vm952_vm1, %v979_v59, %v5259_v62  ;;  %v1560_v59 = vrot.slane %v4741_v17, 1 }
  0x80   : > { %1186 = vmatmul.mubr.bf16.gmra.mrb[40].mxu0 %v5250_v12 }
  0x81   : > { %1193 = vmatprep.mubr.bf16.mxu0 %v5254_v13 }
  0x86   : > { %875 = vmatmul.mubr.bf16.gmra.mrb[44].mxu1 %v4809_v47  ;;  %v988_v47 = vsel %vm952_vm1, %v5259_v62, %v987_v57  ;;  %v4568_v57 = vld [vmem:[%s6121_s1 + $0x350] sm:$0xff]  }
  0x87   : > { %882 = vmatprep.mubr.bf16.mxu1 %v4865_v23  ;;  %v1537_v23 = vrot.slane %v4935_v5, 1 }
  0x88   : > { %1194 = vmatmul.mubr.bf16.gmra.mrb[44].mxu0 %v5266_v35 }
  0x89   : > { %1201 = vmatprep.mubr.bf16.mxu0 %v990_v32  ;;  %v191_v32 = vld [vmem:[%s4717_s10 + $0x98] sm:$0xff] }
  0x8a   : > { %v5329_v11 = vcombine.high %v5009_v6, %v191_v32 }
  0x8c   : > { %6170 = vst [vmem:[#allocation11_spill] sm:$0xff] %v5329_v11 }
  0x8e   : > { %883 = vmatmul.mubr.bf16.gmra.mrb[48].mxu1 %v4889_v43  ;;  %v1539_v43 = vor.u32 %v1538_v63, %v1537_v23  ;;  %v192_v23 = vld [vmem:[%s4717_s10 + $0xa0] sm:$0xff]  ;;  %v4563_v63 = vld [vmem:[%s6121_s1 + $0x288] sm:$0xff]  }
  0x8f   : > { %890 = vmatprep.mubr.bf16.mxu1 %v4945_v21  ;;  %v1554_v21 = vor.u32 %v1553_v24, %v1552_v51  ;;  %v4566_v51 = vld [vmem:[%s6121_s1 + $0x2d0] sm:$0xff]   ;;  %v1568_v24 = vrot.slane %v4771_v29, 1 }
  0x90   : > { %1202 = vmatmul.mubr.bf16.gmra.mrb[48].mxu0 %v988_v47  ;;  %v1540_v50 = vsel %vm1533_vm2, %v6169_v45, %v1539_v43  ;;  %v1556_v47 = vrot.slane %v4761_v25, 1  ;;  %v1569_v45 = vrot.slane %v4744_v18, 2 }
  0x91   : > { %1778 = vmatprep.mubr.bf16.mxu0 %v1547_v14  ;;  %v1557_v14 = vrot.slane %v4750_v20, 2 }
  0x96   : > { %891 = vmatmul.mubr.bf16.gmra.mrb[52].mxu1 %v4955_v39  ;;  %v4559_v39 = vld [vmem:[%s6121_s1 + $0x280] sm:$0xff]  }
  0x97   : > { %1409 = vmatprep.mubr.bf16.mxu1 %v5077_v55  ;;  %v1555_v55 = vsel %vm1533_vm2, %v1546_v22, %v1554_v21  ;;  %v1562_v22 = vor.u32 %v1561_v10, %v1560_v59  ;;  %v4567_v59 = vld [vmem:[%s6121_s1 + $0x290] sm:$0xff]   ;;  %v1558_v10 = vor.u32 %v1557_v14, %v1556_v47  ;;  %v4576_v47 = vld [vmem:[%s6121_s1 + $0x360] sm:$0xff]   ;;  %v1564_v14 = vrot.slane %v4825_v56, 1 }
  0x98   : > { %1779 = vmatmul.mubr.bf16.vlgmr.msra.gmra.mrb[52].mxu0 %v1540_v50  ;;  %v5339_v50 = vcombine.low %v5009_v6, %v191_v32 }
  0x99   : > { %4212 = vmatpush3.bf16.msra.mxu0 %v4561_v52  ;;  %1786 = vmatprep.mubr.bf16.mxu0 %v1555_v55  ;;  %v1563_v52 = vsel %vm1533_vm2, %v1554_v21, %v1562_v22  ;;  %v5351_v55 = vrot.slane %v5329_v11, 2 }
  0x9a   : > { %4213 = vmatprep.subr.bf16.mxu0 %v4564_v54  ;;  %6171 = vst [vmem:[#allocation12_spill] sm:$0xff] %v5339_v50  ;;  %v5355_v21 = vrot.slane %v5339_v50, 2 }
  0x9d   : > { %4214 = vmatpush3.bf16.msra.mxu0 %v4565_v42  ;;  %v1570_v42 = vor.u32 %v1569_v45, %v1568_v24  ;;  %v4571_v24 = vld [vmem:[%s6121_s1 + $0x298] sm:$0xff]  }
  0x9e   : > { %1410 = vmatmul.mubr.bf16.vlgmr.msra.gmra.mrb[56].mxu1 %v5108_v53  ;;  %v1551_v53 = vsel %vm1533_vm2, %v1539_v43, %v1550_v15  ;;  %4215 = vmatprep.subr.bf16.mxu0 %v4568_v57  ;;  %v4572_v43 = vld [vmem:[%s6121_s1 + $0x358] sm:$0xff]  }
  0x9f   : > { %4142 = vmatpush3.bf16.msra.mxu1 %v4559_v39  ;;  %1417 = vmatprep.mubr.bf16.mxu1 %v5116_v48  ;;  %v5336_v48 = vcombine.high %v192_v23, %v192_v23  ;;  %v5348_v39 = vcombine.low %v192_v23, %v192_v23  ;;  %v4573_v57 = vld [vmem:[%s6121_s1 + $0x318] sm:$0xff]  }
  0xa0   : > { %4143 = vmatprep.subr.bf16.mxu1 %v4562_v34  ;;  %1787 = vmatmul.mubr.bf16.gmra.mrb[56].mxu0 %v1551_v53  ;;  %v4570_v34 = vld [vmem:[%s6121_s1 + $0x2d8] sm:$0xff]   ;;  %v193_v53 = vld [vmem:[%s4717_s10 + $0xa8] sm:$0xff] }
  0xa1   : > { %v1939_v6 = vrot.slane %v5336_v48, 2  ;;  %v1937_v54 = vrot.slane %v5348_v39, 2  ;;  %1794 = vmatprep.mubr.bf16.mxu0 %v1563_v52  ;;  %4216 = vmatpush3.bf16.msra.mxu0 %v4569_v41  ;;  %v1576_v41 = vrot.slane %v4853_v9, 1  ;;  %v5388_v45 = vcombine.high %v192_v23, %v193_v53 }
  0xa2   : > { %4217 = vmatprep.subr.bf16.mxu0 %v4572_v43  ;;  %v5390_v52 = vcombine.low %v192_v23, %v193_v53  ;;  %v1577_v43 = vrot.slane %v4804_v44, 2  ;;  %v194_v23 = vld [vmem:[%s4717_s10 + $0xb0] sm:$0xff] }
  0xa3   : > { %4144 = vmatpush3.bf16.msra.mxu1 %v4563_v63  ;;  %v5363_v32 = vsel %vm1902_vm3, %v5351_v55, %v1939_v6  ;;  %v5370_v63 = vsel %vm1902_vm3, %v5355_v21, %v1937_v54  ;;  %6172 = vst [vmem:[#allocation13_spill] sm:$0xff] %v5388_v45  ;;  %v4577_v6 = vld [vmem:[%s6121_s1 + $0x320] sm:$0xff]   ;;  %v4578_v54 = vld [vmem:[%s6121_s1 + $0x2e8] sm:$0xff]   ;;  %v5412_v53 = vcombine.low %v194_v23, %v194_v23  ;;  %v6141_v44 = vrot.slane %v5388_v45, 2 }
  0xa4   : > { %4145 = vmatprep.subr.bf16.mxu1 %v4566_v51  ;;  %v1565_v51 = vrot.slane %v4764_v26, 2  ;;  %v6140_v9 = vrot.slane %v5390_v52, 2  ;;  %v1578_v26 = vor.u32 %v1577_v43, %v1576_v41 }
  0xa5   : > { %4218 = vmatpush3.bf16.msra.mxu0 %v4573_v57  ;;  %v5410_v57 = vcombine.high %v194_v23, %v194_v23  ;;  %v4584_v23 = vld [vmem:[%s6121_s1 + $0x370] sm:$0xff]  }
  0xa6   : > { %1418 = vmatmul.mubr.bf16.gmra.mrb[60].mxu1 %v5146_v8  ;;  %v1559_v8 = vsel %vm1533_vm2, %v1550_v15, %v1558_v10  ;;  %v4575_v15 = vld [vmem:[%s6121_s1 + $0x2a0] sm:$0xff]   ;;  %4219 = vmatprep.subr.bf16.mxu0 %v4576_v47  ;;  %v1566_v47 = vor.u32 %v1565_v51, %v1564_v14  ;;  %v4579_v14 = vld [vmem:[%s6121_s1 + $0x2a8] sm:$0xff]   ;;  %v1579_v43 = vsel %vm1533_vm2, %v1570_v42, %v1578_v26 }
  0xa7   : > { %1425 = vmatprep.mubr.bf16.mxu1 %v5152_v61  ;;  %4146 = vmatpush3.bf16.msra.mxu1 %v4567_v59  ;;  %v4574_v61 = vld [vmem:[%s6121_s1 + $0x2e0] sm:$0xff]   ;;  %v1571_v59 = vsel %vm1533_vm2, %v1562_v22, %v1570_v42  ;;  %v4580_v22 = vld [vmem:[%s6121_s1 + $0x368] sm:$0xff]   ;;  %v4583_v42 = vld [vmem:[%s6121_s1 + $0x2b0] sm:$0xff]  }
  0xa8   : > { %4147 = vmatprep.subr.bf16.mxu1 %v4570_v34  ;;  %1795 = vmatmul.mubr.bf16.gmra.mrb[60].mxu0 %v1559_v8  ;;  %v4581_v34 = vld [vmem:[%s6121_s1 + $0x328] sm:$0xff]   ;;  %v2225_v8 = vrot.slane %v5410_v57, 2  ;;  %v1567_v41 = vsel %vm1533_vm2, %v1558_v10, %v1566_v47  ;;  %v4585_v10 = vld [vmem:[%s6121_s1 + $0x330] sm:$0xff]  }
  0xa9   : > { %1802 = vmatprep.mubr.bf16.mxu0 %v1571_v59  ;;  %4220 = vmatpush3.bf16.msra.mxu0 %v4577_v6  ;;  %v4582_v59 = vld [vmem:[%s6121_s1 + $0x2f0] sm:$0xff]   ;;  %v1585_v6 = vrot.slane %v4886_v40, 2 }
  0xaa   : > { %4221 = vmatprep.subr.bf16.mxu0 %v4580_v22  ;;  %v5429_v51 = vsel %vm1902_vm3, %v6141_v44, %v2225_v8  ;;  %v1588_v44 = vrot.slane %v5012_v58, 1  ;;  %v4597_v58 = vld [vmem:[%s6121_s1 + $0x388] sm:$0xff]  }
  0xab   : > { %4148 = vmatpush3.bf16.msra.mxu1 %v4571_v24  ;;  %v2223_v24 = vrot.slane %v5412_v53, 2 }
  0xac   : > { %4149 = vmatprep.subr.bf16.mxu1 %v4574_v61  ;;  %v1572_v61 = vrot.slane %v4881_v37, 1 }
  0xad   : > { %4222 = vmatpush3.bf16.msra.mxu0 %v4581_v34  ;;  %v4587_v34 = vld [vmem:[%s6121_s1 + $0x2f8] sm:$0xff]  }
  0xae   : > { %1426 = vmatmul.mubr.bf16.gmra.mrb[64].mxu1 %v5182_v0  ;;  %v5434_v0 = vsel %vm1902_vm3, %v6140_v9, %v2223_v24  ;;  %4223 = vmatprep.subr.bf16.mxu0 %v4584_v23  ;;  %v4591_v24 = vld [vmem:[%s6121_s1 + $0x338] sm:$0xff]   ;;  %v4594_v23 = vld [vmem:[%s6121_s1 + $0x440] sm:$0xff]   ;;  %v6144_v9 = vshll.u32 %v5329_v11, 16 }
  0xaf   : > { %1433 = vmatprep.mubr.bf16.mxu1 %v5188_v1  ;;  %4150 = vmatpush3.bf16.msra.mxu1 %v4575_v15  ;;  %v1573_v1 = vrot.slane %v4829_v60, 2  ;;  %v1584_v15 = vrot.slane %v4932_v4, 1 }
  0xb0   : > { %4151 = vmatprep.subr.bf16.mxu1 %v4578_v54  ;;  %v4590_v54 = vld [vmem:[%s6121_s1 + $0x378] sm:$0xff]   ;;  %1803 = vmatmul.mubr.bf16.gmra.mrb[64].mxu0 %v1567_v41 }
  0xb1   : > { %1810 = vmatprep.mubr.bf16.mxu0 %v1579_v43  ;;  %v1574_v22 = vor.u32 %v1573_v1, %v1572_v61  ;;  %v1586_v8 = vor.u32 %v1585_v6, %v1584_v15  ;;  %4224 = vmatpush3.bf16.msra.mxu0 %v4585_v10  ;;  %v6173_v61 = vld [vmem:[#allocation6_spill] sm:$0xff]  ;;  %v6175_v6 = vld [vmem:[#allocation9_spill] sm:$0xff]  ;;  %v6176_v10 = vld [vmem:[#allocation7_spill] sm:$0xff] }
  0xb2   : > { %4225 = vmatprep.subr.bf16.mxu0 %v4590_v54  ;;  %v1580_v1 = vrot.slane %v6173_v61, 1  ;;  %v1593_v54 = vrot.slane %v6176_v10, 2  ;;  %v2568_v10 = vshll.u32 %v5412_v53, 16 }
  0xb3   : > { %4152 = vmatpush3.bf16.msra.mxu1 %v4579_v14  ;;  %v4589_v14 = vld [vmem:[%s6121_s1 + $0x2b8] sm:$0xff]   ;;  %v1575_v41 = vsel %vm1533_vm2, %v1566_v47, %v1574_v22  ;;  %v1587_v15 = vsel %vm1533_vm2, %v1578_v26, %v1586_v8 }
  0xb4   : > { %4153 = vmatprep.subr.bf16.mxu1 %v4582_v59  ;;  %v6174_v59 = vld [vmem:[#allocation5_spill] sm:$0xff] }
  0xb5   : > { %v1581_v43 = vrot.slane %v6174_v59, 2  ;;  %4226 = vmatpush3.bf16.msra.mxu0 %v4591_v24  ;;  %v6177_v24 = vld [vmem:[#allocation8_spill] sm:$0xff] }
  0xb6   : > { %1434 = vmatmul.mubr.bf16.gmra.mrb[68].mxu1 %v5218_v36  ;;  %v4592_v36 = vld [vmem:[%s6121_s1 + $0x3c0] sm:$0xff]   ;;  %4351 = vmatprep.subr.bf16.mxu0 %v4594_v23  ;;  %v1589_v23 = vrot.slane %v6177_v24, 2  ;;  %v2577_v24 = vshll.u32 %v5410_v57, 16 }
  0xb7   : > { %1441 = vmatprep.mubr.bf16.mxu1 %v5224_v28  ;;  %4154 = vmatpush3.bf16.msra.mxu1 %v4583_v42  ;;  %v1592_v28 = vrot.slane %v6175_v6, 1  ;;  %v1582_v47 = vor.u32 %v1581_v43, %v1580_v1  ;;  %v1611_v1 = vrot.slane %v6144_v9, 2 }
  0xb8   : > { %4155 = vmatprep.subr.bf16.mxu1 %v4587_v34  ;;  %1811 = vmatmul.mubr.bf16.gmra.mrb[68].mxu0 %v1575_v41  ;;  %v6145_v34 = vshrl.u32 %v5329_v11, 16  ;;  %v1590_v43 = vor.u32 %v1589_v23, %v1588_v44 }
  0xb9   : > { %1818 = vmatprep.mubr.bf16.mxu0 %v1587_v15  ;;  %v1594_v42 = vor.u32 %v1593_v54, %v1592_v28  ;;  %v1583_v26 = vsel %vm1533_vm2, %v1574_v22, %v1582_v47  ;;  %v1627_v15 = vshll.u32 %v5336_v48, 16  ;;  %v1271_v28 = vrot.slane %v5329_v11, 1 }
  0xba   : > { %v1608_v41 = vrot.slane %v6145_v34, 1  ;;  %v2574_v11 = vshrl.u32 %v5410_v57, 16 }
  0xbb   : > { %4156 = vmatpush3.bf16.msra.mxu1 %v4589_v14  ;;  %v1595_v14 = vsel %vm1533_vm2, %v1586_v8, %v1594_v42  ;;  %v1591_v8 = vsel %vm1533_vm2, %v1582_v47, %v1590_v43  ;;  %v1615_v47 = vshrl.u32 %v5348_v39, 16 }
  0xbc   : > { %4281 = vmatprep.subr.bf16.mxu1 %v4592_v36  ;;  %v1612_v22 = vor.u32 %v1611_v1, %v1608_v41  ;;  %v1624_v36 = vshrl.u32 %v5336_v48, 16  ;;  %v1618_v41 = vshll.u32 %v5348_v39, 16 }
  0xbe   : > { %1442 = vmatmul.mubr.bf16.gmra.mrb[72].mxu1 %v5233_v33  ;;  %v6143_v33 = vshrl.u32 %v5339_v50, 16  ;;  %v1626_v23 = vrot.slane %v1624_v36, 1 }
  0xbf   : > { %1449 = vmatprep.mubr.bf16.mxu1 %v5236_v19  ;;  %v6142_v19 = vshll.u32 %v5339_v50, 16 }
  0xc0   : > { %1819 = vmatmul.mubr.bf16.gmra.mrb[72].mxu0 %v1583_v26  ;;  %v1599_v44 = vrot.slane %v6143_v33, 1  ;;  %v1613_v26 = vsel %vm1533_vm2, %v1594_v42, %v1612_v22  ;;  %v1269_v42 = vrot.slane %v5339_v50, 1 }
  0xc1   : > { %1826 = vmatprep.mubr.bf16.mxu0 %v1595_v14  ;;  %v1602_v54 = vrot.slane %v6142_v19, 2  ;;  %v1629_v14 = vrot.slane %v1627_v15, 2  ;;  %v1275_v15 = vrot.slane %v5336_v48, 1  ;;  %v5519_v48 = vld [vmem:[%s4717_s10 + $0x34] ss:$8 sps:$4 sm:$0xff]   ;;  %v4596_v19 = vld [vmem:[%s6121_s1 + $0x3c8] sm:$0xff]  }
  0xc3   : > { %v1630_v1 = vor.u32 %v1629_v14, %v1626_v23  ;;  %v5515_v23 = vld [vmem:[%s4717_s10 + $0x24] ss:$8 sps:$4 sm:$0xff]   ;;  %v1911_v14 = vrot.slane %v5519_v48, 2 }
  0xc6   : > { %1450 = vmatmul.mubr.bf16.gmra.mrb[76].mxu1 %v5250_v12  ;;  %v1272_v12 = vsel %vm952_vm1, %v5242_v31, %v1271_v28  ;;  %v1620_v31 = vrot.slane %v1618_v41, 2 }
  0xc7   : > { %1457 = vmatprep.mubr.bf16.mxu1 %v5254_v13  ;;  %v1603_v13 = vor.u32 %v1602_v54, %v1599_v44  ;;  %v1631_v44 = vsel %vm1533_vm2, %v1612_v22, %v1630_v1  ;;  %v1270_v54 = vsel %vm952_vm1, %v5259_v62, %v1269_v42  ;;  %v1273_v62 = vrot.slane %v5348_v39, 1 }
  0xc8   : > { %1827 = vmatmul.mubr.bf16.gmra.mrb[76].mxu0 %v1591_v8  ;;  %v1617_v8 = vrot.slane %v1615_v47, 1 }
  0xc9   : > { %1834 = vmatprep.mubr.bf16.mxu0 %v1613_v26  ;;  %v1604_v36 = vsel %vm1533_vm2, %v1590_v43, %v1603_v13  ;;  %v1276_v26 = vsel %vm952_vm1, %v1271_v28, %v1275_v15  ;;  %v1907_v43 = vrot.slane %v5515_v23, 2  ;;  %v4631_v28 = vld [vmem:[%s4717_s10 + $0x14] ss:$8 sps:$4 sm:$0xff]   ;;  %v1274_v41 = vsel %vm952_vm1, %v1269_v42, %v1273_v62  ;;  %v4635_v42 = vld [vmem:[%s4717_s10 + $0x10] ss:$8 sps:$4 sm:$0xff]  }
  0xcb   : > { %v1912_v47 = vsel %vm1902_vm3, %v1907_v43, %v1911_v14 }
  0xce   : > { %1458 = vmatmul.mubr.bf16.gmra.mrb[80].mxu1 %v5266_v35  ;;  %v1621_v35 = vor.u32 %v1620_v31, %v1617_v8  ;;  %v5533_v8 = vld [vmem:[%s4717_s10 + $0x30] ss:$8 sps:$4 sm:$0xff]  }
  0xcf   : > { %1465 = vmatprep.mubr.bf16.mxu1 %v1272_v12  ;;  %v1906_v12 = vrot.slane %v4631_v28, 2  ;;  %v1909_v39 = vrot.slane %v5533_v8, 2  ;;  %v2556_v28 = vshrl.u32 %v5388_v45, 16 }
  0xd0   : > { %1835 = vmatmul.mubr.bf16.gmra.mrb[80].mxu0 %v1604_v36  ;;  %v1622_v22 = vsel %vm1533_vm2, %v1603_v13, %v1621_v35  ;;  %v5529_v36 = vld [vmem:[%s4717_s10 + $0x20] ss:$8 sps:$4 sm:$0xff]   ;;  %v5537_v13 = vld [vmem:[%s4717_s10 + $0x44] ss:$8 sps:$4 sm:$0xff]  }
  0xd1   : > { %1842 = vmatprep.mubr.bf16.mxu0 %v1631_v44  ;;  %v1908_v1 = vsel %vm1902_vm3, %v1906_v12, %v1907_v43  ;;  %v1904_v15 = vrot.slane %v5529_v36, 2  ;;  %v1915_v31 = vrot.slane %v5537_v13, 2  ;;  %v1903_v44 = vrot.slane %v4635_v42, 2  ;;  %v5551_v43 = vld [vmem:[%s4717_s10 + $0x40] ss:$8 sps:$4 sm:$0xff]  }
  0xd2   : > { %v6151_v62 = vrot.slane %v5551_v43, 2  ;;  %v2559_v12 = vshll.u32 %v5388_v45, 16  ;;  %v2550_v42 = vshll.u32 %v5390_v52, 16  ;;  %v2558_v34 = vrot.slane %v2556_v28, 2 }
  0xd3   : > { %v5548_v35 = vsel %vm1902_vm3, %v1911_v14, %v1915_v31  ;;  %v4593_v14 = vld [vmem:[%s6121_s1 + $0x380] sm:$0xff]  }
  0xd4   : > { %v5580_v9 = vsel %vm1902_vm3, %v1909_v39, %v6151_v62  ;;  %v2561_v50 = vrot.slane %v2559_v12, 3  ;;  %v2552_v62 = vrot.slane %v2550_v42, 3  ;;  %v4600_v12 = vld [vmem:[%s6121_s1 + $0x3d0] sm:$0xff]   ;;  %v2889_v42 = vrot.slane %v5410_v57, 3 }
  0xd5   : > { %v4601_v57 = vld [vmem:[%s6121_s1 + $0x390] sm:$0xff]  }
  0xd6   : > { %1466 = vmatmul.mubr.bf16.gmra.mrb[84].mxu1 %v1270_v54  ;;  %v5542_v54 = vsel %vm1902_vm3, %v1904_v15, %v1909_v39  ;;  %v5604_v6 = vor.u32 %v2561_v50, %v2558_v34 }
  0xd7   : > { %1473 = vmatprep.mubr.bf16.mxu1 %v1276_v26  ;;  %v4595_v26 = vld [vmem:[%s6121_s1 + $0x400] sm:$0xff]  }
  0xd8   : > { %1843 = vmatmul.mubr.bf16.gmra.mrb[84].mxu0 %v1622_v22  ;;  %v4598_v22 = vld [vmem:[%s6121_s1 + $0x448] sm:$0xff]   ;;  %6178 = vst [vmem:[#allocation6_spill] sm:$0xff] %v5604_v6 }
  0xd9   : > { %2359 = vmatprep.mubr.bf16.mxu0 %v1912_v47 }
  0xde   : > { %1474 = vmatmul.mubr.bf16.gmra.mrb[88].mxu1 %v1274_v41  ;;  %v1905_v41 = vsel %vm1902_vm3, %v1903_v44, %v1904_v15  ;;  %v4599_v15 = vld [vmem:[%s6121_s1 + $0x408] sm:$0xff]   ;;  %v5574_v44 = vld [vmem:[%s4717_s10 + $0x54] ss:$8 sps:$4 sm:$0xff]  }
  0xdf   : > { %2087 = vmatprep.mubr.bf16.mxu1 %v1908_v1  ;;  %v2547_v1 = vshrl.u32 %v5390_v52, 16  ;;  %v1919_v33 = vrot.slane %v5574_v44, 2 }
  0xe0   : > { %2360 = vmatmul.mubr.bf16.vlgmr.msra.gmra.mrb[88].mxu0 %v5542_v54 }
  0xe1   : > { %4352 = vmatpush3.bf16.msra.mxu0 %v4595_v26  ;;  %2367 = vmatprep.mubr.bf16.mxu0 %v5548_v35  ;;  %v4602_v26 = vld [vmem:[%s6121_s1 + $0x450] sm:$0xff]   ;;  %v2549_v39 = vrot.slane %v2547_v1, 2  ;;  %v1920_v28 = vsel %vm1902_vm3, %v1915_v31, %v1919_v33  ;;  %v6153_v1 = vrot.slane %v5388_v45, 3  ;;  %v4606_v31 = vld [vmem:[%s6121_s1 + $0x458] sm:$0xff]  }
  0xe2   : > { %4353 = vmatprep.subr.bf16.mxu0 %v4598_v22  ;;  %v2565_v22 = vshrl.u32 %v5412_v53, 16 }
  0xe3   : > { %v5617_v50 = vsel %vm2852_vm4, %v6153_v1, %v2889_v42  ;;  %v6184_v42 = vrot.slane %v5551_v43, 2 }
  0xe4   : > { %6180 = vst [vmem:[#allocation14_spill] sm:$0xff] %v5617_v50 }
  0xe5   : > { %4354 = vmatpush3.bf16.msra.mxu0 %v4599_v15  ;;  %v2570_v15 = vrot.slane %v2568_v10, 3  ;;  %v5612_v10 = vor.u32 %v2552_v62, %v2549_v39  ;;  %v5633_v39 = vld [vmem:[%s4717_s10 + $0x64] ss:$8 sps:$4 sm:$0xff]  }
  0xe6   : > { %2088 = vmatmul.mubr.bf16.vlgmr.msra.gmra.mrb[92].mxu1 %v1905_v41  ;;  %v2579_v41 = vrot.slane %v2577_v24, 3  ;;  %4355 = vmatprep.subr.bf16.mxu0 %v4602_v26  ;;  %v2887_v26 = vrot.slane %v5412_v53, 3 }
  0xe7   : > { %4282 = vmatpush3.bf16.msra.mxu1 %v4593_v14  ;;  %2095 = vmatprep.mubr.bf16.mxu1 %v1912_v47  ;;  %v2576_v47 = vrot.slane %v2574_v11, 2  ;;  %v4603_v14 = vld [vmem:[%s6121_s1 + $0x410] sm:$0xff]   ;;  %v6152_v11 = vrot.slane %v5390_v52, 3  ;;  %6179 = vst [vmem:[#allocation5_spill] sm:$0xff] %v5612_v10 }
  0xe8   : > { %4283 = vmatprep.subr.bf16.mxu1 %v4596_v19  ;;  %v2567_v19 = vrot.slane %v2565_v22, 2  ;;  %2368 = vmatmul.mubr.bf16.gmra.mrb[92].mxu0 %v5580_v9  ;;  %v1917_v22 = vrot.slane %v5245_v7, 2  ;;  %v4607_v7 = vld [vmem:[%s6121_s1 + $0x418] sm:$0xff]  }
  0xe9   : > { %v2580_v24 = vor.u32 %v2579_v41, %v2576_v47  ;;  %2375 = vmatprep.mubr.bf16.mxu0 %v1920_v28  ;;  %v5630_v62 = vsel %vm2852_vm4, %v6152_v11, %v2887_v26  ;;  %4356 = vmatpush3.bf16.msra.mxu0 %v4603_v14  ;;  %v1923_v47 = vrot.slane %v5633_v39, 2  ;;  %v4610_v41 = vld [vmem:[%s6121_s1 + $0x460] sm:$0xff]   ;;  %v4605_v14 = vld [vmem:[%s6121_s1 + $0x398] sm:$0xff]  }
  0xea   : > { %v2571_v34 = vor.u32 %v2570_v15, %v2567_v19  ;;  %6182 = vst [vmem:[#allocation16_spill] sm:$0xff] %v5630_v62  ;;  %4357 = vmatprep.subr.bf16.mxu0 %v4606_v31  ;;  %v1918_v19 = vsel %vm1902_vm3, %v6184_v42, %v1917_v22  ;;  %v4614_v31 = vld [vmem:[%s6121_s1 + $0x468] sm:$0xff]  }
  0xeb   : > { %4284 = vmatpush3.bf16.msra.mxu1 %v4597_v58  ;;  %v4604_v58 = vld [vmem:[%s6121_s1 + $0x3d8] sm:$0xff]   ;;  %v5625_v53 = vsel %vm2483_vm5, %v5604_v6, %v2580_v24  ;;  %v1924_v15 = vsel %vm1902_vm3, %v1919_v33, %v1923_v47  ;;  %v4609_v24 = vld [vmem:[%s6121_s1 + $0x3a0] sm:$0xff]  }
  0xec   : > { %4285 = vmatprep.subr.bf16.mxu1 %v4600_v12  ;;  %6181 = vst [vmem:[#allocation15_spill] sm:$0xff] %v5625_v53  ;;  %v5641_v12 = vsel %vm2483_vm5, %v5612_v10, %v2571_v34  ;;  %v5668_v26 = vld [vmem:[%s4717_s10 + $0x60] ss:$8 sps:$4 sm:$0xff]   ;;  %v5675_v34 = vld [vmem:[%s4717_s10 + $0x74] ss:$8 sps:$4 sm:$0xff]  }
  0xed   : > { %6183 = vst [vmem:[#allocation17_spill] sm:$0xff] %v5641_v12  ;;  %4358 = vmatpush3.bf16.msra.mxu0 %v4607_v7  ;;  %v1921_v33 = vrot.slane %v5668_v26, 2  ;;  %v4615_v7 = vld [vmem:[%s6121_s1 + $0x428] sm:$0xff]  }
  0xee   : > { %2096 = vmatmul.mubr.bf16.gmra.mrb[96].mxu1 %v5542_v54  ;;  %v4608_v54 = vld [vmem:[%s6121_s1 + $0x3e0] sm:$0xff]   ;;  %4359 = vmatprep.subr.bf16.mxu0 %v4610_v41  ;;  %v4620_v41 = vld [vmem:[%s6121_s1 + $0x470] sm:$0xff]  }
  0xef   : > { %2103 = vmatprep.mubr.bf16.mxu1 %v5548_v35  ;;  %4286 = vmatpush3.bf16.msra.mxu1 %v4601_v57  ;;  %v4611_v35 = vld [vmem:[%s6121_s1 + $0x420] sm:$0xff]   ;;  %v4612_v57 = vld [vmem:[%s6121_s1 + $0x3e8] sm:$0xff]   ;;  %v1922_v42 = vsel %vm1902_vm3, %v1917_v22, %v1921_v33  ;;  %v4618_v22 = vld [vmem:[%s6121_s1 + $0x3b0] sm:$0xff]  }
  0xf0   : > { %4287 = vmatprep.subr.bf16.mxu1 %v4604_v58  ;;  %2376 = vmatmul.mubr.bf16.gmra.mrb[96].mxu0 %v1918_v19  ;;  %v1927_v58 = vrot.slane %v5675_v34, 2 }
  0xf1   : > { %2383 = vmatprep.mubr.bf16.mxu0 %v1924_v15  ;;  %4360 = vmatpush3.bf16.msra.mxu0 %v4611_v35  ;;  %v4626_v35 = vld [vmem:[%s6121_s1 + $0x478] sm:$0xff]  }
  0xf2   : > { %4361 = vmatprep.subr.bf16.mxu0 %v4614_v31  ;;  %v5703_v31 = vld [vmem:[%s4717_s10 + $0x70] ss:$8 sps:$4 sm:$0xff]  }
  0xf3   : > { %4288 = vmatpush3.bf16.msra.mxu1 %v4605_v14  ;;  %v4613_v14 = vld [vmem:[%s6121_s1 + $0x3a8] sm:$0xff]  }
  0xf4   : > { %4289 = vmatprep.subr.bf16.mxu1 %v4608_v54  ;;  %v1928_v54 = vsel %vm1902_vm3, %v1923_v47, %v1927_v58  ;;  %v1925_v47 = vrot.slane %v5703_v31, 2 }
  0xf5   : > { %4362 = vmatpush3.bf16.msra.mxu0 %v4615_v7 }
  0xf6   : > { %2104 = vmatmul.mubr.bf16.gmra.mrb[100].mxu1 %v5580_v9  ;;  %v4616_v9 = vld [vmem:[%s6121_s1 + $0x3f0] sm:$0xff]   ;;  %4363 = vmatprep.subr.bf16.mxu0 %v4620_v41  ;;  %v4627_v41 = vld [vmem:[%s6121_s1 + $0x438] sm:$0xff]  }
  0xf7   : > { %2111 = vmatprep.mubr.bf16.mxu1 %v1920_v28  ;;  %4290 = vmatpush3.bf16.msra.mxu1 %v4609_v24  ;;  %v4621_v28 = vld [vmem:[%s6121_s1 + $0x430] sm:$0xff]   ;;  %v4623_v24 = vld [vmem:[%s6121_s1 + $0x3f8] sm:$0xff]  }
  0xf8   : > { %4291 = vmatprep.subr.bf16.mxu1 %v4612_v57  ;;  %2384 = vmatmul.mubr.bf16.gmra.mrb[100].mxu0 %v1922_v42  ;;  %v5710_v57 = vld [vmem:[%s4717_s10 + $0x84] ss:$8 sps:$4 sm:$0xff]  }
  0xf9   : > { %2391 = vmatprep.mubr.bf16.mxu0 %v1928_v54  ;;  %v1931_v7 = vrot.slane %v5710_v57, 2  ;;  %4364 = vmatpush3.bf16.msra.mxu0 %v4621_v28 }
  0xfa   : > { %4365 = vmatprep.subr.bf16.mxu0 %v4626_v35 }
  0xfb   : > { %4292 = vmatpush3.bf16.msra.mxu1 %v4613_v14  ;;  %v4625_v14 = vld [vmem:[%s6121_s1 + $0x3b8] sm:$0xff]   ;;  %v1932_v1 = vsel %vm1902_vm3, %v1927_v58, %v1931_v7  ;;  %v1936_v50 = vsel %vm1902_vm3, %v1931_v7, %v5351_v55 }
  0xfc   : > { %4293 = vmatprep.subr.bf16.mxu1 %v4616_v9  ;;  %v1926_v9 = vsel %vm1902_vm3, %v1921_v33, %v1925_v47 }
  0xfd   : > { %4366 = vmatpush3.bf16.msra.mxu0 %v4627_v41 }
  0xfe   : > { %2112 = vmatmul.mubr.bf16.gmra.mrb[104].mxu1 %v1918_v19 }
  0xff   : > { %2119 = vmatprep.mubr.bf16.mxu1 %v1924_v15  ;;  %4294 = vmatpush3.bf16.msra.mxu1 %v4618_v22  ;;  %v5724_v22 = vld [vmem:[%s4717_s10 + $0x80] ss:$8 sps:$4 sm:$0xff]  }
 0x100   : > { %4295 = vmatprep.subr.bf16.mxu1 %v4623_v24  ;;  %2392 = vmatmul.mubr.bf16.gmra.mrb[104].mxu0 %v1926_v9  ;;  %v1929_v53 = vrot.slane %v5724_v22, 2 }
 0x101   : > { %v3831_v11 = vpop.f32.mrb[0].mxu1  ;;  %v3807_v19 = vpop.f32.mrb[0].mxu0  ;;  %2399 = vmatprep.mubr.bf16.mxu0 %v1932_v1 }
 0x102   : > { %v3832_v28 = vpop.f32.mrb[1].mxu1  ;;  %v3808_v35 = vpop.f32.mrb[1].mxu0 }
 0x103   : > { %v5721_v12 = vadd.f32 %v3832_v28, %v3831_v11  ;;  %v3834_v62 = vpop.f32.mrb[2].mxu1  ;;  %4296 = vmatpush3.bf16.msra.mxu1 %v4625_v14  ;;  %v5729_v24 = vadd.f32 %v3808_v35, %v3807_v19  ;;  %v3810_v58 = vpop.f32.mrb[2].mxu0  ;;  %v1930_v28 = vsel %vm1902_vm3, %v1925_v47, %v1929_v53 }
 0x104   : > { %v3835_v15 = vpop.f32.mrb[3].mxu1  ;;  %v3811_v41 = vpop.f32.mrb[3].mxu0 }
 0x105   : > { %6185 = vst [vmem:[#allocation18_spill] sm:$0xff] %v5721_v12  ;;  %v5727_v33 = vadd.f32 %v3835_v15, %v3834_v62  ;;  %v5731_v11 = vadd.f32 %v3811_v41, %v3810_v58  ;;  %v6186_v41 = vrot.slane %v5388_v45, 2  ;;  %v6188_v45 = vrot.slane %v5390_v52, 2 }
 0x106   : > { %2120 = vmatmul.mubr.bf16.gmra.mrb[108].mxu1 %v1922_v42 }
 0x107   : > { %2127 = vmatprep.mubr.bf16.mxu1 %v1928_v54 }
 0x108   : > { %2400 = vmatmul.mubr.bf16.gmra.mrb[108].mxu0 %v1930_v28 }
 0x109   : > { %v3837_v14 = vpop.f32.mrb[4].mxu1  ;;  %v3813_v19 = vpop.f32.mrb[4].mxu0  ;;  %2407 = vmatprep.mubr.bf16.mxu0 %v1936_v50 }
 0x10a   : > { %v3838_v10 = vpop.f32.mrb[5].mxu1  ;;  %v3814_v42 = vpop.f32.mrb[5].mxu0 }
 0x10b   : > { %v5736_v6 = vadd.f32 %v3838_v10, %v3837_v14  ;;  %v3840_v12 = vpop.f32.mrb[6].mxu1  ;;  %v5740_v35 = vadd.f32 %v3814_v42, %v3813_v19  ;;  %v3816_v54 = vpop.f32.mrb[6].mxu0  ;;  %v1934_v10 = vsel %vm1902_vm3, %v1929_v53, %v5355_v21  ;;  %v2222_v14 = vsel %vm1902_vm3, %v5351_v55, %v6186_v41 }
 0x10c   : > { %v3841_v62 = vpop.f32.mrb[7].mxu1  ;;  %v3817_v47 = vpop.f32.mrb[7].mxu0  ;;  %v2220_v55 = vsel %vm1902_vm3, %v5355_v21, %v6188_v45  ;;  %v2857_v45 = vrot.slane %v5519_v48, 3  ;;  %v2484_v48 = vrot.slane %v4935_v5, 2  ;;  %v2503_v5 = vrot.slane %v4738_v16, 3 }
 0x10d   : > { %v5738_v15 = vadd.f32 %v3841_v62, %v3840_v12  ;;  %v5742_v58 = vadd.f32 %v3817_v47, %v3816_v54 }
 0x10e   : > { %2128 = vmatmul.mubr.bf16.gmra.mrb[112].mxu1 %v1926_v9 }
 0x10f   : > { %2135 = vmatprep.mubr.bf16.mxu1 %v1932_v1 }
 0x110   : > { %2408 = vmatmul.mubr.bf16.gmra.mrb[112].mxu0 %v1934_v10 }
 0x111   : > { %v3843_v7 = vpop.f32.mrb[8].mxu1  ;;  %2415 = vmatprep.mubr.bf16.mxu0 %v2222_v14 }
 0x112   : > { %v3844_v12 = vpop.f32.mrb[9].mxu1  ;;  %v3819_v1 = vpop.f32.mrb[8].mxu0 }
 0x113   : > { %v5750_v62 = vadd.f32 %v3844_v12, %v3843_v7  ;;  %v3846_v9 = vpop.f32.mrb[10].mxu1  ;;  %v3820_v54 = vpop.f32.mrb[9].mxu0  ;;  %v2491_v12 = vrot.slane %v4926_v2, 2  ;;  %v2856_v2 = vrot.slane %v5515_v23, 3 }
 0x114   : > { %v3847_v19 = vpop.f32.mrb[11].mxu1  ;;  %v5754_v53 = vadd.f32 %v3820_v54, %v3819_v1  ;;  %v3822_v47 = vpop.f32.mrb[10].mxu0 }
 0x115   : > { %6187 = vst [vmem:[#allocation19_spill] sm:$0xff] %v5750_v62  ;;  %v5752_v42 = vadd.f32 %v3847_v19, %v3846_v9  ;;  %v3823_v41 = vpop.f32.mrb[11].mxu0  ;;  %v2494_v9 = vrot.slane %v4992_v30, 2 }
 0x116   : > { %2136 = vmatmul.mubr.bf16.gmra.mrb[116].mxu1 %v1930_v28  ;;  %v5761_v14 = vadd.f32 %v3823_v41, %v3822_v47  ;;  %v2492_v28 = vrot.slane %v4870_v27, 3 }
 0x117   : > { %2143 = vmatprep.mubr.bf16.mxu1 %v1936_v50  ;;  %v2495_v50 = vrot.slane %v4952_v38, 3 }
 0x118   : > { %2416 = vmatmul.mubr.bf16.gmra.mrb[116].mxu0 %v2220_v55  ;;  %v2493_v27 = vor.u32 %v2492_v28, %v2491_v12  ;;  %v2487_v28 = vrot.slane %v5006_v3, 2 }
 0x119   : > { %v3849_v7 = vpop.f32.mrb[12].mxu1  ;;  %2423 = vmatprep.mubr.bf16.mxu0 %v5429_v51  ;;  %v2496_v41 = vor.u32 %v2495_v50, %v2494_v9  ;;  %v2858_v51 = vsel %vm2852_vm4, %v2856_v2, %v2857_v45  ;;  %v2488_v9 = vrot.slane %v4966_v46, 3  ;;  %v2853_v2 = vrot.slane %v5529_v36, 3 }
 0x11a   : > { %v3850_v62 = vpop.f32.mrb[13].mxu1  ;;  %v3825_v47 = vpop.f32.mrb[12].mxu0 }
 0x11b   : > { %v5766_v19 = vadd.f32 %v3850_v62, %v3849_v7  ;;  %v3852_v1 = vpop.f32.mrb[14].mxu1  ;;  %v3826_v30 = vpop.f32.mrb[13].mxu0  ;;  %v2497_v23 = vsel %vm2483_vm5, %v2493_v27, %v2496_v41  ;;  %v2502_v27 = vrot.slane %v4741_v17, 2 }
 0x11c   : > { %v3853_v54 = vpop.f32.mrb[15].mxu1  ;;  %v5774_v38 = vadd.f32 %v3826_v30, %v3825_v47  ;;  %v3828_v62 = vpop.f32.mrb[14].mxu0  ;;  %v2854_v47 = vrot.slane %v5533_v8, 3 }
 0x11d   : > { %v5769_v21 = vadd.f32 %v3853_v54, %v3852_v1  ;;  %v3829_v7 = vpop.f32.mrb[15].mxu0  ;;  %v2504_v8 = vor.u32 %v2503_v5, %v2502_v27 }
 0x11e   : > { %2144 = vmatmul.mubr.bf16.gmra.mrb[120].mxu1 %v1934_v10  ;;  %v5777_v54 = vadd.f32 %v3829_v7, %v3828_v62  ;;  %v2489_v62 = vor.u32 %v2488_v9, %v2487_v28  ;;  %v2855_v36 = vsel %vm2852_vm4, %v2853_v2, %v2854_v47  ;;  %v2859_v9 = vrot.slane %v5551_v43, 3 }
 0x11f   : > { %2151 = vmatprep.mubr.bf16.mxu1 %v5363_v32  ;;  %v2485_v32 = vrot.slane %v4896_v49, 3  ;;  %v2505_v28 = vsel %vm2483_vm5, %v2496_v41, %v2504_v8  ;;  %v2510_v2 = vrot.slane %v4771_v29, 2 }
 0x120   : > { %2424 = vmatmul.mubr.bf16.gmra.mrb[120].mxu0 %v5434_v0  ;;  %v2861_v0 = vrot.slane %v5537_v13, 3  ;;  %v2860_v29 = vsel %vm2852_vm4, %v2854_v47, %v2859_v9 }
 0x121   : > { %v3855_v55 = vpop.f32.mrb[16].mxu1  ;;  %3037 = vmatprep.mubr.bf16.mxu0 %v2858_v51  ;;  %v2486_v46 = vor.u32 %v2485_v32, %v2484_v48  ;;  %v2499_v48 = vrot.slane %v4750_v20, 3 }
 0x122   : > { %v3856_v1 = vpop.f32.mrb[17].mxu1  ;;  %v3947_v49 = vpop.f32.mrb[16].mxu0  ;;  %v2862_v16 = vsel %vm2852_vm4, %v2857_v45, %v2861_v0  ;;  %v2511_v45 = vrot.slane %v4744_v18, 3 }
 0x123   : > { %v5781_v10 = vadd.f32 %v3856_v1, %v3855_v55  ;;  %v3858_v12 = vpop.f32.mrb[18].mxu1  ;;  %v3948_v3 = vpop.f32.mrb[17].mxu0 }
 0x124   : > { %v3859_v50 = vpop.f32.mrb[19].mxu1  ;;  %v3949_v55 = vadd.f32 %v3948_v3, %v3947_v49  ;;  %v3950_v7 = vpop.f32.mrb[18].mxu0  ;;  %v2865_v49 = vrot.slane %v5574_v44, 3 }
 0x125   : > { %v5791_v30 = vadd.f32 %v3859_v50, %v3858_v12  ;;  %v3951_v17 = vpop.f32.mrb[19].mxu0 }
 0x126   : > { %2152 = vmatmul.mubr.bf16.gmra.mrb[124].mxu1 %v5370_v63  ;;  %v3952_v12 = vadd.f32 %v3951_v17, %v3950_v7  ;;  %v2490_v63 = vsel %vm2483_vm5, %v2486_v46, %v2489_v62  ;;  %v2866_v44 = vsel %vm2852_vm4, %v2861_v0, %v2865_v49  ;;  %v6191_v0 = vld [vmem:[#allocation3_spill] sm:$0xff] }
 0x127   : > { %2728 = vmatprep.mubr.bf16.mxu1 %v2497_v23  ;;  %v2498_v23 = vrot.slane %v4761_v25, 2 }
 0x128   : > { %3038 = vmatmul.mubr.bf16.vlgmr.msra.gmra.mrb[124].mxu0 %v2855_v36  ;;  %v2512_v36 = vor.u32 %v2511_v45, %v2510_v2  ;;  %v2519_v2 = vrot.slane %v6191_v0, 3 }
 0x129   : > { %v3877_v51 = vpop.f32.mrb[20].mxu1  ;;  %3045 = vmatprep.mubr.bf16.mxu0 %v2862_v16  ;;  %v2500_v41 = vor.u32 %v2499_v48, %v2498_v23 }
 0x12a   : > { %v3878_v1 = vpop.f32.mrb[21].mxu1  ;;  %v2513_v23 = vsel %vm2483_vm5, %v2504_v8, %v2512_v36 }
 0x12b   : > { %v3879_v50 = vadd.f32 %v3878_v1, %v3877_v51  ;;  %v3880_v13 = vpop.f32.mrb[22].mxu1  ;;  %v3953_v3 = vpop.f32.mrb[20].mxu0 }
 0x12c   : > { %v3881_v32 = vpop.f32.mrb[23].mxu1  ;;  %v3954_v46 = vpop.f32.mrb[21].mxu0 }
 0x12d   : > { %v829_v27 = vadd.f32 %v3879_v50, %v5729_v24  ;;  %v3882_v5 = vadd.f32 %v3881_v32, %v3880_v13  ;;  %v3955_v7 = vadd.f32 %v3954_v46, %v3953_v3  ;;  %v3956_v43 = vpop.f32.mrb[22].mxu0  ;;  %v2506_v50 = vrot.slane %v4825_v56, 2  ;;  %v6189_v13 = vld [vmem:[#allocation2_spill] sm:$0xff]  ;;  %v6190_v32 = vld [vmem:[#allocation4_spill] sm:$0xff] }
 0x12e   : > { %2729 = vmatmul.mubr.bf16.vlgmr.msra.gmra.mrb[128].mxu1 %v2490_v63  ;;  %v3957_v51 = vpop.f32.mrb[23].mxu0  ;;  %v2507_v63 = vrot.slane %v6189_v13, 3 }
 0x12f   : > { %v5806_v25 = vadd.f32 %v3949_v55, %v829_v27  ;;  %v832_v20 = vadd.f32 %v3882_v5, %v5731_v11  ;;  %2736 = vmatprep.mubr.bf16.mxu1 %v2505_v28  ;;  %v3958_v55 = vadd.f32 %v3957_v51, %v3956_v43  ;;  %v2501_v11 = vsel %vm2483_vm5, %v2489_v62, %v2500_v41 }
 0x130   : > { %3046 = vmatmul.mubr.bf16.gmra.mrb[128].mxu0 %v2860_v29  ;;  %v2518_v28 = vrot.slane %v6190_v32, 2  ;;  %v2869_v62 = vrot.slane %v5633_v39, 3  ;;  %v2508_v8 = vor.u32 %v2507_v63, %v2506_v50  ;;  %v2515_v50 = vrot.slane %v4829_v60, 3 }
 0x131   : > { %v5810_v18 = vadd.f32 %v3952_v12, %v832_v20  ;;  %v3883_v24 = vpop.f32.mrb[24].mxu1  ;;  %3053 = vmatprep.mubr.bf16.mxu0 %v2866_v44  ;;  %v4644_v12 = vld [vmem:[%s4717_s10 + $0x50] ss:$8 sps:$4 sm:$0xff]   ;;  %v2526_v63 = vrot.slane %v4932_v4, 2 }
 0x132   : > { %v3884_v17 = vpop.f32.mrb[25].mxu1  ;;  %v2863_v48 = vrot.slane %v4644_v12, 3  ;;  %v2870_v39 = vsel %vm2852_vm4, %v2865_v49, %v2869_v62  ;;  %v2527_v49 = vrot.slane %v4886_v40, 3 }
 0x133   : > { %v3885_v16 = vadd.f32 %v3884_v17, %v3883_v24  ;;  %v3886_v1 = vpop.f32.mrb[26].mxu1  ;;  %v3959_v5 = vpop.f32.mrb[24].mxu0  ;;  %v2520_v24 = vor.u32 %v2519_v2, %v2518_v28 }
 0x134   : > { %v3887_v47 = vpop.f32.mrb[27].mxu1  ;;  %v3960_v20 = vpop.f32.mrb[25].mxu0  ;;  %v2864_v29 = vsel %vm2852_vm4, %v2859_v9, %v2863_v48  ;;  %v2528_v0 = vor.u32 %v2527_v49, %v2526_v63 }
 0x135   : > { %v837_v45 = vadd.f32 %v3885_v16, %v5740_v35  ;;  %v3888_v27 = vadd.f32 %v3887_v47, %v3886_v1  ;;  %v3961_v46 = vadd.f32 %v3960_v20, %v3959_v5  ;;  %v3962_v43 = vpop.f32.mrb[26].mxu0  ;;  %v2521_v9 = vsel %vm2483_vm5, %v2512_v36, %v2520_v24 }
 0x136   : > { %2737 = vmatmul.mubr.bf16.gmra.mrb[132].mxu1 %v2501_v11  ;;  %v3963_v44 = vpop.f32.mrb[27].mxu0  ;;  %v2514_v11 = vrot.slane %v4881_v37, 2  ;;  %v2522_v20 = vrot.slane %v6173_v61, 2 }
 0x137   : > { %v5822_v56 = vadd.f32 %v3955_v7, %v837_v45  ;;  %v840_v3 = vadd.f32 %v3888_v27, %v5742_v58  ;;  %2744 = vmatprep.mubr.bf16.mxu1 %v2513_v23  ;;  %v3964_v16 = vadd.f32 %v3963_v44, %v3962_v43  ;;  %v2509_v58 = vsel %vm2483_vm5, %v2500_v41, %v2508_v8 }
 0x138   : > { %3054 = vmatmul.mubr.bf16.gmra.mrb[132].mxu0 %v2864_v29  ;;  %v2873_v41 = vrot.slane %v5675_v34, 3  ;;  %v2516_v36 = vor.u32 %v2515_v50, %v2514_v11  ;;  %v2871_v29 = vrot.slane %v5703_v31, 3 }
 0x139   : > { %v5826_v51 = vadd.f32 %v3958_v55, %v840_v3  ;;  %v3889_v35 = vpop.f32.mrb[28].mxu1  ;;  %3061 = vmatprep.mubr.bf16.mxu0 %v2870_v39  ;;  %v2867_v55 = vrot.slane %v5668_v26, 3 }
 0x13a   : > { %v3890_v17 = vpop.f32.mrb[29].mxu1  ;;  %v2874_v34 = vsel %vm2852_vm4, %v2869_v62, %v2873_v41  ;;  %v6193_v62 = vld [vmem:[#allocation7_spill] sm:$0xff] }
 0x13b   : > { %v3891_v7 = vadd.f32 %v3890_v17, %v3889_v35  ;;  %v3892_v1 = vpop.f32.mrb[30].mxu1  ;;  %v3965_v12 = vpop.f32.mrb[28].mxu0  ;;  %v2868_v4 = vsel %vm2852_vm4, %v2863_v48, %v2867_v55  ;;  %v2529_v48 = vsel %vm2483_vm5, %v2520_v24, %v2528_v0  ;;  %v6192_v35 = vld [vmem:[#allocation9_spill] sm:$0xff]  ;;  %v2535_v39 = vrot.slane %v6193_v62, 3 }
 0x13c   : > { %v3893_v13 = vpop.f32.mrb[31].mxu1  ;;  %v3966_v32 = vpop.f32.mrb[29].mxu0  ;;  %v2534_v44 = vrot.slane %v6192_v35, 2  ;;  %v2872_v11 = vsel %vm2852_vm4, %v2867_v55, %v2871_v29 }
 0x13d   : > { %v845_v47 = vadd.f32 %v3891_v7, %v5754_v53  ;;  %v3894_v23 = vadd.f32 %v3893_v13, %v3892_v1  ;;  %v3967_v28 = vadd.f32 %v3966_v32, %v3965_v12  ;;  %v3968_v26 = vpop.f32.mrb[30].mxu0  ;;  %v6194_v12 = vld [vmem:[#allocation10_spill] sm:$0xff]  ;;  %v6195_v32 = vld [vmem:[#allocation8_spill] sm:$0xff] }
 0x13e   : > { %2745 = vmatmul.mubr.bf16.gmra.mrb[136].mxu1 %v2509_v58  ;;  %v3969_v2 = vpop.f32.mrb[31].mxu0  ;;  %v2536_v50 = vor.u32 %v2535_v39, %v2534_v44 }
 0x13f   : > { %v5838_v37 = vadd.f32 %v3961_v46, %v845_v47  ;;  %v848_v60 = vadd.f32 %v3894_v23, %v5761_v14  ;;  %2752 = vmatprep.mubr.bf16.mxu1 %v2521_v9  ;;  %v3970_v27 = vadd.f32 %v3969_v2, %v3968_v26  ;;  %v2517_v14 = vsel %vm2483_vm5, %v2508_v8, %v2516_v36 }
 0x140   : > { %3062 = vmatmul.mubr.bf16.gmra.mrb[136].mxu0 %v2868_v4  ;;  %v2523_v46 = vrot.slane %v6174_v59, 3  ;;  %v2877_v8 = vrot.slane %v5710_v57, 3  ;;  %v2537_v55 = vsel %vm2483_vm5, %v2528_v0, %v2536_v50  ;;  %v2875_v4 = vrot.slane %v5724_v22, 3 }
 0x141   : > { %v5842_v40 = vadd.f32 %v3964_v16, %v848_v60  ;;  %v3895_v53 = vpop.f32.mrb[32].mxu1  ;;  %3069 = vmatprep.mubr.bf16.mxu0 %v2874_v34  ;;  %v2530_v60 = vrot.slane %v6194_v12, 2 }
 0x142   : > { %v3896_v45 = vpop.f32.mrb[33].mxu1  ;;  %v2524_v24 = vor.u32 %v2523_v46, %v2522_v20  ;;  %v2878_v57 = vsel %vm2852_vm4, %v2873_v41, %v2877_v8  ;;  %v2876_v35 = vsel %vm2852_vm4, %v2871_v29, %v2875_v4 }
 0x143   : > { %v3897_v5 = vadd.f32 %v3896_v45, %v3895_v53  ;;  %v3898_v3 = vpop.f32.mrb[34].mxu1  ;;  %v3971_v7 = vpop.f32.mrb[32].mxu0  ;;  %v6196_v53 = vld [vmem:[#allocation11_spill] sm:$0xff] }
 0x144   : > { %v3899_v43 = vpop.f32.mrb[35].mxu1  ;;  %v3972_v1 = vpop.f32.mrb[33].mxu0  ;;  %v6197_v2 = vshrl.u32 %v6196_v53, 16  ;;  %v6198_v34 = vshll.u32 %v6196_v53, 16 }
 0x145   : > { %v853_v17 = vadd.f32 %v3897_v5, %v5774_v38  ;;  %v3900_v16 = vadd.f32 %v3899_v43, %v3898_v3  ;;  %v3973_v58 = vadd.f32 %v3972_v1, %v3971_v7  ;;  %v3974_v31 = vpop.f32.mrb[34].mxu0  ;;  %v2881_v3 = vrot.slane %v6196_v53, 3 }
 0x146   : > { %2753 = vmatmul.mubr.bf16.gmra.mrb[140].mxu1 %v2517_v14  ;;  %v3975_v9 = vpop.f32.mrb[35].mxu0  ;;  %v2542_v41 = vrot.slane %v6197_v2, 2  ;;  %v2543_v45 = vrot.slane %v6198_v34, 3  ;;  %v6203_v2 = vld [vmem:[#allocation13_spill] sm:$0xff] }
 0x147   : > { %v5854_v61 = vadd.f32 %v3967_v28, %v853_v17  ;;  %v856_v59 = vadd.f32 %v3900_v16, %v5777_v54  ;;  %2760 = vmatprep.mubr.bf16.mxu1 %v2529_v48  ;;  %v3976_v49 = vadd.f32 %v3975_v9, %v3974_v31  ;;  %v2525_v54 = vsel %vm2483_vm5, %v2516_v36, %v2524_v24  ;;  %v6200_v31 = vld [vmem:[#allocation12_spill] sm:$0xff] }
 0x148   : > { %3070 = vmatmul.mubr.bf16.gmra.mrb[140].mxu0 %v2872_v11  ;;  %v2531_v28 = vrot.slane %v6195_v32, 3  ;;  %v2544_v44 = vor.u32 %v2543_v45, %v2542_v41  ;;  %v2882_v16 = vsel %vm2852_vm4, %v2877_v8, %v2881_v3  ;;  %v6201_v11 = vshrl.u32 %v6200_v31, 16 }
 0x149   : > { %v5858_v13 = vadd.f32 %v3970_v27, %v856_v59  ;;  %v3901_v38 = vpop.f32.mrb[36].mxu1  ;;  %3077 = vmatprep.mubr.bf16.mxu0 %v2878_v57  ;;  %v6199_v27 = vld [vmem:[#allocation18_spill] sm:$0xff]  ;;  %v6202_v9 = vshll.u32 %v6200_v31, 16 }
 0x14a   : > { %v3902_v63 = vpop.f32.mrb[37].mxu1  ;;  %v2532_v22 = vor.u32 %v2531_v28, %v2530_v60 }
 0x14b   : > { %v3903_v47 = vadd.f32 %v3902_v63, %v3901_v38  ;;  %v3904_v23 = vpop.f32.mrb[38].mxu1  ;;  %v3977_v14 = vpop.f32.mrb[36].mxu0  ;;  %v2538_v38 = vrot.slane %v6201_v11, 2  ;;  %v2539_v29 = vrot.slane %v6202_v9, 3  ;;  %v2545_v63 = vsel %vm2483_vm5, %v2536_v50, %v2544_v44 }
 0x14c   : > { %v3905_v26 = vpop.f32.mrb[39].mxu1  ;;  %v3978_v46 = vpop.f32.mrb[37].mxu0 }
 0x14d   : > { %v861_v5 = vadd.f32 %v3903_v47, %v6199_v27  ;;  %v3906_v36 = vadd.f32 %v3905_v26, %v3904_v23  ;;  %v3979_v43 = vadd.f32 %v3978_v46, %v3977_v14  ;;  %v3980_v48 = vpop.f32.mrb[38].mxu0  ;;  %v2540_v60 = vor.u32 %v2539_v29, %v2538_v38  ;;  %v6205_v14 = vld [vmem:[#allocation6_spill] sm:$0xff]  ;;  %v6208_v38 = vld [vmem:[#allocation5_spill] sm:$0xff] }
 0x14e   : > { %2761 = vmatmul.mubr.bf16.gmra.mrb[144].mxu1 %v2525_v54  ;;  %v3981_v17 = vpop.f32.mrb[39].mxu0  ;;  %v6209_v29 = vld [vmem:[#allocation14_spill] sm:$0xff] }
 0x14f   : > { %v5872_v20 = vadd.f32 %v3973_v58, %v861_v5  ;;  %v864_v0 = vadd.f32 %v3906_v36, %v5727_v33  ;;  %2768 = vmatprep.mubr.bf16.mxu1 %v2537_v55  ;;  %v3982_v59 = vadd.f32 %v3981_v17, %v3980_v48  ;;  %v2533_v33 = vsel %vm2483_vm5, %v2524_v24, %v2532_v22 }
 0x150   : > { %3078 = vmatmul.mubr.bf16.gmra.mrb[144].mxu0 %v2876_v35  ;;  %v2554_v9 = vsel %vm2483_vm5, %v2540_v60, %v6208_v38 }
 0x151   : > { %v5876_v62 = vadd.f32 %v3976_v49, %v864_v0  ;;  %v3907_v39 = vpop.f32.mrb[40].mxu1  ;;  %3085 = vmatprep.mubr.bf16.mxu0 %v2882_v16  ;;  %v2879_v49 = vrot.slane %v6200_v31, 3  ;;  %v2563_v0 = vsel %vm2483_vm5, %v2544_v44, %v6205_v14 }
 0x152   : > { %v3908_v7 = vpop.f32.mrb[41].mxu1 }
 0x153   : > { %v3909_v1 = vadd.f32 %v3908_v7, %v3907_v39  ;;  %v3910_v58 = vpop.f32.mrb[42].mxu1  ;;  %v3983_v23 = vpop.f32.mrb[40].mxu0  ;;  %v2880_v26 = vsel %vm2852_vm4, %v2875_v4, %v2879_v49  ;;  %v6206_v4 = vld [vmem:[#allocation19_spill] sm:$0xff] }
 0x154   : > { %v3911_v57 = vpop.f32.mrb[43].mxu1  ;;  %v3984_v12 = vpop.f32.mrb[41].mxu0 }
 0x155   : > { %v869_v8 = vadd.f32 %v3909_v1, %v5736_v6  ;;  %v3912_v47 = vadd.f32 %v3911_v57, %v3910_v58  ;;  %v3985_v32 = vadd.f32 %v3984_v12, %v3983_v23  ;;  %v3986_v28 = vpop.f32.mrb[42].mxu0  ;;  %v6204_v6 = vrot.slane %v6203_v2, 3  ;;  %v6210_v23 = vld [vmem:[#allocation15_spill] sm:$0xff]  ;;  %v6211_v2 = vld [vmem:[#allocation16_spill] sm:$0xff] }
 0x156   : > { %2769 = vmatmul.mubr.bf16.gmra.mrb[148].mxu1 %v2533_v33  ;;  %v3987_v53 = vpop.f32.mrb[43].mxu0 }
 0x157   : > { %v5887_v54 = vadd.f32 %v3979_v43, %v869_v8  ;;  %v872_v24 = vadd.f32 %v3912_v47, %v5738_v15  ;;  %2776 = vmatprep.mubr.bf16.mxu1 %v2545_v63  ;;  %v2886_v41 = vsel %vm2852_vm4, %v2881_v3, %v6204_v6  ;;  %v3988_v45 = vadd.f32 %v3987_v53, %v3986_v28 }
 0x158   : > { %v2541_v15 = vsel %vm2483_vm5, %v2532_v22, %v2540_v60  ;;  %3086 = vmatmul.mubr.bf16.gmra.mrb[148].mxu0 %v2880_v26  ;;  %v6207_v22 = vrot.slane %v5390_v52, 3 }
 0x159   : > { %v5891_v50 = vadd.f32 %v3982_v59, %v872_v24  ;;  %v3913_v55 = vpop.f32.mrb[44].mxu1  ;;  %3093 = vmatprep.mubr.bf16.mxu0 %v2886_v41 }
 0x15a   : > { %v3914_v34 = vpop.f32.mrb[45].mxu1  ;;  %v2884_v7 = vsel %vm2852_vm4, %v2879_v49, %v6207_v22 }
 0x15b   : > { %v3915_v27 = vadd.f32 %v3914_v34, %v3913_v55  ;;  %v3916_v5 = vpop.f32.mrb[46].mxu1  ;;  %v3989_v48 = vpop.f32.mrb[44].mxu0 }
 0x15c   : > { %v3917_v36 = vpop.f32.mrb[47].mxu1  ;;  %v3990_v39 = vpop.f32.mrb[45].mxu0 }
 0x15d   : > { %v877_v46 = vadd.f32 %v3915_v27, %v6206_v4  ;;  %v3918_v43 = vadd.f32 %v3917_v36, %v3916_v5  ;;  %v3991_v17 = vadd.f32 %v3990_v39, %v3989_v48  ;;  %v3992_v16 = vpop.f32.mrb[46].mxu0 }
 0x15e   : > { %2777 = vmatmul.mubr.bf16.gmra.mrb[152].mxu1 %v2541_v15  ;;  %v3993_v1 = vpop.f32.mrb[47].mxu0 }
 0x15f   : > { %v5900_v35 = vadd.f32 %v3985_v32, %v877_v46  ;;  %v880_v3 = vadd.f32 %v3918_v43, %v5752_v42  ;;  %2784 = vmatprep.mubr.bf16.mxu1 %v2563_v0  ;;  %v3994_v33 = vadd.f32 %v3993_v1, %v3992_v16 }
 0x160   : > { %3094 = vmatmul.mubr.bf16.gmra.mrb[152].mxu0 %v2884_v7 }
 0x161   : > { %v5906_v59 = vadd.f32 %v3988_v45, %v880_v3  ;;  %v3919_v44 = vpop.f32.mrb[48].mxu1  ;;  %3101 = vmatprep.mubr.bf16.mxu0 %v6209_v29 }
 0x162   : > { %v3920_v58 = vpop.f32.mrb[49].mxu1 }
 0x163   : > { %v3921_v31 = vadd.f32 %v3920_v58, %v3919_v44  ;;  %v3922_v11 = vpop.f32.mrb[50].mxu1  ;;  %v3995_v63 = vpop.f32.mrb[48].mxu0 }
 0x164   : > { %v3923_v42 = vpop.f32.mrb[51].mxu1  ;;  %v3996_v47 = vpop.f32.mrb[49].mxu0 }
 0x165   : > { %v885_v57 = vadd.f32 %v3921_v31, %v5766_v19  ;;  %v3924_v52 = vadd.f32 %v3923_v42, %v3922_v11  ;;  %v3997_v24 = vadd.f32 %v3996_v47, %v3995_v63  ;;  %v3998_v12 = vpop.f32.mrb[50].mxu0 }
 0x166   : > { %2785 = vmatmul.mubr.bf16.gmra.mrb[156].mxu1 %v2554_v9  ;;  %v3999_v28 = vpop.f32.mrb[51].mxu0 }
 0x167   : > { %v5912_v49 = vadd.f32 %v3991_v17, %v885_v57  ;;  %v888_v8 = vadd.f32 %v3924_v52, %v5769_v21  ;;  %2792 = vmatprep.mubr.bf16.mxu1 %v6210_v23  ;;  %v4000_v55 = vadd.f32 %v3999_v28, %v3998_v12  ;;  %v6212_v21 = vld [vmem:[#allocation17_spill] sm:$0xff] }
 0x168   : > { %3102 = vmatmul.mubr.bf16.gmra.mrb[156].mxu0 %v6211_v2 }
 0x169   : > { %v5916_v32 = vadd.f32 %v3994_v33, %v888_v8  ;;  %v3925_v60 = vpop.f32.mrb[52].mxu1 }
 0x16a   : > { %v3926_v26 = vpop.f32.mrb[53].mxu1 }
 0x16b   : > { %v3927_v53 = vadd.f32 %v3926_v26, %v3925_v60  ;;  %v3928_v19 = vpop.f32.mrb[54].mxu1  ;;  %v4087_v45 = vpop.f32.mrb[52].mxu0 }
 0x16c   : > { %v3929_v6 = vpop.f32.mrb[55].mxu1  ;;  %v4088_v15 = vpop.f32.mrb[53].mxu0 }
 0x16d   : > { %v893_v41 = vadd.f32 %v3927_v53, %v5781_v10  ;;  %v3930_v34 = vadd.f32 %v3929_v6, %v3928_v19  ;;  %v4089_v36 = vadd.f32 %v4088_v15, %v4087_v45  ;;  %v4090_v14 = vpop.f32.mrb[54].mxu0 }
 0x16e   : > { %2793 = vmatmul.mubr.bf16.gmra.mrb[160].mxu1 %v6212_v21  ;;  %v4091_v46 = vpop.f32.mrb[55].mxu0 }
 0x16f   : > { %v5921_v27 = vadd.f32 %v3997_v24, %v893_v41  ;;  %v896_v5 = vadd.f32 %v3930_v34, %v5791_v30  ;;  %v4092_v48 = vadd.f32 %v4091_v46, %v4090_v14 }
 0x171   : > { %v5924_v0 = vadd.f32 %v4000_v55, %v896_v5  ;;  %v4017_v4 = vpop.f32.mrb[56].mxu1 }
 0x172   : > { %v4018_v43 = vpop.f32.mrb[57].mxu1 }
 0x173   : > { %v4019_v3 = vadd.f32 %v4018_v43, %v4017_v4  ;;  %v4020_v39 = vpop.f32.mrb[58].mxu1  ;;  %v4093_v22 = vpop.f32.mrb[56].mxu0 }
 0x174   : > { %v4021_v10 = vpop.f32.mrb[59].mxu1  ;;  %v4094_v44 = vpop.f32.mrb[57].mxu0 }
 0x175   : > { %v1482_v17 = vadd.f32 %v4019_v3, %v5806_v25  ;;  %v4022_v16 = vadd.f32 %v4021_v10, %v4020_v39  ;;  %v4095_v1 = vadd.f32 %v4094_v44, %v4093_v22  ;;  %v4096_v58 = vpop.f32.mrb[58].mxu0 }
 0x176   : > { %v4097_v11 = vpop.f32.mrb[59].mxu0 }
 0x177   : > { %v5927_v7 = vadd.f32 %v4089_v36, %v1482_v17  ;;  %v1483_v30 = vadd.f32 %v4022_v16, %v5810_v18  ;;  %v4098_v9 = vadd.f32 %v4097_v11, %v4096_v58 }
 0x179   : > { %v5930_v33 = vadd.f32 %v4092_v48, %v1483_v30  ;;  %v4023_v31 = vpop.f32.mrb[60].mxu1 }
 0x17a   : > { %v4024_v38 = vpop.f32.mrb[61].mxu1 }
 0x17b   : > { %v4025_v42 = vadd.f32 %v4024_v38, %v4023_v31  ;;  %v4026_v29 = vpop.f32.mrb[62].mxu1  ;;  %v4099_v63 = vpop.f32.mrb[60].mxu0 }
 0x17c   : > { %v4027_v57 = vpop.f32.mrb[63].mxu1  ;;  %v4100_v47 = vpop.f32.mrb[61].mxu0 }
 0x17d   : > { %v1484_v25 = vadd.f32 %v4025_v42, %v5822_v56  ;;  %v4028_v52 = vadd.f32 %v4027_v57, %v4026_v29  ;;  %v4101_v23 = vadd.f32 %v4100_v47, %v4099_v63  ;;  %v4102_v24 = vpop.f32.mrb[62].mxu0 }
 0x17e   : > { %v4103_v28 = vpop.f32.mrb[63].mxu0 }
 0x17f   : > { %v5933_v8 = vadd.f32 %v4095_v1, %v1484_v25  ;;  %v1485_v18 = vadd.f32 %v4028_v52, %v5826_v51  ;;  %v4104_v55 = vadd.f32 %v4103_v28, %v4102_v24 }
 0x181   : > { %v5936_v12 = vadd.f32 %v4098_v9, %v1485_v18  ;;  %v4029_v60 = vpop.f32.mrb[64].mxu1 }
 0x182   : > { %v4030_v26 = vpop.f32.mrb[65].mxu1 }
 0x183   : > { %v4031_v53 = vadd.f32 %v4030_v26, %v4029_v60  ;;  %v4032_v19 = vpop.f32.mrb[66].mxu1  ;;  %v4105_v41 = vpop.f32.mrb[64].mxu0 }
 0x184   : > { %v4033_v2 = vpop.f32.mrb[67].mxu1  ;;  %v4106_v21 = vpop.f32.mrb[65].mxu0 }
 0x185   : > { %v1486_v56 = vadd.f32 %v4031_v53, %v5838_v37  ;;  %v4034_v6 = vadd.f32 %v4033_v2, %v4032_v19  ;;  %v4107_v45 = vadd.f32 %v4106_v21, %v4105_v41  ;;  %v4108_v5 = vpop.f32.mrb[66].mxu0 }
 0x186   : > { %v4109_v14 = vpop.f32.mrb[67].mxu0 }
 0x187   : > { %v5939_v34 = vadd.f32 %v4101_v23, %v1486_v56  ;;  %v1487_v51 = vadd.f32 %v4034_v6, %v5842_v40  ;;  %v4110_v46 = vadd.f32 %v4109_v14, %v4108_v5 }
 0x189   : > { %v5942_v15 = vadd.f32 %v4104_v55, %v1487_v51  ;;  %v4035_v36 = vpop.f32.mrb[68].mxu1 }
 0x18a   : > { %v4036_v4 = vpop.f32.mrb[69].mxu1 }
 0x18b   : > { %v4037_v43 = vadd.f32 %v4036_v4, %v4035_v36  ;;  %v4038_v48 = vpop.f32.mrb[70].mxu1  ;;  %v4111_v10 = vpop.f32.mrb[68].mxu0 }
 0x18c   : > { %v4039_v3 = vpop.f32.mrb[71].mxu1  ;;  %v4112_v16 = vpop.f32.mrb[69].mxu0 }
 0x18d   : > { %v1488_v37 = vadd.f32 %v4037_v43, %v5854_v61  ;;  %v4040_v39 = vadd.f32 %v4039_v3, %v4038_v48  ;;  %v4113_v22 = vadd.f32 %v4112_v16, %v4111_v10  ;;  %v4114_v30 = vpop.f32.mrb[70].mxu0 }
 0x18e   : > { %v4115_v58 = vpop.f32.mrb[71].mxu0 }
 0x18f   : > { %v5945_v17 = vadd.f32 %v4107_v45, %v1488_v37  ;;  %v1489_v40 = vadd.f32 %v4040_v39, %v5858_v13  ;;  %v4116_v11 = vadd.f32 %v4115_v58, %v4114_v30 }
 0x191   : > { %v5948_v44 = vadd.f32 %v4110_v46, %v1489_v40  ;;  %v4041_v1 = vpop.f32.mrb[72].mxu1 }
 0x192   : > { %v4042_v31 = vpop.f32.mrb[73].mxu1 }
 0x193   : > { %v4043_v38 = vadd.f32 %v4042_v31, %v4041_v1  ;;  %v4044_v9 = vpop.f32.mrb[74].mxu1  ;;  %v4117_v57 = vpop.f32.mrb[72].mxu0 }
 0x194   : > { %v4045_v42 = vpop.f32.mrb[75].mxu1  ;;  %v4118_v52 = vpop.f32.mrb[73].mxu0 }
 0x195   : > { %v1490_v61 = vadd.f32 %v4043_v38, %v5872_v20  ;;  %v4046_v29 = vadd.f32 %v4045_v42, %v4044_v9  ;;  %v4119_v63 = vadd.f32 %v4118_v52, %v4117_v57  ;;  %v4120_v18 = vpop.f32.mrb[74].mxu0 }
 0x196   : > { %v4121_v24 = vpop.f32.mrb[75].mxu0 }
 0x197   : > { %v5951_v25 = vadd.f32 %v4113_v22, %v1490_v61  ;;  %v1491_v13 = vadd.f32 %v4046_v29, %v5876_v62  ;;  %v4122_v28 = vadd.f32 %v4121_v24, %v4120_v18 }
 0x199   : > { %v5954_v47 = vadd.f32 %v4116_v11, %v1491_v13  ;;  %v4047_v23 = vpop.f32.mrb[76].mxu1 }
 0x19a   : > { %v4048_v60 = vpop.f32.mrb[77].mxu1 }
 0x19b   : > { %v4049_v26 = vadd.f32 %v4048_v60, %v4047_v23  ;;  %v4050_v55 = vpop.f32.mrb[78].mxu1  ;;  %v4123_v2 = vpop.f32.mrb[76].mxu0 }
 0x19c   : > { %v4051_v53 = vpop.f32.mrb[79].mxu1  ;;  %v4124_v6 = vpop.f32.mrb[77].mxu0 }
 0x19d   : > { %v1492_v20 = vadd.f32 %v4049_v26, %v5887_v54  ;;  %v4052_v19 = vadd.f32 %v4051_v53, %v4050_v55  ;;  %v4125_v41 = vadd.f32 %v4124_v6, %v4123_v2  ;;  %v4126_v51 = vpop.f32.mrb[78].mxu0 }
 0x19e   : > { %v4127_v5 = vpop.f32.mrb[79].mxu0 }
 0x19f   : > { %v5957_v56 = vadd.f32 %v4119_v63, %v1492_v20  ;;  %v1493_v62 = vadd.f32 %v4052_v19, %v5891_v50  ;;  %v4128_v14 = vadd.f32 %v4127_v5, %v4126_v51 }
 0x1a1   : > { %v5960_v21 = vadd.f32 %v4122_v28, %v1493_v62  ;;  %v4053_v45 = vpop.f32.mrb[80].mxu1 }
 0x1a2   : > { %v4054_v36 = vpop.f32.mrb[81].mxu1 }
 0x1a3   : > { %v4055_v4 = vadd.f32 %v4054_v36, %v4053_v45  ;;  %v4056_v46 = vpop.f32.mrb[82].mxu1  ;;  %v4129_v3 = vpop.f32.mrb[80].mxu0 }
 0x1a4   : > { %v4057_v43 = vpop.f32.mrb[83].mxu1  ;;  %v4130_v39 = vpop.f32.mrb[81].mxu0 }
 0x1a5   : > { %v1494_v54 = vadd.f32 %v4055_v4, %v5900_v35  ;;  %v4058_v48 = vadd.f32 %v4057_v43, %v4056_v46  ;;  %v4131_v10 = vadd.f32 %v4130_v39, %v4129_v3  ;;  %v4132_v40 = vpop.f32.mrb[82].mxu0 }
 0x1a6   : > { %v4133_v30 = vpop.f32.mrb[83].mxu0 }
 0x1a7   : > { %v5963_v37 = vadd.f32 %v4125_v41, %v1494_v54  ;;  %v1495_v50 = vadd.f32 %v4058_v48, %v5906_v59  ;;  %v4134_v58 = vadd.f32 %v4133_v30, %v4132_v40 }
 0x1a9   : > { %v5966_v16 = vadd.f32 %v4128_v14, %v1495_v50  ;;  %v4059_v22 = vpop.f32.mrb[84].mxu1 }
 0x1aa   : > { %v4060_v1 = vpop.f32.mrb[85].mxu1 }
 0x1ab   : > { %v4061_v31 = vadd.f32 %v4060_v1, %v4059_v22  ;;  %v4062_v11 = vpop.f32.mrb[86].mxu1  ;;  %v4135_v42 = vpop.f32.mrb[84].mxu0 }
 0x1ac   : > { %v4063_v38 = vpop.f32.mrb[87].mxu1  ;;  %v4136_v29 = vpop.f32.mrb[85].mxu0 }
 0x1ad   : > { %v1496_v35 = vadd.f32 %v4061_v31, %v5912_v49  ;;  %v4064_v9 = vadd.f32 %v4063_v38, %v4062_v11  ;;  %v4137_v57 = vadd.f32 %v4136_v29, %v4135_v42  ;;  %v4138_v13 = vpop.f32.mrb[86].mxu0 }
 0x1ae   : > { %v4139_v18 = vpop.f32.mrb[87].mxu0 }
 0x1af   : > { %v5969_v61 = vadd.f32 %v4131_v10, %v1496_v35  ;;  %v1497_v59 = vadd.f32 %v4064_v9, %v5916_v32  ;;  %v4140_v24 = vadd.f32 %v4139_v18, %v4138_v13 }
 0x1b1   : > { %v5972_v52 = vadd.f32 %v4134_v58, %v1497_v59  ;;  %v4065_v63 = vpop.f32.mrb[88].mxu1 }
 0x1b2   : > { %v4066_v23 = vpop.f32.mrb[89].mxu1 }
 0x1b3   : > { %v4067_v60 = vadd.f32 %v4066_v23, %v4065_v63  ;;  %v4068_v28 = vpop.f32.mrb[90].mxu1  ;;  %v4227_v53 = vpop.f32.mrb[88].mxu0 }
 0x1b4   : > { %v4069_v26 = vpop.f32.mrb[91].mxu1  ;;  %v4228_v19 = vpop.f32.mrb[89].mxu0 }
 0x1b5   : > { %v1498_v49 = vadd.f32 %v4067_v60, %v5921_v27  ;;  %v4070_v55 = vadd.f32 %v4069_v26, %v4068_v28  ;;  %v4229_v2 = vadd.f32 %v4228_v19, %v4227_v53  ;;  %v4230_v62 = vpop.f32.mrb[90].mxu0 }
 0x1b6   : > { %v4231_v51 = vpop.f32.mrb[91].mxu0 }
 0x1b7   : > { %v5975_v20 = vadd.f32 %v4137_v57, %v1498_v49  ;;  %v1499_v32 = vadd.f32 %v4070_v55, %v5924_v0  ;;  %v4232_v5 = vadd.f32 %v4231_v51, %v4230_v62 }
 0x1b9   : > { %v5978_v6 = vadd.f32 %v4140_v24, %v1499_v32  ;;  %v4157_v41 = vpop.f32.mrb[92].mxu1 }
 0x1ba   : > { %v4158_v45 = vpop.f32.mrb[93].mxu1 }
 0x1bb   : > { %v4159_v36 = vadd.f32 %v4158_v45, %v4157_v41  ;;  %v4160_v14 = vpop.f32.mrb[94].mxu1  ;;  %v4233_v43 = vpop.f32.mrb[92].mxu0 }
 0x1bc   : > { %v4161_v4 = vpop.f32.mrb[95].mxu1  ;;  %v4234_v48 = vpop.f32.mrb[93].mxu0 }
 0x1bd   : > { %v2160_v27 = vadd.f32 %v4159_v36, %v5927_v7  ;;  %v4162_v46 = vadd.f32 %v4161_v4, %v4160_v14  ;;  %v4235_v3 = vadd.f32 %v4234_v48, %v4233_v43  ;;  %v4236_v50 = vpop.f32.mrb[94].mxu0 }
 0x1be   : > { %v4237_v40 = vpop.f32.mrb[95].mxu0 }
 0x1bf   : > { %v5981_v54 = vadd.f32 %v4229_v2, %v2160_v27  ;;  %v2161_v0 = vadd.f32 %v4162_v46, %v5930_v33  ;;  %v4238_v30 = vadd.f32 %v4237_v40, %v4236_v50 }
 0x1c1   : > { %v5984_v39 = vadd.f32 %v4232_v5, %v2161_v0  ;;  %v4163_v10 = vpop.f32.mrb[96].mxu1 }
 0x1c2   : > { %v4164_v22 = vpop.f32.mrb[97].mxu1 }
 0x1c3   : > { %v4165_v1 = vadd.f32 %v4164_v22, %v4163_v10  ;;  %v4166_v58 = vpop.f32.mrb[98].mxu1  ;;  %v4239_v38 = vpop.f32.mrb[96].mxu0 }
 0x1c4   : > { %v4167_v31 = vpop.f32.mrb[99].mxu1  ;;  %v4240_v9 = vpop.f32.mrb[97].mxu0 }
 0x1c5   : > { %v2162_v7 = vadd.f32 %v4165_v1, %v5933_v8  ;;  %v4168_v11 = vadd.f32 %v4167_v31, %v4166_v58  ;;  %v4241_v42 = vadd.f32 %v4240_v9, %v4239_v38  ;;  %v4242_v59 = vpop.f32.mrb[98].mxu0 }
 0x1c6   : > { %v4243_v13 = vpop.f32.mrb[99].mxu0 }
 0x1c7   : > { %v5987_v35 = vadd.f32 %v4235_v3, %v2162_v7  ;;  %v2163_v33 = vadd.f32 %v4168_v11, %v5936_v12  ;;  %v4244_v18 = vadd.f32 %v4243_v13, %v4242_v59 }
 0x1c9   : > { %v5990_v29 = vadd.f32 %v4238_v30, %v2163_v33  ;;  %v4169_v57 = vpop.f32.mrb[100].mxu1 }
 0x1ca   : > { %v4170_v63 = vpop.f32.mrb[101].mxu1 }
 0x1cb   : > { %v4171_v23 = vadd.f32 %v4170_v63, %v4169_v57  ;;  %v4172_v24 = vpop.f32.mrb[102].mxu1  ;;  %v4245_v26 = vpop.f32.mrb[100].mxu0 }
 0x1cc   : > { %v4173_v60 = vpop.f32.mrb[103].mxu1  ;;  %v4246_v55 = vpop.f32.mrb[101].mxu0 }
 0x1cd   : > { %v2164_v8 = vadd.f32 %v4171_v23, %v5939_v34  ;;  %v4174_v28 = vadd.f32 %v4173_v60, %v4172_v24  ;;  %v4247_v53 = vadd.f32 %v4246_v55, %v4245_v26  ;;  %v4248_v32 = vpop.f32.mrb[102].mxu0 }
 0x1ce   : > { %v4249_v62 = vpop.f32.mrb[103].mxu0 }
 0x1cf   : > { %v5993_v49 = vadd.f32 %v4241_v42, %v2164_v8  ;;  %v2165_v12 = vadd.f32 %v4174_v28, %v5942_v15  ;;  %v4250_v51 = vadd.f32 %v4249_v62, %v4248_v32 }
 0x1d1   : > { %v5996_v19 = vadd.f32 %v4244_v18, %v2165_v12  ;;  %v4175_v2 = vpop.f32.mrb[104].mxu1 }
 0x1d2   : > { %v4176_v41 = vpop.f32.mrb[105].mxu1 }
 0x1d3   : > { %v4177_v45 = vadd.f32 %v4176_v41, %v4175_v2  ;;  %v4178_v5 = vpop.f32.mrb[106].mxu1  ;;  %v4251_v4 = vpop.f32.mrb[104].mxu0 }
 0x1d4   : > { %v4179_v36 = vpop.f32.mrb[107].mxu1  ;;  %v4252_v46 = vpop.f32.mrb[105].mxu0 }
 0x1d5   : > { %v2166_v34 = vadd.f32 %v4177_v45, %v5945_v17  ;;  %v4180_v14 = vadd.f32 %v4179_v36, %v4178_v5  ;;  %v4253_v43 = vadd.f32 %v4252_v46, %v4251_v4  ;;  %v4254_v0 = vpop.f32.mrb[106].mxu0 }
 0x1d6   : > { %v4255_v50 = vpop.f32.mrb[107].mxu0 }
 0x1d7   : > { %v5999_v27 = vadd.f32 %v4247_v53, %v2166_v34  ;;  %v2167_v15 = vadd.f32 %v4180_v14, %v5948_v44  ;;  %v4256_v40 = vadd.f32 %v4255_v50, %v4254_v0 }
 0x1d9   : > { %v6002_v48 = vadd.f32 %v4250_v51, %v2167_v15  ;;  %v4181_v3 = vpop.f32.mrb[108].mxu1 }
 0x1da   : > { %v4182_v10 = vpop.f32.mrb[109].mxu1 }
 0x1db   : > { %v4183_v22 = vadd.f32 %v4182_v10, %v4181_v3  ;;  %v4184_v30 = vpop.f32.mrb[110].mxu1  ;;  %v4257_v31 = vpop.f32.mrb[108].mxu0 }
 0x1dc   : > { %v4185_v1 = vpop.f32.mrb[111].mxu1  ;;  %v4258_v11 = vpop.f32.mrb[109].mxu0 }
 0x1dd   : > { %v2168_v17 = vadd.f32 %v4183_v22, %v5951_v25  ;;  %v4186_v58 = vadd.f32 %v4185_v1, %v4184_v30  ;;  %v4259_v38 = vadd.f32 %v4258_v11, %v4257_v31  ;;  %v4260_v33 = vpop.f32.mrb[110].mxu0 }
 0x1de   : > { %v4261_v59 = vpop.f32.mrb[111].mxu0 }
 0x1df   : > { %v6005_v7 = vadd.f32 %v4253_v43, %v2168_v17  ;;  %v2169_v44 = vadd.f32 %v4186_v58, %v5954_v47  ;;  %v4262_v13 = vadd.f32 %v4261_v59, %v4260_v33 }
 0x1e1   : > { %v6008_v9 = vadd.f32 %v4256_v40, %v2169_v44  ;;  %v4187_v42 = vpop.f32.mrb[112].mxu1 }
 0x1e2   : > { %v4188_v57 = vpop.f32.mrb[113].mxu1 }
 0x1e3   : > { %v4189_v63 = vadd.f32 %v4188_v57, %v4187_v42  ;;  %v4190_v18 = vpop.f32.mrb[114].mxu1  ;;  %v4263_v60 = vpop.f32.mrb[112].mxu0 }
 0x1e4   : > { %v4191_v23 = vpop.f32.mrb[115].mxu1  ;;  %v4264_v28 = vpop.f32.mrb[113].mxu0 }
 0x1e5   : > { %v2170_v25 = vadd.f32 %v4189_v63, %v5957_v56  ;;  %v4192_v24 = vadd.f32 %v4191_v23, %v4190_v18  ;;  %v4265_v26 = vadd.f32 %v4264_v28, %v4263_v60  ;;  %v4266_v12 = vpop.f32.mrb[114].mxu0 }
 0x1e6   : > { %v4267_v32 = vpop.f32.mrb[115].mxu0 }
 0x1e7   : > { %v6011_v8 = vadd.f32 %v4259_v38, %v2170_v25  ;;  %v2171_v47 = vadd.f32 %v4192_v24, %v5960_v21  ;;  %v4268_v62 = vadd.f32 %v4267_v32, %v4266_v12 }
 0x1e9   : > { %v6014_v55 = vadd.f32 %v4262_v13, %v2171_v47  ;;  %v4193_v53 = vpop.f32.mrb[116].mxu1 }
 0x1ea   : > { %v4194_v2 = vpop.f32.mrb[117].mxu1 }
 0x1eb   : > { %v4195_v41 = vadd.f32 %v4194_v2, %v4193_v53  ;;  %v4196_v51 = vpop.f32.mrb[118].mxu1  ;;  %v4269_v36 = vpop.f32.mrb[116].mxu0 }
 0x1ec   : > { %v4197_v45 = vpop.f32.mrb[119].mxu1  ;;  %v4270_v14 = vpop.f32.mrb[117].mxu0 }
 0x1ed   : > { %v2172_v56 = vadd.f32 %v4195_v41, %v5963_v37  ;;  %v4198_v5 = vadd.f32 %v4197_v45, %v4196_v51  ;;  %v4271_v4 = vadd.f32 %v4270_v14, %v4269_v36  ;;  %v4272_v15 = vpop.f32.mrb[118].mxu0 }
 0x1ee   : > { %v4273_v0 = vpop.f32.mrb[119].mxu0 }
 0x1ef   : > { %v6017_v34 = vadd.f32 %v4265_v26, %v2172_v56  ;;  %v2173_v21 = vadd.f32 %v4198_v5, %v5966_v16  ;;  %v4274_v50 = vadd.f32 %v4273_v0, %v4272_v15 }
 0x1f1   : > { %v6020_v46 = vadd.f32 %v4268_v62, %v2173_v21  ;;  %v4199_v43 = vpop.f32.mrb[120].mxu1 }
 0x1f2   : > { %v4200_v3 = vpop.f32.mrb[121].mxu1 }
 0x1f3   : > { %v4201_v10 = vadd.f32 %v4200_v3, %v4199_v43  ;;  %v4202_v40 = vpop.f32.mrb[122].mxu1  ;;  %v4275_v1 = vpop.f32.mrb[120].mxu0 }
 0x1f4   : > { %v4203_v22 = vpop.f32.mrb[123].mxu1  ;;  %v4276_v58 = vpop.f32.mrb[121].mxu0 }
 0x1f5   : > { %v2174_v37 = vadd.f32 %v4201_v10, %v5969_v61  ;;  %v4204_v30 = vadd.f32 %v4203_v22, %v4202_v40  ;;  %v4277_v31 = vadd.f32 %v4276_v58, %v4275_v1  ;;  %v4278_v44 = vpop.f32.mrb[122].mxu0 }
 0x1f6   : > { %v4279_v33 = vpop.f32.mrb[123].mxu0 }
 0x1f7   : > { %v6023_v17 = vadd.f32 %v4271_v4, %v2174_v37  ;;  %v2175_v16 = vadd.f32 %v4204_v30, %v5972_v52  ;;  %v4280_v59 = vadd.f32 %v4279_v33, %v4278_v44 }
 0x1f9   : > { %v6026_v11 = vadd.f32 %v4274_v50, %v2175_v16  ;;  %v4205_v38 = vpop.f32.mrb[124].mxu1 }
 0x1fa   : > { %v4206_v42 = vpop.f32.mrb[125].mxu1 }
 0x1fb   : > { %v4207_v57 = vadd.f32 %v4206_v42, %v4205_v38  ;;  %v4208_v13 = vpop.f32.mrb[126].mxu1  ;;  %v4367_v23 = vpop.f32.mrb[124].mxu0 }
 0x1fc   : > { %v4209_v63 = vpop.f32.mrb[127].mxu1  ;;  %v4368_v24 = vpop.f32.mrb[125].mxu0 }
 0x1fd   : > { %v2176_v61 = vadd.f32 %v4207_v57, %v5975_v20  ;;  %v4210_v18 = vadd.f32 %v4209_v63, %v4208_v13  ;;  %v4369_v60 = vadd.f32 %v4368_v24, %v4367_v23  ;;  %v4370_v47 = vpop.f32.mrb[126].mxu0 }
 0x1fe   : > { %v4371_v12 = vpop.f32.mrb[127].mxu0 }
 0x1ff   : > { %v6029_v25 = vadd.f32 %v4277_v31, %v2176_v61  ;;  %v2177_v52 = vadd.f32 %v4210_v18, %v5978_v6  ;;  %v4372_v32 = vadd.f32 %v4371_v12, %v4370_v47  ;;  %v6038_v6 = vld [vmem:[%s6122_s2] ss:$0 sm:$0xff] }
 0x201   : > { %v6032_v28 = vadd.f32 %v4280_v59, %v2177_v52  ;;  %v4297_v26 = vpop.f32.mrb[128].mxu1 }
 0x202   : > { %v4298_v53 = vpop.f32.mrb[129].mxu1 }
 0x203   : > { %v4299_v2 = vadd.f32 %v4298_v53, %v4297_v26  ;;  %v4300_v62 = vpop.f32.mrb[130].mxu1  ;;  %v4373_v45 = vpop.f32.mrb[128].mxu0 }
 0x204   : > { %v4301_v41 = vpop.f32.mrb[131].mxu1  ;;  %v4374_v36 = vpop.f32.mrb[129].mxu0 }
 0x205   : > { %v2801_v20 = vadd.f32 %v4299_v2, %v5981_v54  ;;  %v4302_v51 = vadd.f32 %v4301_v41, %v4300_v62  ;;  %v4375_v21 = vadd.f32 %v4374_v36, %v4373_v45  ;;  %v4376_v14 = vpop.f32.mrb[130].mxu0 }
 0x206   : > { %v4377_v0 = vpop.f32.mrb[131].mxu0 }
 0x207   : > { %v3110_v56 = vadd.f32 %v4369_v60, %v2801_v20  ;;  %v2802_v5 = vadd.f32 %v4302_v51, %v5984_v39  ;;  %v4378_v3 = vadd.f32 %v4377_v0, %v4376_v14 }
 0x209   : > { %v3135_v4 = vadd.f32 %v6038_v6, %v3110_v56  ;;  %v3111_v15 = vadd.f32 %v4372_v32, %v2802_v5  ;;  %v4303_v43 = vpop.f32.mrb[132].mxu1 }
 0x20a   : > { %v4304_v54 = vpop.f32.mrb[133].mxu1 }
 0x20b   : > { %v3153_v50 = vmax.f32 %v3135_v4, 0.0  ;;  %v3136_v10 = vadd.f32 %v6038_v6, %v3111_v15  ;;  %v4305_v40 = vadd.f32 %v4304_v54, %v4303_v43  ;;  %v4306_v22 = vpop.f32.mrb[134].mxu1  ;;  %v4379_v58 = vpop.f32.mrb[132].mxu0 }
 0x20c   : > { %v4307_v39 = vpop.f32.mrb[135].mxu1  ;;  %v4380_v33 = vpop.f32.mrb[133].mxu0 }
 0x20d   : > { %v3773_v37 = vpack.c.bf16 %v3153_v50, %v3153_v50  ;;  %v3154_v30 = vmax.f32 %v3136_v10, 0.0  ;;  %v2803_v1 = vadd.f32 %v4305_v40, %v5987_v35  ;;  %v4308_v16 = vadd.f32 %v4307_v39, %v4306_v22  ;;  %v4382_v59 = vpop.f32.mrb[134].mxu0 }
 0x20e   : > { %v4381_v42 = vadd.f32 %v4380_v33, %v4379_v58  ;;  %v4383_v61 = vpop.f32.mrb[135].mxu0 }
 0x20f   : > { %3244 = vst.msk [vmem:[%s6047_s21] sm:$0xf] %vm3243_vm6, %v3773_v37  ;;  %v3774_v31 = vpack.c.bf16 %v3154_v30, %v3154_v30  ;;  %v3112_v44 = vadd.f32 %v4375_v21, %v2803_v1  ;;  %v2804_v38 = vadd.f32 %v4308_v16, %v5990_v29  ;;  %v4384_v18 = vadd.f32 %v4383_v61, %v4382_v59 }
 0x211   : > { %3245 = vst.msk [vmem:[%s6047_s21 + $0x4] sm:$0xf] %vm3243_vm6, %v3774_v31  ;;  %v3137_v57 = vadd.f32 %v6038_v6, %v3112_v44  ;;  %v3113_v13 = vadd.f32 %v4378_v3, %v2804_v38  ;;  %v4309_v63 = vpop.f32.mrb[136].mxu1 }
 0x212   : > { %v4310_v35 = vpop.f32.mrb[137].mxu1 }
 0x213   : > { %v3155_v23 = vmax.f32 %v3137_v57, 0.0  ;;  %v3138_v52 = vadd.f32 %v6038_v6, %v3113_v13  ;;  %v4311_v24 = vadd.f32 %v4310_v35, %v4309_v63  ;;  %v4312_v60 = vpop.f32.mrb[138].mxu1  ;;  %v4385_v32 = vpop.f32.mrb[136].mxu0 }
 0x214   : > { %v4313_v29 = vpop.f32.mrb[139].mxu1  ;;  %v4386_v20 = vpop.f32.mrb[137].mxu0 }
 0x215   : > { %v3775_v47 = vpack.c.bf16 %v3155_v23, %v3155_v23  ;;  %v3156_v26 = vmax.f32 %v3138_v52, 0.0  ;;  %v2805_v12 = vadd.f32 %v4311_v24, %v5993_v49  ;;  %v4314_v53 = vadd.f32 %v4313_v29, %v4312_v60  ;;  %v4388_v45 = vpop.f32.mrb[138].mxu0 }
 0x216   : > { %v4387_v51 = vadd.f32 %v4386_v20, %v4385_v32  ;;  %v4389_v21 = vpop.f32.mrb[139].mxu0 }
 0x217   : > { %3246 = vst.msk [vmem:[%s6047_s21 + $0x8] sm:$0xf] %vm3243_vm6, %v3775_v47  ;;  %v3776_v2 = vpack.c.bf16 %v3156_v26, %v3156_v26  ;;  %v3114_v62 = vadd.f32 %v4381_v42, %v2805_v12  ;;  %v2806_v41 = vadd.f32 %v4314_v53, %v5996_v19  ;;  %v4390_v14 = vadd.f32 %v4389_v21, %v4388_v45 }
 0x219   : > { %3247 = vst.msk [vmem:[%s6047_s21 + $0xc] sm:$0xf] %vm3243_vm6, %v3776_v2  ;;  %v3139_v56 = vadd.f32 %v6038_v6, %v3114_v62  ;;  %v3115_v5 = vadd.f32 %v4384_v18, %v2806_v41  ;;  %v4315_v36 = vpop.f32.mrb[140].mxu1 }
 0x21a   : > { %v4316_v49 = vpop.f32.mrb[141].mxu1 }
 0x21b   : > { %v3157_v4 = vmax.f32 %v3139_v56, 0.0  ;;  %v3140_v15 = vadd.f32 %v6038_v6, %v3115_v5  ;;  %v4317_v43 = vadd.f32 %v4316_v49, %v4315_v36  ;;  %v4318_v0 = vpop.f32.mrb[142].mxu1  ;;  %v4391_v40 = vpop.f32.mrb[140].mxu0 }
 0x21c   : > { %v4319_v19 = vpop.f32.mrb[143].mxu1  ;;  %v4392_v30 = vpop.f32.mrb[141].mxu0 }
 0x21d   : > { %v3777_v54 = vpack.c.bf16 %v3157_v4, %v3157_v4  ;;  %v3158_v3 = vmax.f32 %v3140_v15, 0.0  ;;  %v2807_v50 = vadd.f32 %v4317_v43, %v5999_v27  ;;  %v4320_v10 = vadd.f32 %v4319_v19, %v4318_v0  ;;  %v4394_v16 = vpop.f32.mrb[142].mxu0 }
 0x21e   : > { %v4393_v1 = vadd.f32 %v4392_v30, %v4391_v40  ;;  %v4395_v38 = vpop.f32.mrb[143].mxu0 }
 0x21f   : > { %3248 = vst.msk [vmem:[%s6047_s21 + $0x10] sm:$0xf] %vm3243_vm6, %v3777_v54  ;;  %v3778_v22 = vpack.c.bf16 %v3158_v3, %v3158_v3  ;;  %v3116_v39 = vadd.f32 %v4387_v51, %v2807_v50  ;;  %v2808_v37 = vadd.f32 %v4320_v10, %v6002_v48  ;;  %v4396_v33 = vadd.f32 %v4395_v38, %v4394_v16 }
 0x221   : > { %3249 = vst.msk [vmem:[%s6047_s21 + $0x14] sm:$0xf] %vm3243_vm6, %v3778_v22  ;;  %v3141_v58 = vadd.f32 %v6038_v6, %v3116_v39  ;;  %v3117_v31 = vadd.f32 %v4390_v14, %v2808_v37  ;;  %v4321_v44 = vpop.f32.mrb[144].mxu1 }
 0x222   : > { %v4322_v27 = vpop.f32.mrb[145].mxu1 }
 0x223   : > { %v3159_v42 = vmax.f32 %v3141_v58, 0.0  ;;  %v3142_v59 = vadd.f32 %v6038_v6, %v3117_v31  ;;  %v4323_v57 = vadd.f32 %v4322_v27, %v4321_v44  ;;  %v4324_v13 = vpop.f32.mrb[146].mxu1  ;;  %v4397_v23 = vpop.f32.mrb[144].mxu0 }
 0x224   : > { %v4325_v48 = vpop.f32.mrb[147].mxu1  ;;  %v4398_v29 = vpop.f32.mrb[145].mxu0 }
 0x225   : > { %v3779_v63 = vpack.c.bf16 %v3159_v42, %v3159_v42  ;;  %v3160_v61 = vmax.f32 %v3142_v59, 0.0  ;;  %v2809_v35 = vadd.f32 %v4323_v57, %v6005_v7  ;;  %v4326_v18 = vadd.f32 %v4325_v48, %v4324_v13  ;;  %v4400_v26 = vpop.f32.mrb[146].mxu0 }
 0x226   : > { %v4399_v47 = vadd.f32 %v4398_v29, %v4397_v23  ;;  %v4401_v2 = vpop.f32.mrb[147].mxu0 }
 0x227   : > { %3250 = vst.msk [vmem:[%s6047_s21 + $0x18] sm:$0xf] %vm3243_vm6, %v3779_v63  ;;  %v3780_v52 = vpack.c.bf16 %v3160_v61, %v3160_v61  ;;  %v3118_v24 = vadd.f32 %v4393_v1, %v2809_v35  ;;  %v2810_v60 = vadd.f32 %v4326_v18, %v6008_v9  ;;  %v4402_v62 = vadd.f32 %v4401_v2, %v4400_v26 }
 0x229   : > { %3251 = vst.msk [vmem:[%s6047_s21 + $0x1c] sm:$0xf] %vm3243_vm6, %v3780_v52  ;;  %v3143_v12 = vadd.f32 %v6038_v6, %v3118_v24  ;;  %v3119_v53 = vadd.f32 %v4396_v33, %v2810_v60  ;;  %v4327_v32 = vpop.f32.mrb[148].mxu1 }
 0x22a   : > { %v4328_v7 = vpop.f32.mrb[149].mxu1 }
 0x22b   : > { %v3161_v41 = vmax.f32 %v3143_v12, 0.0  ;;  %v3144_v20 = vadd.f32 %v6038_v6, %v3119_v53  ;;  %v4329_v51 = vadd.f32 %v4328_v7, %v4327_v32  ;;  %v4330_v45 = vpop.f32.mrb[150].mxu1  ;;  %v4403_v49 = vpop.f32.mrb[148].mxu0 }
 0x22c   : > { %v4331_v9 = vpop.f32.mrb[151].mxu1  ;;  %v4404_v43 = vpop.f32.mrb[149].mxu0 }
 0x22d   : > { %v3781_v56 = vpack.c.bf16 %v3161_v41, %v3161_v41  ;;  %v3162_v5 = vmax.f32 %v3144_v20, 0.0  ;;  %v2811_v36 = vadd.f32 %v4329_v51, %v6011_v8  ;;  %v4332_v21 = vadd.f32 %v4331_v9, %v4330_v45  ;;  %v4406_v19 = vpop.f32.mrb[150].mxu0 }
 0x22e   : > { %v4405_v0 = vadd.f32 %v4404_v43, %v4403_v49  ;;  %v4407_v10 = vpop.f32.mrb[151].mxu0 }
 0x22f   : > { %3252 = vst.msk [vmem:[%s6047_s21 + $0x20] sm:$0xf] %vm3243_vm6, %v3781_v56  ;;  %v3782_v14 = vpack.c.bf16 %v3162_v5, %v3162_v5  ;;  %v3120_v4 = vadd.f32 %v4399_v47, %v2811_v36  ;;  %v2812_v15 = vadd.f32 %v4332_v21, %v6014_v55  ;;  %v4408_v40 = vadd.f32 %v4407_v10, %v4406_v19 }
 0x231   : > { %3253 = vst.msk [vmem:[%s6047_s21 + $0x24] sm:$0xf] %vm3243_vm6, %v3782_v14  ;;  %v3145_v54 = vadd.f32 %v6038_v6, %v3120_v4  ;;  %v3121_v3 = vadd.f32 %v4402_v62, %v2812_v15  ;;  %v4333_v50 = vpop.f32.mrb[152].mxu1 }
 0x232   : > { %v4334_v8 = vpop.f32.mrb[153].mxu1 }
 0x233   : > { %v3163_v22 = vmax.f32 %v3145_v54, 0.0  ;;  %v3146_v39 = vadd.f32 %v6038_v6, %v3121_v3  ;;  %v4335_v37 = vadd.f32 %v4334_v8, %v4333_v50  ;;  %v4336_v30 = vpop.f32.mrb[154].mxu1  ;;  %v4409_v44 = vpop.f32.mrb[152].mxu0 }
 0x234   : > { %v4337_v55 = vpop.f32.mrb[155].mxu1  ;;  %v4410_v42 = vpop.f32.mrb[153].mxu0 }
 0x235   : > { %v3783_v1 = vpack.c.bf16 %v3163_v22, %v3163_v22  ;;  %v3164_v16 = vmax.f32 %v3146_v39, 0.0  ;;  %v2813_v58 = vadd.f32 %v4335_v37, %v6017_v34  ;;  %v4338_v31 = vadd.f32 %v4337_v55, %v4336_v30  ;;  %v4412_v57 = vpop.f32.mrb[154].mxu0 }
 0x236   : > { %v4411_v59 = vadd.f32 %v4410_v42, %v4409_v44  ;;  %v4413_v61 = vpop.f32.mrb[155].mxu0 }
 0x237   : > { %3254 = vst.msk [vmem:[%s6047_s21 + $0x28] sm:$0xf] %vm3243_vm6, %v3783_v1  ;;  %v3784_v38 = vpack.c.bf16 %v3164_v16, %v3164_v16  ;;  %v3122_v27 = vadd.f32 %v4405_v0, %v2813_v58  ;;  %v2814_v33 = vadd.f32 %v4338_v31, %v6020_v46  ;;  %v4414_v35 = vadd.f32 %v4413_v61, %v4412_v57 }
 0x239   : > { %3255 = vst.msk [vmem:[%s6047_s21 + $0x2c] sm:$0xf] %vm3243_vm6, %v3784_v38  ;;  %v3147_v13 = vadd.f32 %v6038_v6, %v3122_v27  ;;  %v3123_v48 = vadd.f32 %v4408_v40, %v2814_v33  ;;  %v4339_v63 = vpop.f32.mrb[156].mxu1 }
 0x23a   : > { %v4340_v34 = vpop.f32.mrb[157].mxu1 }
 0x23b   : > { %v3165_v18 = vmax.f32 %v3147_v13, 0.0  ;;  %v3148_v23 = vadd.f32 %v6038_v6, %v3123_v48  ;;  %v4341_v52 = vadd.f32 %v4340_v34, %v4339_v63  ;;  %v4342_v24 = vpop.f32.mrb[158].mxu1  ;;  %v4415_v12 = vpop.f32.mrb[156].mxu0 }
 0x23c   : > { %v4343_v46 = vpop.f32.mrb[159].mxu1  ;;  %v4416_v7 = vpop.f32.mrb[157].mxu0 }
 0x23d   : > { %v3785_v60 = vpack.c.bf16 %v3165_v18, %v3165_v18  ;;  %v3166_v29 = vmax.f32 %v3148_v23, 0.0  ;;  %v2815_v47 = vadd.f32 %v4341_v52, %v6023_v17  ;;  %v4344_v26 = vadd.f32 %v4343_v46, %v4342_v24  ;;  %v4418_v41 = vpop.f32.mrb[158].mxu0 }
 0x23e   : > { %v4417_v62 = vadd.f32 %v4416_v7, %v4415_v12  ;;  %v4419_v9 = vpop.f32.mrb[159].mxu0 }
 0x23f   : > { %3256 = vst.msk [vmem:[%s6047_s21 + $0x30] sm:$0xf] %vm3243_vm6, %v3785_v60  ;;  %v3786_v53 = vpack.c.bf16 %v3166_v29, %v3166_v29  ;;  %v3124_v32 = vadd.f32 %v4411_v59, %v2815_v47  ;;  %v2816_v2 = vadd.f32 %v4344_v26, %v6026_v11  ;;  %v4420_v56 = vadd.f32 %v4419_v9, %v4418_v41 }
 0x241   : > { %3257 = vst.msk [vmem:[%s6047_s21 + $0x34] sm:$0xf] %vm3243_vm6, %v3786_v53  ;;  %v3149_v20 = vadd.f32 %v6038_v6, %v3124_v32  ;;  %v3125_v51 = vadd.f32 %v4414_v35, %v2816_v2  ;;  %v4345_v45 = vpop.f32.mrb[160].mxu1 }
 0x242   : > { %v4346_v17 = vpop.f32.mrb[161].mxu1 }
 0x243   : > { %v3167_v5 = vmax.f32 %v3149_v20, 0.0  ;;  %v3150_v36 = vadd.f32 %v6038_v6, %v3125_v51  ;;  %v4347_v21 = vadd.f32 %v4346_v17, %v4345_v45  ;;  %v4348_v49 = vpop.f32.mrb[162].mxu1 }
 0x244   : > { %v4349_v11 = vpop.f32.mrb[163].mxu1 }
 0x245   : > { %v3787_v14 = vpack.c.bf16 %v3167_v5, %v3167_v5  ;;  %v3168_v4 = vmax.f32 %v3150_v36, 0.0  ;;  %v2817_v15 = vadd.f32 %v4347_v21, %v6029_v25  ;;  %v4350_v43 = vadd.f32 %v4349_v11, %v4348_v49 }
 0x247   : > { %3258 = vst.msk [vmem:[%s6047_s21 + $0x38] sm:$0xf] %vm3243_vm6, %v3787_v14  ;;  %v3788_v0 = vpack.c.bf16 %v3168_v4, %v3168_v4  ;;  %v3126_v19 = vadd.f32 %v4417_v62, %v2817_v15  ;;  %v2818_v54 = vadd.f32 %v4350_v43, %v6032_v28 }
 0x249   : > { %3259 = vst.msk [vmem:[%s6047_s21 + $0x3c] sm:$0xf] %vm3243_vm6, %v3788_v0  ;;  %v3151_v3 = vadd.f32 %v6038_v6, %v3126_v19  ;;  %v3127_v50 = vadd.f32 %v4420_v56, %v2818_v54 }
 0x24b   : > { %v3169_v10 = vmax.f32 %v3151_v3, 0.0  ;;  %v3152_v8 = vadd.f32 %v6038_v6, %v3127_v50 }
 0x24d   : > { %v3789_v40 = vpack.c.bf16 %v3169_v10, %v3169_v10  ;;  %v3170_v22 = vmax.f32 %v3152_v8, 0.0 }
 0x24f   : > { %3260 = vst.msk [vmem:[%s6047_s21 + $0x40] sm:$0xf] %vm3243_vm6, %v3789_v40  ;;  %v3790_v25 = vpack.c.bf16 %v3170_v22, %v3170_v22 }
 0x251   : > { %3261 = vst.msk [vmem:[%s6047_s21 + $0x44] sm:$0xf] %vm3243_vm6, %v3790_v25 }
 0x252 PF: > { %s13_s12 = sadd.s32 1, %s4651_s12  }
 0x253   : > { %p10_p4 = scmp.ge.s32.totalorder %s13_s12, 4  }
 0x255   :  { %12 = sbr.rel (!%p10_p4) target bundleno = 1 (0x1), region = 70 }

// kernel: _front.33
= control target key start
LH: loop header
LB: loop body
LE: loop exit
PB: predicated region body
PF: predicated region fallthrough
CT: control target
= control target key end

     0   :  { %s3881_s0 = inlined_call_operand.vmem [shape: bf16[64,2304], index: 0, kind: input, shape index: {}]   ;;  %s3882_s1 = inlined_call_operand.vmem [shape: bf16[2304,96], index: 1, kind: input, shape index: {}]   ;;  %s3883_s2 = inlined_call_operand.vmem [shape: f32[1,96], index: 2, kind: input, shape index: {}]   ;;  %s3884_s3 = inlined_call_operand.hbm [shape: bf16[64,96], index: 3, kind: output, shape index: {}]  }
   0x1   :  { %v2869_v0 = vld [vmem:[%s3882_s1 + $0x40] sm:$0xff]   ;;  %v2873_v4 = vld [vmem:[%s3882_s1 + $0x48] sm:$0xff]   ;;  %v2877_v8 = vld [vmem:[%s3882_s1 + $0x50] sm:$0xff]  }
   0x2   :  { %v2870_v1 = vld [vmem:[%s3882_s1 + $0xc0] sm:$0xff]   ;;  %2490 = vmatprep.subr.bf16.mxu0 %v2869_v0  ;;  %v2874_v5 = vld [vmem:[%s3882_s1 + $0xc8] sm:$0xff]   ;;  %v2878_v9 = vld [vmem:[%s3882_s1 + $0xd0] sm:$0xff]  }
   0x3   :  { %v2871_v2 = vld [vmem:[%s3882_s1] sm:$0xff]   ;;  %2530 = vmatprep.subr.bf16.mxu1 %v2870_v1  ;;  %v2875_v6 = vld [vmem:[%s3882_s1 + $0x8] sm:$0xff]   ;;  %v2879_v10 = vld [vmem:[%s3882_s1 + $0x10] sm:$0xff]  }
   0x4   :  { %v2872_v3 = vld [vmem:[%s3882_s1 + $0x80] sm:$0xff]   ;;  %2491 = vmatpush3.bf16.msra.mxu0 %v2871_v2  ;;  %v2876_v7 = vld [vmem:[%s3882_s1 + $0x88] sm:$0xff]   ;;  %v2880_v11 = vld [vmem:[%s3882_s1 + $0x90] sm:$0xff]  }
   0x5   :  { %2531 = vmatpush3.bf16.msra.mxu1 %v2872_v3  ;;  %2492 = vmatprep.subr.bf16.mxu0 %v2873_v4  ;;  %v2881_v12 = vld [vmem:[%s3882_s1 + $0x58] sm:$0xff]   ;;  %v2885_v16 = vld [vmem:[%s3882_s1 + $0x60] sm:$0xff]   ;;  %v2889_v20 = vld [vmem:[%s3882_s1 + $0x68] sm:$0xff]  }
   0x6   :  { %2532 = vmatprep.subr.bf16.mxu1 %v2874_v5  ;;  %v2882_v13 = vld [vmem:[%s3882_s1 + $0xd8] sm:$0xff]   ;;  %v2886_v17 = vld [vmem:[%s3882_s1 + $0xe0] sm:$0xff]   ;;  %v2890_v21 = vld [vmem:[%s3882_s1 + $0xe8] sm:$0xff]  }
   0x7   :  { %v2883_v14 = vld [vmem:[%s3882_s1 + $0x18] sm:$0xff]   ;;  %v2887_v18 = vld [vmem:[%s3882_s1 + $0x20] sm:$0xff]   ;;  %v2891_v22 = vld [vmem:[%s3882_s1 + $0x28] sm:$0xff]  }
   0x8   :  { %2493 = vmatpush3.bf16.msra.mxu0 %v2875_v6  ;;  %v2884_v15 = vld [vmem:[%s3882_s1 + $0x98] sm:$0xff]   ;;  %v2888_v19 = vld [vmem:[%s3882_s1 + $0xa0] sm:$0xff]   ;;  %v2892_v23 = vld [vmem:[%s3882_s1 + $0xa8] sm:$0xff]  }
   0x9   :  { %2533 = vmatpush3.bf16.msra.mxu1 %v2876_v7  ;;  %2494 = vmatprep.subr.bf16.mxu0 %v2877_v8  ;;  %v2893_v24 = vld [vmem:[%s3882_s1 + $0x70] sm:$0xff]   ;;  %v2897_v28 = vld [vmem:[%s3882_s1 + $0x78] sm:$0xff]   ;;  %v2901_v32 = vld [vmem:[%s3881_s0] ss:$72 sps:$4 sm:$0xff]  }
   0xa   :  { %2534 = vmatprep.subr.bf16.mxu1 %v2878_v9  ;;  %v2894_v25 = vld [vmem:[%s3882_s1 + $0xf0] sm:$0xff]   ;;  %v2898_v29 = vld [vmem:[%s3882_s1 + $0xf8] sm:$0xff]   ;;  %v2903_v33 = vld [vmem:[%s3881_s0 + $0x4] ss:$72 sps:$4 sm:$0xff]  }
   0xb   :  { %v2895_v26 = vld [vmem:[%s3882_s1 + $0x30] sm:$0xff]   ;;  %v2899_v30 = vld [vmem:[%s3882_s1 + $0x38] sm:$0xff]   ;;  %1639 = vmatprep.mubr.bf16.mxu0 %v2903_v33  ;;  %v2907_v36 = vld [vmem:[%s3882_s1 + $0x140] sm:$0xff]  }
   0xc   :  { %2495 = vmatpush3.bf16.msra.mxu0 %v2879_v10  ;;  %v2896_v27 = vld [vmem:[%s3882_s1 + $0xb0] sm:$0xff]   ;;  %v2900_v31 = vld [vmem:[%s3882_s1 + $0xb8] sm:$0xff]   ;;  %v2908_v37 = vld [vmem:[%s3882_s1 + $0x1c0] sm:$0xff]  }
   0xd   :  { %2535 = vmatpush3.bf16.msra.mxu1 %v2880_v11  ;;  %2496 = vmatprep.subr.bf16.mxu0 %v2881_v12  ;;  %v2904_v34 = vld [vmem:[%s3881_s0 + $0x8] ss:$72 sps:$4 sm:$0xff]   ;;  %v2906_v35 = vld [vmem:[%s3881_s0 + $0xc] ss:$72 sps:$4 sm:$0xff]   ;;  %v2909_v38 = vld [vmem:[%s3882_s1 + $0x100] sm:$0xff]  }
   0xe   :  { %2536 = vmatprep.subr.bf16.mxu1 %v2882_v13  ;;  %1704 = vmatprep.mubr.bf16.mxu1 %v2906_v35  ;;  %v2910_v39 = vld [vmem:[%s3882_s1 + $0x180] sm:$0xff]   ;;  %v2911_v40 = vld [vmem:[%s3882_s1 + $0x148] sm:$0xff]   ;;  %v2915_v44 = vld [vmem:[%s3881_s0 + $0x94] ss:$72 sps:$4 sm:$0xff]  }
   0xf   :  { %v2912_v41 = vld [vmem:[%s3882_s1 + $0x1c8] sm:$0xff]   ;;  %v2917_v45 = vld [vmem:[%s3881_s0 + $0x9c] ss:$72 sps:$4 sm:$0xff]   ;;  %v2919_v46 = vld [vmem:[%s3881_s0 + $0x90] ss:$72 sps:$4 sm:$0xff]  }
  0x10   :  { %2497 = vmatpush3.bf16.msra.mxu0 %v2883_v14  ;;  %v2913_v42 = vld [vmem:[%s3882_s1 + $0x108] sm:$0xff]   ;;  %v2920_v47 = vld [vmem:[%s3881_s0 + $0x98] ss:$72 sps:$4 sm:$0xff]   ;;  %v2921_v48 = vld [vmem:[%s3882_s1 + $0x150] sm:$0xff]  }
  0x11   :  { %2537 = vmatpush3.bf16.msra.mxu1 %v2884_v15  ;;  %2498 = vmatprep.subr.bf16.mxu0 %v2885_v16  ;;  %v2914_v43 = vld [vmem:[%s3882_s1 + $0x188] sm:$0xff]   ;;  %v2922_v49 = vld [vmem:[%s3882_s1 + $0x1d0] sm:$0xff]   ;;  %v2925_v52 = vld [vmem:[%s3882_s1 + $0x158] sm:$0xff]  }
  0x12   :  { %2538 = vmatprep.subr.bf16.mxu1 %v2886_v17  ;;  %v2923_v50 = vld [vmem:[%s3882_s1 + $0x110] sm:$0xff]   ;;  %v2926_v53 = vld [vmem:[%s3882_s1 + $0x1d8] sm:$0xff]   ;;  %v2929_v56 = vld [vmem:[%s3881_s0 + $0x124] ss:$72 sps:$4 sm:$0xff]  }
  0x13   :  { %v2924_v51 = vld [vmem:[%s3882_s1 + $0x190] sm:$0xff]   ;;  %v2927_v54 = vld [vmem:[%s3882_s1 + $0x118] sm:$0xff]   ;;  %v2933_v58 = vld [vmem:[%s3881_s0 + $0x120] ss:$72 sps:$4 sm:$0xff]  }
  0x14   :  { %2499 = vmatpush3.bf16.msra.mxu0 %v2887_v18  ;;  %v2928_v55 = vld [vmem:[%s3882_s1 + $0x198] sm:$0xff]   ;;  %v2931_v57 = vld [vmem:[%s3881_s0 + $0x12c] ss:$72 sps:$4 sm:$0xff]   ;;  %v2934_v59 = vld [vmem:[%s3881_s0 + $0x128] ss:$72 sps:$4 sm:$0xff]  }
  0x15   :  { %2539 = vmatpush3.bf16.msra.mxu1 %v2888_v19  ;;  %2500 = vmatprep.subr.bf16.mxu0 %v2889_v20  ;;  %v2935_v60 = vld [vmem:[%s3882_s1 + $0x160] sm:$0xff]   ;;  %v2939_v0 = vld [vmem:[%s3882_s1 + $0x168] sm:$0xff]   ;;  %v2943_v4 = vld [vmem:[%s3881_s0 + $0x1b4] ss:$72 sps:$4 sm:$0xff]  }
  0x16   :  { %2540 = vmatprep.subr.bf16.mxu1 %v2890_v21  ;;  %v2936_v61 = vld [vmem:[%s3882_s1 + $0x1e0] sm:$0xff]   ;;  %v2940_v1 = vld [vmem:[%s3882_s1 + $0x1e8] sm:$0xff]   ;;  %v2947_v6 = vld [vmem:[%s3881_s0 + $0x1b0] ss:$72 sps:$4 sm:$0xff]  }
  0x17   :  { %v2937_v62 = vld [vmem:[%s3882_s1 + $0x120] sm:$0xff]   ;;  %v2941_v2 = vld [vmem:[%s3882_s1 + $0x128] sm:$0xff]   ;;  %v2949_v8 = vld [vmem:[%s3882_s1 + $0x170] sm:$0xff]  }
  0x18   :  { %2501 = vmatpush3.bf16.msra.mxu0 %v2891_v22  ;;  %v2938_v63 = vld [vmem:[%s3882_s1 + $0x1a0] sm:$0xff]   ;;  %v2942_v3 = vld [vmem:[%s3882_s1 + $0x1a8] sm:$0xff]   ;;  %v2950_v9 = vld [vmem:[%s3882_s1 + $0x1f0] sm:$0xff]  }
  0x19   :  { %2541 = vmatpush3.bf16.msra.mxu1 %v2892_v23  ;;  %2502 = vmatprep.subr.bf16.mxu0 %v2893_v24  ;;  %v2945_v5 = vld [vmem:[%s3881_s0 + $0x1bc] ss:$72 sps:$4 sm:$0xff]   ;;  %v2948_v7 = vld [vmem:[%s3881_s0 + $0x1b8] ss:$72 sps:$4 sm:$0xff]   ;;  %v2951_v10 = vld [vmem:[%s3882_s1 + $0x130] sm:$0xff]  }
  0x1a   :  { %2542 = vmatprep.subr.bf16.mxu1 %v2894_v25  ;;  %v2952_v11 = vld [vmem:[%s3882_s1 + $0x1b0] sm:$0xff]   ;;  %v2953_v12 = vld [vmem:[%s3882_s1 + $0x178] sm:$0xff]   ;;  %v2963_v20 = vld [vmem:[%s3882_s1 + $0x240] sm:$0xff]  }
  0x1b   :  { %v2954_v13 = vld [vmem:[%s3882_s1 + $0x1f8] sm:$0xff]   ;;  %v2964_v21 = vld [vmem:[%s3882_s1 + $0x2c0] sm:$0xff]   ;;  %v2967_v24 = vld [vmem:[%s3882_s1 + $0x248] sm:$0xff]  }
  0x1c   :  { %2503 = vmatpush3.bf16.msra.mxu0 %v2895_v26  ;;  %v2955_v14 = vld [vmem:[%s3882_s1 + $0x138] sm:$0xff]   ;;  %v2965_v22 = vld [vmem:[%s3882_s1 + $0x200] sm:$0xff]   ;;  %v2968_v25 = vld [vmem:[%s3882_s1 + $0x2c8] sm:$0xff]  }
  0x1d   :  { %2543 = vmatpush3.bf16.msra.mxu1 %v2896_v27  ;;  %2504 = vmatprep.subr.bf16.mxu0 %v2897_v28  ;;  %v2956_v15 = vld [vmem:[%s3882_s1 + $0x1b8] sm:$0xff]   ;;  %v2966_v23 = vld [vmem:[%s3882_s1 + $0x280] sm:$0xff]   ;;  %v2969_v26 = vld [vmem:[%s3882_s1 + $0x208] sm:$0xff]  }
  0x1e   :  { %2544 = vmatprep.subr.bf16.mxu1 %v2898_v29  ;;  %v2957_v16 = vld [vmem:[%s3881_s0 + $0x10] ss:$72 sps:$4 sm:$0xff]   ;;  %v2959_v17 = vld [vmem:[%s3881_s0 + $0x14] ss:$72 sps:$4 sm:$0xff]   ;;  %v2970_v27 = vld [vmem:[%s3882_s1 + $0x288] sm:$0xff]  }
  0x1f   :  { %v2960_v18 = vld [vmem:[%s3881_s0 + $0x18] ss:$72 sps:$4 sm:$0xff]   ;;  %v2962_v19 = vld [vmem:[%s3881_s0 + $0x1c] ss:$72 sps:$4 sm:$0xff]   ;;  %v2973_v29 = vld [vmem:[%s3881_s0 + $0xac] ss:$72 sps:$4 sm:$0xff]  }
  0x20   :  { %2505 = vmatpush3.bf16.msra.mxu0 %v2899_v30  ;;  %v2971_v28 = vld [vmem:[%s3881_s0 + $0xa4] ss:$72 sps:$4 sm:$0xff]   ;;  %v2975_v30 = vld [vmem:[%s3881_s0 + $0xa0] ss:$72 sps:$4 sm:$0xff]   ;;  %v2978_v33 = vld [vmem:[%s3882_s1 + $0x2d0] sm:$0xff]  }
  0x21   :  { %2545 = vmatpush3.bf16.msra.mxu1 %v2900_v31  ;;  %2570 = vmatprep.subr.bf16.mxu0 %v2907_v36  ;;  %v2976_v31 = vld [vmem:[%s3881_s0 + $0xa8] ss:$72 sps:$4 sm:$0xff]   ;;  %v2981_v36 = vld [vmem:[%s3882_s1 + $0x258] sm:$0xff]  }
  0x22   :  { %2610 = vmatprep.subr.bf16.mxu1 %v2908_v37  ;;  %v2980_v35 = vld [vmem:[%s3882_s1 + $0x290] sm:$0xff]   ;;  %v2982_v37 = vld [vmem:[%s3882_s1 + $0x2d8] sm:$0xff]  }
  0x23   :  { %1640 = vmatmul.mubr.bf16.vlgmr.msra.gmra.mrb[0].mxu0 %v2901_v32  ;;  %v2977_v32 = vld [vmem:[%s3882_s1 + $0x250] sm:$0xff]  }
  0x24   :  { %1705 = vmatmul.mubr.bf16.vlgmr.msra.gmra.mrb[0].mxu1 %v2904_v34  ;;  %2571 = vmatpush3.bf16.msra.mxu0 %v2909_v38  ;;  %v2979_v34 = vld [vmem:[%s3882_s1 + $0x210] sm:$0xff]   ;;  %v2983_v38 = vld [vmem:[%s3882_s1 + $0x218] sm:$0xff]  }
  0x25   :  { %2611 = vmatpush3.bf16.msra.mxu1 %v2910_v39  ;;  %2572 = vmatprep.subr.bf16.mxu0 %v2911_v40  ;;  %v2984_v39 = vld [vmem:[%s3882_s1 + $0x298] sm:$0xff]  }
  0x26   :  { %2612 = vmatprep.subr.bf16.mxu1 %v2912_v41  ;;  %1647 = vmatprep.mubr.bf16.mxu0 %v2915_v44  ;;  %v2985_v40 = vld [vmem:[%s3881_s0 + $0x134] ss:$72 sps:$4 sm:$0xff]   ;;  %v2991_v44 = vld [vmem:[%s3882_s1 + $0x260] sm:$0xff]  }
  0x27   :  { %1712 = vmatprep.mubr.bf16.mxu1 %v2917_v45  ;;  %v2987_v41 = vld [vmem:[%s3881_s0 + $0x13c] ss:$72 sps:$4 sm:$0xff]  }
  0x28   :  { %2573 = vmatpush3.bf16.msra.mxu0 %v2913_v42  ;;  %v2989_v42 = vld [vmem:[%s3881_s0 + $0x130] ss:$72 sps:$4 sm:$0xff]   ;;  %v2992_v45 = vld [vmem:[%s3882_s1 + $0x2e0] sm:$0xff]  }
  0x29   :  { %2613 = vmatpush3.bf16.msra.mxu1 %v2914_v43  ;;  %2574 = vmatprep.subr.bf16.mxu0 %v2921_v48  ;;  %v2990_v43 = vld [vmem:[%s3881_s0 + $0x138] ss:$72 sps:$4 sm:$0xff]   ;;  %v2995_v48 = vld [vmem:[%s3882_s1 + $0x268] sm:$0xff]  }
  0x2a   :  { %2614 = vmatprep.subr.bf16.mxu1 %v2922_v49  ;;  %v2996_v49 = vld [vmem:[%s3882_s1 + $0x2e8] sm:$0xff]  }
  0x2b   :  { %1648 = vmatmul.mubr.bf16.gmra.mrb[4].mxu0 %v2919_v46  ;;  %v2993_v46 = vld [vmem:[%s3882_s1 + $0x220] sm:$0xff]  }
  0x2c   :  { %1713 = vmatmul.mubr.bf16.gmra.mrb[4].mxu1 %v2920_v47  ;;  %2575 = vmatpush3.bf16.msra.mxu0 %v2923_v50  ;;  %v2994_v47 = vld [vmem:[%s3882_s1 + $0x2a0] sm:$0xff]   ;;  %v2997_v50 = vld [vmem:[%s3882_s1 + $0x228] sm:$0xff]  }
  0x2d   :  { %2615 = vmatpush3.bf16.msra.mxu1 %v2924_v51  ;;  %2576 = vmatprep.subr.bf16.mxu0 %v2925_v52  ;;  %v2998_v51 = vld [vmem:[%s3882_s1 + $0x2a8] sm:$0xff]  }
  0x2e   :  { %2616 = vmatprep.subr.bf16.mxu1 %v2926_v53  ;;  %1655 = vmatprep.mubr.bf16.mxu0 %v2929_v56  ;;  %v2999_v52 = vld [vmem:[%s3881_s0 + $0x1c4] ss:$72 sps:$4 sm:$0xff]   ;;  %v3005_v56 = vld [vmem:[%s3882_s1 + $0x270] sm:$0xff]  }
  0x2f   :  { %1720 = vmatprep.mubr.bf16.mxu1 %v2931_v57  ;;  %v3001_v53 = vld [vmem:[%s3881_s0 + $0x1cc] ss:$72 sps:$4 sm:$0xff]  }
  0x30   :  { %2577 = vmatpush3.bf16.msra.mxu0 %v2927_v54  ;;  %v3003_v54 = vld [vmem:[%s3881_s0 + $0x1c0] ss:$72 sps:$4 sm:$0xff]   ;;  %v3006_v57 = vld [vmem:[%s3882_s1 + $0x2f0] sm:$0xff]  }
  0x31   :  { %2617 = vmatpush3.bf16.msra.mxu1 %v2928_v55  ;;  %2578 = vmatprep.subr.bf16.mxu0 %v2935_v60  ;;  %v3004_v55 = vld [vmem:[%s3881_s0 + $0x1c8] ss:$72 sps:$4 sm:$0xff]   ;;  %v3009_v60 = vld [vmem:[%s3882_s1 + $0x278] sm:$0xff]  }
  0x32   :  { %2618 = vmatprep.subr.bf16.mxu1 %v2936_v61  ;;  %v3010_v61 = vld [vmem:[%s3882_s1 + $0x2f8] sm:$0xff]  }
  0x33   :  { %1656 = vmatmul.mubr.bf16.gmra.mrb[8].mxu0 %v2933_v58  ;;  %v3007_v58 = vld [vmem:[%s3882_s1 + $0x230] sm:$0xff]  }
  0x34   :  { %1721 = vmatmul.mubr.bf16.gmra.mrb[8].mxu1 %v2934_v59  ;;  %2579 = vmatpush3.bf16.msra.mxu0 %v2937_v62  ;;  %v3008_v59 = vld [vmem:[%s3882_s1 + $0x2b0] sm:$0xff]   ;;  %v3011_v62 = vld [vmem:[%s3882_s1 + $0x238] sm:$0xff]  }
  0x35   :  { %2619 = vmatpush3.bf16.msra.mxu1 %v2938_v63  ;;  %2580 = vmatprep.subr.bf16.mxu0 %v2939_v0  ;;  %v3012_v63 = vld [vmem:[%s3882_s1 + $0x2b8] sm:$0xff]   ;;  %v3013_v0 = vld [vmem:[%s3881_s0 + $0x20] ss:$72 sps:$4 sm:$0xff]  }
  0x36   :  { %2620 = vmatprep.subr.bf16.mxu1 %v2940_v1  ;;  %1663 = vmatprep.mubr.bf16.mxu0 %v2943_v4  ;;  %v3015_v1 = vld [vmem:[%s3881_s0 + $0x24] ss:$72 sps:$4 sm:$0xff]  }
  0x37   :  { %1728 = vmatprep.mubr.bf16.mxu1 %v2945_v5  ;;  %v3019_v4 = vld [vmem:[%s3882_s1 + $0x340] sm:$0xff]  }
  0x38   :  { %2581 = vmatpush3.bf16.msra.mxu0 %v2941_v2  ;;  %v3016_v2 = vld [vmem:[%s3881_s0 + $0x28] ss:$72 sps:$4 sm:$0xff]   ;;  %v3020_v5 = vld [vmem:[%s3882_s1 + $0x3c0] sm:$0xff]  }
  0x39   :  { %2621 = vmatpush3.bf16.msra.mxu1 %v2942_v3  ;;  %2582 = vmatprep.subr.bf16.mxu0 %v2949_v8  ;;  %v3018_v3 = vld [vmem:[%s3881_s0 + $0x2c] ss:$72 sps:$4 sm:$0xff]  }
  0x3a   :  { %2622 = vmatprep.subr.bf16.mxu1 %v2950_v9  ;;  %v3023_v8 = vld [vmem:[%s3882_s1 + $0x348] sm:$0xff]  }
  0x3b   :  { %1664 = vmatmul.mubr.bf16.gmra.mrb[12].mxu0 %v2947_v6  ;;  %v3021_v6 = vld [vmem:[%s3882_s1 + $0x300] sm:$0xff]   ;;  %v3024_v9 = vld [vmem:[%s3882_s1 + $0x3c8] sm:$0xff]  }
  0x3c   :  { %1729 = vmatmul.mubr.bf16.gmra.mrb[12].mxu1 %v2948_v7  ;;  %2583 = vmatpush3.bf16.msra.mxu0 %v2951_v10  ;;  %v3022_v7 = vld [vmem:[%s3882_s1 + $0x380] sm:$0xff]   ;;  %v3025_v10 = vld [vmem:[%s3882_s1 + $0x308] sm:$0xff]  }
  0x3d   :  { %2623 = vmatpush3.bf16.msra.mxu1 %v2952_v11  ;;  %2584 = vmatprep.subr.bf16.mxu0 %v2953_v12  ;;  %v3026_v11 = vld [vmem:[%s3882_s1 + $0x388] sm:$0xff]   ;;  %v3027_v12 = vld [vmem:[%s3881_s0 + $0xb4] ss:$72 sps:$4 sm:$0xff]  }
  0x3e   :  { %2624 = vmatprep.subr.bf16.mxu1 %v2954_v13  ;;  %1769 = vmatprep.mubr.bf16.mxu0 %v2959_v17  ;;  %v3029_v13 = vld [vmem:[%s3881_s0 + $0xbc] ss:$72 sps:$4 sm:$0xff]   ;;  %v3034_v17 = vld [vmem:[%s3882_s1 + $0x3d0] sm:$0xff]  }
  0x3f   :  { %1834 = vmatprep.mubr.bf16.mxu1 %v2962_v19  ;;  %v3036_v19 = vld [vmem:[%s3882_s1 + $0x390] sm:$0xff]  }
  0x40   :  { %2585 = vmatpush3.bf16.msra.mxu0 %v2955_v14  ;;  %v3031_v14 = vld [vmem:[%s3881_s0 + $0xb0] ss:$72 sps:$4 sm:$0xff]  }
  0x41   :  { %2625 = vmatpush3.bf16.msra.mxu1 %v2956_v15  ;;  %2650 = vmatprep.subr.bf16.mxu0 %v2963_v20  ;;  %v3032_v15 = vld [vmem:[%s3881_s0 + $0xb8] ss:$72 sps:$4 sm:$0xff]  }
  0x42   :  { %2690 = vmatprep.subr.bf16.mxu1 %v2964_v21  ;;  %v3037_v20 = vld [vmem:[%s3882_s1 + $0x358] sm:$0xff]  }
  0x43   :  { %1770 = vmatmul.mubr.bf16.vlgmr.msra.gmra.mrb[16].mxu0 %v2957_v16  ;;  %v3033_v16 = vld [vmem:[%s3882_s1 + $0x350] sm:$0xff]   ;;  %v3038_v21 = vld [vmem:[%s3882_s1 + $0x3d8] sm:$0xff]  }
  0x44   :  { %1835 = vmatmul.mubr.bf16.vlgmr.msra.gmra.mrb[16].mxu1 %v2960_v18  ;;  %2651 = vmatpush3.bf16.msra.mxu0 %v2965_v22  ;;  %v3035_v18 = vld [vmem:[%s3882_s1 + $0x310] sm:$0xff]   ;;  %v3039_v22 = vld [vmem:[%s3882_s1 + $0x318] sm:$0xff]  }
  0x45   :  { %2691 = vmatpush3.bf16.msra.mxu1 %v2966_v23  ;;  %2652 = vmatprep.subr.bf16.mxu0 %v2967_v24  ;;  %v3040_v23 = vld [vmem:[%s3882_s1 + $0x398] sm:$0xff]   ;;  %v3041_v24 = vld [vmem:[%s3881_s0 + $0x144] ss:$72 sps:$4 sm:$0xff]  }
  0x46   :  { %2692 = vmatprep.subr.bf16.mxu1 %v2968_v25  ;;  %1777 = vmatprep.mubr.bf16.mxu0 %v2971_v28  ;;  %v3043_v25 = vld [vmem:[%s3881_s0 + $0x14c] ss:$72 sps:$4 sm:$0xff]   ;;  %v3047_v28 = vld [vmem:[%s3882_s1 + $0x360] sm:$0xff]  }
  0x47   :  { %1842 = vmatprep.mubr.bf16.mxu1 %v2973_v29  ;;  %v3048_v29 = vld [vmem:[%s3882_s1 + $0x3e0] sm:$0xff]  }
  0x48   :  { %2653 = vmatpush3.bf16.msra.mxu0 %v2969_v26  ;;  %v3045_v26 = vld [vmem:[%s3881_s0 + $0x140] ss:$72 sps:$4 sm:$0xff]  }
  0x49   :  { %2693 = vmatpush3.bf16.msra.mxu1 %v2970_v27  ;;  %2654 = vmatprep.subr.bf16.mxu0 %v2977_v32  ;;  %v3046_v27 = vld [vmem:[%s3881_s0 + $0x148] ss:$72 sps:$4 sm:$0xff]  }
  0x4a   :  { %2694 = vmatprep.subr.bf16.mxu1 %v2978_v33  ;;  %v3051_v32 = vld [vmem:[%s3882_s1 + $0x368] sm:$0xff]  }
  0x4b   :  { %1778 = vmatmul.mubr.bf16.gmra.mrb[20].mxu0 %v2975_v30  ;;  %v3049_v30 = vld [vmem:[%s3882_s1 + $0x320] sm:$0xff]   ;;  %v3052_v33 = vld [vmem:[%s3882_s1 + $0x3e8] sm:$0xff]  }
  0x4c   :  { %1843 = vmatmul.mubr.bf16.gmra.mrb[20].mxu1 %v2976_v31  ;;  %2655 = vmatpush3.bf16.msra.mxu0 %v2979_v34  ;;  %v3050_v31 = vld [vmem:[%s3882_s1 + $0x3a0] sm:$0xff]   ;;  %v3053_v34 = vld [vmem:[%s3882_s1 + $0x328] sm:$0xff]  }
  0x4d   :  { %2695 = vmatpush3.bf16.msra.mxu1 %v2980_v35  ;;  %2656 = vmatprep.subr.bf16.mxu0 %v2981_v36  ;;  %v3054_v35 = vld [vmem:[%s3882_s1 + $0x3a8] sm:$0xff]   ;;  %v3055_v36 = vld [vmem:[%s3881_s0 + $0x1d4] ss:$72 sps:$4 sm:$0xff]  }
  0x4e   :  { %2696 = vmatprep.subr.bf16.mxu1 %v2982_v37  ;;  %1785 = vmatprep.mubr.bf16.mxu0 %v2985_v40  ;;  %v3057_v37 = vld [vmem:[%s3881_s0 + $0x1dc] ss:$72 sps:$4 sm:$0xff]   ;;  %v3061_v40 = vld [vmem:[%s3882_s1 + $0x370] sm:$0xff]  }
  0x4f   :  { %1850 = vmatprep.mubr.bf16.mxu1 %v2987_v41  ;;  %v3062_v41 = vld [vmem:[%s3882_s1 + $0x3f0] sm:$0xff]  }
  0x50   :  { %2657 = vmatpush3.bf16.msra.mxu0 %v2983_v38  ;;  %v3059_v38 = vld [vmem:[%s3881_s0 + $0x1d0] ss:$72 sps:$4 sm:$0xff]  }
  0x51   :  { %2697 = vmatpush3.bf16.msra.mxu1 %v2984_v39  ;;  %2658 = vmatprep.subr.bf16.mxu0 %v2991_v44  ;;  %v3060_v39 = vld [vmem:[%s3881_s0 + $0x1d8] ss:$72 sps:$4 sm:$0xff]  }
  0x52   :  { %2698 = vmatprep.subr.bf16.mxu1 %v2992_v45  ;;  %v3065_v44 = vld [vmem:[%s3882_s1 + $0x378] sm:$0xff]  }
  0x53   :  { %1786 = vmatmul.mubr.bf16.gmra.mrb[24].mxu0 %v2989_v42  ;;  %v3063_v42 = vld [vmem:[%s3882_s1 + $0x330] sm:$0xff]   ;;  %v3066_v45 = vld [vmem:[%s3882_s1 + $0x3f8] sm:$0xff]  }
  0x54   :  { %1851 = vmatmul.mubr.bf16.gmra.mrb[24].mxu1 %v2990_v43  ;;  %2659 = vmatpush3.bf16.msra.mxu0 %v2993_v46  ;;  %v3064_v43 = vld [vmem:[%s3882_s1 + $0x3b0] sm:$0xff]   ;;  %v3067_v46 = vld [vmem:[%s3882_s1 + $0x338] sm:$0xff]  }
  0x55   :  { %2699 = vmatpush3.bf16.msra.mxu1 %v2994_v47  ;;  %2660 = vmatprep.subr.bf16.mxu0 %v2995_v48  ;;  %v3068_v47 = vld [vmem:[%s3882_s1 + $0x3b8] sm:$0xff]  }
  0x56   :  { %2700 = vmatprep.subr.bf16.mxu1 %v2996_v49  ;;  %1793 = vmatprep.mubr.bf16.mxu0 %v2999_v52  ;;  %v3069_v48 = vld [vmem:[%s3881_s0 + $0x30] ss:$72 sps:$4 sm:$0xff]   ;;  %v3071_v49 = vld [vmem:[%s3881_s0 + $0x34] ss:$72 sps:$4 sm:$0xff]   ;;  %v3075_v52 = vld [vmem:[%s3882_s1 + $0x440] sm:$0xff]  }
  0x57   :  { %1858 = vmatprep.mubr.bf16.mxu1 %v3001_v53  ;;  %v3076_v53 = vld [vmem:[%s3882_s1 + $0x400] sm:$0xff]  }
  0x58   :  { %2661 = vmatpush3.bf16.msra.mxu0 %v2997_v50  ;;  %v3072_v50 = vld [vmem:[%s3881_s0 + $0x38] ss:$72 sps:$4 sm:$0xff]  }
  0x59   :  { %2701 = vmatpush3.bf16.msra.mxu1 %v2998_v51  ;;  %2662 = vmatprep.subr.bf16.mxu0 %v3005_v56  ;;  %v3074_v51 = vld [vmem:[%s3881_s0 + $0x3c] ss:$72 sps:$4 sm:$0xff]  }
  0x5a   :  { %2702 = vmatprep.subr.bf16.mxu1 %v3006_v57  ;;  %v3079_v56 = vld [vmem:[%s3881_s0 + $0xc4] ss:$72 sps:$4 sm:$0xff]  }
  0x5b   :  { %1794 = vmatmul.mubr.bf16.gmra.mrb[28].mxu0 %v3003_v54  ;;  %v3077_v54 = vld [vmem:[%s3882_s1 + $0x448] sm:$0xff]  }
  0x5c   :  { %1859 = vmatmul.mubr.bf16.gmra.mrb[28].mxu1 %v3004_v55  ;;  %2663 = vmatpush3.bf16.msra.mxu0 %v3007_v58  ;;  %v3078_v55 = vld [vmem:[%s3882_s1 + $0x408] sm:$0xff]  }
  0x5d   :  { %2703 = vmatpush3.bf16.msra.mxu1 %v3008_v59  ;;  %2664 = vmatprep.subr.bf16.mxu0 %v3009_v60  ;;  %v3081_v57 = vld [vmem:[%s3881_s0 + $0xcc] ss:$72 sps:$4 sm:$0xff]   ;;  %v3083_v58 = vld [vmem:[%s3881_s0 + $0xc0] ss:$72 sps:$4 sm:$0xff]  }
  0x5e   :  { %2704 = vmatprep.subr.bf16.mxu1 %v3010_v61  ;;  %1899 = vmatprep.mubr.bf16.mxu0 %v3015_v1  ;;  %v3084_v59 = vld [vmem:[%s3881_s0 + $0xc8] ss:$72 sps:$4 sm:$0xff]   ;;  %v3091_v1 = vld [vmem:[%s3881_s0 + $0x15c] ss:$72 sps:$4 sm:$0xff]  }
  0x5f   :  { %1964 = vmatprep.mubr.bf16.mxu1 %v3018_v3  ;;  %v3085_v60 = vld [vmem:[%s3882_s1 + $0x450] sm:$0xff]   ;;  %v3095_v3 = vld [vmem:[%s3882_s1 + $0x460] sm:$0xff]  }
  0x60   :  { %2665 = vmatpush3.bf16.msra.mxu0 %v3011_v62  ;;  %v3086_v61 = vld [vmem:[%s3882_s1 + $0x410] sm:$0xff]   ;;  %v3087_v62 = vld [vmem:[%s3882_s1 + $0x458] sm:$0xff]  }
  0x61   :  { %2705 = vmatpush3.bf16.msra.mxu1 %v3012_v63  ;;  %2730 = vmatprep.subr.bf16.mxu0 %v3019_v4  ;;  %v3088_v63 = vld [vmem:[%s3882_s1 + $0x418] sm:$0xff]  }
  0x62   :  { %2770 = vmatprep.subr.bf16.mxu1 %v3020_v5  ;;  %v3094_v4 = vld [vmem:[%s3881_s0 + $0x158] ss:$72 sps:$4 sm:$0xff]  }
  0x63   :  { %1900 = vmatmul.mubr.bf16.vlgmr.msra.gmra.mrb[32].mxu0 %v3013_v0  ;;  %v3089_v0 = vld [vmem:[%s3881_s0 + $0x154] ss:$72 sps:$4 sm:$0xff]   ;;  %v3096_v5 = vld [vmem:[%s3882_s1 + $0x420] sm:$0xff]  }
  0x64   :  { %1965 = vmatmul.mubr.bf16.vlgmr.msra.gmra.mrb[32].mxu1 %v3016_v2  ;;  %2731 = vmatpush3.bf16.msra.mxu0 %v3021_v6  ;;  %v3093_v2 = vld [vmem:[%s3881_s0 + $0x150] ss:$72 sps:$4 sm:$0xff]   ;;  %v3097_v6 = vld [vmem:[%s3882_s1 + $0x468] sm:$0xff]  }
  0x65   :  { %2771 = vmatpush3.bf16.msra.mxu1 %v3022_v7  ;;  %2732 = vmatprep.subr.bf16.mxu0 %v3023_v8  ;;  %v3099_v7 = vld [vmem:[%s3881_s0 + $0x1e4] ss:$72 sps:$4 sm:$0xff]  }
  0x66   :  { %2772 = vmatprep.subr.bf16.mxu1 %v3024_v9  ;;  %1907 = vmatprep.mubr.bf16.mxu0 %v3027_v12  ;;  %v3101_v8 = vld [vmem:[%s3881_s0 + $0x1ec] ss:$72 sps:$4 sm:$0xff]   ;;  %v3104_v12 = vld [vmem:[%s3881_s0 + $0x1e8] ss:$72 sps:$4 sm:$0xff]  }
  0x67   :  { %1972 = vmatprep.mubr.bf16.mxu1 %v3029_v13  ;;  %v3098_v9 = vld [vmem:[%s3882_s1 + $0x428] sm:$0xff]   ;;  %v3106_v13 = vld [vmem:[%s3882_s1 + $0x430] sm:$0xff]  }
  0x68   :  { %2733 = vmatpush3.bf16.msra.mxu0 %v3025_v10  ;;  %v3105_v10 = vld [vmem:[%s3882_s1 + $0x470] sm:$0xff]  }
  0x69   :  { %2773 = vmatpush3.bf16.msra.mxu1 %v3026_v11  ;;  %2734 = vmatprep.subr.bf16.mxu0 %v3033_v16  ;;  %v3103_v11 = vld [vmem:[%s3881_s0 + $0x1e0] ss:$72 sps:$4 sm:$0xff]   ;;  %v3114_v16 = vld [vmem:[%s3881_s0 + $0x164] ss:$72 sps:$4 sm:$0xff]  }
  0x6a   :  { %2774 = vmatprep.subr.bf16.mxu1 %v3034_v17  ;;  %v3108_v17 = vld [vmem:[%s3882_s1 + $0x438] sm:$0xff]  }
  0x6b   :  { %1908 = vmatmul.mubr.bf16.gmra.mrb[36].mxu0 %v3031_v14  ;;  %v3107_v14 = vld [vmem:[%s3882_s1 + $0x478] sm:$0xff]  }
  0x6c   :  { %1973 = vmatmul.mubr.bf16.gmra.mrb[36].mxu1 %v3032_v15  ;;  %2735 = vmatpush3.bf16.msra.mxu0 %v3035_v18  ;;  %v3111_v15 = vld [vmem:[%s3881_s0 + $0x44] ss:$72 sps:$4 sm:$0xff]  }
  0x6d   :  { %2775 = vmatpush3.bf16.msra.mxu1 %v3036_v19  ;;  %2736 = vmatprep.subr.bf16.mxu0 %v3037_v20 }
  0x6e   :  { %2776 = vmatprep.subr.bf16.mxu1 %v3038_v21  ;;  %1915 = vmatprep.mubr.bf16.mxu0 %v3041_v24 }
  0x6f   :  { %1980 = vmatprep.mubr.bf16.mxu1 %v3043_v25 }
  0x70   :  { %2737 = vmatpush3.bf16.msra.mxu0 %v3039_v22 }
  0x71   :  { %2777 = vmatpush3.bf16.msra.mxu1 %v3040_v23  ;;  %2738 = vmatprep.subr.bf16.mxu0 %v3047_v28 }
  0x72   :  { %2778 = vmatprep.subr.bf16.mxu1 %v3048_v29 }
  0x73   :  { %1916 = vmatmul.mubr.bf16.gmra.mrb[40].mxu0 %v3045_v26 }
  0x74   :  { %1981 = vmatmul.mubr.bf16.gmra.mrb[40].mxu1 %v3046_v27  ;;  %2739 = vmatpush3.bf16.msra.mxu0 %v3049_v30 }
  0x75   :  { %2779 = vmatpush3.bf16.msra.mxu1 %v3050_v31  ;;  %2740 = vmatprep.subr.bf16.mxu0 %v3051_v32 }
  0x76   :  { %2780 = vmatprep.subr.bf16.mxu1 %v3052_v33  ;;  %1923 = vmatprep.mubr.bf16.mxu0 %v3055_v36 }
  0x77   :  { %1988 = vmatprep.mubr.bf16.mxu1 %v3057_v37 }
  0x78   :  { %2741 = vmatpush3.bf16.msra.mxu0 %v3053_v34 }
  0x79   :  { %2781 = vmatpush3.bf16.msra.mxu1 %v3054_v35  ;;  %2742 = vmatprep.subr.bf16.mxu0 %v3061_v40 }
  0x7a   :  { %2782 = vmatprep.subr.bf16.mxu1 %v3062_v41 }
  0x7b   :  { %1924 = vmatmul.mubr.bf16.gmra.mrb[44].mxu0 %v3059_v38 }
  0x7c   :  { %1989 = vmatmul.mubr.bf16.gmra.mrb[44].mxu1 %v3060_v39  ;;  %2743 = vmatpush3.bf16.msra.mxu0 %v3063_v42 }
  0x7d   :  { %2783 = vmatpush3.bf16.msra.mxu1 %v3064_v43  ;;  %2744 = vmatprep.subr.bf16.mxu0 %v3065_v44 }
  0x7e   :  { %2784 = vmatprep.subr.bf16.mxu1 %v3066_v45  ;;  %2029 = vmatprep.mubr.bf16.mxu0 %v3071_v49 }
  0x7f   :  { %2094 = vmatprep.mubr.bf16.mxu1 %v3074_v51 }
  0x80   :  { %2745 = vmatpush3.bf16.msra.mxu0 %v3067_v46 }
  0x81   :  { %2785 = vmatpush3.bf16.msra.mxu1 %v3068_v47  ;;  %2810 = vmatprep.subr.bf16.mxu0 %v3075_v52 }
  0x82   :  { %2850 = vmatprep.subr.bf16.mxu1 %v3075_v52 }
  0x83   :  { %2030 = vmatmul.mubr.bf16.vlgmr.msra.gmra.mrb[48].mxu0 %v3069_v48 }
  0x84   :  { %2095 = vmatmul.mubr.bf16.vlgmr.msra.gmra.mrb[48].mxu1 %v3072_v50  ;;  %2811 = vmatpush3.bf16.msra.mxu0 %v3076_v53 }
  0x85   :  { %2858 = vmatpush3.bf16.msra.mxu1 %v3076_v53  ;;  %2812 = vmatprep.subr.bf16.mxu0 %v3077_v54 }
  0x86   :  { %2851 = vmatprep.subr.bf16.mxu1 %v3077_v54  ;;  %2037 = vmatprep.mubr.bf16.mxu0 %v3079_v56 }
  0x87   :  { %2102 = vmatprep.mubr.bf16.mxu1 %v3081_v57 }
  0x88   :  { %2813 = vmatpush3.bf16.msra.mxu0 %v3078_v55 }
  0x89   :  { %2859 = vmatpush3.bf16.msra.mxu1 %v3078_v55  ;;  %2814 = vmatprep.subr.bf16.mxu0 %v3085_v60 }
  0x8a   :  { %2852 = vmatprep.subr.bf16.mxu1 %v3085_v60 }
  0x8b   :  { %2038 = vmatmul.mubr.bf16.gmra.mrb[52].mxu0 %v3083_v58 }
  0x8c   :  { %2103 = vmatmul.mubr.bf16.gmra.mrb[52].mxu1 %v3084_v59  ;;  %2815 = vmatpush3.bf16.msra.mxu0 %v3086_v61 }
  0x8d   :  { %2860 = vmatpush3.bf16.msra.mxu1 %v3086_v61  ;;  %2816 = vmatprep.subr.bf16.mxu0 %v3087_v62 }
  0x8e   :  { %2853 = vmatprep.subr.bf16.mxu1 %v3087_v62  ;;  %2045 = vmatprep.mubr.bf16.mxu0 %v3089_v0 }
  0x8f   :  { %2110 = vmatprep.mubr.bf16.mxu1 %v3091_v1 }
  0x90   :  { %2817 = vmatpush3.bf16.msra.mxu0 %v3088_v63 }
  0x91   :  { %2861 = vmatpush3.bf16.msra.mxu1 %v3088_v63  ;;  %2818 = vmatprep.subr.bf16.mxu0 %v3095_v3 }
  0x92   :  { %2854 = vmatprep.subr.bf16.mxu1 %v3095_v3 }
  0x93   :  { %2046 = vmatmul.mubr.bf16.gmra.mrb[56].mxu0 %v3093_v2 }
  0x94   :  { %2111 = vmatmul.mubr.bf16.gmra.mrb[56].mxu1 %v3094_v4  ;;  %2819 = vmatpush3.bf16.msra.mxu0 %v3096_v5 }
  0x95   :  { %2053 = vmatprep.mubr.bf16.mxu0 %v3099_v7  ;;  %2862 = vmatpush3.bf16.msra.mxu1 %v3096_v5 }
  0x96   :  { %2820 = vmatprep.subr.bf16.mxu0 %v3097_v6  ;;  %2855 = vmatprep.subr.bf16.mxu1 %v3097_v6 }
  0x97   :  { %2118 = vmatprep.mubr.bf16.mxu1 %v3101_v8 }
  0x98   :  { %2821 = vmatpush3.bf16.msra.mxu0 %v3098_v9 }
  0x99   :  { %2863 = vmatpush3.bf16.msra.mxu1 %v3098_v9  ;;  %2822 = vmatprep.subr.bf16.mxu0 %v3105_v10 }
  0x9a   :  { %2856 = vmatprep.subr.bf16.mxu1 %v3105_v10 }
  0x9b   :  { %2054 = vmatmul.mubr.bf16.gmra.mrb[60].mxu0 %v3103_v11 }
  0x9c   :  { %2119 = vmatmul.mubr.bf16.gmra.mrb[60].mxu1 %v3104_v12  ;;  %2159 = vmatprep.mubr.bf16.mxu0 %v3111_v15 }
  0x9d   :  { %2823 = vmatpush3.bf16.msra.mxu0 %v3106_v13  ;;  %2864 = vmatpush3.bf16.msra.mxu1 %v3106_v13 }
  0x9e   :  { %2824 = vmatprep.subr.bf16.mxu0 %v3107_v14  ;;  %2857 = vmatprep.subr.bf16.mxu1 %v3107_v14 }
  0x9f   :  { %2175 = vmatprep.mubr.bf16.mxu1 %v3114_v16 }
  0xa0   :  { %8 = vsyncpa [#allocation3], 0  ;;  %v3109_v18 = vld [vmem:[%s3881_s0 + $0x40] ss:$72 sps:$4 sm:$0xff]   ;;  %v3115_v20 = vld [vmem:[%s3881_s0 + $0xd4] ss:$72 sps:$4 sm:$0xff]  }
  0xa1   :  { %2825 = vmatpush3.bf16.msra.mxu0 %v3108_v17  ;;  %v3112_v19 = vld [vmem:[%s3881_s0 + $0x160] ss:$72 sps:$4 sm:$0xff]   ;;  %2865 = vmatpush3.bf16.msra.mxu1 %v3108_v17  ;;  %v3117_v21 = vld [vmem:[%s3881_s0 + $0x1f4] ss:$72 sps:$4 sm:$0xff]   ;;  %v3119_v22 = vld [vmem:[%s3881_s0 + $0xd0] ss:$72 sps:$4 sm:$0xff]  }
  0xa2   :  { %v3120_v23 = vld [vmem:[%s3881_s0 + $0x1f0] ss:$72 sps:$4 sm:$0xff]   ;;  %v2257_v26 = vld [vmem:[%s3883_s2] ss:$0 sm:$0xff]  ;;  %vm2232_vm0 = vcmask 781312   ;;  %s3145_s0 = smov [#allocation2]  }
  0xa3   :  { %s2246_s2 = sshll.u32 %s3145_s0, 4  ;;  %s2247_s2 = int_to_ptr.vmem [resolvable:$true] %s2246_s2 }
  0xa4   :  { %2160 = vmatmul.mubr.bf16.vlgmr.msra.gmra.mrb[64].mxu0 %v3109_v18  ;;  %2176 = vmatmul.mubr.bf16.vlgmr.msra.gmra.mrb[64].mxu1 %v3112_v19  ;;  %s3121_s13 = scalar_lea.vmem %s2247_s2, 512  ;;  %p3126_p1 = scmp.lt.s32.totalorder %s2247_s2, %s2247_s2 }
  0xa5   :  { %2167 = vmatprep.mubr.bf16.mxu0 %v3115_v20  ;;  %2183 = vmatprep.mubr.bf16.mxu1 %v3117_v21  ;;  %p3122_p0 = scmp.ne.s32.totalorder %s2247_s2, %s3121_s13  ;;  %p3127_p2 = scmp.lt.s32.totalorder %s3121_s13, %s3121_s13 }
  0xa7   :  { %p3128_p3 = por %p3127_p2, %p3126_p1 }
  0xa9   :  { %p3129_p4 = pnand %p3128_p3, %p3122_p0 }
  0xac   :  { %2168 = vmatmul.mubr.bf16.gmra.mrb[68].mxu0 %v3119_v22  ;;  %2184 = vmatmul.mubr.bf16.gmra.mrb[68].mxu1 %v3120_v23 }
  0xf6   :  { %v2506_v24 = vpop.f32.mrb[0].mxu0 }
  0xf7   :  { %v2546_v25 = vpop.f32.mrb[0].mxu1  ;;  %v2507_v27 = vpop.f32.mrb[1].mxu0 }
  0xf8   :  { %v2508_v28 = vadd.f32 %v2507_v27, %v2506_v24  ;;  %v2547_v29 = vpop.f32.mrb[1].mxu1  ;;  %v2509_v30 = vpop.f32.mrb[2].mxu0 }
  0xf9   :  { %v2548_v31 = vadd.f32 %v2547_v29, %v2546_v25  ;;  %v2549_v32 = vpop.f32.mrb[2].mxu1  ;;  %v2510_v33 = vpop.f32.mrb[3].mxu0 }
  0xfa   :  { %v1642_v34 = vadd.f32 %v2508_v28, %v2257_v26  ;;  %v2511_v35 = vadd.f32 %v2510_v33, %v2509_v30  ;;  %v2550_v36 = vpop.f32.mrb[3].mxu1 }
  0xfb   :  { %v2551_v37 = vadd.f32 %v2550_v36, %v2549_v32 }
  0xfc   :  { %v1707_v38 = vadd.f32 %v2548_v31, %v1642_v34  ;;  %v1645_v39 = vadd.f32 %v2511_v35, %v2257_v26 }
  0xfe   :  { %v1710_v40 = vadd.f32 %v2551_v37, %v1645_v39  ;;  %v2512_v41 = vpop.f32.mrb[4].mxu0 }
  0xff   :  { %v2552_v42 = vpop.f32.mrb[4].mxu1  ;;  %v2513_v43 = vpop.f32.mrb[5].mxu0 }
 0x100   :  { %v2514_v44 = vadd.f32 %v2513_v43, %v2512_v41  ;;  %v2553_v45 = vpop.f32.mrb[5].mxu1  ;;  %v2515_v46 = vpop.f32.mrb[6].mxu0 }
 0x101   :  { %v2554_v47 = vadd.f32 %v2553_v45, %v2552_v42  ;;  %v2555_v48 = vpop.f32.mrb[6].mxu1  ;;  %v2516_v49 = vpop.f32.mrb[7].mxu0 }
 0x102   :  { %v1650_v50 = vadd.f32 %v2514_v44, %v2257_v26  ;;  %v2517_v51 = vadd.f32 %v2516_v49, %v2515_v46  ;;  %v2556_v52 = vpop.f32.mrb[7].mxu1 }
 0x103   :  { %v2557_v53 = vadd.f32 %v2556_v52, %v2555_v48 }
 0x104   :  { %v1715_v54 = vadd.f32 %v2554_v47, %v1650_v50  ;;  %v1653_v55 = vadd.f32 %v2517_v51, %v2257_v26 }
 0x106   :  { %v3819_v56 = vadd.f32 %v2557_v53, %v1653_v55  ;;  %v2518_v57 = vpop.f32.mrb[8].mxu0 }
 0x107   :  { %v2558_v58 = vpop.f32.mrb[8].mxu1  ;;  %v2519_v59 = vpop.f32.mrb[9].mxu0 }
 0x108   :  { %v2520_v60 = vadd.f32 %v2519_v59, %v2518_v57  ;;  %v2559_v61 = vpop.f32.mrb[9].mxu1  ;;  %v2521_v62 = vpop.f32.mrb[10].mxu0 }
 0x109   :  { %v2560_v63 = vadd.f32 %v2559_v61, %v2558_v58  ;;  %v2561_v0 = vpop.f32.mrb[10].mxu1  ;;  %v2522_v1 = vpop.f32.mrb[11].mxu0 }
 0x10a   :  { %v1658_v2 = vadd.f32 %v2520_v60, %v2257_v26  ;;  %v2523_v3 = vadd.f32 %v2522_v1, %v2521_v62  ;;  %v2562_v4 = vpop.f32.mrb[11].mxu1 }
 0x10b   :  { %v2563_v5 = vadd.f32 %v2562_v4, %v2561_v0 }
 0x10c   :  { %v1723_v6 = vadd.f32 %v2560_v63, %v1658_v2  ;;  %v1661_v7 = vadd.f32 %v2523_v3, %v2257_v26 }
 0x10e   :  { %v3821_v8 = vadd.f32 %v2563_v5, %v1661_v7  ;;  %v2524_v9 = vpop.f32.mrb[12].mxu0 }
 0x10f   :  { %v2564_v10 = vpop.f32.mrb[12].mxu1  ;;  %v2525_v11 = vpop.f32.mrb[13].mxu0 }
 0x110   :  { %v2565_v12 = vpop.f32.mrb[13].mxu1  ;;  %v2526_v13 = vadd.f32 %v2525_v11, %v2524_v9  ;;  %v2527_v15 = vpop.f32.mrb[14].mxu0 }
 0x111   :  { %v2566_v14 = vadd.f32 %v2565_v12, %v2564_v10  ;;  %v2567_v16 = vpop.f32.mrb[14].mxu1  ;;  %v2528_v17 = vpop.f32.mrb[15].mxu0 }
 0x112   :  { %v2568_v18 = vpop.f32.mrb[15].mxu1  ;;  %v1666_v19 = vadd.f32 %v2526_v13, %v2257_v26  ;;  %v2529_v20 = vadd.f32 %v2528_v17, %v2527_v15 }
 0x113   :  { %v2569_v21 = vadd.f32 %v2568_v18, %v2567_v16 }
 0x114   :  { %v1731_v22 = vadd.f32 %v2566_v14, %v1666_v19  ;;  %v1669_v23 = vadd.f32 %v2529_v20, %v2257_v26 }
 0x116   :  { %v3823_v24 = vadd.f32 %v2569_v21, %v1669_v23  ;;  %v2586_v25 = vpop.f32.mrb[16].mxu0 }
 0x117   :  { %v2587_v27 = vpop.f32.mrb[17].mxu0  ;;  %v2626_v28 = vpop.f32.mrb[16].mxu1 }
 0x118   :  { %v2588_v29 = vadd.f32 %v2587_v27, %v2586_v25  ;;  %v2589_v30 = vpop.f32.mrb[18].mxu0  ;;  %v2627_v31 = vpop.f32.mrb[17].mxu1 }
 0x119   :  { %v2590_v32 = vpop.f32.mrb[19].mxu0  ;;  %v2628_v34 = vadd.f32 %v2627_v31, %v2626_v28  ;;  %v2629_v35 = vpop.f32.mrb[18].mxu1 }
 0x11a   :  { %v1772_v33 = vadd.f32 %v2588_v29, %v1707_v38  ;;  %v2591_v36 = vadd.f32 %v2590_v32, %v2589_v30  ;;  %v2630_v37 = vpop.f32.mrb[19].mxu1 }
 0x11b   :  { %v2631_v42 = vadd.f32 %v2630_v37, %v2629_v35 }
 0x11c   :  { %v1837_v39 = vadd.f32 %v2628_v34, %v1772_v33  ;;  %v1775_v41 = vadd.f32 %v2591_v36, %v1710_v40 }
 0x11e   :  { %v3825_v43 = vadd.f32 %v2631_v42, %v1775_v41  ;;  %v2592_v26 = vpop.f32.mrb[20].mxu0 }
 0x11f   :  { %v2632_v44 = vpop.f32.mrb[20].mxu1  ;;  %v2593_v45 = vpop.f32.mrb[21].mxu0 }
 0x120   :  { %v2594_v46 = vadd.f32 %v2593_v45, %v2592_v26  ;;  %v2633_v47 = vpop.f32.mrb[21].mxu1  ;;  %v2595_v48 = vpop.f32.mrb[22].mxu0 }
 0x121   :  { %v2634_v49 = vadd.f32 %v2633_v47, %v2632_v44  ;;  %v2635_v50 = vpop.f32.mrb[22].mxu1  ;;  %v2596_v51 = vpop.f32.mrb[23].mxu0 }
 0x122   :  { %v1780_v52 = vadd.f32 %v2594_v46, %v1715_v54  ;;  %v2597_v38 = vadd.f32 %v2596_v51, %v2595_v48  ;;  %v2636_v53 = vpop.f32.mrb[23].mxu1 }
 0x123   :  { %v2637_v55 = vadd.f32 %v2636_v53, %v2635_v50 }
 0x124   :  { %v1845_v57 = vadd.f32 %v2634_v49, %v1780_v52  ;;  %v1783_v58 = vadd.f32 %v2597_v38, %v3819_v56 }
 0x126   :  { %v3828_v40 = vadd.f32 %v2637_v55, %v1783_v58  ;;  %v2598_v59 = vpop.f32.mrb[24].mxu0 }
 0x127   :  { %v2638_v60 = vpop.f32.mrb[24].mxu1  ;;  %v2599_v61 = vpop.f32.mrb[25].mxu0 }
 0x128   :  { %v2639_v62 = vpop.f32.mrb[25].mxu1  ;;  %v2600_v63 = vadd.f32 %v2599_v61, %v2598_v59  ;;  %v2601_v1 = vpop.f32.mrb[26].mxu0 }
 0x129   :  { %v2640_v0 = vadd.f32 %v2639_v62, %v2638_v60  ;;  %v2641_v2 = vpop.f32.mrb[26].mxu1  ;;  %v2602_v3 = vpop.f32.mrb[27].mxu0 }
 0x12a   :  { %v2642_v4 = vpop.f32.mrb[27].mxu1  ;;  %v1788_v5 = vadd.f32 %v2600_v63, %v1723_v6  ;;  %v2603_v54 = vadd.f32 %v2602_v3, %v2601_v1 }
 0x12b   :  { %v2643_v7 = vadd.f32 %v2642_v4, %v2641_v2 }
 0x12c   :  { %v1853_v9 = vadd.f32 %v2640_v0, %v1788_v5  ;;  %v1791_v10 = vadd.f32 %v2603_v54, %v3821_v8 }
 0x12e   :  { %v3831_v11 = vadd.f32 %v2643_v7, %v1791_v10  ;;  %v2604_v56 = vpop.f32.mrb[28].mxu0 }
 0x12f   :  { %v2644_v12 = vpop.f32.mrb[28].mxu1  ;;  %v2605_v13 = vpop.f32.mrb[29].mxu0 }
 0x130   :  { %v2606_v14 = vadd.f32 %v2605_v13, %v2604_v56  ;;  %v2645_v15 = vpop.f32.mrb[29].mxu1  ;;  %v2607_v16 = vpop.f32.mrb[30].mxu0 }
 0x131   :  { %v2646_v17 = vadd.f32 %v2645_v15, %v2644_v12  ;;  %v2647_v18 = vpop.f32.mrb[30].mxu1  ;;  %v2608_v19 = vpop.f32.mrb[31].mxu0 }
 0x132   :  { %v1796_v20 = vadd.f32 %v2606_v14, %v1731_v22  ;;  %v2609_v21 = vadd.f32 %v2608_v19, %v2607_v16  ;;  %v2648_v23 = vpop.f32.mrb[31].mxu1 }
 0x133   :  { %v2649_v6 = vadd.f32 %v2648_v23, %v2647_v18 }
 0x134   :  { %v1861_v25 = vadd.f32 %v2646_v17, %v1796_v20  ;;  %v1799_v27 = vadd.f32 %v2609_v21, %v3823_v24 }
 0x136   :  { %v3834_v28 = vadd.f32 %v2649_v6, %v1799_v27  ;;  %v2666_v8 = vpop.f32.mrb[32].mxu0 }
 0x137   :  { %v2706_v29 = vpop.f32.mrb[32].mxu1  ;;  %v2667_v30 = vpop.f32.mrb[33].mxu0 }
 0x138   :  { %v2668_v31 = vadd.f32 %v2667_v30, %v2666_v8  ;;  %v2707_v32 = vpop.f32.mrb[33].mxu1  ;;  %v2669_v33 = vpop.f32.mrb[34].mxu0 }
 0x139   :  { %v2708_v34 = vadd.f32 %v2707_v32, %v2706_v29  ;;  %v2709_v35 = vpop.f32.mrb[34].mxu1  ;;  %v2670_v36 = vpop.f32.mrb[35].mxu0 }
 0x13a   :  { %v1902_v37 = vadd.f32 %v2668_v31, %v1837_v39  ;;  %v2671_v41 = vadd.f32 %v2670_v36, %v2669_v33  ;;  %v2710_v22 = vpop.f32.mrb[35].mxu1 }
 0x13b   :  { %v2711_v42 = vadd.f32 %v2710_v22, %v2709_v35 }
 0x13c   :  { %v1967_v26 = vadd.f32 %v2708_v34, %v1902_v37  ;;  %v1905_v44 = vadd.f32 %v2671_v41, %v3825_v43 }
 0x13e   :  { %v3837_v45 = vadd.f32 %v2711_v42, %v1905_v44  ;;  %v2672_v24 = vpop.f32.mrb[36].mxu0 }
 0x13f   :  { %v2712_v46 = vpop.f32.mrb[36].mxu1  ;;  %v2673_v47 = vpop.f32.mrb[37].mxu0 }
 0x140   :  { %v2713_v48 = vpop.f32.mrb[37].mxu1  ;;  %v2674_v49 = vadd.f32 %v2673_v47, %v2672_v24  ;;  %v2675_v51 = vpop.f32.mrb[38].mxu0 }
 0x141   :  { %v2714_v50 = vadd.f32 %v2713_v48, %v2712_v46  ;;  %v2715_v52 = vpop.f32.mrb[38].mxu1  ;;  %v2676_v38 = vpop.f32.mrb[39].mxu0 }
 0x142   :  { %v2716_v53 = vpop.f32.mrb[39].mxu1  ;;  %v1910_v55 = vadd.f32 %v2674_v49, %v1845_v57  ;;  %v2677_v39 = vadd.f32 %v2676_v38, %v2675_v51 }
 0x143   :  { %v2717_v58 = vadd.f32 %v2716_v53, %v2715_v52 }
 0x144   :  { %v1975_v59 = vadd.f32 %v2714_v50, %v1910_v55  ;;  %v1913_v60 = vadd.f32 %v2677_v39, %v3828_v40 }
 0x146   :  { %v3840_v61 = vadd.f32 %v2717_v58, %v1913_v60  ;;  %v2678_v43 = vpop.f32.mrb[40].mxu0 }
 0x147   :  { %v2718_v62 = vpop.f32.mrb[40].mxu1  ;;  %v2679_v63 = vpop.f32.mrb[41].mxu0 }
 0x148   :  { %v2680_v0 = vadd.f32 %v2679_v63, %v2678_v43  ;;  %v2719_v1 = vpop.f32.mrb[41].mxu1  ;;  %v2681_v2 = vpop.f32.mrb[42].mxu0 }
 0x149   :  { %v2720_v3 = vadd.f32 %v2719_v1, %v2718_v62  ;;  %v2721_v4 = vpop.f32.mrb[42].mxu1  ;;  %v2682_v5 = vpop.f32.mrb[43].mxu0 }
 0x14a   :  { %v1918_v54 = vadd.f32 %v2680_v0, %v1853_v9  ;;  %v2683_v7 = vadd.f32 %v2682_v5, %v2681_v2  ;;  %v2722_v10 = vpop.f32.mrb[43].mxu1 }
 0x14b   :  { %v2723_v57 = vadd.f32 %v2722_v10, %v2721_v4 }
 0x14c   :  { %v1983_v56 = vadd.f32 %v2720_v3, %v1918_v54  ;;  %v1921_v12 = vadd.f32 %v2683_v7, %v3831_v11 }
 0x14e   :  { %v3843_v13 = vadd.f32 %v2723_v57, %v1921_v12  ;;  %v2684_v40 = vpop.f32.mrb[44].mxu0 }
 0x14f   :  { %v2724_v14 = vpop.f32.mrb[44].mxu1  ;;  %v2685_v15 = vpop.f32.mrb[45].mxu0 }
 0x150   :  { %v2686_v16 = vadd.f32 %v2685_v15, %v2684_v40  ;;  %v2725_v17 = vpop.f32.mrb[45].mxu1  ;;  %v2687_v18 = vpop.f32.mrb[46].mxu0 }
 0x151   :  { %v2726_v19 = vadd.f32 %v2725_v17, %v2724_v14  ;;  %v2727_v20 = vpop.f32.mrb[46].mxu1  ;;  %v2688_v21 = vpop.f32.mrb[47].mxu0 }
 0x152   :  { %v1926_v23 = vadd.f32 %v2686_v16, %v1861_v25  ;;  %v2689_v6 = vadd.f32 %v2688_v21, %v2687_v18  ;;  %v2728_v9 = vpop.f32.mrb[47].mxu1 }
 0x153   :  { %v2729_v27 = vadd.f32 %v2728_v9, %v2727_v20 }
 0x154   :  { %v1991_v8 = vadd.f32 %v2726_v19, %v1926_v23  ;;  %v1929_v29 = vadd.f32 %v2689_v6, %v3834_v28 }
 0x156   :  { %v3846_v30 = vadd.f32 %v2729_v27, %v1929_v29  ;;  %v2746_v11 = vpop.f32.mrb[48].mxu0 }
 0x157   :  { %v2786_v31 = vpop.f32.mrb[48].mxu1  ;;  %v2747_v32 = vpop.f32.mrb[49].mxu0 }
 0x158   :  { %v2748_v33 = vadd.f32 %v2747_v32, %v2746_v11  ;;  %v2787_v34 = vpop.f32.mrb[49].mxu1  ;;  %v2749_v35 = vpop.f32.mrb[50].mxu0 }
 0x159   :  { %v2788_v36 = vadd.f32 %v2787_v34, %v2786_v31  ;;  %v2789_v37 = vpop.f32.mrb[50].mxu1  ;;  %v2750_v41 = vpop.f32.mrb[51].mxu0 }
 0x15a   :  { %v2032_v22 = vadd.f32 %v2748_v33, %v1967_v26  ;;  %v2751_v42 = vadd.f32 %v2750_v41, %v2749_v35  ;;  %v2790_v25 = vpop.f32.mrb[51].mxu1 }
 0x15b   :  { %v2791_v44 = vadd.f32 %v2790_v25, %v2789_v37 }
 0x15c   :  { %v2097_v24 = vadd.f32 %v2788_v36, %v2032_v22  ;;  %v2035_v46 = vadd.f32 %v2751_v42, %v3837_v45 }
 0x15e   :  { %v3849_v47 = vadd.f32 %v2791_v44, %v2035_v46  ;;  %v2752_v28 = vpop.f32.mrb[52].mxu0 }
 0x15f   :  { %v2792_v48 = vpop.f32.mrb[52].mxu1  ;;  %v2753_v49 = vpop.f32.mrb[53].mxu0 }
 0x160   :  { %v2754_v50 = vadd.f32 %v2753_v49, %v2752_v28  ;;  %v2793_v51 = vpop.f32.mrb[53].mxu1  ;;  %v2755_v52 = vpop.f32.mrb[54].mxu0 }
 0x161   :  { %v2794_v38 = vadd.f32 %v2793_v51, %v2792_v48  ;;  %v2795_v53 = vpop.f32.mrb[54].mxu1  ;;  %v2756_v55 = vpop.f32.mrb[55].mxu0 }
 0x162   :  { %v2040_v39 = vadd.f32 %v2754_v50, %v1975_v59  ;;  %v2757_v58 = vadd.f32 %v2756_v55, %v2755_v52  ;;  %v2796_v26 = vpop.f32.mrb[55].mxu1 }
 0x163   :  { %v2797_v60 = vadd.f32 %v2796_v26, %v2795_v53 }
 0x164   :  { %v3851_v43 = vadd.f32 %v2794_v38, %v2040_v39  ;;  %v2043_v62 = vadd.f32 %v2757_v58, %v3840_v61 }
 0x166   :  { %v3854_v45 = vadd.f32 %v2797_v60, %v2043_v62  ;;  %v2758_v63 = vpop.f32.mrb[56].mxu0 }
 0x167   :  { %v2798_v0 = vpop.f32.mrb[56].mxu1  ;;  %v2759_v1 = vpop.f32.mrb[57].mxu0 }
 0x168   :  { %v2760_v2 = vadd.f32 %v2759_v1, %v2758_v63  ;;  %v2799_v3 = vpop.f32.mrb[57].mxu1  ;;  %v2761_v4 = vpop.f32.mrb[58].mxu0 }
 0x169   :  { %v2800_v5 = vadd.f32 %v2799_v3, %v2798_v0  ;;  %v2801_v54 = vpop.f32.mrb[58].mxu1  ;;  %v2762_v7 = vpop.f32.mrb[59].mxu0 }
 0x16a   :  { %v2048_v10 = vadd.f32 %v2760_v2, %v1983_v56  ;;  %v2763_v59 = vadd.f32 %v2762_v7, %v2761_v4  ;;  %v2802_v57 = vpop.f32.mrb[59].mxu1 }
 0x16b   :  { %v2803_v12 = vadd.f32 %v2802_v57, %v2801_v54 }
 0x16c   :  { %v2113_v40 = vadd.f32 %v2800_v5, %v2048_v10  ;;  %v2051_v14 = vadd.f32 %v2763_v59, %v3843_v13 }
 0x16e   :  { %v2116_v15 = vadd.f32 %v2803_v12, %v2051_v14  ;;  %v2764_v61 = vpop.f32.mrb[60].mxu0 }
 0x16f   :  { %v2804_v16 = vpop.f32.mrb[60].mxu1  ;;  %v2765_v17 = vpop.f32.mrb[61].mxu0 }
 0x170   :  { %v2766_v18 = vadd.f32 %v2765_v17, %v2764_v61  ;;  %v2805_v19 = vpop.f32.mrb[61].mxu1  ;;  %v2767_v20 = vpop.f32.mrb[62].mxu0 }
 0x171   :  { %v2806_v21 = vadd.f32 %v2805_v19, %v2804_v16  ;;  %v2807_v23 = vpop.f32.mrb[62].mxu1  ;;  %v2768_v6 = vpop.f32.mrb[63].mxu0 }
 0x172   :  { %v2056_v9 = vadd.f32 %v2766_v18, %v1991_v8  ;;  %v2769_v27 = vadd.f32 %v2768_v6, %v2767_v20  ;;  %v2808_v29 = vpop.f32.mrb[63].mxu1 }
 0x173   :  { %v2809_v56 = vadd.f32 %v2808_v29, %v2807_v23 }
 0x174   :  { %v2121_v11 = vadd.f32 %v2806_v21, %v2056_v9  ;;  %v2059_v31 = vadd.f32 %v2769_v27, %v3846_v30 }
 0x176   :  { %v2124_v32 = vadd.f32 %v2809_v56, %v2059_v31 }
 0x177   :  { %v2826_v33 = vpop.f32.mrb[64].mxu0  ;;  %v2838_v13 = vpop.f32.mrb[64].mxu1 }
 0x178   :  { %v2827_v34 = vpop.f32.mrb[65].mxu0  ;;  %v2839_v36 = vpop.f32.mrb[65].mxu1 }
 0x179   :  { %v2828_v35 = vadd.f32 %v2827_v34, %v2826_v33  ;;  %v2829_v37 = vpop.f32.mrb[66].mxu0  ;;  %v2840_v41 = vadd.f32 %v2839_v36, %v2838_v13  ;;  %v2841_v22 = vpop.f32.mrb[66].mxu1 }
 0x17a   :  { %v2830_v42 = vpop.f32.mrb[67].mxu0  ;;  %v2842_v46 = vpop.f32.mrb[67].mxu1 }
 0x17b   :  { %v2162_v25 = vadd.f32 %v2828_v35, %v2097_v24  ;;  %v2831_v44 = vadd.f32 %v2830_v42, %v2829_v37  ;;  %v2178_v8 = vadd.f32 %v2840_v41, %v2113_v40  ;;  %v2843_v28 = vadd.f32 %v2842_v46, %v2841_v22 }
 0x17d   :  { %v2192_v48 = vmax.f32 %v2162_v25, 0.0  ;;  %v2165_v49 = vadd.f32 %v2831_v44, %v3849_v47  ;;  %v2196_v30 = vmax.f32 %v2178_v8, 0.0  ;;  %v2181_v50 = vadd.f32 %v2843_v28, %v2116_v15 }
 0x17f   :  { %v2482_v51 = vpack.c.bf16 %v2192_v48, %v2192_v48  ;;  %v2193_v52 = vmax.f32 %v2165_v49, 0.0  ;;  %v2832_v38 = vpop.f32.mrb[68].mxu0  ;;  %v2486_v53 = vpack.c.bf16 %v2196_v30, %v2196_v30  ;;  %v2197_v55 = vmax.f32 %v2181_v50, 0.0  ;;  %v2844_v39 = vpop.f32.mrb[68].mxu1 }
 0x180   :  { %v2833_v58 = vpop.f32.mrb[69].mxu0  ;;  %v2845_v60 = vpop.f32.mrb[69].mxu1 }
 0x181   :  { %2233 = vst.msk [vmem:[#allocation2] sm:$0xf] %vm2232_vm0, %v2482_v51  ;;  %v2483_v24 = vpack.c.bf16 %v2193_v52, %v2193_v52  ;;  %v2834_v26 = vadd.f32 %v2833_v58, %v2832_v38  ;;  %v2835_v62 = vpop.f32.mrb[70].mxu0  ;;  %2237 = vst.msk [vmem:[#allocation2 + $0x10] sm:$0xf] %vm2232_vm0, %v2486_v53  ;;  %v2487_v63 = vpack.c.bf16 %v2197_v55, %v2197_v55  ;;  %v2847_v0 = vpop.f32.mrb[70].mxu1 }
 0x182   :  { %v2846_v47 = vadd.f32 %v2845_v60, %v2844_v39  ;;  %v2836_v1 = vpop.f32.mrb[71].mxu0  ;;  %v2848_v4 = vpop.f32.mrb[71].mxu1 }
 0x183   :  { %2234 = vst.msk [vmem:[#allocation2 + $0x4] sm:$0xf] %vm2232_vm0, %v2483_v24  ;;  %v2170_v2 = vadd.f32 %v2834_v26, %v3851_v43  ;;  %v2837_v3 = vadd.f32 %v2836_v1, %v2835_v62  ;;  %2238 = vst.msk [vmem:[#allocation2 + $0x14] sm:$0xf] %vm2232_vm0, %v2487_v63  ;;  %v2849_v54 = vadd.f32 %v2848_v4, %v2847_v0 }
 0x184   :  { %v2186_v5 = vadd.f32 %v2846_v47, %v2121_v11 }
 0x185   :  { %v2194_v7 = vmax.f32 %v2170_v2, 0.0  ;;  %v2173_v10 = vadd.f32 %v2837_v3, %v3854_v45  ;;  %v2189_v57 = vadd.f32 %v2849_v54, %v2124_v32 }
 0x186   :  { %v2198_v59 = vmax.f32 %v2186_v5, 0.0 }
 0x187   :  { %v2484_v12 = vpack.c.bf16 %v2194_v7, %v2194_v7  ;;  %v2195_v40 = vmax.f32 %v2173_v10, 0.0  ;;  %v2199_v15 = vmax.f32 %v2189_v57, 0.0 }
 0x188   :  { %v2488_v14 = vpack.c.bf16 %v2198_v59, %v2198_v59 }
 0x189   :  { %2235 = vst.msk [vmem:[#allocation2 + $0x8] sm:$0xf] %vm2232_vm0, %v2484_v12  ;;  %v2485_v43 = vpack.c.bf16 %v2195_v40, %v2195_v40  ;;  %v2489_v61 = vpack.c.bf16 %v2199_v15, %v2199_v15 }
 0x18a   :  { %2239 = vst.msk [vmem:[#allocation2 + $0x18] sm:$0xf] %vm2232_vm0, %v2488_v14 }
 0x18b   :  { %2236 = vst.msk [vmem:[#allocation2 + $0xc] sm:$0xf] %vm2232_vm0, %v2485_v43  ;;  %2240 = vst.msk [vmem:[#allocation2 + $0x1c] sm:$0xf] %vm2232_vm0, %v2489_v61 }
 0x18c   :  { %3132 = shalt.err (!%p3129_p4)
}
 0x18d   :  { %s3133_s16 = scalar_lea.hbm %s3884_s3, 512 }
 0x18e   :  { %p3134_p5 = scmp.ne.s32.totalorder %s3884_s3, %s3133_s16  ;;  %p3137_p6 = scmp.lt.u32.totalorder %s3133_s16, %s3884_s3 }
 0x190   :  { %p3139_p7 = pnand %p3137_p6, %p3134_p5 }
 0x192   :  { %3142 = shalt.err (!%p3139_p7)
}
 0x193   :  { %s3146_s21 = smov 64   ;;  %s3147_s22 = smov 4  }
 0x194   :  { %2252 = dma.vmem_to_hbm [thread:$0]  %s2247_s2, 512, %s3884_s3, [#allocation3], %s3146_s21, %s3146_s21, %s3147_s22  }
 0x195   :  { %3143 = dma.done.wait [#allocation3], 512  }
 0x196   :  { %3144 = vsyncadd [#allocation3], 4294966784 }
 0x197   :  { %2256 = vsyncpa [#allocation3], 1 }

</bundles_post_ra>
